<compile_context>
chip_gen: v5e
topology: v5e:2x2
jax: 0.10.0
libtpu: 0.0.40
codegen_flags: <defaults>
</compile_context>

<pallas_src>
import jax
import jax.numpy as jnp
from jax.experimental import pallas as pl
from jax.experimental.pallas import tpu as pltpu


def _basic_block_kernel(x_ref, w1_ref, s1_ref, b1_ref, w2_ref, s2_ref, b2_ref,
                        out_ref, xpad_ref, hpad_ref, col_ref):
    # x_ref / out_ref : (1, H, W, Cp) f32
    # w*_ref          : (9*Cp, Cp)    bf16  (reshaped (kh, kw, cin) x cout)
    # s*/b*_ref       : (1, Cp)       f32   (folded BatchNorm)
    # xpad/hpad_ref   : (H+2, W+2, Cp) f32 scratch (zero halo applied in-kernel)
    # col_ref         : (H*W, 9*Cp)   bf16 scratch (im2col buffer, reused)
    H, W, Cp = out_ref.shape[1], out_ref.shape[2], out_ref.shape[3]
    x = x_ref[0]                                    # (H, W, Cp) f32 (residual)

    def im2col(src_ref):
        # Column block t = kh*3 + kw holds src[h+kh, w+kw, :] for each output
        # pixel -- matches the row-major (3,3,Cp,Cp)->(9*Cp,Cp) weight reshape.
        for kh in range(3):
            for kw in range(3):
                t = kh * 3 + kw
                win = src_ref[pl.ds(kh, H), pl.ds(kw, W), :]
                col_ref[:, pl.ds(t * Cp, Cp)] = (
                    win.reshape(H * W, Cp).astype(jnp.bfloat16))

    # ---- stage 1: conv3x3 + bn1 + relu (result stays in VMEM) ----
    xpad_ref[...] = jnp.zeros_like(xpad_ref)
    xpad_ref[pl.ds(1, H), pl.ds(1, W), :] = x
    im2col(xpad_ref)
    acc1 = jnp.dot(col_ref[...], w1_ref[...],
                   preferred_element_type=jnp.float32)         # (H*W, Cp)
    h = jnp.maximum(acc1 * s1_ref[...] + b1_ref[...], 0.0)     # f32 epilogue

    # ---- stage 2: conv3x3 + bn2 + residual add + relu ----
    hpad_ref[...] = jnp.zeros_like(hpad_ref)
    hpad_ref[pl.ds(1, H), pl.ds(1, W), :] = h.reshape(H, W, Cp)
    im2col(hpad_ref)
    acc2 = jnp.dot(col_ref[...], w2_ref[...],
                   preferred_element_type=jnp.float32)         # (H*W, Cp)
    y = (acc2 * s2_ref[...] + b2_ref[...]).reshape(H, W, Cp) + x
    out_ref[0] = jnp.maximum(y, 0.0)


def _round_up(n, m):
    return (n + m - 1) // m * m


def _fold_bn(gamma, beta, mean, var, cp, eps=1e-5):
    scale = gamma / jnp.sqrt(var + eps)
    bias = beta - mean * scale
    pad = cp - scale.shape[0]
    scale = jnp.pad(scale, (0, pad)).reshape(1, cp)
    bias = jnp.pad(bias, (0, pad)).reshape(1, cp)
    return scale.astype(jnp.float32), bias.astype(jnp.float32)


def _pack_weight(w, cp):
    # (3, 3, Cin, Cout) -> zero-pad channels to cp -> (9*cp, cp) bf16
    _, _, cin, cout = w.shape
    w = jnp.pad(w, ((0, 0), (0, 0), (0, cp - cin), (0, cp - cout)))
    return w.reshape(9 * cp, cp).astype(jnp.bfloat16)


@jax.jit
def basic_block_forward(x_nchw, params):
    """BasicBlock forward. x_nchw: (B, C, H, W) float32 (PyTorch layout)."""
    x = jnp.transpose(x_nchw, (0, 2, 3, 1)).astype(jnp.float32)   # NCHW->NHWC
    B, H, W, C = x.shape
    Cp = _round_up(C, 128)                    # lane-dense channel layout
    xp = jnp.pad(x, ((0, 0), (0, 0), (0, 0), (0, Cp - C)))

    w1 = _pack_weight(params["w1"], Cp)
    w2 = _pack_weight(params["w2"], Cp)
    s1, b1 = _fold_bn(params["bn1_gamma"], params["bn1_beta"],
                      params["bn1_mean"], params["bn1_var"], Cp)
    s2, b2 = _fold_bn(params["bn2_gamma"], params["bn2_beta"],
                      params["bn2_mean"], params["bn2_var"], Cp)

    batched = pl.BlockSpec((1, H, W, Cp), lambda b: (b, 0, 0, 0))
    resident = lambda shape: pl.BlockSpec(shape, lambda b: (0,) * len(shape))

    out = pl.pallas_call(
        _basic_block_kernel,
        out_shape=jax.ShapeDtypeStruct((B, H, W, Cp), jnp.float32),
        grid=(B,),
        in_specs=[
            batched,                        # x (conv input + f32 residual)
            resident((9 * Cp, Cp)),         # w1 (bf16), resident across grid
            resident((1, Cp)),              # bn1 scale
            resident((1, Cp)),              # bn1 bias
            resident((9 * Cp, Cp)),         # w2 (bf16), resident across grid
            resident((1, Cp)),              # bn2 scale
            resident((1, Cp)),              # bn2 bias
        ],
        out_specs=batched,
        scratch_shapes=[
            pltpu.VMEM((H + 2, W + 2, Cp), jnp.float32),    # zero-padded x
            pltpu.VMEM((H + 2, W + 2, Cp), jnp.float32),    # zero-padded conv1 out
            pltpu.VMEM((H * W, 9 * Cp), jnp.bfloat16),      # im2col buffer
        ],
        compiler_params=pltpu.CompilerParams(
            dimension_semantics=("parallel",)),
    )(xp, w1, s1, b1, w2, s2, b2)

    out = out[..., :C]                                       # drop lane padding
    return jnp.transpose(out, (0, 3, 1, 2))                  # NHWC -> NCHW


def _reference_forward(x_nchw, params, eps=1e-5):
    """Pure-JAX f32 reference (matches PyTorch inference semantics)."""
    def conv(x, w_hwio):
        return jax.lax.conv_general_dilated(
            x, w_hwio, window_strides=(1, 1), padding=((1, 1), (1, 1)),
            dimension_numbers=("NCHW", "HWIO", "NCHW"),
            precision=jax.lax.Precision.HIGHEST)

    def bn(x, g, b, m, v):
        g, b, m, v = (a.reshape(1, -1, 1, 1) for a in (g, b, m, v))
        return (x - m) / jnp.sqrt(v + eps) * g + b

    out = conv(x_nchw, params["w1"])
    out = jnp.maximum(bn(out, params["bn1_gamma"], params["bn1_beta"],
                         params["bn1_mean"], params["bn1_var"]), 0.0)
    out = conv(out, params["w2"])
    out = bn(out, params["bn2_gamma"], params["bn2_beta"],
             params["bn2_mean"], params["bn2_var"])
    return jnp.maximum(out + x_nchw, 0.0)


def make_params(key, inplanes, planes):
    ks = jax.random.split(key, 6)
    return {
        # conv weights stored as (KH, KW, Cin, Cout)
        "w1": 0.1 * jax.random.normal(ks[0], (3, 3, inplanes, planes), jnp.float32),
        "w2": 0.1 * jax.random.normal(ks[1], (3, 3, planes, planes), jnp.float32),
        "bn1_gamma": 1.0 + 0.1 * jax.random.normal(ks[2], (planes,), jnp.float32),
        "bn1_beta": 0.1 * jax.random.normal(ks[3], (planes,), jnp.float32),
        "bn1_mean": 0.05 * jnp.arange(planes, dtype=jnp.float32),
        "bn1_var": jnp.ones((planes,), jnp.float32) * 0.9,
        "bn2_gamma": 1.0 + 0.1 * jax.random.normal(ks[4], (planes,), jnp.float32),
        "bn2_beta": 0.1 * jax.random.normal(ks[5], (planes,), jnp.float32),
        "bn2_mean": -0.03 * jnp.arange(planes, dtype=jnp.float32),
        "bn2_var": jnp.ones((planes,), jnp.float32) * 1.1,
    }


if __name__ == "__main__":
    B, C, H, W = 2, 4, 16, 16          # inplanes = planes = 4 (no downsample)
    key = jax.random.PRNGKey(0)
    kx, kp = jax.random.split(key)
    x = jax.random.normal(kx, (B, C, H, W), jnp.float32)
    params = make_params(kp, inplanes=C, planes=C)

    out = basic_block_forward(x, params)
    out = jax.block_until_ready(out)

    ref = _reference_forward(x, params)
    assert out.shape == (B, C, H, W)
    # Tolerance loosened vs pure-f32: conv matmuls use bf16 MXU inputs with
    # f32 accumulation (BN/residual/ReLU epilogue stays f32).
    assert jnp.allclose(out, ref, atol=2e-2, rtol=2e-2), "mismatch vs reference"
    print("KERNEL_OK")
</pallas_src>

<mosaic_0001>
module attributes {stable_mosaic.version = 11 : i64} {
  func.func @_basic_block_kernel(%arg0: i32, %arg1: memref<1x16x16x128xf32, #tpu.memory_space<vmem>>, %arg2: memref<1152x128xbf16, #tpu.memory_space<vmem>>, %arg3: memref<1x128xf32, #tpu.memory_space<vmem>>, %arg4: memref<1x128xf32, #tpu.memory_space<vmem>>, %arg5: memref<1152x128xbf16, #tpu.memory_space<vmem>>, %arg6: memref<1x128xf32, #tpu.memory_space<vmem>>, %arg7: memref<1x128xf32, #tpu.memory_space<vmem>>, %arg8: memref<1x16x16x128xf32, #tpu.memory_space<vmem>>, %arg9: memref<18x18x128xf32, #tpu.memory_space<vmem>>, %arg10: memref<18x18x128xf32, #tpu.memory_space<vmem>>, %arg11: memref<256x1152xbf16, #tpu.memory_space<vmem>>) attributes {dimension_semantics = [#tpu.dimension_semantics<parallel>], iteration_bounds = array<i64: 2>, scalar_prefetch = 0 : i64, scratch_operands = 3 : i64, tpu.core_type = #tpu.core_type<tc>, window_params = [{transform_indices = @transform_0, window_bounds = array<i64: 1, 16, 16, 128>}, {pipeline_mode = #tpu.pipeline_mode<synchronous>, transform_indices = @transform_1, window_bounds = array<i64: 1152, 128>}, {pipeline_mode = #tpu.pipeline_mode<synchronous>, transform_indices = @transform_2, window_bounds = array<i64: 1, 128>}, {pipeline_mode = #tpu.pipeline_mode<synchronous>, transform_indices = @transform_3, window_bounds = array<i64: 1, 128>}, {pipeline_mode = #tpu.pipeline_mode<synchronous>, transform_indices = @transform_4, window_bounds = array<i64: 1152, 128>}, {pipeline_mode = #tpu.pipeline_mode<synchronous>, transform_indices = @transform_5, window_bounds = array<i64: 1, 128>}, {pipeline_mode = #tpu.pipeline_mode<synchronous>, transform_indices = @transform_6, window_bounds = array<i64: 1, 128>}, {transform_indices = @transform_7, window_bounds = array<i64: 1, 16, 16, 128>}]} {
    %c0 = arith.constant 0 : index
    %c0_0 = arith.constant 0 : index
    %c0_1 = arith.constant 0 : index
    %c0_2 = arith.constant 0 : index
    %0 = vector.load %arg1[%c0, %c0_0, %c0_1, %c0_2] : memref<1x16x16x128xf32, #tpu.memory_space<vmem>>, vector<1x16x16x128xf32>
    %1 = vector.shape_cast %0 : vector<1x16x16x128xf32> to vector<16x16x128xf32>
    %cst = arith.constant 0.000000e+00 : f32
    %2 = vector.broadcast %cst : f32 to vector<18x18x128xf32>
    %c0_3 = arith.constant 0 : index
    %c0_4 = arith.constant 0 : index
    %c0_5 = arith.constant 0 : index
    %3 = vector.load %arg9[%c0_3, %c0_4, %c0_5] : memref<18x18x128xf32, #tpu.memory_space<vmem>>, vector<18x18x128xf32>
    tpu.vector_store %arg9[%c0_3, %c0_4, %c0_5], %2 {strides = array<i32>} : memref<18x18x128xf32, #tpu.memory_space<vmem>>, vector<18x18x128xf32>,
    %c1 = arith.constant 1 : index
    %c1_6 = arith.constant 1 : index
    %c0_7 = arith.constant 0 : index
    %4 = vector.load %arg9[%c1, %c1_6, %c0_7] : memref<18x18x128xf32, #tpu.memory_space<vmem>>, vector<16x16x128xf32>
    tpu.vector_store %arg9[%c1, %c1_6, %c0_7], %1 {strides = array<i32>} : memref<18x18x128xf32, #tpu.memory_space<vmem>>, vector<16x16x128xf32>,
    %c0_8 = arith.constant 0 : index
    %c0_9 = arith.constant 0 : index
    %c0_10 = arith.constant 0 : index
    %5 = vector.load %arg9[%c0_8, %c0_9, %c0_10] : memref<18x18x128xf32, #tpu.memory_space<vmem>>, vector<16x16x128xf32>
    %6 = vector.shape_cast %5 : vector<16x16x128xf32> to vector<256x128xf32>
    %7 = arith.truncf %6 : vector<256x128xf32> to vector<256x128xbf16>
    %c0_11 = arith.constant 0 : index
    %c0_12 = arith.constant 0 : index
    %8 = vector.load %arg11[%c0_11, %c0_12] : memref<256x1152xbf16, #tpu.memory_space<vmem>>, vector<256x128xbf16>
    tpu.vector_store %arg11[%c0_11, %c0_12], %7 {strides = array<i32>} : memref<256x1152xbf16, #tpu.memory_space<vmem>>, vector<256x128xbf16>,
    %c0_13 = arith.constant 0 : index
    %c1_14 = arith.constant 1 : index
    %c0_15 = arith.constant 0 : index
    %9 = vector.load %arg9[%c0_13, %c1_14, %c0_15] : memref<18x18x128xf32, #tpu.memory_space<vmem>>, vector<16x16x128xf32>
    %10 = vector.shape_cast %9 : vector<16x16x128xf32> to vector<256x128xf32>
    %11 = arith.truncf %10 : vector<256x128xf32> to vector<256x128xbf16>
    %c0_16 = arith.constant 0 : index
    %c128 = arith.constant 128 : index
    %12 = vector.load %arg11[%c0_16, %c128] : memref<256x1152xbf16, #tpu.memory_space<vmem>>, vector<256x128xbf16>
    tpu.vector_store %arg11[%c0_16, %c128], %11 {strides = array<i32>} : memref<256x1152xbf16, #tpu.memory_space<vmem>>, vector<256x128xbf16>,
    %c0_17 = arith.constant 0 : index
    %c2 = arith.constant 2 : index
    %c0_18 = arith.constant 0 : index
    %13 = vector.load %arg9[%c0_17, %c2, %c0_18] : memref<18x18x128xf32, #tpu.memory_space<vmem>>, vector<16x16x128xf32>
    %14 = vector.shape_cast %13 : vector<16x16x128xf32> to vector<256x128xf32>
    %15 = arith.truncf %14 : vector<256x128xf32> to vector<256x128xbf16>
    %c0_19 = arith.constant 0 : index
    %c256 = arith.constant 256 : index
    %16 = vector.load %arg11[%c0_19, %c256] : memref<256x1152xbf16, #tpu.memory_space<vmem>>, vector<256x128xbf16>
    tpu.vector_store %arg11[%c0_19, %c256], %15 {strides = array<i32>} : memref<256x1152xbf16, #tpu.memory_space<vmem>>, vector<256x128xbf16>,
    %c1_20 = arith.constant 1 : index
    %c0_21 = arith.constant 0 : index
    %c0_22 = arith.constant 0 : index
    %17 = vector.load %arg9[%c1_20, %c0_21, %c0_22] : memref<18x18x128xf32, #tpu.memory_space<vmem>>, vector<16x16x128xf32>
    %18 = vector.shape_cast %17 : vector<16x16x128xf32> to vector<256x128xf32>
    %19 = arith.truncf %18 : vector<256x128xf32> to vector<256x128xbf16>
    %c0_23 = arith.constant 0 : index
    %c384 = arith.constant 384 : index
    %20 = vector.load %arg11[%c0_23, %c384] : memref<256x1152xbf16, #tpu.memory_space<vmem>>, vector<256x128xbf16>
    tpu.vector_store %arg11[%c0_23, %c384], %19 {strides = array<i32>} : memref<256x1152xbf16, #tpu.memory_space<vmem>>, vector<256x128xbf16>,
    %c1_24 = arith.constant 1 : index
    %c1_25 = arith.constant 1 : index
    %c0_26 = arith.constant 0 : index
    %21 = vector.load %arg9[%c1_24, %c1_25, %c0_26] : memref<18x18x128xf32, #tpu.memory_space<vmem>>, vector<16x16x128xf32>
    %22 = vector.shape_cast %21 : vector<16x16x128xf32> to vector<256x128xf32>
    %23 = arith.truncf %22 : vector<256x128xf32> to vector<256x128xbf16>
    %c0_27 = arith.constant 0 : index
    %c512 = arith.constant 512 : index
    %24 = vector.load %arg11[%c0_27, %c512] : memref<256x1152xbf16, #tpu.memory_space<vmem>>, vector<256x128xbf16>
    tpu.vector_store %arg11[%c0_27, %c512], %23 {strides = array<i32>} : memref<256x1152xbf16, #tpu.memory_space<vmem>>, vector<256x128xbf16>,
    %c1_28 = arith.constant 1 : index
    %c2_29 = arith.constant 2 : index
    %c0_30 = arith.constant 0 : index
    %25 = vector.load %arg9[%c1_28, %c2_29, %c0_30] : memref<18x18x128xf32, #tpu.memory_space<vmem>>, vector<16x16x128xf32>
    %26 = vector.shape_cast %25 : vector<16x16x128xf32> to vector<256x128xf32>
    %27 = arith.truncf %26 : vector<256x128xf32> to vector<256x128xbf16>
    %c0_31 = arith.constant 0 : index
    %c640 = arith.constant 640 : index
    %28 = vector.load %arg11[%c0_31, %c640] : memref<256x1152xbf16, #tpu.memory_space<vmem>>, vector<256x128xbf16>
    tpu.vector_store %arg11[%c0_31, %c640], %27 {strides = array<i32>} : memref<256x1152xbf16, #tpu.memory_space<vmem>>, vector<256x128xbf16>,
    %c2_32 = arith.constant 2 : index
    %c0_33 = arith.constant 0 : index
    %c0_34 = arith.constant 0 : index
    %29 = vector.load %arg9[%c2_32, %c0_33, %c0_34] : memref<18x18x128xf32, #tpu.memory_space<vmem>>, vector<16x16x128xf32>
    %30 = vector.shape_cast %29 : vector<16x16x128xf32> to vector<256x128xf32>
    %31 = arith.truncf %30 : vector<256x128xf32> to vector<256x128xbf16>
    %c0_35 = arith.constant 0 : index
    %c768 = arith.constant 768 : index
    %32 = vector.load %arg11[%c0_35, %c768] : memref<256x1152xbf16, #tpu.memory_space<vmem>>, vector<256x128xbf16>
    tpu.vector_store %arg11[%c0_35, %c768], %31 {strides = array<i32>} : memref<256x1152xbf16, #tpu.memory_space<vmem>>, vector<256x128xbf16>,
    %c2_36 = arith.constant 2 : index
    %c1_37 = arith.constant 1 : index
    %c0_38 = arith.constant 0 : index
    %33 = vector.load %arg9[%c2_36, %c1_37, %c0_38] : memref<18x18x128xf32, #tpu.memory_space<vmem>>, vector<16x16x128xf32>
    %34 = vector.shape_cast %33 : vector<16x16x128xf32> to vector<256x128xf32>
    %35 = arith.truncf %34 : vector<256x128xf32> to vector<256x128xbf16>
    %c0_39 = arith.constant 0 : index
    %c896 = arith.constant 896 : index
    %36 = vector.load %arg11[%c0_39, %c896] : memref<256x1152xbf16, #tpu.memory_space<vmem>>, vector<256x128xbf16>
    tpu.vector_store %arg11[%c0_39, %c896], %35 {strides = array<i32>} : memref<256x1152xbf16, #tpu.memory_space<vmem>>, vector<256x128xbf16>,
    %c2_40 = arith.constant 2 : index
    %c2_41 = arith.constant 2 : index
    %c0_42 = arith.constant 0 : index
    %37 = vector.load %arg9[%c2_40, %c2_41, %c0_42] : memref<18x18x128xf32, #tpu.memory_space<vmem>>, vector<16x16x128xf32>
    %38 = vector.shape_cast %37 : vector<16x16x128xf32> to vector<256x128xf32>
    %39 = arith.truncf %38 : vector<256x128xf32> to vector<256x128xbf16>
    %c0_43 = arith.constant 0 : index
    %c1024 = arith.constant 1024 : index
    %40 = vector.load %arg11[%c0_43, %c1024] : memref<256x1152xbf16, #tpu.memory_space<vmem>>, vector<256x128xbf16>
    tpu.vector_store %arg11[%c0_43, %c1024], %39 {strides = array<i32>} : memref<256x1152xbf16, #tpu.memory_space<vmem>>, vector<256x128xbf16>,
    %c0_44 = arith.constant 0 : index
    %c0_45 = arith.constant 0 : index
    %41 = vector.load %arg11[%c0_44, %c0_45] : memref<256x1152xbf16, #tpu.memory_space<vmem>>, vector<256x1152xbf16>
    %c0_46 = arith.constant 0 : index
    %c0_47 = arith.constant 0 : index
    %42 = vector.load %arg2[%c0_46, %c0_47] : memref<1152x128xbf16, #tpu.memory_space<vmem>>, vector<1152x128xbf16>
    %cst_48 = arith.constant dense<0.000000e+00> : vector<256x128xf32>
    %43 = tpu.matmul %41, %42, %cst_48 {dimension_numbers = #tpu.dot_dimension_numbers<[1], [0], [0], [1], [0, 0, 1, 1], [], []>} : vector<256x1152xbf16>, vector<1152x128xbf16>, vector<256x128xf32> -> vector<256x128xf32>
    %c0_49 = arith.constant 0 : index
    %c0_50 = arith.constant 0 : index
    %44 = vector.load %arg3[%c0_49, %c0_50] : memref<1x128xf32, #tpu.memory_space<vmem>>, vector<1x128xf32>
    %45 = vector.broadcast %44 : vector<1x128xf32> to vector<256x128xf32>
    %46 = arith.mulf %43, %45 : vector<256x128xf32>
    %c0_51 = arith.constant 0 : index
    %c0_52 = arith.constant 0 : index
    %47 = vector.load %arg4[%c0_51, %c0_52] : memref<1x128xf32, #tpu.memory_space<vmem>>, vector<1x128xf32>
    %48 = vector.broadcast %47 : vector<1x128xf32> to vector<256x128xf32>
    %49 = arith.addf %46, %48 : vector<256x128xf32>
    %cst_53 = arith.constant 0.000000e+00 : f32
    %50 = vector.broadcast %cst_53 : f32 to vector<256x128xf32>
    %51 = arith.maximumf %49, %50 : vector<256x128xf32>
    %cst_54 = arith.constant 0.000000e+00 : f32
    %52 = vector.broadcast %cst_54 : f32 to vector<18x18x128xf32>
    %c0_55 = arith.constant 0 : index
    %c0_56 = arith.constant 0 : index
    %c0_57 = arith.constant 0 : index
    %53 = vector.load %arg10[%c0_55, %c0_56, %c0_57] : memref<18x18x128xf32, #tpu.memory_space<vmem>>, vector<18x18x128xf32>
    tpu.vector_store %arg10[%c0_55, %c0_56, %c0_57], %52 {strides = array<i32>} : memref<18x18x128xf32, #tpu.memory_space<vmem>>, vector<18x18x128xf32>,
    %54 = vector.shape_cast %51 : vector<256x128xf32> to vector<16x16x128xf32>
    %c1_58 = arith.constant 1 : index
    %c1_59 = arith.constant 1 : index
    %c0_60 = arith.constant 0 : index
    %55 = vector.load %arg10[%c1_58, %c1_59, %c0_60] : memref<18x18x128xf32, #tpu.memory_space<vmem>>, vector<16x16x128xf32>
    tpu.vector_store %arg10[%c1_58, %c1_59, %c0_60], %54 {strides = array<i32>} : memref<18x18x128xf32, #tpu.memory_space<vmem>>, vector<16x16x128xf32>,
    %c0_61 = arith.constant 0 : index
    %c0_62 = arith.constant 0 : index
    %c0_63 = arith.constant 0 : index
    %56 = vector.load %arg10[%c0_61, %c0_62, %c0_63] : memref<18x18x128xf32, #tpu.memory_space<vmem>>, vector<16x16x128xf32>
    %57 = vector.shape_cast %56 : vector<16x16x128xf32> to vector<256x128xf32>
    %58 = arith.truncf %57 : vector<256x128xf32> to vector<256x128xbf16>
    %c0_64 = arith.constant 0 : index
    %c0_65 = arith.constant 0 : index
    %59 = vector.load %arg11[%c0_64, %c0_65] : memref<256x1152xbf16, #tpu.memory_space<vmem>>, vector<256x128xbf16>
    tpu.vector_store %arg11[%c0_64, %c0_65], %58 {strides = array<i32>} : memref<256x1152xbf16, #tpu.memory_space<vmem>>, vector<256x128xbf16>,
    %c0_66 = arith.constant 0 : index
    %c1_67 = arith.constant 1 : index
    %c0_68 = arith.constant 0 : index
    %60 = vector.load %arg10[%c0_66, %c1_67, %c0_68] : memref<18x18x128xf32, #tpu.memory_space<vmem>>, vector<16x16x128xf32>
    %61 = vector.shape_cast %60 : vector<16x16x128xf32> to vector<256x128xf32>
    %62 = arith.truncf %61 : vector<256x128xf32> to vector<256x128xbf16>
    %c0_69 = arith.constant 0 : index
    %c128_70 = arith.constant 128 : index
    %63 = vector.load %arg11[%c0_69, %c128_70] : memref<256x1152xbf16, #tpu.memory_space<vmem>>, vector<256x128xbf16>
    tpu.vector_store %arg11[%c0_69, %c128_70], %62 {strides = array<i32>} : memref<256x1152xbf16, #tpu.memory_space<vmem>>, vector<256x128xbf16>,
    %c0_71 = arith.constant 0 : index
    %c2_72 = arith.constant 2 : index
    %c0_73 = arith.constant 0 : index
    %64 = vector.load %arg10[%c0_71, %c2_72, %c0_73] : memref<18x18x128xf32, #tpu.memory_space<vmem>>, vector<16x16x128xf32>
    %65 = vector.shape_cast %64 : vector<16x16x128xf32> to vector<256x128xf32>
    %66 = arith.truncf %65 : vector<256x128xf32> to vector<256x128xbf16>
    %c0_74 = arith.constant 0 : index
    %c256_75 = arith.constant 256 : index
    %67 = vector.load %arg11[%c0_74, %c256_75] : memref<256x1152xbf16, #tpu.memory_space<vmem>>, vector<256x128xbf16>
    tpu.vector_store %arg11[%c0_74, %c256_75], %66 {strides = array<i32>} : memref<256x1152xbf16, #tpu.memory_space<vmem>>, vector<256x128xbf16>,
    %c1_76 = arith.constant 1 : index
    %c0_77 = arith.constant 0 : index
    %c0_78 = arith.constant 0 : index
    %68 = vector.load %arg10[%c1_76, %c0_77, %c0_78] : memref<18x18x128xf32, #tpu.memory_space<vmem>>, vector<16x16x128xf32>
    %69 = vector.shape_cast %68 : vector<16x16x128xf32> to vector<256x128xf32>
    %70 = arith.truncf %69 : vector<256x128xf32> to vector<256x128xbf16>
    %c0_79 = arith.constant 0 : index
    %c384_80 = arith.constant 384 : index
    %71 = vector.load %arg11[%c0_79, %c384_80] : memref<256x1152xbf16, #tpu.memory_space<vmem>>, vector<256x128xbf16>
    tpu.vector_store %arg11[%c0_79, %c384_80], %70 {strides = array<i32>} : memref<256x1152xbf16, #tpu.memory_space<vmem>>, vector<256x128xbf16>,
    %c1_81 = arith.constant 1 : index
    %c1_82 = arith.constant 1 : index
    %c0_83 = arith.constant 0 : index
    %72 = vector.load %arg10[%c1_81, %c1_82, %c0_83] : memref<18x18x128xf32, #tpu.memory_space<vmem>>, vector<16x16x128xf32>
    %73 = vector.shape_cast %72 : vector<16x16x128xf32> to vector<256x128xf32>
    %74 = arith.truncf %73 : vector<256x128xf32> to vector<256x128xbf16>
    %c0_84 = arith.constant 0 : index
    %c512_85 = arith.constant 512 : index
    %75 = vector.load %arg11[%c0_84, %c512_85] : memref<256x1152xbf16, #tpu.memory_space<vmem>>, vector<256x128xbf16>
    tpu.vector_store %arg11[%c0_84, %c512_85], %74 {strides = array<i32>} : memref<256x1152xbf16, #tpu.memory_space<vmem>>, vector<256x128xbf16>,
    %c1_86 = arith.constant 1 : index
    %c2_87 = arith.constant 2 : index
    %c0_88 = arith.constant 0 : index
    %76 = vector.load %arg10[%c1_86, %c2_87, %c0_88] : memref<18x18x128xf32, #tpu.memory_space<vmem>>, vector<16x16x128xf32>
    %77 = vector.shape_cast %76 : vector<16x16x128xf32> to vector<256x128xf32>
    %78 = arith.truncf %77 : vector<256x128xf32> to vector<256x128xbf16>
    %c0_89 = arith.constant 0 : index
    %c640_90 = arith.constant 640 : index
    %79 = vector.load %arg11[%c0_89, %c640_90] : memref<256x1152xbf16, #tpu.memory_space<vmem>>, vector<256x128xbf16>
    tpu.vector_store %arg11[%c0_89, %c640_90], %78 {strides = array<i32>} : memref<256x1152xbf16, #tpu.memory_space<vmem>>, vector<256x128xbf16>,
    %c2_91 = arith.constant 2 : index
    %c0_92 = arith.constant 0 : index
    %c0_93 = arith.constant 0 : index
    %80 = vector.load %arg10[%c2_91, %c0_92, %c0_93] : memref<18x18x128xf32, #tpu.memory_space<vmem>>, vector<16x16x128xf32>
    %81 = vector.shape_cast %80 : vector<16x16x128xf32> to vector<256x128xf32>
    %82 = arith.truncf %81 : vector<256x128xf32> to vector<256x128xbf16>
    %c0_94 = arith.constant 0 : index
    %c768_95 = arith.constant 768 : index
    %83 = vector.load %arg11[%c0_94, %c768_95] : memref<256x1152xbf16, #tpu.memory_space<vmem>>, vector<256x128xbf16>
    tpu.vector_store %arg11[%c0_94, %c768_95], %82 {strides = array<i32>} : memref<256x1152xbf16, #tpu.memory_space<vmem>>, vector<256x128xbf16>,
    %c2_96 = arith.constant 2 : index
    %c1_97 = arith.constant 1 : index
    %c0_98 = arith.constant 0 : index
    %84 = vector.load %arg10[%c2_96, %c1_97, %c0_98] : memref<18x18x128xf32, #tpu.memory_space<vmem>>, vector<16x16x128xf32>
    %85 = vector.shape_cast %84 : vector<16x16x128xf32> to vector<256x128xf32>
    %86 = arith.truncf %85 : vector<256x128xf32> to vector<256x128xbf16>
    %c0_99 = arith.constant 0 : index
    %c896_100 = arith.constant 896 : index
    %87 = vector.load %arg11[%c0_99, %c896_100] : memref<256x1152xbf16, #tpu.memory_space<vmem>>, vector<256x128xbf16>
    tpu.vector_store %arg11[%c0_99, %c896_100], %86 {strides = array<i32>} : memref<256x1152xbf16, #tpu.memory_space<vmem>>, vector<256x128xbf16>,
    %c2_101 = arith.constant 2 : index
    %c2_102 = arith.constant 2 : index
    %c0_103 = arith.constant 0 : index
    %88 = vector.load %arg10[%c2_101, %c2_102, %c0_103] : memref<18x18x128xf32, #tpu.memory_space<vmem>>, vector<16x16x128xf32>
    %89 = vector.shape_cast %88 : vector<16x16x128xf32> to vector<256x128xf32>
    %90 = arith.truncf %89 : vector<256x128xf32> to vector<256x128xbf16>
    %c0_104 = arith.constant 0 : index
    %c1024_105 = arith.constant 1024 : index
    %91 = vector.load %arg11[%c0_104, %c1024_105] : memref<256x1152xbf16, #tpu.memory_space<vmem>>, vector<256x128xbf16>
    tpu.vector_store %arg11[%c0_104, %c1024_105], %90 {strides = array<i32>} : memref<256x1152xbf16, #tpu.memory_space<vmem>>, vector<256x128xbf16>,
    %c0_106 = arith.constant 0 : index
    %c0_107 = arith.constant 0 : index
    %92 = vector.load %arg11[%c0_106, %c0_107] : memref<256x1152xbf16, #tpu.memory_space<vmem>>, vector<256x1152xbf16>
    %c0_108 = arith.constant 0 : index
    %c0_109 = arith.constant 0 : index
    %93 = vector.load %arg5[%c0_108, %c0_109] : memref<1152x128xbf16, #tpu.memory_space<vmem>>, vector<1152x128xbf16>
    %cst_110 = arith.constant dense<0.000000e+00> : vector<256x128xf32>
    %94 = tpu.matmul %92, %93, %cst_110 {dimension_numbers = #tpu.dot_dimension_numbers<[1], [0], [0], [1], [0, 0, 1, 1], [], []>} : vector<256x1152xbf16>, vector<1152x128xbf16>, vector<256x128xf32> -> vector<256x128xf32>
    %c0_111 = arith.constant 0 : index
    %c0_112 = arith.constant 0 : index
    %95 = vector.load %arg6[%c0_111, %c0_112] : memref<1x128xf32, #tpu.memory_space<vmem>>, vector<1x128xf32>
    %96 = vector.broadcast %95 : vector<1x128xf32> to vector<256x128xf32>
    %97 = arith.mulf %94, %96 : vector<256x128xf32>
    %c0_113 = arith.constant 0 : index
    %c0_114 = arith.constant 0 : index
    %98 = vector.load %arg7[%c0_113, %c0_114] : memref<1x128xf32, #tpu.memory_space<vmem>>, vector<1x128xf32>
    %99 = vector.broadcast %98 : vector<1x128xf32> to vector<256x128xf32>
    %100 = arith.addf %97, %99 : vector<256x128xf32>
    %101 = vector.shape_cast %100 : vector<256x128xf32> to vector<16x16x128xf32>
    %102 = arith.addf %101, %1 : vector<16x16x128xf32>
    %cst_115 = arith.constant 0.000000e+00 : f32
    %103 = vector.broadcast %cst_115 : f32 to vector<16x16x128xf32>
    %104 = arith.maximumf %102, %103 : vector<16x16x128xf32>
    %c0_116 = arith.constant 0 : index
    %c0_117 = arith.constant 0 : index
    %c0_118 = arith.constant 0 : index
    %c0_119 = arith.constant 0 : index
    %105 = vector.load %arg8[%c0_116, %c0_117, %c0_118, %c0_119] : memref<1x16x16x128xf32, #tpu.memory_space<vmem>>, vector<1x16x16x128xf32>
    %106 = vector.shape_cast %105 : vector<1x16x16x128xf32> to vector<16x16x128xf32>
    %107 = vector.shape_cast %104 : vector<16x16x128xf32> to vector<1x16x16x128xf32>
    tpu.vector_store %arg8[%c0_116, %c0_117, %c0_118, %c0_119], %107 {strides = array<i32>} : memref<1x16x16x128xf32, #tpu.memory_space<vmem>>, vector<1x16x16x128xf32>,
    return
  }
  func.func @transform_0(%arg0: i32) -> (i32, i32, i32, i32) {
    %c0_i32 = arith.constant 0 : i32
    %c0_i32_0 = arith.constant 0 : i32
    %c0_i32_1 = arith.constant 0 : i32
    %c0_i32_2 = arith.constant 0 : i32
    return %arg0, %c0_i32, %c0_i32_0, %c0_i32_1 : i32, i32, i32, i32
  }
  func.func @transform_1(%arg0: i32) -> (i32, i32) {
    %c0_i32 = arith.constant 0 : i32
    %c0_i32_0 = arith.constant 0 : i32
    %c0_i32_1 = arith.constant 0 : i32
    return %c0_i32, %c0_i32_0 : i32, i32
  }
  func.func @transform_2(%arg0: i32) -> (i32, i32) {
    %c0_i32 = arith.constant 0 : i32
    %c0_i32_0 = arith.constant 0 : i32
    %c0_i32_1 = arith.constant 0 : i32
    return %c0_i32, %c0_i32_0 : i32, i32
  }
  func.func @transform_3(%arg0: i32) -> (i32, i32) {
    %c0_i32 = arith.constant 0 : i32
    %c0_i32_0 = arith.constant 0 : i32
    %c0_i32_1 = arith.constant 0 : i32
    return %c0_i32, %c0_i32_0 : i32, i32
  }
  func.func @transform_4(%arg0: i32) -> (i32, i32) {
    %c0_i32 = arith.constant 0 : i32
    %c0_i32_0 = arith.constant 0 : i32
    %c0_i32_1 = arith.constant 0 : i32
    return %c0_i32, %c0_i32_0 : i32, i32
  }
  func.func @transform_5(%arg0: i32) -> (i32, i32) {
    %c0_i32 = arith.constant 0 : i32
    %c0_i32_0 = arith.constant 0 : i32
    %c0_i32_1 = arith.constant 0 : i32
    return %c0_i32, %c0_i32_0 : i32, i32
  }
  func.func @transform_6(%arg0: i32) -> (i32, i32) {
    %c0_i32 = arith.constant 0 : i32
    %c0_i32_0 = arith.constant 0 : i32
    %c0_i32_1 = arith.constant 0 : i32
    return %c0_i32, %c0_i32_0 : i32, i32
  }
  func.func @transform_7(%arg0: i32) -> (i32, i32, i32, i32) {
    %c0_i32 = arith.constant 0 : i32
    %c0_i32_0 = arith.constant 0 : i32
    %c0_i32_1 = arith.constant 0 : i32
    %c0_i32_2 = arith.constant 0 : i32
    return %arg0, %c0_i32, %c0_i32_0, %c0_i32_1 : i32, i32, i32, i32
  }
}

</mosaic_0001>

<bundles_post_ra>
// kernel: basic_block_forward.1
= control target key start
LH: loop header
LB: loop body
LE: loop exit
PB: predicated region body
PF: predicated region fallthrough
CT: control target
= control target key end

     0   :  { %s9377_s24 = smov 0   ;;  %s11401_s0 = inlined_call_operand.vmem [shape: f32[2,16,16,128], index: 0, kind: input, shape index: {}]   ;;  %s11402_s1 = inlined_call_operand.vmem [shape: bf16[1152,128], index: 1, kind: input, shape index: {}]   ;;  %s11403_s2 = inlined_call_operand.vmem [shape: f32[1,128], index: 2, kind: input, shape index: {}]   ;;  %s11404_s3 = inlined_call_operand.vmem [shape: f32[1,128], index: 3, kind: input, shape index: {}]   ;;  %s11405_s4 = inlined_call_operand.vmem [shape: bf16[1152,128], index: 4, kind: input, shape index: {}]   ;;  %s11406_s5 = inlined_call_operand.vmem [shape: f32[1,128], index: 5, kind: input, shape index: {}]   ;;  %s11407_s6 = inlined_call_operand.vmem [shape: f32[1,128], index: 6, kind: input, shape index: {}]   ;;  %s11408_s7 = inlined_call_operand.vmem [shape: f32[2,16,16,128], index: 7, kind: output, shape index: {}]  }
   0x1 LB: > { %s7088_s25 = sadd.s32 4294967295, %s9333_s24   ;;  %p7092_p0 = scmp.ge.s32.totalorder %s9333_s24, 1  ;;  %s9333_s24 = sphi %s9377_s24, %s17_s24  }
   0x2   : > { %p237_p1 = scmp.lt.s32.totalorder %s9333_s24, 3 }
   0x4   : > { %p238_p2 = pnand %p7092_p0, %p237_p1 }
   0x6   : > { %241 = sbr.rel (%p238_p2) target bundleno = 1586 (0x632), region = 48 }
   0xb   : > { %v8980_v0 = vld [vmem:[%s11402_s1 + $0x38] sm:$0xff]  ;;  %v9335_v2 = vmov 0.0   ;;  %v8979_v3 = vld [vmem:[%s11402_s1 + $0x30] sm:$0xff]  ;;  %v9336_v5 = vmov 0.0|0.0   ;;  %v8978_v6 = vld [vmem:[%s11402_s1 + $0x28] sm:$0xff]  ;;  %p269_p3 = scmp.lt.s32.totalorder %s7088_s25, 1 }
   0xc   : > { %v8988_v1 = vld [vmem:[%s11402_s1 + $0x78] sm:$0xff]  ;;  %311 = vst [vmem:[#allocation2] sm:$0xff] %v9335_v2  ;;  %2735 = vmatpush.bf16.msra.mxu0 %v8980_v0  ;;  %9261 = vmatpush.bf16.msra.mxu2 %v8980_v0  ;;  %v8987_v4 = vld [vmem:[%s11402_s1 + $0x70] sm:$0xff]  ;;  %v8986_v7 = vld [vmem:[%s11402_s1 + $0x68] sm:$0xff] }
   0xd   : > { %312 = vst [vmem:[#allocation2 + $0x8] sm:$0xff] %v9335_v2  ;;  %9269 = vmatpush.bf16.msra.mxu3 %v8988_v1  ;;  %2824 = vmatpush.bf16.msra.mxu1 %v8988_v1  ;;  %v8977_v8 = vld [vmem:[%s11402_s1 + $0x20] sm:$0xff]  ;;  %v8976_v12 = vld [vmem:[%s11402_s1 + $0x18] sm:$0xff]  ;;  %v8975_v14 = vld [vmem:[%s11402_s1 + $0x10] sm:$0xff]  ;;  %s11440_s25 = smov (!%p269_p3, %s7088_s25), 1 }
   0xe   : > { %462 = vst [vmem:[#allocation4] sm:$0xf] %v9336_v5  ;;  %v8985_v10 = vld [vmem:[%s11402_s1 + $0x60] sm:$0xff]  ;;  %v8984_v13 = vld [vmem:[%s11402_s1 + $0x58] sm:$0xff]  ;;  %v8983_v15 = vld [vmem:[%s11402_s1 + $0x50] sm:$0xff]  ;;  %s8827_s20 = sshll.u32 %s11440_s25, 8 }
   0xf   : > { %463 = vst [vmem:[#allocation4 + $0x24] sm:$0xf] %v9336_v5  ;;  %v8974_v16 = vld [vmem:[%s11402_s1 + $0x8] sm:$0xff]  ;;  %v8973_v18 = vld [vmem:[%s11402_s1] sm:$0xff]  ;;  %v8996_v21 = vld [vmem:[%s11402_s1 + $0xb8] sm:$0xff]  ;;  %s9557_s23 = scalar_lea.vmem %s11401_s0, %s8827_s20  ;;  %s11196_s15 = scalar_lea.vmem %s11408_s7, %s8827_s20 }
  0x10   : > { %3640 = vst [vmem:[#allocation3] sm:$0xff] %v9335_v2  ;;  %2736 = vmatpush.bf16.msra.mxu0 %v8979_v3  ;;  %9262 = vmatpush.bf16.msra.mxu2 %v8979_v3  ;;  %v8982_v17 = vld [vmem:[%s11402_s1 + $0x48] sm:$0xff]  ;;  %v8981_v19 = vld [vmem:[%s11402_s1 + $0x40] sm:$0xff]  ;;  %v9004_v22 = vld [vmem:[%s11402_s1 + $0xf8] sm:$0xff] }
  0x11   : > { %3641 = vst [vmem:[#allocation3 + $0x8] sm:$0xff] %v9335_v2  ;;  %9270 = vmatpush.bf16.msra.mxu3 %v8987_v4  ;;  %2825 = vmatpush.bf16.msra.mxu1 %v8987_v4  ;;  %v9012_v23 = vld [vmem:[%s11402_s1 + $0x138] sm:$0xff]  ;;  %v293_v24 = vld [vmem:[%s9557_s23 + $0x70] sm:$0xff]  ;;  %v279_v32 = vld [vmem:[%s9557_s23] sm:$0xff] }
  0x12   : > { %313 = vst [vmem:[#allocation2 + $0x10] sm:$0x3] %v9335_v2  ;;  %v294_v26 = vld [vmem:[%s9557_s23 + $0x78] sm:$0xff]  ;;  %v542_v27 = vpack.c.bf16 %v293_v24, %v293_v24  ;;  %v280_v34 = vld [vmem:[%s9557_s23 + $0x8] sm:$0xff]  ;;  %v295_v35 = vld [vmem:[%s9557_s23 + $0x80] sm:$0xff]  ;;  %v9584_v62 = vpack.c.bf16 %v279_v32, %v279_v32 }
  0x13   : > { %314 = vst [vmem:[#allocation2 + $0x18] sm:$0xff] %v9335_v2  ;;  %v543_v29 = vpack.c.bf16 %v294_v26, %v294_v26  ;;  %v8995_v36 = vld [vmem:[%s11402_s1 + $0xb0] sm:$0xff]  ;;  %v296_v40 = vld [vmem:[%s9557_s23 + $0x88] sm:$0xff]  ;;  %v544_v49 = vpack.c.bf16 %v295_v35, %v295_v35  ;;  %v9587_v1 = vpack.c.bf16 %v280_v34, %v280_v34 }
  0x14   : > { %315 = vst [vmem:[#allocation2 + $0x20] sm:$0xff] %v9335_v2  ;;  %2737 = vmatpush.bf16.msra.mxu0 %v8978_v6  ;;  %9263 = vmatpush.bf16.msra.mxu2 %v8978_v6  ;;  %v494_v25 = vld [vmem:[#allocation2 + $0x1] sm:$0xff]  ;;  %v9003_v37 = vld [vmem:[%s11402_s1 + $0xf0] sm:$0xff]  ;;  %v545_v52 = vpack.c.bf16 %v296_v40, %v296_v40 }
  0x15   : > { %v7099_v9 = vld [vmem:[#allocation4] sm:$0xf]  ;;  %316 = vst [vmem:[#allocation2 + $0x28] sm:$0x3] %v9335_v2  ;;  %9271 = vmatpush.bf16.msra.mxu3 %v8986_v7  ;;  %2826 = vmatpush.bf16.msra.mxu1 %v8986_v7  ;;  %v526_v30 = vpack.c.bf16 %v494_v25, %v494_v25  ;;  %v9011_v38 = vld [vmem:[%s11402_s1 + $0x130] sm:$0xff]  ;;  %v298_v7 = vld [vmem:[%s9557_s23 + $0x98] sm:$0xff] }
  0x16   : > { %v8833_v11 = vld [vmem:[#allocation4 + $0x20] sm:$0xf0]  ;;  %3791 = vst [vmem:[#allocation4] sm:$0xf] %v9336_v5  ;;  %v281_v4 = vld [vmem:[%s9557_s23 + $0x10] sm:$0xff] }
  0x17   : > { %3792 = vst [vmem:[#allocation4 + $0x24] sm:$0xf] %v9336_v5  ;;  %v7100_v20 = vor.u32 %v8833_v11, %v7099_v9  ;;  %v282_v5 = vld [vmem:[%s9557_s23 + $0x18] sm:$0xff]  ;;  %v297_v6 = vld [vmem:[%s9557_s23 + $0x90] sm:$0xff]  ;;  %v9002_v9 = vld [vmem:[%s11402_s1 + $0xe8] sm:$0xff] }
  0x18   : > { %317 = vst [vmem:[#allocation2 + $0x30] sm:$0xff] %v9335_v2  ;;  %2738 = vmatpush.bf16.msra.mxu0 %v8977_v8  ;;  %9264 = vmatpush.bf16.msra.mxu2 %v8977_v8  ;;  %v3823_v33 = vld [vmem:[#allocation3 + $0x1] sm:$0xff]  ;;  %v8994_v8 = vld [vmem:[%s11402_s1 + $0xa8] sm:$0xff] }
  0x19   : > { %318 = vst [vmem:[#allocation2 + $0x38] sm:$0xff] %v9335_v2  ;;  %9272 = vmatpush.bf16.msra.mxu3 %v8985_v10  ;;  %2827 = vmatpush.bf16.msra.mxu1 %v8985_v10  ;;  %v495_v28 = vld [vmem:[#allocation2 + $0x9] sm:$0xff]  ;;  %v3855_v44 = vpack.c.bf16 %v3823_v33, %v3823_v33 }
  0x1a   : > { %319 = vst [vmem:[#allocation2 + $0x40] sm:$0x3] %v9335_v2  ;;  %v527_v31 = vpack.c.bf16 %v495_v28, %v495_v28 }
  0x1b   : > { %320 = vst [vmem:[#allocation2 + $0x48] sm:$0xff] %v9335_v2 }
  0x1c   : > { %321 = vst [vmem:[#allocation2 + $0x50] sm:$0xff] %v9335_v2  ;;  %2739 = vmatpush.bf16.msra.mxu0 %v8976_v12  ;;  %9265 = vmatpush.bf16.msra.mxu2 %v8976_v12  ;;  %v546_v12 = vpack.c.bf16 %v297_v6, %v297_v6 }
  0x1d   : > { %322 = vst [vmem:[#allocation2 + $0x58] sm:$0x3] %v9335_v2  ;;  %9273 = vmatpush.bf16.msra.mxu3 %v8984_v13  ;;  %2828 = vmatpush.bf16.msra.mxu1 %v8984_v13  ;;  %v9010_v13 = vld [vmem:[%s11402_s1 + $0x128] sm:$0xff] }
  0x1e   : > { %323 = vst [vmem:[#allocation2 + $0x60] sm:$0xff] %v9335_v2 }
  0x1f   : > { %324 = vst [vmem:[#allocation2 + $0x68] sm:$0xff] %v9335_v2 }
  0x20   : > { %325 = vst [vmem:[#allocation2 + $0x70] sm:$0x3] %v9335_v2  ;;  %2740 = vmatpush.bf16.msra.mxu0 %v8975_v14  ;;  %9266 = vmatpush.bf16.msra.mxu2 %v8975_v14 }
  0x21   : > { %326 = vst [vmem:[#allocation2 + $0x78] sm:$0xff] %v9335_v2  ;;  %9274 = vmatpush.bf16.msra.mxu3 %v8983_v15  ;;  %2829 = vmatpush.bf16.msra.mxu1 %v8983_v15  ;;  %v547_v15 = vpack.c.bf16 %v298_v7, %v298_v7 }
  0x22   : > { %327 = vst [vmem:[#allocation2 + $0x80] sm:$0xff] %v9335_v2 }
  0x23   : > { %328 = vst [vmem:[#allocation2 + $0x88] sm:$0x3] %v9335_v2 }
  0x24   : > { %329 = vst [vmem:[#allocation2 + $0x90] sm:$0xff] %v9335_v2  ;;  %2741 = vmatpush.bf16.msra.mxu0 %v8974_v16  ;;  %9267 = vmatpush.bf16.msra.mxu2 %v8974_v16 }
  0x25   : > { %330 = vst [vmem:[#allocation2 + $0x98] sm:$0xff] %v9335_v2  ;;  %9275 = vmatpush.bf16.msra.mxu3 %v8982_v17  ;;  %2830 = vmatpush.bf16.msra.mxu1 %v8982_v17  ;;  %v9604_v17 = vpack.c.bf16 %v281_v4, %v281_v4 }
  0x26   : > { %331 = vst [vmem:[#allocation2 + $0xa0] sm:$0x3] %v9335_v2 }
  0x27   : > { %332 = vst [vmem:[#allocation2 + $0xa8] sm:$0xff] %v9335_v2 }
  0x28   : > { %333 = vst [vmem:[#allocation2 + $0xb0] sm:$0xff] %v9335_v2  ;;  %2742 = vmatpush.bf16.msra.mxu0 %v8973_v18  ;;  %9268 = vmatpush.bf16.msra.mxu2 %v8973_v18 }
  0x29   : > { %334 = vst [vmem:[#allocation2 + $0xb8] sm:$0x3] %v9335_v2  ;;  %9276 = vmatpush.bf16.msra.mxu3 %v8981_v19  ;;  %2831 = vmatpush.bf16.msra.mxu1 %v8981_v19 }
  0x2a   : > { %335 = vst [vmem:[#allocation2 + $0xc0] sm:$0xff] %v9335_v2 }
  0x2b   : > { %336 = vst [vmem:[#allocation2 + $0xc8] sm:$0xff] %v9335_v2  ;;  %2743 = vmatmul.bf16.vlgmr.msra.gmra.mxu0 %v7100_v20  ;;  %v9606_v20 = vpack.c.bf16 %v282_v5, %v282_v5 }
  0x2c   : > { %337 = vst [vmem:[#allocation2 + $0xd0] sm:$0x3] %v9335_v2  ;;  %2913 = vmatpush.bf16.msrb.mxu2 %v8996_v21  ;;  %3091 = vmatpush.bf16.msrb.mxu0 %v9012_v23 }
  0x2d   : > { %338 = vst [vmem:[#allocation2 + $0xd8] sm:$0xff] %v9335_v2  ;;  %3002 = vmatpush.bf16.msrb.mxu3 %v9004_v22  ;;  %v283_v22 = vld [vmem:[%s9557_s23 + $0x20] sm:$0xff] }
  0x2e   : > { %339 = vst [vmem:[#allocation2 + $0xe0] sm:$0xff] %v9335_v2 }
  0x2f   : > { %340 = vst [vmem:[#allocation2 + $0xe8] sm:$0x3] %v9335_v2 }
  0x30   : > { %341 = vst [vmem:[#allocation2 + $0xf0] sm:$0xff] %v9335_v2  ;;  %2914 = vmatpush.bf16.msrb.mxu2 %v8995_v36  ;;  %3092 = vmatpush.bf16.msrb.mxu0 %v9011_v38  ;;  %v300_v38 = vld [vmem:[%s9557_s23 + $0xa8] sm:$0xff] }
  0x31   : > { %342 = vst [vmem:[#allocation2 + $0xf8] sm:$0xff] %v9335_v2  ;;  %3003 = vmatpush.bf16.msrb.mxu3 %v9003_v37  ;;  %v299_v37 = vld [vmem:[%s9557_s23 + $0xa0] sm:$0xff] }
  0x32   : > { %343 = vst [vmem:[#allocation2 + $0x100] sm:$0x3] %v9335_v2 }
  0x33   : > { %344 = vst [vmem:[#allocation2 + $0x108] sm:$0xff] %v9335_v2 }
  0x34   : > { %345 = vst [vmem:[#allocation2 + $0x110] sm:$0xff] %v9335_v2  ;;  %2915 = vmatpush.bf16.msrb.mxu2 %v8994_v8  ;;  %3093 = vmatpush.bf16.msrb.mxu0 %v9010_v13 }
  0x35   : > { %346 = vst [vmem:[#allocation2 + $0x118] sm:$0x3] %v9335_v2  ;;  %3004 = vmatpush.bf16.msrb.mxu3 %v9002_v9 }
  0x36   : > { %347 = vst [vmem:[#allocation2 + $0x120] sm:$0xff] %v9335_v2 }
  0x37   : > { %348 = vst [vmem:[#allocation2 + $0x128] sm:$0xff] %v9335_v2 }
  0x38   : > { %349 = vst [vmem:[#allocation2 + $0x130] sm:$0x3] %v9335_v2 }
  0x39   : > { %350 = vst [vmem:[#allocation2 + $0x138] sm:$0xff] %v9335_v2 }
  0x3a   : > { %351 = vst [vmem:[#allocation2 + $0x140] sm:$0xff] %v9335_v2 }
  0x3b   : > { %352 = vst [vmem:[#allocation2 + $0x148] sm:$0x3] %v9335_v2 }
  0x3c   : > { %353 = vst [vmem:[#allocation2 + $0x150] sm:$0xff] %v9335_v2 }
  0x3d   : > { %354 = vst [vmem:[#allocation2 + $0x158] sm:$0xff] %v9335_v2 }
  0x3e   : > { %355 = vst [vmem:[#allocation2 + $0x160] sm:$0x3] %v9335_v2 }
  0x3f   : > { %356 = vst [vmem:[#allocation2 + $0x168] sm:$0xff] %v9335_v2 }
  0x40   : > { %357 = vst [vmem:[#allocation2 + $0x170] sm:$0xff] %v9335_v2 }
  0x41   : > { %358 = vst [vmem:[#allocation2 + $0x178] sm:$0x3] %v9335_v2 }
  0x42   : > { %359 = vst [vmem:[#allocation2 + $0x180] sm:$0xff] %v9335_v2 }
  0x43   : > { %360 = vst [vmem:[#allocation2 + $0x188] sm:$0xff] %v9335_v2 }
  0x44   : > { %361 = vst [vmem:[#allocation2 + $0x190] sm:$0x3] %v9335_v2 }
  0x45   : > { %362 = vst [vmem:[#allocation2 + $0x198] sm:$0xff] %v9335_v2 }
  0x46   : > { %363 = vst [vmem:[#allocation2 + $0x1a0] sm:$0xff] %v9335_v2 }
  0x47   : > { %364 = vst [vmem:[#allocation2 + $0x1a8] sm:$0x3] %v9335_v2 }
  0x48   : > { %3642 = vst [vmem:[#allocation3 + $0x10] sm:$0x3] %v9335_v2 }
  0x49   : > { %3643 = vst [vmem:[#allocation3 + $0x18] sm:$0xff] %v9335_v2 }
  0x4a   : > { %3644 = vst [vmem:[#allocation3 + $0x20] sm:$0xff] %v9335_v2 }
  0x4b   : > { %3645 = vst [vmem:[#allocation3 + $0x28] sm:$0x3] %v9335_v2 }
  0x4c   : > { %3646 = vst [vmem:[#allocation3 + $0x30] sm:$0xff] %v9335_v2 }
  0x4d   : > { %3647 = vst [vmem:[#allocation3 + $0x38] sm:$0xff] %v9335_v2 }
  0x4e   : > { %3648 = vst [vmem:[#allocation3 + $0x40] sm:$0x3] %v9335_v2 }
  0x4f   : > { %3649 = vst [vmem:[#allocation3 + $0x48] sm:$0xff] %v9335_v2  ;;  %v3824_v39 = vld [vmem:[#allocation3 + $0x9] sm:$0xff] }
  0x50   : > { %3650 = vst [vmem:[#allocation3 + $0x50] sm:$0xff] %v9335_v2  ;;  %v3856_v47 = vpack.c.bf16 %v3824_v39, %v3824_v39  ;;  %v548_v39 = vpack.c.bf16 %v299_v37, %v299_v37 }
  0x51   : > { %3651 = vst [vmem:[#allocation3 + $0x58] sm:$0x3] %v9335_v2 }
  0x52   : > { %3652 = vst [vmem:[#allocation3 + $0x60] sm:$0xff] %v9335_v2 }
  0x53   : > { %3653 = vst [vmem:[#allocation3 + $0x68] sm:$0xff] %v9335_v2 }
  0x54   : > { %3654 = vst [vmem:[#allocation3 + $0x70] sm:$0x3] %v9335_v2 }
  0x55   : > { %3655 = vst [vmem:[#allocation3 + $0x78] sm:$0xff] %v9335_v2 }
  0x56   : > { %3656 = vst [vmem:[#allocation3 + $0x80] sm:$0xff] %v9335_v2 }
  0x57   : > { %3657 = vst [vmem:[#allocation3 + $0x88] sm:$0x3] %v9335_v2 }
  0x58   : > { %3658 = vst [vmem:[#allocation3 + $0x90] sm:$0xff] %v9335_v2 }
  0x59   : > { %3659 = vst [vmem:[#allocation3 + $0x98] sm:$0xff] %v9335_v2 }
  0x5a   : > { %3660 = vst [vmem:[#allocation3 + $0xa0] sm:$0x3] %v9335_v2 }
  0x5b   : > { %3661 = vst [vmem:[#allocation3 + $0xa8] sm:$0xff] %v9335_v2 }
  0x5c   : > { %3662 = vst [vmem:[#allocation3 + $0xb0] sm:$0xff] %v9335_v2 }
  0x5d   : > { %3663 = vst [vmem:[#allocation3 + $0xb8] sm:$0x3] %v9335_v2 }
  0x5e   : > { %3664 = vst [vmem:[#allocation3 + $0xc0] sm:$0xff] %v9335_v2 }
  0x5f   : > { %3665 = vst [vmem:[#allocation3 + $0xc8] sm:$0xff] %v9335_v2 }
  0x60   : > { %3666 = vst [vmem:[#allocation3 + $0xd0] sm:$0x3] %v9335_v2 }
  0x61   : > { %3667 = vst [vmem:[#allocation3 + $0xd8] sm:$0xff] %v9335_v2 }
  0x62   : > { %3668 = vst [vmem:[#allocation3 + $0xe0] sm:$0xff] %v9335_v2 }
  0x63   : > { %3669 = vst [vmem:[#allocation3 + $0xe8] sm:$0x3] %v9335_v2 }
  0x64   : > { %3670 = vst [vmem:[#allocation3 + $0xf0] sm:$0xff] %v9335_v2 }
  0x65   : > { %3671 = vst [vmem:[#allocation3 + $0xf8] sm:$0xff] %v9335_v2 }
  0x66   : > { %3672 = vst [vmem:[#allocation3 + $0x100] sm:$0x3] %v9335_v2 }
  0x67   : > { %3673 = vst [vmem:[#allocation3 + $0x108] sm:$0xff] %v9335_v2 }
  0x68   : > { %3674 = vst [vmem:[#allocation3 + $0x110] sm:$0xff] %v9335_v2 }
  0x69   : > { %3675 = vst [vmem:[#allocation3 + $0x118] sm:$0x3] %v9335_v2 }
  0x6a   : > { %3676 = vst [vmem:[#allocation3 + $0x120] sm:$0xff] %v9335_v2 }
  0x6b   : > { %3677 = vst [vmem:[#allocation3 + $0x128] sm:$0xff] %v9335_v2 }
  0x6c   : > { %3678 = vst [vmem:[#allocation3 + $0x130] sm:$0x3] %v9335_v2 }
  0x6d   : > { %3679 = vst [vmem:[#allocation3 + $0x138] sm:$0xff] %v9335_v2 }
  0x6e   : > { %3680 = vst [vmem:[#allocation3 + $0x140] sm:$0xff] %v9335_v2 }
  0x6f   : > { %3681 = vst [vmem:[#allocation3 + $0x148] sm:$0x3] %v9335_v2 }
  0x70   : > { %3682 = vst [vmem:[#allocation3 + $0x150] sm:$0xff] %v9335_v2 }
  0x71   : > { %3683 = vst [vmem:[#allocation3 + $0x158] sm:$0xff] %v9335_v2 }
  0x72   : > { %3684 = vst [vmem:[#allocation3 + $0x160] sm:$0x3] %v9335_v2 }
  0x73   : > { %3685 = vst [vmem:[#allocation3 + $0x168] sm:$0xff] %v9335_v2 }
  0x74   : > { %3686 = vst [vmem:[#allocation3 + $0x170] sm:$0xff] %v9335_v2 }
  0x75   : > { %3687 = vst [vmem:[#allocation3 + $0x178] sm:$0x3] %v9335_v2 }
  0x76   : > { %3688 = vst [vmem:[#allocation3 + $0x180] sm:$0xff] %v9335_v2 }
  0x77   : > { %3689 = vst [vmem:[#allocation3 + $0x188] sm:$0xff] %v9335_v2 }
  0x78   : > { %3690 = vst [vmem:[#allocation3 + $0x190] sm:$0x3] %v9335_v2 }
  0x79   : > { %3691 = vst [vmem:[#allocation3 + $0x198] sm:$0xff] %v9335_v2 }
  0x7a   : > { %3692 = vst [vmem:[#allocation3 + $0x1a0] sm:$0xff] %v9335_v2 }
  0x7b   : > { %3693 = vst [vmem:[#allocation3 + $0x1a8] sm:$0x3] %v9335_v2 }
  0x7c   : > { %380 = vst [vmem:[#allocation2 + $0xc1] sm:$0xff] %v293_v24  ;;  %v284_v24 = vld [vmem:[%s9557_s23 + $0x28] sm:$0xff] }
  0x7d   : > { %381 = vst [vmem:[#allocation2 + $0xc9] sm:$0xff] %v294_v26 }
  0x7e   : > { %574 = vst [vmem:[#allocation4 + $0x244] sm:$0xf] %v542_v27 }
  0x7f   : > { %575 = vst [vmem:[#allocation4 + $0x268] sm:$0xf] %v543_v29 }
  0x80   : > { %558 = vst [vmem:[#allocation4 + $0x4] sm:$0xf] %v526_v30 }
  0x81   : > { %559 = vst [vmem:[#allocation4 + $0x28] sm:$0xf] %v527_v31 }
  0x82   : > { %366 = vst [vmem:[#allocation2 + $0x19] sm:$0xff] %v279_v32 }
  0x83   : > { %v414_v41 = vld [vmem:[#allocation2 + $0xc0] sm:$0xff]  ;;  %367 = vst [vmem:[#allocation2 + $0x21] sm:$0xff] %v280_v34 }
  0x84   : > { %v415_v42 = vld [vmem:[#allocation2 + $0xc8] sm:$0xff]  ;;  %v446_v43 = vpack.c.bf16 %v414_v41, %v414_v41  ;;  %382 = vst [vmem:[#allocation2 + $0xd9] sm:$0xff] %v295_v35 }
  0x85   : > { %v447_v45 = vpack.c.bf16 %v415_v42, %v415_v42  ;;  %v8901_v46 = vld [vmem:[#allocation4 + $0x244] sm:$0xf]  ;;  %383 = vst [vmem:[#allocation2 + $0xe1] sm:$0xff] %v296_v40  ;;  %v549_v40 = vpack.c.bf16 %v300_v38, %v300_v38 }
  0x86   : > { %478 = vst [vmem:[#allocation4 + $0x240] sm:$0xf] %v446_v43  ;;  %v7389_v48 = vld [vmem:[#allocation4 + $0x264] sm:$0xf0]  ;;  %v8993_v43 = vld [vmem:[%s11402_s1 + $0xa0] sm:$0xff] }
  0x87   : > { %479 = vst [vmem:[#allocation4 + $0x264] sm:$0xf] %v447_v45  ;;  %v7392_v50 = vor.u32 %v8901_v46, %v7389_v48  ;;  %v8829_v51 = vld [vmem:[#allocation4 + $0x4] sm:$0xf]  ;;  %v9628_v48 = vpack.c.bf16 %v283_v22, %v283_v22  ;;  %2916 = vmatpush.bf16.msrb.mxu2 %v8993_v43 }
  0x88   : > { %v7101_v53 = vld [vmem:[#allocation4 + $0x24] sm:$0xf0]  ;;  %3887 = vst [vmem:[#allocation4 + $0x4] sm:$0xf] %v3855_v44  ;;  %v9001_v44 = vld [vmem:[%s11402_s1 + $0xe0] sm:$0xff] }
  0x89   : > { %2872 = vmatmul.bf16.vlgmr.msra.gmra.mxu3 %v7392_v50  ;;  %v7104_v54 = vor.u32 %v8829_v51, %v7101_v53  ;;  %3888 = vst [vmem:[#allocation4 + $0x28] sm:$0xf] %v3856_v47  ;;  %v400_v55 = vld [vmem:[#allocation2 + $0x18] sm:$0xff]  ;;  %v9635_v53 = vpack.c.bf16 %v284_v24, %v284_v24 }
  0x8a   : > { %v401_v56 = vld [vmem:[#allocation2 + $0x20] sm:$0xff]  ;;  %v9579_v57 = vpack.c.bf16 %v400_v55, %v400_v55  ;;  %576 = vst [vmem:[#allocation4 + $0x28c] sm:$0xf] %v544_v49  ;;  %3005 = vmatpush.bf16.msrb.mxu3 %v9001_v44 }
  0x8b   : > { %2832 = vmatmul.bf16.vlgmr.msra.gmra.mxu1 %v7104_v54  ;;  %v9581_v58 = vpack.c.bf16 %v401_v56, %v401_v56  ;;  %v416_v59 = vld [vmem:[#allocation2 + $0xd8] sm:$0xff]  ;;  %577 = vst [vmem:[#allocation4 + $0x2b0] sm:$0xf] %v545_v52  ;;  %v9009_v49 = vld [vmem:[%s11402_s1 + $0x120] sm:$0xff] }
  0x8c   : > { %464 = vst [vmem:[#allocation4 + $0x48] sm:$0xf] %v9579_v57  ;;  %v417_v60 = vld [vmem:[#allocation2 + $0xe0] sm:$0xff]  ;;  %v448_v61 = vpack.c.bf16 %v416_v59, %v416_v59  ;;  %3094 = vmatpush.bf16.msrb.mxu0 %v9009_v49 }
  0x8d   : > { %v7387_v63 = vld [vmem:[#allocation4 + $0x240] sm:$0xf]  ;;  %465 = vst [vmem:[#allocation4 + $0x6c] sm:$0xf] %v9581_v58  ;;  %v449_v0 = vpack.c.bf16 %v417_v60, %v417_v60  ;;  %v285_v60 = vld [vmem:[%s9557_s23 + $0x30] sm:$0xff] }
  0x8e   : > { %v8905_v2 = vld [vmem:[#allocation4 + $0x260] sm:$0xf0]  ;;  %480 = vst [vmem:[#allocation4 + $0x288] sm:$0xf] %v448_v61  ;;  %v286_v61 = vld [vmem:[%s9557_s23 + $0x38] sm:$0xff] }
  0x8f   : > { %v7388_v3 = vor.u32 %v8905_v2, %v7387_v63  ;;  %481 = vst [vmem:[#allocation4 + $0x2ac] sm:$0xf] %v449_v0  ;;  %v9647_v13 = vpack.c.bf16 %v286_v61, %v286_v61 }
  0x90   : > { %560 = vst [vmem:[#allocation4 + $0x4c] sm:$0xf] %v9584_v62 }
  0x91   : > { %2783 = vmatmul.bf16.vlgmr.msra.gmra.mxu2 %v7388_v3  ;;  %561 = vst [vmem:[#allocation4 + $0x70] sm:$0xf] %v9587_v1  ;;  %v8910_v10 = vld [vmem:[#allocation4 + $0x28c] sm:$0xf] }
  0x92   : > { %v7425_v11 = vld [vmem:[#allocation4 + $0x2ac] sm:$0xf0]  ;;  %368 = vst [vmem:[#allocation2 + $0x31] sm:$0xff] %v281_v4 }
  0x93   : > { %v7135_v14 = vld [vmem:[#allocation4 + $0x48] sm:$0xf]  ;;  %369 = vst [vmem:[#allocation2 + $0x39] sm:$0xff] %v282_v5  ;;  %v7428_v19 = vor.u32 %v8910_v10, %v7425_v11  ;;  %v301_v5 = vld [vmem:[%s9557_s23 + $0xb0] sm:$0xff]  ;;  %v9645_v11 = vpack.c.bf16 %v285_v60, %v285_v60 }
  0x94   : > { %v8842_v16 = vld [vmem:[#allocation4 + $0x68] sm:$0xf0]  ;;  %384 = vst [vmem:[#allocation2 + $0xf1] sm:$0xff] %v297_v6  ;;  %v302_v6 = vld [vmem:[%s9557_s23 + $0xb8] sm:$0xff]  ;;  %v550_v9 = vpack.c.bf16 %v301_v5, %v301_v5 }
  0x95   : > { %v7136_v18 = vor.u32 %v8842_v16, %v7135_v14  ;;  %385 = vst [vmem:[#allocation2 + $0xf9] sm:$0xff] %v298_v7  ;;  %v7423_v27 = vld [vmem:[#allocation4 + $0x288] sm:$0xf]  ;;  %v551_v10 = vpack.c.bf16 %v302_v6, %v302_v6 }
  0x96   : > { %578 = vst [vmem:[#allocation4 + $0x2d4] sm:$0xf] %v546_v12  ;;  %v8914_v28 = vld [vmem:[#allocation4 + $0x2a8] sm:$0xf0] }
  0x97   : > { %2748 = vmatmul.bf16.gmra.mxu0 %v7136_v18  ;;  %v8838_v21 = vld [vmem:[#allocation4 + $0x4c] sm:$0xf]  ;;  %579 = vst [vmem:[#allocation4 + $0x2f8] sm:$0xf] %v547_v15  ;;  %v7424_v35 = vor.u32 %v8914_v28, %v7423_v27  ;;  %v9008_v27 = vld [vmem:[%s11402_s1 + $0x118] sm:$0xff] }
  0x98   : > { %v7137_v23 = vld [vmem:[#allocation4 + $0x6c] sm:$0xf0]  ;;  %562 = vst [vmem:[#allocation4 + $0x94] sm:$0xf] %v9604_v17  ;;  %v288_v28 = vld [vmem:[%s9557_s23 + $0x48] sm:$0xff]  ;;  %3095 = vmatpush.bf16.msrb.mxu0 %v9008_v27 }
  0x99   : > { %2877 = vmatmul.bf16.gmra.mxu3 %v7428_v19  ;;  %v7140_v25 = vor.u32 %v8838_v21, %v7137_v23  ;;  %v402_v26 = vld [vmem:[#allocation2 + $0x30] sm:$0xff]  ;;  %563 = vst [vmem:[#allocation4 + $0xb8] sm:$0xf] %v9606_v20  ;;  %v8992_v23 = vld [vmem:[%s11402_s1 + $0x98] sm:$0xff] }
  0x9a   : > { %v403_v29 = vld [vmem:[#allocation2 + $0x38] sm:$0xff]  ;;  %v9612_v30 = vpack.c.bf16 %v402_v26, %v402_v26  ;;  %370 = vst [vmem:[#allocation2 + $0x49] sm:$0xff] %v283_v22  ;;  %2917 = vmatpush.bf16.msrb.mxu2 %v8992_v23 }
  0x9b   : > { %2837 = vmatmul.bf16.gmra.mxu1 %v7140_v25  ;;  %v9614_v31 = vpack.c.bf16 %v403_v29, %v403_v29  ;;  %v418_v32 = vld [vmem:[#allocation2 + $0xf0] sm:$0xff]  ;;  %371 = vst [vmem:[#allocation2 + $0x51] sm:$0xff] %v284_v24  ;;  %v9000_v24 = vld [vmem:[%s11402_s1 + $0xd8] sm:$0xff]  ;;  %v287_v25 = vld [vmem:[%s9557_s23 + $0x40] sm:$0xff] }
  0x9c   : > { %466 = vst [vmem:[#allocation4 + $0x90] sm:$0xf] %v9612_v30  ;;  %v419_v33 = vld [vmem:[#allocation2 + $0xf8] sm:$0xff]  ;;  %v450_v34 = vpack.c.bf16 %v418_v32, %v418_v32  ;;  %3006 = vmatpush.bf16.msrb.mxu3 %v9000_v24  ;;  %v9670_v44 = vpack.c.bf16 %v287_v25, %v287_v25 }
  0x9d   : > { %467 = vst [vmem:[#allocation4 + $0xb4] sm:$0xf] %v9614_v31  ;;  %v451_v36 = vpack.c.bf16 %v419_v33, %v419_v33  ;;  %v8919_v41 = vld [vmem:[#allocation4 + $0x2d4] sm:$0xf] }
  0x9e   : > { %482 = vst [vmem:[#allocation4 + $0x2d0] sm:$0xf] %v450_v34  ;;  %v7461_v45 = vld [vmem:[#allocation4 + $0x2f4] sm:$0xf0] }
  0x9f   : > { %483 = vst [vmem:[#allocation4 + $0x2f4] sm:$0xf] %v451_v36  ;;  %v8847_v51 = vld [vmem:[#allocation4 + $0x94] sm:$0xf]  ;;  %v7464_v59 = vor.u32 %v8919_v41, %v7461_v45  ;;  %v9672_v45 = vpack.c.bf16 %v288_v28, %v288_v28 }
  0xa0   : > { %386 = vst [vmem:[#allocation2 + $0x109] sm:$0xff] %v299_v37  ;;  %v7173_v55 = vld [vmem:[#allocation4 + $0xb4] sm:$0xf0] }
  0xa1   : > { %2788 = vmatmul.bf16.gmra.mxu2 %v7424_v35  ;;  %v404_v42 = vld [vmem:[#allocation2 + $0x48] sm:$0xff]  ;;  %387 = vst [vmem:[#allocation2 + $0x111] sm:$0xff] %v300_v38  ;;  %v7176_v63 = vor.u32 %v8847_v51, %v7173_v55 }
  0xa2   : > { %v405_v46 = vld [vmem:[#allocation2 + $0x50] sm:$0xff]  ;;  %v9626_v47 = vpack.c.bf16 %v404_v42, %v404_v42  ;;  %580 = vst [vmem:[#allocation4 + $0x31c] sm:$0xf] %v548_v39  ;;  %v303_v39 = vld [vmem:[%s9557_s23 + $0xc0] sm:$0xff] }
  0xa3   : > { %v7171_v50 = vld [vmem:[#allocation4 + $0x90] sm:$0xf]  ;;  %v9633_v52 = vpack.c.bf16 %v405_v46, %v405_v46  ;;  %581 = vst [vmem:[#allocation4 + $0x340] sm:$0xf] %v549_v40  ;;  %v304_v40 = vld [vmem:[%s9557_s23 + $0xc8] sm:$0xff]  ;;  %v552_v41 = vpack.c.bf16 %v303_v39, %v303_v39 }
  0xa4   : > { %v8851_v54 = vld [vmem:[#allocation4 + $0xb0] sm:$0xf0]  ;;  %468 = vst [vmem:[#allocation4 + $0xd8] sm:$0xf] %v9626_v47  ;;  %v553_v43 = vpack.c.bf16 %v304_v40, %v304_v40 }
  0xa5   : > { %v7172_v56 = vor.u32 %v8851_v54, %v7171_v50  ;;  %469 = vst [vmem:[#allocation4 + $0xfc] sm:$0xf] %v9633_v52  ;;  %v7459_v7 = vld [vmem:[#allocation4 + $0x2d0] sm:$0xf] }
  0xa6   : > { %564 = vst [vmem:[#allocation4 + $0xdc] sm:$0xf] %v9628_v48  ;;  %v8923_v8 = vld [vmem:[#allocation4 + $0x2f0] sm:$0xf0] }
  0xa7   : > { %2753 = vmatmul.bf16.gmra.mxu0 %v7172_v56  ;;  %v420_v0 = vld [vmem:[#allocation2 + $0x108] sm:$0xff]  ;;  %565 = vst [vmem:[#allocation4 + $0x100] sm:$0xf] %v9635_v53  ;;  %v7460_v12 = vor.u32 %v8923_v8, %v7459_v7  ;;  %v8999_v7 = vld [vmem:[%s11402_s1 + $0xd0] sm:$0xff] }
  0xa8   : > { %v421_v2 = vld [vmem:[#allocation2 + $0x110] sm:$0xff]  ;;  %v452_v3 = vpack.c.bf16 %v420_v0, %v420_v0  ;;  %372 = vst [vmem:[#allocation2 + $0x61] sm:$0xff] %v285_v60  ;;  %v290_v60 = vld [vmem:[%s9557_s23 + $0x58] sm:$0xff]  ;;  %3007 = vmatpush.bf16.msrb.mxu3 %v8999_v7 }
  0xa9   : > { %2882 = vmatmul.bf16.gmra.mxu3 %v7464_v59  ;;  %v453_v4 = vpack.c.bf16 %v421_v2, %v421_v2  ;;  %373 = vst [vmem:[#allocation2 + $0x69] sm:$0xff] %v286_v61  ;;  %v8928_v18 = vld [vmem:[#allocation4 + $0x31c] sm:$0xf]  ;;  %v289_v59 = vld [vmem:[%s9557_s23 + $0x50] sm:$0xff] }
  0xaa   : > { %484 = vst [vmem:[#allocation4 + $0x318] sm:$0xf] %v452_v3  ;;  %v7497_v26 = vld [vmem:[#allocation4 + $0x33c] sm:$0xf0]  ;;  %v305_v8 = vld [vmem:[%s9557_s23 + $0xd0] sm:$0xff] }
  0xab   : > { %2842 = vmatmul.bf16.gmra.mxu1 %v7176_v63  ;;  %485 = vst [vmem:[#allocation4 + $0x33c] sm:$0xf] %v453_v4  ;;  %v7207_v14 = vld [vmem:[#allocation4 + $0xd8] sm:$0xf]  ;;  %v7500_v37 = vor.u32 %v8928_v18, %v7497_v26  ;;  %v9696_v26 = vpack.c.bf16 %v289_v59, %v289_v59 }
  0xac   : > { %388 = vst [vmem:[#allocation2 + $0x121] sm:$0xff] %v301_v5  ;;  %v8860_v16 = vld [vmem:[#allocation4 + $0xf8] sm:$0xf0] }
  0xad   : > { %389 = vst [vmem:[#allocation2 + $0x129] sm:$0xff] %v302_v6  ;;  %v7208_v29 = vor.u32 %v8860_v16, %v7207_v14  ;;  %v8856_v33 = vld [vmem:[#allocation4 + $0xdc] sm:$0xf]  ;;  %v8991_v6 = vld [vmem:[%s11402_s1 + $0x90] sm:$0xff] }
  0xae   : > { %582 = vst [vmem:[#allocation4 + $0x364] sm:$0xf] %v550_v9  ;;  %v7209_v34 = vld [vmem:[#allocation4 + $0xfc] sm:$0xf0]  ;;  %2918 = vmatpush.bf16.msrb.mxu2 %v8991_v6 }
  0xaf   : > { %v406_v15 = vld [vmem:[#allocation2 + $0x60] sm:$0xff]  ;;  %583 = vst [vmem:[#allocation4 + $0x388] sm:$0xf] %v551_v10  ;;  %v7212_v42 = vor.u32 %v8856_v33, %v7209_v34  ;;  %v9007_v10 = vld [vmem:[%s11402_s1 + $0x110] sm:$0xff] }
  0xb0   : > { %v407_v19 = vld [vmem:[#allocation2 + $0x68] sm:$0xff]  ;;  %v9649_v21 = vpack.c.bf16 %v406_v15, %v406_v15  ;;  %566 = vst [vmem:[#allocation4 + $0x124] sm:$0xf] %v9645_v11  ;;  %3096 = vmatpush.bf16.msrb.mxu0 %v9007_v10 }
  0xb1   : > { %2793 = vmatmul.bf16.gmra.mxu2 %v7460_v12  ;;  %v9652_v22 = vpack.c.bf16 %v407_v19, %v407_v19  ;;  %567 = vst [vmem:[#allocation4 + $0x148] sm:$0xf] %v9647_v13  ;;  %v7495_v46 = vld [vmem:[#allocation4 + $0x318] sm:$0xf]  ;;  %v554_v19 = vpack.c.bf16 %v305_v8, %v305_v8 }
  0xb2   : > { %470 = vst [vmem:[#allocation4 + $0x120] sm:$0xf] %v9649_v21  ;;  %v8932_v49 = vld [vmem:[#allocation4 + $0x338] sm:$0xf0] }
  0xb3   : > { %471 = vst [vmem:[#allocation4 + $0x144] sm:$0xf] %v9652_v22  ;;  %v422_v32 = vld [vmem:[#allocation2 + $0x120] sm:$0xff]  ;;  %v7496_v55 = vor.u32 %v8932_v49, %v7495_v46  ;;  %v306_v12 = vld [vmem:[%s9557_s23 + $0xd8] sm:$0xff] }
  0xb4   : > { %v423_v35 = vld [vmem:[#allocation2 + $0x128] sm:$0xff]  ;;  %v454_v36 = vpack.c.bf16 %v422_v32, %v422_v32  ;;  %374 = vst [vmem:[#allocation2 + $0x79] sm:$0xff] %v287_v25  ;;  %v555_v23 = vpack.c.bf16 %v306_v12, %v306_v12 }
  0xb5   : > { %v455_v38 = vpack.c.bf16 %v423_v35, %v423_v35  ;;  %375 = vst [vmem:[#allocation2 + $0x81] sm:$0xff] %v288_v28  ;;  %v8937_v2 = vld [vmem:[#allocation4 + $0x364] sm:$0xf] }
  0xb6   : > { %486 = vst [vmem:[#allocation4 + $0x360] sm:$0xf] %v454_v36  ;;  %v7533_v9 = vld [vmem:[#allocation4 + $0x384] sm:$0xf0] }
  0xb7   : > { %2758 = vmatmul.bf16.gmra.mxu0 %v7208_v29  ;;  %487 = vst [vmem:[#allocation4 + $0x384] sm:$0xf] %v455_v38  ;;  %v8865_v15 = vld [vmem:[#allocation4 + $0x124] sm:$0xf]  ;;  %v7536_v18 = vor.u32 %v8937_v2, %v7533_v9  ;;  %v9700_v29 = vpack.c.bf16 %v290_v60, %v290_v60 }
  0xb8   : > { %390 = vst [vmem:[#allocation2 + $0x139] sm:$0xff] %v303_v39  ;;  %v7245_v16 = vld [vmem:[#allocation4 + $0x144] sm:$0xf0] }
  0xb9   : > { %2887 = vmatmul.bf16.gmra.mxu3 %v7500_v37  ;;  %391 = vst [vmem:[#allocation2 + $0x141] sm:$0xff] %v304_v40  ;;  %v7243_v63 = vld [vmem:[#allocation4 + $0x120] sm:$0xf]  ;;  %v7248_v24 = vor.u32 %v8865_v15, %v7245_v16  ;;  %v292_v40 = vld [vmem:[%s9557_s23 + $0x68] sm:$0xff] }
  0xba   : > { %584 = vst [vmem:[#allocation4 + $0x3ac] sm:$0xf] %v552_v41  ;;  %v8869_v0 = vld [vmem:[#allocation4 + $0x140] sm:$0xf0] }
  0xbb   : > { %2847 = vmatmul.bf16.gmra.mxu1 %v7212_v42  ;;  %v408_v50 = vld [vmem:[#allocation2 + $0x78] sm:$0xff]  ;;  %585 = vst [vmem:[#allocation4 + $0x3d0] sm:$0xf] %v553_v43  ;;  %v7244_v14 = vor.u32 %v8869_v0, %v7243_v63  ;;  %v291_v37 = vld [vmem:[%s9557_s23 + $0x60] sm:$0xff]  ;;  %v308_v42 = vld [vmem:[%s9557_s23 + $0xe8] sm:$0xff] }
  0xbc   : > { %v409_v51 = vld [vmem:[#allocation2 + $0x80] sm:$0xff]  ;;  %v9674_v54 = vpack.c.bf16 %v408_v50, %v408_v50  ;;  %568 = vst [vmem:[#allocation4 + $0x16c] sm:$0xf] %v9670_v44  ;;  %v8990_v50 = vld [vmem:[%s11402_s1 + $0x88] sm:$0xff]  ;;  %v557_v6 = vpack.c.bf16 %v308_v42, %v308_v42 }
  0xbd   : > { %v9677_v56 = vpack.c.bf16 %v409_v51, %v409_v51  ;;  %569 = vst [vmem:[#allocation4 + $0x190] sm:$0xf] %v9672_v45  ;;  %v307_v41 = vld [vmem:[%s9557_s23 + $0xe0] sm:$0xff]  ;;  %v8998_v51 = vld [vmem:[%s11402_s1 + $0xc8] sm:$0xff]  ;;  %2919 = vmatpush.bf16.msrb.mxu2 %v8990_v50 }
  0xbe   : > { %472 = vst [vmem:[#allocation4 + $0x168] sm:$0xf] %v9674_v54  ;;  %v8941_v33 = vld [vmem:[#allocation4 + $0x380] sm:$0xf0]  ;;  %3008 = vmatpush.bf16.msrb.mxu3 %v8998_v51 }
  0xbf   : > { %473 = vst [vmem:[#allocation4 + $0x18c] sm:$0xf] %v9677_v56  ;;  %v424_v61 = vld [vmem:[#allocation2 + $0x138] sm:$0xff]  ;;  %v879_v50 = vld [vmem:[#allocation2 + $0x22] sm:$0xff] }
  0xc0   : > { %v425_v3 = vld [vmem:[#allocation2 + $0x140] sm:$0xff]  ;;  %v456_v4 = vpack.c.bf16 %v424_v61, %v424_v61  ;;  %376 = vst [vmem:[#allocation2 + $0x91] sm:$0xff] %v289_v59  ;;  %v9006_v59 = vld [vmem:[%s11402_s1 + $0x108] sm:$0xff] }
  0xc1   : > { %2798 = vmatmul.bf16.gmra.mxu2 %v7496_v55  ;;  %v457_v5 = vpack.c.bf16 %v425_v3, %v425_v3  ;;  %377 = vst [vmem:[#allocation2 + $0x99] sm:$0xff] %v290_v60  ;;  %v8946_v49 = vld [vmem:[#allocation4 + $0x3ac] sm:$0xf]  ;;  %v9020_v60 = vld [vmem:[%s11402_s1 + $0x178] sm:$0xff]  ;;  %3097 = vmatpush.bf16.msrb.mxu0 %v9006_v59 }
  0xc2   : > { %488 = vst [vmem:[#allocation4 + $0x3a8] sm:$0xf] %v456_v4  ;;  %v7569_v55 = vld [vmem:[#allocation4 + $0x3cc] sm:$0xf0]  ;;  %3180 = vmatpush.bf16.msrb.mxu1 %v9020_v60  ;;  %v9036_v60 = vld [vmem:[%s11402_s1 + $0x1f8] sm:$0xff] }
  0xc3   : > { %489 = vst [vmem:[#allocation4 + $0x3cc] sm:$0xf] %v457_v5  ;;  %v8874_v63 = vld [vmem:[#allocation4 + $0x16c] sm:$0xf]  ;;  %v7572_v3 = vor.u32 %v8946_v49, %v7569_v55  ;;  %v556_v5 = vpack.c.bf16 %v307_v41, %v307_v41  ;;  %v878_v49 = vld [vmem:[#allocation2 + $0x1a] sm:$0xff] }
  0xc4   : > { %392 = vst [vmem:[#allocation2 + $0x151] sm:$0xff] %v305_v8  ;;  %v7281_v0 = vld [vmem:[#allocation4 + $0x18c] sm:$0xf0] }
  0xc5   : > { %393 = vst [vmem:[#allocation2 + $0x159] sm:$0xff] %v306_v12  ;;  %v7279_v43 = vld [vmem:[#allocation4 + $0x168] sm:$0xf]  ;;  %v7284_v7 = vor.u32 %v8874_v63, %v7281_v0  ;;  %v9733_v12 = vpack.c.bf16 %v291_v37, %v291_v37 }
  0xc6   : > { %750 = vst [vmem:[#allocation4 + $0xc] sm:$0xf] %v9579_v57  ;;  %v7531_v57 = vld [vmem:[#allocation4 + $0x360] sm:$0xf]  ;;  %v8878_v46 = vld [vmem:[#allocation4 + $0x188] sm:$0xf0] }
  0xc7   : > { %2763 = vmatmul.bf16.gmra.mxu0 %v7244_v14  ;;  %v410_v25 = vld [vmem:[#allocation2 + $0x90] sm:$0xff]  ;;  %586 = vst [vmem:[#allocation4 + $0x3f4] sm:$0xf] %v554_v19  ;;  %v7532_v38 = vor.u32 %v8941_v33, %v7531_v57  ;;  %v7280_v61 = vor.u32 %v8878_v46, %v7279_v43  ;;  %v9018_v57 = vld [vmem:[%s11402_s1 + $0x168] sm:$0xff] }
  0xc8   : > { %v411_v27 = vld [vmem:[#allocation2 + $0x98] sm:$0xff]  ;;  %v9698_v28 = vpack.c.bf16 %v410_v25, %v410_v25  ;;  %587 = vst [vmem:[#allocation4 + $0x418] sm:$0xf] %v555_v23  ;;  %v9019_v23 = vld [vmem:[%s11402_s1 + $0x170] sm:$0xff]  ;;  %v8989_v25 = vld [vmem:[%s11402_s1 + $0x80] sm:$0xff] }
  0xc9   : > { %2892 = vmatmul.bf16.gmra.mxu3 %v7536_v18  ;;  %v9702_v32 = vpack.c.bf16 %v411_v27, %v411_v27  ;;  %570 = vst [vmem:[#allocation4 + $0x1b4] sm:$0xf] %v9696_v26  ;;  %v7567_v14 = vld [vmem:[#allocation4 + $0x3a8] sm:$0xf]  ;;  %v8997_v27 = vld [vmem:[%s11402_s1 + $0xc0] sm:$0xff]  ;;  %3181 = vmatpush.bf16.msrb.mxu1 %v9019_v23  ;;  %v9015_v46 = vld [vmem:[%s11402_s1 + $0x150] sm:$0xff] }
  0xca   : > { %474 = vst [vmem:[#allocation4 + $0x1b0] sm:$0xf] %v9698_v28  ;;  %v8950_v15 = vld [vmem:[#allocation4 + $0x3c8] sm:$0xf0]  ;;  %2920 = vmatpush.bf16.msrb.mxu2 %v8989_v25  ;;  %3009 = vmatpush.bf16.msrb.mxu3 %v8997_v27 }
  0xcb   : > { %2852 = vmatmul.bf16.gmra.mxu1 %v7248_v24  ;;  %475 = vst [vmem:[#allocation4 + $0x1d4] sm:$0xf] %v9702_v32  ;;  %v426_v34 = vld [vmem:[#allocation2 + $0x150] sm:$0xff]  ;;  %v7568_v16 = vor.u32 %v8950_v15, %v7567_v14  ;;  %v881_v15 = vld [vmem:[#allocation2 + $0x3a] sm:$0xff] }
  0xcc   : > { %v427_v35 = vld [vmem:[#allocation2 + $0x158] sm:$0xff]  ;;  %v458_v36 = vpack.c.bf16 %v426_v34, %v426_v34  ;;  %571 = vst [vmem:[#allocation4 + $0x1d8] sm:$0xf] %v9700_v29  ;;  %v9005_v34 = vld [vmem:[%s11402_s1 + $0x100] sm:$0xff] }
  0xcd   : > { %v459_v39 = vpack.c.bf16 %v427_v35, %v427_v35  ;;  %378 = vst [vmem:[#allocation2 + $0xa9] sm:$0xff] %v291_v37  ;;  %3098 = vmatpush.bf16.msrb.mxu0 %v9005_v34  ;;  %3182 = vmatpush.bf16.msrb.mxu1 %v9018_v57  ;;  %v880_v14 = vld [vmem:[#allocation2 + $0x32] sm:$0xff] }
  0xce   : > { %490 = vst [vmem:[#allocation4 + $0x3f0] sm:$0xf] %v458_v36  ;;  %v8955_v24 = vld [vmem:[#allocation4 + $0x3f4] sm:$0xf]  ;;  %v591_v36 = vld [vmem:[#allocation2 + $0xa] sm:$0xff]  ;;  %3358 = vmatpush.bf16.msra.mxu3 %v9036_v60 }
  0xcf   : > { %491 = vst [vmem:[#allocation4 + $0x414] sm:$0xf] %v459_v39  ;;  %v623_v39 = vpack.c.bf16 %v591_v36, %v591_v36  ;;  %v883_v34 = vld [vmem:[#allocation2 + $0x52] sm:$0xff] }
  0xd0   : > { %379 = vst [vmem:[#allocation2 + $0xb1] sm:$0xff] %v292_v40  ;;  %v8883_v33 = vld [vmem:[#allocation4 + $0x1b4] sm:$0xf] }
  0xd1   : > { %2803 = vmatmul.bf16.gmra.mxu2 %v7532_v38  ;;  %394 = vst [vmem:[#allocation2 + $0x169] sm:$0xff] %v307_v41  ;;  %v7315_v18 = vld [vmem:[#allocation4 + $0x1b0] sm:$0xf] }
  0xd2   : > { %395 = vst [vmem:[#allocation2 + $0x171] sm:$0xff] %v308_v42  ;;  %v8887_v19 = vld [vmem:[#allocation4 + $0x1d0] sm:$0xf0] }
  0xd3   : > { %751 = vst [vmem:[#allocation4 + $0x30] sm:$0xf] %v9581_v58  ;;  %v7317_v35 = vld [vmem:[#allocation4 + $0x1d4] sm:$0xf0]  ;;  %v9035_v36 = vld [vmem:[%s11402_s1 + $0x1f0] sm:$0xff] }
  0xd4   : > { %v412_v2 = vld [vmem:[#allocation2 + $0xa8] sm:$0xff]  ;;  %846 = vst [vmem:[#allocation4 + $0x10] sm:$0xf] %v9584_v62  ;;  %3359 = vmatpush.bf16.msra.mxu3 %v9035_v36 }
  0xd5   : > { %v9726_v4 = vpack.c.bf16 %v412_v2, %v412_v2  ;;  %847 = vst [vmem:[#allocation4 + $0x34] sm:$0xf] %v9587_v1 }
  0xd6   : > { %752 = vst [vmem:[#allocation4 + $0x54] sm:$0xf] %v9612_v30  ;;  %v9736_v30 = vpack.c.bf16 %v292_v40, %v292_v40  ;;  %v7603_v40 = vld [vmem:[#allocation4 + $0x3f0] sm:$0xf] }
  0xd7   : > { %2768 = vmatmul.bf16.gmra.mxu0 %v7280_v61  ;;  %v413_v8 = vld [vmem:[#allocation2 + $0xb0] sm:$0xff]  ;;  %476 = vst [vmem:[#allocation4 + $0x1f8] sm:$0xf] %v9726_v4  ;;  %v911_v61 = vpack.c.bf16 %v879_v50, %v879_v50 }
  0xd8   : > { %v9731_v58 = vpack.c.bf16 %v413_v8, %v413_v8  ;;  %v428_v9 = vld [vmem:[#allocation2 + $0x168] sm:$0xff]  ;;  %588 = vst [vmem:[#allocation4 + $0x43c] sm:$0xf] %v556_v5  ;;  %v9044_v5 = vld [vmem:[%s11402_s1 + $0x238] sm:$0xff] }
  0xd9   : > { %2897 = vmatmul.bf16.gmra.mxu3 %v7572_v3  ;;  %v429_v62 = vld [vmem:[#allocation2 + $0x170] sm:$0xff]  ;;  %v460_v10 = vpack.c.bf16 %v428_v9, %v428_v9  ;;  %589 = vst [vmem:[#allocation4 + $0x460] sm:$0xf] %v557_v6  ;;  %3447 = vmatpush.bf16.msra.mxu0 %v9044_v5 }
  0xda   : > { %477 = vst [vmem:[#allocation4 + $0x21c] sm:$0xf] %v9731_v58  ;;  %v461_v1 = vpack.c.bf16 %v429_v62, %v429_v62 }
  0xdb   : > { %2857 = vmatmul.bf16.gmra.mxu1 %v7284_v7  ;;  %492 = vst [vmem:[#allocation4 + $0x438] sm:$0xf] %v460_v10  ;;  %v7115_v62 = vld [vmem:[#allocation4 + $0x10] sm:$0xf] }
  0xdc   : > { %493 = vst [vmem:[#allocation4 + $0x45c] sm:$0xf] %v461_v1  ;;  %v8835_v10 = vld [vmem:[#allocation4 + $0x30] sm:$0xf0]  ;;  %v912_v1 = vpack.c.bf16 %v880_v14, %v880_v14 }
  0xdd   : > { %572 = vst [vmem:[#allocation4 + $0x1fc] sm:$0xf] %v9733_v12 }
  0xde   : > { %573 = vst [vmem:[#allocation4 + $0x220] sm:$0xf] %v9736_v30  ;;  %v7351_v41 = vld [vmem:[#allocation4 + $0x1f8] sm:$0xf] }
  0xdf   : > { %753 = vst [vmem:[#allocation4 + $0x78] sm:$0xf] %v9614_v31  ;;  %v7605_v31 = vld [vmem:[#allocation4 + $0x414] sm:$0xf0] }
  0xe0   : > { %848 = vst [vmem:[#allocation4 + $0x58] sm:$0xf] %v9604_v17  ;;  %v7316_v17 = vor.u32 %v8887_v19, %v7315_v18  ;;  %v7608_v37 = vor.u32 %v8955_v24, %v7605_v31  ;;  %v7641_v43 = vld [vmem:[#allocation4 + $0x45c] sm:$0xf0]  ;;  %v7109_v18 = vld [vmem:[#allocation4 + $0x2c] sm:$0xf0] }
  0xe1   : > { %2808 = vmatmul.bf16.gmra.mxu2 %v7568_v16  ;;  %849 = vst [vmem:[#allocation4 + $0x7c] sm:$0xf] %v9606_v20  ;;  %v590_v20 = vld [vmem:[#allocation2 + $0x2] sm:$0xff]  ;;  %v8896_v42 = vld [vmem:[#allocation4 + $0x218] sm:$0xf0]  ;;  %v913_v16 = vpack.c.bf16 %v881_v15, %v881_v15 }
  0xe2   : > { %754 = vst [vmem:[#allocation4 + $0x9c] sm:$0xf] %v9626_v47  ;;  %v622_v38 = vpack.c.bf16 %v590_v20, %v590_v20  ;;  %v9017_v47 = vld [vmem:[%s11402_s1 + $0x160] sm:$0xff]  ;;  %v7639_v7 = vld [vmem:[#allocation4 + $0x438] sm:$0xf]  ;;  %v9027_v20 = vld [vmem:[%s11402_s1 + $0x1b0] sm:$0xff] }
  0xe3   : > { %755 = vst [vmem:[#allocation4 + $0xc0] sm:$0xf] %v9633_v52  ;;  %v7320_v52 = vor.u32 %v8883_v33, %v7317_v35  ;;  %3183 = vmatpush.bf16.msrb.mxu1 %v9017_v47  ;;  %v8968_v8 = vld [vmem:[#allocation4 + $0x458] sm:$0xf0]  ;;  %v882_v33 = vld [vmem:[#allocation2 + $0x4a] sm:$0xff] }
  0xe4   : > { %850 = vst [vmem:[#allocation4 + $0xa0] sm:$0xf] %v9628_v48  ;;  %v8959_v48 = vld [vmem:[#allocation4 + $0x410] sm:$0xf0]  ;;  %v8892_v51 = vld [vmem:[#allocation4 + $0x1fc] sm:$0xf]  ;;  %v7640_v9 = vor.u32 %v8968_v8, %v7639_v7 }
  0xe5   : > { %851 = vst [vmem:[#allocation4 + $0xc4] sm:$0xf] %v9635_v53  ;;  %v9016_v53 = vld [vmem:[%s11402_s1 + $0x158] sm:$0xff]  ;;  %v7353_v63 = vld [vmem:[#allocation4 + $0x21c] sm:$0xf0] }
  0xe6   : > { %756 = vst [vmem:[#allocation4 + $0xe4] sm:$0xf] %v9649_v21  ;;  %v7604_v21 = vor.u32 %v8959_v48, %v7603_v40  ;;  %v7356_v6 = vor.u32 %v8892_v51, %v7353_v63  ;;  %v7145_v47 = vld [vmem:[#allocation4 + $0x74] sm:$0xf0]  ;;  %v884_v63 = vld [vmem:[#allocation2 + $0x62] sm:$0xff] }
  0xe7   : > { %2773 = vmatmul.bf16.gmra.mxu0 %v7316_v17  ;;  %654 = vst [vmem:[#allocation4 + $0x8] sm:$0xf] %v622_v38  ;;  %3184 = vmatpush.bf16.msrb.mxu1 %v9016_v53  ;;  %v7151_v31 = vld [vmem:[#allocation4 + $0x58] sm:$0xf]  ;;  %v915_v38 = vpack.c.bf16 %v883_v34, %v883_v34 }
  0xe8   : > { %655 = vst [vmem:[#allocation4 + $0x2c] sm:$0xf] %v623_v39  ;;  %v8844_v17 = vld [vmem:[#allocation4 + $0x78] sm:$0xf0]  ;;  %v8839_v39 = vld [vmem:[#allocation4 + $0x54] sm:$0xf] }
  0xe9   : > { %2902 = vmatmul.bf16.gmra.mxu3 %v7608_v37  ;;  %757 = vst [vmem:[#allocation4 + $0x108] sm:$0xf] %v9652_v22  ;;  %v8964_v22 = vld [vmem:[#allocation4 + $0x43c] sm:$0xf]  ;;  %v914_v37 = vpack.c.bf16 %v882_v33, %v882_v33  ;;  %v9034_v33 = vld [vmem:[%s11402_s1 + $0x1e8] sm:$0xff] }
  0xea   : > { %852 = vst [vmem:[#allocation4 + $0xe8] sm:$0xf] %v9645_v11  ;;  %v3919_v11 = vld [vmem:[#allocation3 + $0x2] sm:$0xff]  ;;  %v7644_v3 = vor.u32 %v8964_v22, %v7641_v43  ;;  %v7148_v22 = vor.u32 %v8839_v39, %v7145_v47  ;;  %v8848_v5 = vld [vmem:[#allocation4 + $0x9c] sm:$0xf]  ;;  %3360 = vmatpush.bf16.msra.mxu3 %v9034_v33 }
  0xeb   : > { %2862 = vmatmul.bf16.gmra.mxu1 %v7320_v52  ;;  %853 = vst [vmem:[#allocation4 + $0x10c] sm:$0xf] %v9647_v13  ;;  %v3920_v13 = vld [vmem:[#allocation3 + $0xa] sm:$0xff]  ;;  %v3951_v55 = vpack.c.bf16 %v3919_v11, %v3919_v11  ;;  %v7152_v52 = vor.u32 %v8844_v17, %v7151_v31  ;;  %v9043_v43 = vld [vmem:[%s11402_s1 + $0x230] sm:$0xff]  ;;  %v887_v31 = vld [vmem:[#allocation2 + $0x82] sm:$0xff] }
  0xec   : > { %758 = vst [vmem:[#allocation4 + $0x12c] sm:$0xf] %v9674_v54  ;;  %v9028_v54 = vld [vmem:[%s11402_s1 + $0x1b8] sm:$0xff]  ;;  %v3952_v59 = vpack.c.bf16 %v3920_v13, %v3920_v13  ;;  %3185 = vmatpush.bf16.msrb.mxu1 %v9015_v46  ;;  %3448 = vmatpush.bf16.msra.mxu0 %v9043_v43  ;;  %v7187_v60 = vld [vmem:[#allocation4 + $0xa0] sm:$0xf]  ;;  %v9026_v17 = vld [vmem:[%s11402_s1 + $0x1a8] sm:$0xff] }
  0xed   : > { %759 = vst [vmem:[#allocation4 + $0x150] sm:$0xf] %v9677_v56  ;;  %v910_v56 = vpack.c.bf16 %v878_v49, %v878_v49  ;;  %3269 = vmatpush.bf16.msra.mxu2 %v9028_v54  ;;  %v8857_v36 = vld [vmem:[#allocation4 + $0xe4] sm:$0xf] }
  0xee   : > { %854 = vst [vmem:[#allocation4 + $0x130] sm:$0xf] %v9670_v44  ;;  %v7352_v44 = vor.u32 %v8896_v42, %v7351_v41  ;;  %v9786_v0 = vld [vmem:[#allocation4 + $0x8] sm:$0xf] }
  0xef   : > { %855 = vst [vmem:[#allocation4 + $0x154] sm:$0xf] %v9672_v45  ;;  %v8834_v2 = vld [vmem:[#allocation4 + $0x28] sm:$0xf0] }
  0xf0   : > { %760 = vst [vmem:[#allocation4 + $0x174] sm:$0xf] %v9698_v28  ;;  %v9014_v45 = vld [vmem:[%s11402_s1 + $0x148] sm:$0xff]  ;;  %v9013_v28 = vld [vmem:[%s11402_s1 + $0x140] sm:$0xff] }
  0xf1   : > { %2813 = vmatmul.bf16.gmra.mxu2 %v7604_v21  ;;  %942 = vst [vmem:[#allocation4 + $0x14] sm:$0xf] %v910_v56  ;;  %3186 = vmatpush.bf16.msrb.mxu1 %v9014_v45  ;;  %v916_v45 = vpack.c.bf16 %v884_v63, %v884_v63  ;;  %v888_v63 = vld [vmem:[#allocation2 + $0x92] sm:$0xff] }
  0xf2   : > { %3983 = vst [vmem:[#allocation4 + $0x8] sm:$0xf] %v3951_v55  ;;  %3270 = vmatpush.bf16.msra.mxu2 %v9027_v20  ;;  %v919_v20 = vpack.c.bf16 %v887_v31, %v887_v31 }
  0xf3   : > { %3984 = vst [vmem:[#allocation4 + $0x2c] sm:$0xf] %v3952_v59 }
  0xf4   : > { %943 = vst [vmem:[#allocation4 + $0x38] sm:$0xf] %v911_v61 }
  0xf5   : > { %656 = vst [vmem:[#allocation4 + $0x50] sm:$0xf] %v910_v56  ;;  %3187 = vmatpush.bf16.msrb.mxu1 %v9013_v28  ;;  %v7181_v28 = vld [vmem:[#allocation4 + $0xbc] sm:$0xf0] }
  0xf6   : > { %657 = vst [vmem:[#allocation4 + $0x74] sm:$0xf] %v911_v61  ;;  %v7184_v15 = vor.u32 %v8848_v5, %v7181_v28  ;;  %3271 = vmatpush.bf16.msra.mxu2 %v9026_v17  ;;  %v8866_v28 = vld [vmem:[#allocation4 + $0x12c] sm:$0xf] }
  0xf7   : > { %2778 = vmatmul.bf16.gmra.mxu0 %v7352_v44  ;;  %761 = vst [vmem:[#allocation4 + $0x198] sm:$0xf] %v9702_v32  ;;  %v2744_v32 = vpop.f32.mrf.mxu0  ;;  %v8853_v44 = vld [vmem:[#allocation4 + $0xc0] sm:$0xf0]  ;;  %v8875_v31 = vld [vmem:[#allocation4 + $0x174] sm:$0xf] }
  0xf8   : > { %856 = vst [vmem:[#allocation4 + $0x178] sm:$0xf] %v9696_v26  ;;  %v8830_v26 = vld [vmem:[#allocation4 + $0xc] sm:$0xf] }
  0xf9   : > { %2907 = vmatmul.bf16.gmra.mxu3 %v7644_v3  ;;  %857 = vst [vmem:[#allocation4 + $0x19c] sm:$0xf] %v9700_v29  ;;  %v7116_v29 = vor.u32 %v8835_v10, %v7115_v62 }
  0xfa   : > { %762 = vst [vmem:[#allocation4 + $0x1bc] sm:$0xf] %v9726_v4  ;;  %v8831_v4 = vld [vmem:[#allocation4 + $0x14] sm:$0xf] }
  0xfb   : > { %2867 = vmatmul.bf16.gmra.mxu1 %v7356_v6  ;;  %763 = vst [vmem:[#allocation4 + $0x1e0] sm:$0xf] %v9731_v58  ;;  %v7117_v19 = vld [vmem:[#allocation4 + $0x34] sm:$0xf0]  ;;  %v7112_v58 = vor.u32 %v8830_v26, %v7109_v18  ;;  %v7188_v6 = vor.u32 %v8853_v44, %v7187_v60  ;;  %v7259_v60 = vld [vmem:[#allocation4 + $0x130] sm:$0xf] }
  0xfc   : > { %858 = vst [vmem:[#allocation4 + $0x1c0] sm:$0xf] %v9733_v12  ;;  %v7120_v23 = vor.u32 %v8831_v4, %v7117_v19  ;;  %v7143_v11 = vld [vmem:[#allocation4 + $0x50] sm:$0xf]  ;;  %v8871_v44 = vld [vmem:[#allocation4 + $0x150] sm:$0xf0] }
  0xfd   : > { %859 = vst [vmem:[#allocation4 + $0x1e4] sm:$0xf] %v9736_v30  ;;  %v7108_v30 = vor.u32 %v8834_v2, %v9786_v0  ;;  %v8843_v13 = vld [vmem:[#allocation4 + $0x70] sm:$0xf0]  ;;  %v885_v0 = vld [vmem:[#allocation2 + $0x6a] sm:$0xff] }
  0xfe   : > { %944 = vst [vmem:[#allocation4 + $0x5c] sm:$0xf] %v912_v1  ;;  %v7144_v55 = vor.u32 %v8843_v13, %v7143_v11  ;;  %v917_v3 = vpack.c.bf16 %v885_v0, %v885_v0  ;;  %v889_v0 = vld [vmem:[#allocation2 + $0x9a] sm:$0xff] }
  0xff   : > { %945 = vst [vmem:[#allocation4 + $0x80] sm:$0xf] %v913_v16  ;;  %v2746_v25 = vpop.f32.mrf.mxu0  ;;  %v921_v5 = vpack.c.bf16 %v889_v0, %v889_v0  ;;  %v7295_v17 = vld [vmem:[#allocation4 + $0x178] sm:$0xf] }
 0x100   : > { %658 = vst [vmem:[#allocation4 + $0x98] sm:$0xf] %v912_v1 }
 0x101   : > { %2818 = vmatmul.bf16.gmra.mxu2 %v7640_v9  ;;  %659 = vst [vmem:[#allocation4 + $0xbc] sm:$0xf] %v913_v16 }
 0x102   : > { %946 = vst [vmem:[#allocation4 + $0xa4] sm:$0xf] %v914_v37 }
 0x103   : > { %947 = vst [vmem:[#allocation4 + $0xc8] sm:$0xf] %v915_v38 }
 0x104   : > { %660 = vst [vmem:[#allocation4 + $0xe0] sm:$0xf] %v914_v37  ;;  %v7217_v37 = vld [vmem:[#allocation4 + $0x104] sm:$0xf0] }
 0x105   : > { %v8840_v53 = vld [vmem:[#allocation4 + $0x5c] sm:$0xf]  ;;  %661 = vst [vmem:[#allocation4 + $0x104] sm:$0xf] %v915_v38 }
 0x106   : > { %v7153_v21 = vld [vmem:[#allocation4 + $0x7c] sm:$0xf0]  ;;  %948 = vst [vmem:[#allocation4 + $0xec] sm:$0xf] %v916_v45 }
 0x107   : > { %3099 = vmatmul.bf16.vlgmr.msrb.gmra.mxu0 %v7116_v29  ;;  %v7156_v46 = vor.u32 %v8840_v53, %v7153_v21  ;;  %949 = vst [vmem:[#allocation4 + $0x110] sm:$0xf] %v917_v3  ;;  %v7179_v26 = vld [vmem:[#allocation4 + $0x98] sm:$0xf]  ;;  %v7220_v21 = vor.u32 %v8857_v36, %v7217_v37 }
 0x108   : > { %v2833_v24 = vpop.f32.mrf.mxu1  ;;  %662 = vst [vmem:[#allocation4 + $0x128] sm:$0xf] %v916_v45  ;;  %v8852_v18 = vld [vmem:[#allocation4 + $0xb8] sm:$0xf0]  ;;  %v891_v36 = vld [vmem:[#allocation2 + $0xb2] sm:$0xff] }
 0x109   : > { %v9804_v12 = vadd.f32 %v2833_v24, %v2744_v32  ;;  %3010 = vmatmul.bf16.vlgmr.msrb.gmra.mxu3 %v7112_v58  ;;  %v8849_v9 = vld [vmem:[#allocation4 + $0xa4] sm:$0xf]  ;;  %663 = vst [vmem:[#allocation4 + $0x14c] sm:$0xf] %v917_v3  ;;  %v7180_v58 = vor.u32 %v8852_v18, %v7179_v26  ;;  %v7223_v24 = vld [vmem:[#allocation4 + $0xe8] sm:$0xf]  ;;  %v920_v3 = vpack.c.bf16 %v888_v63, %v888_v63 }
 0x10a   : > { %v7189_v62 = vld [vmem:[#allocation4 + $0xc4] sm:$0xf0]  ;;  %951 = vst [vmem:[#allocation4 + $0x158] sm:$0xf] %v919_v20 }
 0x10b   : > { %3188 = vmatmul.bf16.vlgmr.msrb.gmra.mxu1 %v7120_v23  ;;  %v7192_v32 = vor.u32 %v8849_v9, %v7189_v62  ;;  %665 = vst [vmem:[#allocation4 + $0x194] sm:$0xf] %v919_v20  ;;  %v890_v20 = vld [vmem:[#allocation2 + $0xaa] sm:$0xff] }
 0x10c   : > { %v2873_v27 = vpop.f32.mrf.mxu3  ;;  %v8861_v11 = vld [vmem:[#allocation4 + $0x100] sm:$0xf0]  ;;  %952 = vst [vmem:[#allocation4 + $0x17c] sm:$0xf] %v920_v3  ;;  %v797_v63 = vld [vmem:[#allocation2 + $0xc9] sm:$0xff] }
 0x10d   : > { %953 = vst [vmem:[#allocation4 + $0x1a0] sm:$0xf] %v921_v5 }
 0x10e   : > { %666 = vst [vmem:[#allocation4 + $0x1b8] sm:$0xf] %v920_v3  ;;  %v829_v3 = vpack.c.bf16 %v797_v63, %v797_v63 }
 0x10f   : > { %667 = vst [vmem:[#allocation4 + $0x1dc] sm:$0xf] %v921_v5 }
 0x110   : > { %v2835_v57 = vpop.f32.mrf.mxu1  ;;  %861 = vst [vmem:[#allocation4 + $0x22c] sm:$0xf] %v829_v3 }
 0x111   : > { %2921 = vmatmul.bf16.vlgmr.msrb.gmra.mxu2 %v7108_v30  ;;  %v9807_v35 = vadd.f32 %v2835_v57, %v2746_v25  ;;  %v886_v30 = vld [vmem:[#allocation2 + $0x7a] sm:$0xff] }
 0x112   : > { %v918_v34 = vpack.c.bf16 %v886_v30, %v886_v30 }
 0x114   : > { %v2784_v40 = vpop.f32.mrf.mxu2  ;;  %v2875_v48 = vpop.f32.mrf.mxu3  ;;  %950 = vst [vmem:[#allocation4 + $0x134] sm:$0xf] %v918_v34 }
 0x115   : > { %v9815_v41 = vadd.f32 %v2873_v27, %v2784_v40  ;;  %v2749_v42 = vpop.f32.mrf.mxu0  ;;  %v8862_v27 = vld [vmem:[#allocation4 + $0x108] sm:$0xf0]  ;;  %v7225_v40 = vld [vmem:[#allocation4 + $0x10c] sm:$0xf0]  ;;  %664 = vst [vmem:[#allocation4 + $0x170] sm:$0xf] %v918_v34 }
 0x116   : > { %v7224_v38 = vor.u32 %v8862_v27, %v7223_v24  ;;  %v8880_v34 = vld [vmem:[#allocation4 + $0x198] sm:$0xf0] }
 0x117   : > { %3104 = vmatmul.bf16.gmra.mxu0 %v7152_v52  ;;  %v8858_v52 = vld [vmem:[#allocation4 + $0xec] sm:$0xf] }
 0x118   : > { %v2838_v49 = vpop.f32.mrf.mxu1 }
 0x119   : > { %v9820_v50 = vadd.f32 %v2838_v49, %v2749_v42  ;;  %3015 = vmatmul.bf16.gmra.mxu3 %v7148_v22  ;;  %v9042_v42 = vld [vmem:[%s11402_s1 + $0x228] sm:$0xff]  ;;  %v7228_v22 = vor.u32 %v8858_v52, %v7225_v40  ;;  %v7215_v49 = vld [vmem:[#allocation4 + $0xe0] sm:$0xf]  ;;  %v922_v52 = vpack.c.bf16 %v890_v20, %v890_v20  ;;  %v923_v40 = vpack.c.bf16 %v891_v36, %v891_v36 }
 0x11a   : > { %3449 = vmatpush.bf16.msra.mxu0 %v9042_v42  ;;  %v7297_v42 = vld [vmem:[#allocation4 + $0x19c] sm:$0xf0] }
 0x11b   : > { %3193 = vmatmul.bf16.gmra.mxu1 %v7156_v46  ;;  %v8867_v62 = vld [vmem:[#allocation4 + $0x134] sm:$0xf]  ;;  %954 = vst [vmem:[#allocation4 + $0x1c4] sm:$0xf] %v922_v52 }
 0x11c   : > { %v2786_v54 = vpop.f32.mrf.mxu2  ;;  %v2878_v56 = vpop.f32.mrf.mxu3  ;;  %955 = vst [vmem:[#allocation4 + $0x1e8] sm:$0xf] %v923_v40 }
 0x11d   : > { %v9822_v51 = vadd.f32 %v2875_v48, %v2786_v54  ;;  %v2751_v59 = vpop.f32.mrf.mxu0  ;;  %668 = vst [vmem:[#allocation4 + $0x200] sm:$0xf] %v922_v52  ;;  %v703_v52 = vld [vmem:[#allocation2 + $0xe0] sm:$0xff] }
 0x11e   : > { %669 = vst [vmem:[#allocation4 + $0x224] sm:$0xf] %v923_v40  ;;  %v798_v40 = vld [vmem:[#allocation2 + $0xd9] sm:$0xff] }
 0x120   : > { %v2840_v61 = vpop.f32.mrf.mxu1 }
 0x121   : > { %2926 = vmatmul.bf16.gmra.mxu2 %v7144_v55  ;;  %v9824_v2 = vadd.f32 %v2840_v61, %v2751_v59  ;;  %v7216_v55 = vor.u32 %v8861_v11, %v7215_v49  ;;  %v700_v11 = vld [vmem:[#allocation2 + $0xc0] sm:$0xff] }
 0x123   : > { %v7333_v20 = vld [vmem:[#allocation4 + $0x1e4] sm:$0xf0] }
 0x124   : > { %v2789_v7 = vpop.f32.mrf.mxu2  ;;  %v2880_v8 = vpop.f32.mrf.mxu3 }
 0x125   : > { %v9826_v10 = vadd.f32 %v2878_v56, %v2789_v7  ;;  %v2754_v14 = vpop.f32.mrf.mxu0  ;;  %v7260_v7 = vor.u32 %v8871_v44, %v7259_v60  ;;  %v9041_v60 = vld [vmem:[%s11402_s1 + $0x220] sm:$0xff] }
 0x126   : > { %3450 = vmatpush.bf16.msra.mxu0 %v9041_v60  ;;  %v7323_v60 = vld [vmem:[#allocation4 + $0x1b8] sm:$0xf] }
 0x127   : > { %3109 = vmatmul.bf16.gmra.mxu0 %v7188_v6  ;;  %v7253_v6 = vld [vmem:[#allocation4 + $0x14c] sm:$0xf0] }
 0x128   : > { %v2843_v1 = vpop.f32.mrf.mxu1 }
 0x129   : > { %v9828_v16 = vadd.f32 %v2843_v1, %v2754_v14  ;;  %3020 = vmatmul.bf16.gmra.mxu3 %v7184_v15  ;;  %v7261_v14 = vld [vmem:[#allocation4 + $0x154] sm:$0xf0]  ;;  %v7256_v1 = vor.u32 %v8866_v28, %v7253_v6 }
 0x12a   : > { %v7264_v26 = vor.u32 %v8867_v62, %v7261_v14 }
 0x12b   : > { %3198 = vmatmul.bf16.gmra.mxu1 %v7192_v32 }
 0x12c   : > { %v2791_v29 = vpop.f32.mrf.mxu2  ;;  %v2883_v4 = vpop.f32.mrf.mxu3 }
 0x12d   : > { %v9830_v19 = vadd.f32 %v2880_v8, %v2791_v29  ;;  %v2756_v23 = vpop.f32.mrf.mxu0 }
 0x130   : > { %v2845_v25 = vpop.f32.mrf.mxu1 }
 0x131   : > { %2931 = vmatmul.bf16.gmra.mxu2 %v7180_v58  ;;  %v9832_v57 = vadd.f32 %v2845_v25, %v2756_v23  ;;  %v8870_v58 = vld [vmem:[#allocation4 + $0x148] sm:$0xf0] }
 0x134   : > { %v2794_v39 = vpop.f32.mrf.mxu2  ;;  %v2885_v47 = vpop.f32.mrf.mxu3 }
 0x135   : > { %v9840_v48 = vadd.f32 %v2883_v4, %v2794_v39  ;;  %v2759_v53 = vpop.f32.mrf.mxu0  ;;  %v7251_v4 = vld [vmem:[#allocation4 + $0x128] sm:$0xf]  ;;  %v9025_v39 = vld [vmem:[%s11402_s1 + $0x1a0] sm:$0xff] }
 0x136   : > { %v7252_v27 = vor.u32 %v8870_v58, %v7251_v4  ;;  %3272 = vmatpush.bf16.msra.mxu2 %v9025_v39  ;;  %v8889_v4 = vld [vmem:[#allocation4 + $0x1e0] sm:$0xf0] }
 0x137   : > { %3114 = vmatmul.bf16.gmra.mxu0 %v7224_v38  ;;  %v7289_v38 = vld [vmem:[#allocation4 + $0x194] sm:$0xf0]  ;;  %v892_v58 = vld [vmem:[#allocation2 + $0xc2] sm:$0xff] }
 0x138   : > { %v2848_v43 = vpop.f32.mrf.mxu1  ;;  %v7292_v49 = vor.u32 %v8875_v31, %v7289_v38  ;;  %v924_v31 = vpack.c.bf16 %v892_v58, %v892_v58 }
 0x139   : > { %v9845_v46 = vadd.f32 %v2848_v43, %v2759_v53  ;;  %3025 = vmatmul.bf16.gmra.mxu3 %v7220_v21  ;;  %v7296_v53 = vor.u32 %v8880_v34, %v7295_v17  ;;  %v8876_v21 = vld [vmem:[#allocation4 + $0x17c] sm:$0xf]  ;;  %v8885_v34 = vld [vmem:[#allocation4 + $0x1c4] sm:$0xf] }
 0x13a   : > { %v7300_v5 = vor.u32 %v8876_v21, %v7297_v42  ;;  %956 = vst [vmem:[#allocation4 + $0x20c] sm:$0xf] %v924_v31 }
 0x13b   : > { %3203 = vmatmul.bf16.gmra.mxu1 %v7228_v22  ;;  %670 = vst [vmem:[#allocation4 + $0x248] sm:$0xf] %v924_v31 }
 0x13c   : > { %v2796_v13 = vpop.f32.mrf.mxu2  ;;  %v2888_v54 = vpop.f32.mrf.mxu3 }
 0x13d   : > { %v9847_v56 = vadd.f32 %v2885_v47, %v2796_v13  ;;  %v2761_v59 = vpop.f32.mrf.mxu0  ;;  %v9033_v47 = vld [vmem:[%s11402_s1 + $0x1e0] sm:$0xff]  ;;  %v701_v13 = vld [vmem:[#allocation2 + $0xc8] sm:$0xff] }
 0x13e   : > { %3361 = vmatpush.bf16.msra.mxu3 %v9033_v47  ;;  %v733_v44 = vpack.c.bf16 %v701_v13, %v701_v13  ;;  %v702_v47 = vld [vmem:[#allocation2 + $0xd8] sm:$0xff]  ;;  %v7336_v13 = vor.u32 %v8885_v34, %v7333_v20  ;;  %v704_v20 = vld [vmem:[#allocation2 + $0xf0] sm:$0xff] }
 0x13f   : > { %v734_v42 = vpack.c.bf16 %v702_v47, %v702_v47 }
 0x140   : > { %v2850_v61 = vpop.f32.mrf.mxu1  ;;  %765 = vst [vmem:[#allocation4 + $0x228] sm:$0xf] %v733_v44 }
 0x141   : > { %2936 = vmatmul.bf16.gmra.mxu2 %v7216_v55  ;;  %v9849_v45 = vadd.f32 %v2850_v61, %v2761_v59  ;;  %v732_v61 = vpack.c.bf16 %v700_v11, %v700_v11  ;;  %766 = vst [vmem:[#allocation4 + $0x24c] sm:$0xf] %v734_v42 }
 0x143   : > { %764 = vst [vmem:[#allocation4 + $0x204] sm:$0xf] %v732_v61  ;;  %v8888_v61 = vld [vmem:[#allocation4 + $0x1d8] sm:$0xf0] }
 0x144   : > { %v2799_v8 = vpop.f32.mrf.mxu2  ;;  %v2890_v9 = vpop.f32.mrf.mxu3  ;;  %v7324_v3 = vor.u32 %v8888_v61, %v7323_v60  ;;  %v9040_v60 = vld [vmem:[%s11402_s1 + $0x218] sm:$0xff] }
 0x145   : > { %v9851_v15 = vadd.f32 %v2888_v54, %v2799_v8  ;;  %v2764_v32 = vpop.f32.mrf.mxu0  ;;  %v796_v54 = vld [vmem:[#allocation2 + $0xc1] sm:$0xff]  ;;  %v8879_v8 = vld [vmem:[#allocation4 + $0x190] sm:$0xf0]  ;;  %3451 = vmatpush.bf16.msra.mxu0 %v9040_v60 }
 0x146   : > { %v828_v0 = vpack.c.bf16 %v796_v54, %v796_v54 }
 0x147   : > { %3119 = vmatmul.bf16.gmra.mxu0 %v7260_v7  ;;  %v7287_v7 = vld [vmem:[#allocation4 + $0x170] sm:$0xf] }
 0x148   : > { %v2853_v18 = vpop.f32.mrf.mxu1  ;;  %860 = vst [vmem:[#allocation4 + $0x208] sm:$0xf] %v828_v0 }
 0x149   : > { %v9853_v29 = vadd.f32 %v2853_v18, %v2764_v32  ;;  %3030 = vmatmul.bf16.gmra.mxu3 %v7256_v1  ;;  %v7288_v32 = vor.u32 %v8879_v8, %v7287_v7 }
 0x14b   : > { %3208 = vmatmul.bf16.gmra.mxu1 %v7264_v26  ;;  %v7331_v26 = vld [vmem:[#allocation4 + $0x1c0] sm:$0xf] }
 0x14c   : > { %v2801_v23 = vpop.f32.mrf.mxu2  ;;  %v2893_v24 = vpop.f32.mrf.mxu3 }
 0x14d   : > { %v9855_v25 = vadd.f32 %v2890_v9, %v2801_v23  ;;  %v2766_v30 = vpop.f32.mrf.mxu0  ;;  %v893_v23 = vld [vmem:[#allocation2 + $0xca] sm:$0xff] }
 0x14e   : > { %v925_v17 = vpack.c.bf16 %v893_v23, %v893_v23 }
 0x14f   : > { %v7367_v7 = vld [vmem:[#allocation4 + $0x208] sm:$0xf] }
 0x150   : > { %v2855_v33 = vpop.f32.mrf.mxu1  ;;  %957 = vst [vmem:[#allocation4 + $0x230] sm:$0xf] %v925_v17 }
 0x151   : > { %2941 = vmatmul.bf16.gmra.mxu2 %v7252_v27  ;;  %v9857_v37 = vadd.f32 %v2855_v33, %v2766_v30  ;;  %v8884_v27 = vld [vmem:[#allocation4 + $0x1bc] sm:$0xf]  ;;  %v7325_v30 = vld [vmem:[#allocation4 + $0x1dc] sm:$0xf0]  ;;  %v7332_v33 = vor.u32 %v8889_v4, %v7331_v26  ;;  %671 = vst [vmem:[#allocation4 + $0x26c] sm:$0xf] %v925_v17 }
 0x152   : > { %v7328_v39 = vor.u32 %v8884_v27, %v7325_v30  ;;  %v7361_v26 = vld [vmem:[#allocation4 + $0x224] sm:$0xf0]  ;;  %v9032_v4 = vld [vmem:[%s11402_s1 + $0x1d8] sm:$0xff]  ;;  %v8894_v30 = vld [vmem:[#allocation4 + $0x20c] sm:$0xf] }
 0x153   : > { %3362 = vmatpush.bf16.msra.mxu3 %v9032_v4 }
 0x154   : > { %v2804_v22 = vpop.f32.mrf.mxu2  ;;  %v2895_v43 = vpop.f32.mrf.mxu3 }
 0x155   : > { %v9865_v55 = vadd.f32 %v2893_v24, %v2804_v22  ;;  %v2769_v59 = vpop.f32.mrf.mxu0  ;;  %v735_v22 = vpack.c.bf16 %v703_v52, %v703_v52  ;;  %v736_v52 = vpack.c.bf16 %v704_v20, %v704_v20  ;;  %v707_v20 = vld [vmem:[#allocation2 + $0x110] sm:$0xff] }
 0x157   : > { %3124 = vmatmul.bf16.gmra.mxu0 %v7296_v53  ;;  %767 = vst [vmem:[#allocation4 + $0x270] sm:$0xf] %v735_v22  ;;  %v7369_v31 = vld [vmem:[#allocation4 + $0x22c] sm:$0xf0] }
 0x158   : > { %v2858_v28 = vpop.f32.mrf.mxu1  ;;  %768 = vst [vmem:[#allocation4 + $0x294] sm:$0xf] %v736_v52 }
 0x159   : > { %v9870_v6 = vadd.f32 %v2858_v28, %v2769_v59  ;;  %3035 = vmatmul.bf16.gmra.mxu3 %v7292_v49  ;;  %v830_v49 = vpack.c.bf16 %v798_v40, %v798_v40  ;;  %v8893_v28 = vld [vmem:[#allocation4 + $0x204] sm:$0xf] }
 0x15a   : > { %v7364_v34 = vor.u32 %v8893_v28, %v7361_v26  ;;  %v8902_v26 = vld [vmem:[#allocation4 + $0x24c] sm:$0xf] }
 0x15b   : > { %3213 = vmatmul.bf16.gmra.mxu1 %v7300_v5  ;;  %862 = vst [vmem:[#allocation4 + $0x250] sm:$0xf] %v830_v49 }
 0x15c   : > { %v2806_v9 = vpop.f32.mrf.mxu2  ;;  %v2898_v62 = vpop.f32.mrf.mxu3 }
 0x15d   : > { %v9872_v14 = vadd.f32 %v2895_v43, %v2806_v9  ;;  %v2771_v1 = vpop.f32.mrf.mxu0  ;;  %v799_v43 = vld [vmem:[#allocation2 + $0xe1] sm:$0xff]  ;;  %v8898_v9 = vld [vmem:[#allocation4 + $0x228] sm:$0xf0] }
 0x15e   : > { %v831_v11 = vpack.c.bf16 %v799_v43, %v799_v43  ;;  %v7368_v27 = vor.u32 %v8898_v9, %v7367_v7  ;;  %v7372_v43 = vor.u32 %v8894_v30, %v7369_v31  ;;  %v896_v9 = vld [vmem:[#allocation2 + $0xf2] sm:$0xff] }
 0x15f   : > { %v928_v4 = vpack.c.bf16 %v896_v9, %v896_v9 }
 0x160   : > { %v2860_v18 = vpop.f32.mrf.mxu1  ;;  %863 = vst [vmem:[#allocation4 + $0x274] sm:$0xf] %v831_v11 }
 0x161   : > { %2946 = vmatmul.bf16.gmra.mxu2 %v7288_v32  ;;  %v9874_v24 = vadd.f32 %v2860_v18, %v2771_v1  ;;  %v895_v32 = vld [vmem:[#allocation2 + $0xe2] sm:$0xff]  ;;  %v9024_v18 = vld [vmem:[%s11402_s1 + $0x198] sm:$0xff]  ;;  %960 = vst [vmem:[#allocation4 + $0x29c] sm:$0xf] %v928_v4 }
 0x162   : > { %v927_v23 = vpack.c.bf16 %v895_v32, %v895_v32  ;;  %3273 = vmatpush.bf16.msra.mxu2 %v9024_v18  ;;  %v7403_v28 = vld [vmem:[#allocation4 + $0x250] sm:$0xf]  ;;  %674 = vst [vmem:[#allocation4 + $0x2d8] sm:$0xf] %v928_v4 }
 0x163   : > { %v7397_v18 = vld [vmem:[#allocation4 + $0x26c] sm:$0xf0] }
 0x164   : > { %v2809_v36 = vpop.f32.mrf.mxu2  ;;  %v2900_v38 = vpop.f32.mrf.mxu3  ;;  %959 = vst [vmem:[#allocation4 + $0x278] sm:$0xf] %v927_v23 }
 0x165   : > { %v9876_v53 = vadd.f32 %v2898_v62, %v2809_v36  ;;  %v2774_v21 = vpop.f32.mrf.mxu0  ;;  %v894_v62 = vld [vmem:[#allocation2 + $0xda] sm:$0xff]  ;;  %673 = vst [vmem:[#allocation4 + $0x2b4] sm:$0xf] %v927_v23 }
 0x166   : > { %v926_v58 = vpack.c.bf16 %v894_v62, %v894_v62  ;;  %v705_v36 = vld [vmem:[#allocation2 + $0xf8] sm:$0xff] }
 0x167   : > { %3129 = vmatmul.bf16.gmra.mxu0 %v7332_v33  ;;  %v737_v40 = vpack.c.bf16 %v705_v36, %v705_v36  ;;  %v897_v62 = vld [vmem:[#allocation2 + $0xfa] sm:$0xff]  ;;  %v802_v36 = vld [vmem:[#allocation2 + $0x109] sm:$0xff] }
 0x168   : > { %v2863_v54 = vpop.f32.mrf.mxu1  ;;  %958 = vst [vmem:[#allocation4 + $0x254] sm:$0xf] %v926_v58 }
 0x169   : > { %v9878_v59 = vadd.f32 %v2863_v54, %v2774_v21  ;;  %3040 = vmatmul.bf16.gmra.mxu3 %v7328_v39  ;;  %672 = vst [vmem:[#allocation4 + $0x290] sm:$0xf] %v926_v58  ;;  %v801_v21 = vld [vmem:[#allocation2 + $0xf9] sm:$0xff]  ;;  %v8897_v54 = vld [vmem:[#allocation4 + $0x220] sm:$0xf0]  ;;  %v929_v58 = vpack.c.bf16 %v897_v62, %v897_v62  ;;  %v898_v62 = vld [vmem:[#allocation2 + $0x10a] sm:$0xff] }
 0x16a   : > { %v833_v22 = vpack.c.bf16 %v801_v21, %v801_v21  ;;  %769 = vst [vmem:[#allocation4 + $0x2b8] sm:$0xf] %v737_v40  ;;  %v739_v40 = vpack.c.bf16 %v707_v20, %v707_v20  ;;  %v803_v21 = vld [vmem:[#allocation2 + $0x111] sm:$0xff] }
 0x16b   : > { %3218 = vmatmul.bf16.gmra.mxu1 %v7336_v13  ;;  %v7359_v13 = vld [vmem:[#allocation4 + $0x200] sm:$0xf]  ;;  %v7405_v30 = vld [vmem:[#allocation4 + $0x274] sm:$0xf0]  ;;  %961 = vst [vmem:[#allocation4 + $0x2c0] sm:$0xf] %v929_v58 }
 0x16c   : > { %v2811_v44 = vpop.f32.mrf.mxu2  ;;  %v2903_v63 = vpop.f32.mrf.mxu3  ;;  %865 = vst [vmem:[#allocation4 + $0x2bc] sm:$0xf] %v833_v22  ;;  %v835_v22 = vpack.c.bf16 %v803_v21, %v803_v21  ;;  %v804_v21 = vld [vmem:[#allocation2 + $0x121] sm:$0xff] }
 0x16d   : > { %v9880_v0 = vadd.f32 %v2900_v38, %v2811_v44  ;;  %v2776_v5 = vpop.f32.mrf.mxu0  ;;  %v800_v38 = vld [vmem:[#allocation2 + $0xf1] sm:$0xff]  ;;  %675 = vst [vmem:[#allocation4 + $0x2fc] sm:$0xf] %v929_v58 }
 0x16e   : > { %v832_v42 = vpack.c.bf16 %v800_v38, %v800_v38  ;;  %771 = vst [vmem:[#allocation4 + $0x300] sm:$0xf] %v739_v40  ;;  %v9023_v58 = vld [vmem:[%s11402_s1 + $0x190] sm:$0xff]  ;;  %v709_v40 = vld [vmem:[#allocation2 + $0x128] sm:$0xff] }
 0x16f   : > { %867 = vst [vmem:[#allocation4 + $0x304] sm:$0xf] %v835_v22  ;;  %3274 = vmatpush.bf16.msra.mxu2 %v9023_v58 }
 0x170   : > { %v2865_v8 = vpop.f32.mrf.mxu1  ;;  %864 = vst [vmem:[#allocation4 + $0x298] sm:$0xf] %v832_v42  ;;  %v834_v42 = vpack.c.bf16 %v802_v36, %v802_v36 }
 0x171   : > { %2951 = vmatmul.bf16.gmra.mxu2 %v7324_v3  ;;  %v9882_v1 = vadd.f32 %v2865_v8, %v2776_v5  ;;  %v7360_v3 = vor.u32 %v8897_v54, %v7359_v13  ;;  %v8907_v8 = vld [vmem:[#allocation4 + $0x270] sm:$0xf0]  ;;  %v7395_v13 = vld [vmem:[#allocation4 + $0x248] sm:$0xf]  ;;  %v8906_v54 = vld [vmem:[#allocation4 + $0x268] sm:$0xf0] }
 0x172   : > { %v7404_v23 = vor.u32 %v8907_v8, %v7403_v28  ;;  %866 = vst [vmem:[#allocation4 + $0x2e0] sm:$0xf] %v834_v42  ;;  %v7433_v4 = vld [vmem:[#allocation4 + $0x2b4] sm:$0xf0] }
 0x173   : > { %v8916_v8 = vld [vmem:[#allocation4 + $0x2b8] sm:$0xf0] }
 0x174   : > { %v2814_v17 = vpop.f32.mrf.mxu2  ;;  %v2905_v33 = vpop.f32.mrf.mxu3 }
 0x175   : > { %v9890_v39 = vadd.f32 %v2903_v63, %v2814_v17  ;;  %v2779_v47 = vpop.f32.mrf.mxu0 }
 0x177   : > { %3134 = vmatmul.bf16.gmra.mxu0 %v7368_v27  ;;  %v8903_v27 = vld [vmem:[#allocation4 + $0x254] sm:$0xf]  ;;  %v7439_v28 = vld [vmem:[#allocation4 + $0x298] sm:$0xf] }
 0x178   : > { %v2868_v49 = vpop.f32.mrf.mxu1 }
 0x179   : > { %v9892_v11 = vadd.f32 %v2868_v49, %v2779_v47  ;;  %3045 = vmatmul.bf16.gmra.mxu3 %v7364_v34  ;;  %v706_v34 = vld [vmem:[#allocation2 + $0x108] sm:$0xff] }
 0x17a   : > { %v738_v52 = vpack.c.bf16 %v706_v34, %v706_v34 }
 0x17b   : > { %3223 = vmatmul.bf16.gmra.mxu1 %v7372_v43  ;;  %v7408_v43 = vor.u32 %v8903_v27, %v7405_v30  ;;  %v8912_v30 = vld [vmem:[#allocation4 + $0x29c] sm:$0xf] }
 0x17c   : > { %v2816_v61 = vpop.f32.mrf.mxu2  ;;  %v2908_v44 = vpop.f32.mrf.mxu3  ;;  %770 = vst [vmem:[#allocation4 + $0x2dc] sm:$0xf] %v738_v52  ;;  %v708_v52 = vld [vmem:[#allocation2 + $0x120] sm:$0xff] }
 0x17d   : > { %v9897_v63 = vadd.f32 %v2905_v33, %v2816_v61  ;;  %v2781_v5 = vpop.f32.mrf.mxu0  ;;  %v7400_v33 = vor.u32 %v8902_v26, %v7397_v18  ;;  %v899_v26 = vld [vmem:[#allocation2 + $0x112] sm:$0xff] }
 0x17e   : > { %v8911_v18 = vld [vmem:[#allocation4 + $0x294] sm:$0xf]  ;;  %v931_v27 = vpack.c.bf16 %v899_v26, %v899_v26 }
 0x17f   : > { %v7436_v36 = vor.u32 %v8911_v18, %v7433_v4  ;;  %v8915_v26 = vld [vmem:[#allocation4 + $0x2b0] sm:$0xf0] }
 0x180   : > { %v2870_v7 = vpop.f32.mrf.mxu1  ;;  %963 = vst [vmem:[#allocation4 + $0x308] sm:$0xf] %v931_v27  ;;  %v9039_v4 = vld [vmem:[%s11402_s1 + $0x210] sm:$0xff] }
 0x181   : > { %2956 = vmatmul.bf16.gmra.mxu2 %v7360_v3  ;;  %v9899_v32 = vadd.f32 %v2870_v7, %v2781_v5  ;;  %v7396_v3 = vor.u32 %v8906_v54, %v7395_v13  ;;  %v9196_v7 = vld [vmem:[%s11405_s4 + $0x38] sm:$0xff]  ;;  %v741_v13 = vpack.c.bf16 %v709_v40, %v709_v40  ;;  %v805_v54 = vld [vmem:[#allocation2 + $0x129] sm:$0xff]  ;;  %677 = vst [vmem:[#allocation4 + $0x344] sm:$0xf] %v931_v27  ;;  %v7469_v40 = vld [vmem:[#allocation4 + $0x2fc] sm:$0xf0] }
 0x182   : > { %6064 = vmatpush.bf16.msra.mxu1 %v9196_v7  ;;  %3452 = vmatpush.bf16.msra.mxu0 %v9039_v4 }
 0x183   : > { %773 = vst [vmem:[#allocation4 + $0x348] sm:$0xf] %v741_v13 }
 0x184   : > { %v2819_v31 = vpop.f32.mrf.mxu2  ;;  %v2910_v17 = vpop.f32.mrf.mxu3 }
 0x185   : > { %v9901_v38 = vadd.f32 %v2908_v44, %v2819_v31  ;;  %v9903_v47 = vpop.f32.mrf.mxu0  ;;  %v7440_v31 = vor.u32 %v8916_v8, %v7439_v28 }
 0x187   : > { %3139 = vmatmul.bf16.gmra.mxu0 %v7404_v23  ;;  %v930_v23 = vpack.c.bf16 %v898_v62, %v898_v62 }
 0x188   : > { %v3189_v49 = vpop.f32.mrf.mxu1 }
 0x189   : > { %3050 = vmatmul.bf16.gmra.mxu3 %v7400_v33  ;;  %v9031_v33 = vld [vmem:[%s11402_s1 + $0x1d0] sm:$0xff]  ;;  %962 = vst [vmem:[#allocation4 + $0x2e4] sm:$0xf] %v930_v23 }
 0x18a   : > { %3363 = vmatpush.bf16.msra.mxu3 %v9031_v33  ;;  %676 = vst [vmem:[#allocation4 + $0x320] sm:$0xf] %v930_v23 }
 0x18b   : > { %3228 = vmatmul.bf16.gmra.mxu1 %v7408_v43  ;;  %v740_v43 = vpack.c.bf16 %v708_v52, %v708_v52  ;;  %v8920_v52 = vld [vmem:[#allocation4 + $0x2dc] sm:$0xf] }
 0x18c   : > { %v2821_v60 = vpop.f32.mrf.mxu2  ;;  %v3011_v61 = vpop.f32.mrf.mxu3 }
 0x18d   : > { %v9905_v44 = vadd.f32 %v2910_v17, %v2821_v60  ;;  %v9907_v5 = vpop.f32.mrf.mxu0  ;;  %v7441_v17 = vld [vmem:[#allocation4 + $0x2bc] sm:$0xf0]  ;;  %v836_v60 = vpack.c.bf16 %v804_v21, %v804_v21  ;;  %772 = vst [vmem:[#allocation4 + $0x324] sm:$0xf] %v740_v43 }
 0x18e   : > { %v7444_v7 = vor.u32 %v8912_v30, %v7441_v17  ;;  %v8925_v17 = vld [vmem:[#allocation4 + $0x300] sm:$0xf0] }
 0x18f   : > { %868 = vst [vmem:[#allocation4 + $0x328] sm:$0xf] %v836_v60 }
 0x190   : > { %v9912_v9 = vpop.f32.mrf.mxu1  ;;  %v8921_v13 = vld [vmem:[#allocation4 + $0x2e4] sm:$0xf] }
 0x191   : > { %2961 = vmatmul.bf16.gmra.mxu2 %v7396_v3  ;;  %v837_v3 = vpack.c.bf16 %v805_v54, %v805_v54  ;;  %v7477_v54 = vld [vmem:[#allocation4 + $0x304] sm:$0xf0] }
 0x193   : > { %869 = vst [vmem:[#allocation4 + $0x34c] sm:$0xf] %v837_v3  ;;  %v7472_v3 = vor.u32 %v8920_v52, %v7469_v40 }
 0x194   : > { %v2922_v34 = vpop.f32.mrf.mxu2  ;;  %v3013_v20 = vpop.f32.mrf.mxu3 }
 0x195   : > { %v2923_v42 = vadd.f32 %v2922_v34, %v9804_v12  ;;  %v9921_v22 = vpop.f32.mrf.mxu0  ;;  %v7431_v12 = vld [vmem:[#allocation4 + $0x290] sm:$0xf]  ;;  %v900_v34 = vld [vmem:[#allocation2 + $0x122] sm:$0xff] }
 0x196   : > { %v7432_v27 = vor.u32 %v8915_v26, %v7431_v12  ;;  %v932_v21 = vpack.c.bf16 %v900_v34, %v900_v34  ;;  %v8924_v34 = vld [vmem:[#allocation4 + $0x2f8] sm:$0xf0] }
 0x197   : > { %v3012_v28 = vadd.f32 %v3011_v61, %v2923_v42  ;;  %3144 = vmatmul.bf16.gmra.mxu0 %v7440_v31  ;;  %v7475_v31 = vld [vmem:[#allocation4 + $0x2e0] sm:$0xf] }
 0x198   : > { %v3194_v8 = vpop.f32.mrf.mxu1  ;;  %964 = vst [vmem:[#allocation4 + $0x32c] sm:$0xf] %v932_v21 }
 0x199   : > { %v3101_v62 = vadd.f32 %v9903_v47, %v3012_v28  ;;  %3055 = vmatmul.bf16.gmra.mxu3 %v7436_v36  ;;  %v710_v28 = vld [vmem:[#allocation2 + $0x138] sm:$0xff]  ;;  %678 = vst [vmem:[#allocation4 + $0x368] sm:$0xf] %v932_v21 }
 0x19a   : > { %v742_v26 = vpack.c.bf16 %v710_v28, %v710_v28  ;;  %v8929_v28 = vld [vmem:[#allocation4 + $0x324] sm:$0xf] }
 0x19b   : > { %v9924_v18 = vadd.f32 %v3189_v49, %v3101_v62  ;;  %3233 = vmatmul.bf16.gmra.mxu1 %v7444_v7  ;;  %v901_v49 = vld [vmem:[#allocation2 + $0x12a] sm:$0xff]  ;;  %v711_v7 = vld [vmem:[#allocation2 + $0x140] sm:$0xff] }
 0x19c   : > { %v2924_v61 = vpop.f32.mrf.mxu2  ;;  %v3016_v58 = vpop.f32.mrf.mxu3  ;;  %v933_v42 = vpack.c.bf16 %v901_v49, %v901_v49  ;;  %v806_v62 = vld [vmem:[#allocation2 + $0x139] sm:$0xff]  ;;  %v743_v4 = vpack.c.bf16 %v711_v7, %v711_v7  ;;  %774 = vst [vmem:[#allocation4 + $0x36c] sm:$0xf] %v742_v26  ;;  %v7505_v7 = vld [vmem:[#allocation4 + $0x344] sm:$0xf0] }
 0x19d   : > { %v2925_v23 = vadd.f32 %v2924_v61, %v9807_v35  ;;  %v3107_v30 = vpop.f32.mrf.mxu0  ;;  %v7476_v35 = vor.u32 %v8925_v17, %v7475_v31  ;;  %v838_v61 = vpack.c.bf16 %v806_v62, %v806_v62 }
 0x19e   : > { %965 = vst [vmem:[#allocation4 + $0x350] sm:$0xf] %v933_v42 }
 0x19f   : > { %v3014_v47 = vadd.f32 %v3013_v20, %v2925_v23  ;;  %679 = vst [vmem:[#allocation4 + $0x38c] sm:$0xf] %v933_v42 }
 0x1a0   : > { %v9930_v33 = vpop.f32.mrf.mxu1  ;;  %775 = vst [vmem:[#allocation4 + $0x390] sm:$0xf] %v743_v4 }
 0x1a1   : > { %2966 = vmatmul.bf16.gmra.mxu2 %v7432_v27  ;;  %v3103_v36 = vadd.f32 %v9907_v5, %v3014_v47  ;;  %v7480_v47 = vor.u32 %v8921_v13, %v7477_v54  ;;  %870 = vst [vmem:[#allocation4 + $0x370] sm:$0xf] %v838_v61  ;;  %v8934_v13 = vld [vmem:[#allocation4 + $0x348] sm:$0xf0] }
 0x1a3   : > { %v9934_v43 = vadd.f32 %v9912_v9, %v3103_v36  ;;  %v807_v9 = vld [vmem:[#allocation2 + $0x141] sm:$0xff] }
 0x1a4   : > { %v2927_v20 = vpop.f32.mrf.mxu2  ;;  %v3018_v60 = vpop.f32.mrf.mxu3  ;;  %v839_v23 = vpack.c.bf16 %v807_v9, %v807_v9 }
 0x1a5   : > { %v2928_v5 = vadd.f32 %v2927_v20, %v9820_v50  ;;  %v9937_v12 = vpop.f32.mrf.mxu0  ;;  %v7467_v50 = vld [vmem:[#allocation4 + $0x2d8] sm:$0xf]  ;;  %v7513_v9 = vld [vmem:[#allocation4 + $0x34c] sm:$0xf0] }
 0x1a6   : > { %871 = vst [vmem:[#allocation4 + $0x394] sm:$0xf] %v839_v23  ;;  %v7468_v40 = vor.u32 %v8924_v34, %v7467_v50  ;;  %v902_v20 = vld [vmem:[#allocation2 + $0x13a] sm:$0xff]  ;;  %v808_v50 = vld [vmem:[#allocation2 + $0x151] sm:$0xff] }
 0x1a7   : > { %v3017_v27 = vadd.f32 %v3016_v58, %v2928_v5  ;;  %3149 = vmatmul.bf16.gmra.mxu0 %v7476_v35  ;;  %v7511_v35 = vld [vmem:[#allocation4 + $0x328] sm:$0xf]  ;;  %v8930_v5 = vld [vmem:[#allocation4 + $0x32c] sm:$0xf] }
 0x1a8   : > { %v9939_v31 = vpop.f32.mrf.mxu1  ;;  %v7512_v4 = vor.u32 %v8934_v13, %v7511_v35  ;;  %v7516_v13 = vor.u32 %v8930_v5, %v7513_v9 }
 0x1a9   : > { %v3106_v17 = vadd.f32 %v9921_v22, %v3017_v27  ;;  %3060 = vmatmul.bf16.gmra.mxu3 %v7472_v3  ;;  %v9195_v22 = vld [vmem:[%s11405_s4 + $0x30] sm:$0xff]  ;;  %v7508_v27 = vor.u32 %v8929_v28, %v7505_v7 }
 0x1aa   : > { %6065 = vmatpush.bf16.msra.mxu1 %v9195_v22 }
 0x1ab   : > { %v9942_v49 = vadd.f32 %v3194_v8, %v3106_v17  ;;  %3238 = vmatmul.bf16.gmra.mxu1 %v7480_v47  ;;  %v903_v8 = vld [vmem:[#allocation2 + $0x142] sm:$0xff]  ;;  %v712_v47 = vld [vmem:[#allocation2 + $0x150] sm:$0xff]  ;;  %v713_v17 = vld [vmem:[#allocation2 + $0x158] sm:$0xff] }
 0x1ac   : > { %v2929_v36 = vpop.f32.mrf.mxu2  ;;  %v3021_v52 = vpop.f32.mrf.mxu3  ;;  %v935_v62 = vpack.c.bf16 %v903_v8, %v903_v8 }
 0x1ad   : > { %v2930_v58 = vadd.f32 %v2929_v36, %v9824_v2  ;;  %v9945_v21 = vpop.f32.mrf.mxu0  ;;  %v9022_v2 = vld [vmem:[%s11402_s1 + $0x188] sm:$0xff]  ;;  %v8943_v9 = vld [vmem:[#allocation4 + $0x390] sm:$0xf0] }
 0x1ae   : > { %3275 = vmatpush.bf16.msra.mxu2 %v9022_v2  ;;  %967 = vst [vmem:[#allocation4 + $0x398] sm:$0xf] %v935_v62 }
 0x1af   : > { %v3019_v42 = vadd.f32 %v3018_v60, %v2930_v58  ;;  %v934_v60 = vpack.c.bf16 %v902_v20, %v902_v20  ;;  %v745_v58 = vpack.c.bf16 %v713_v17, %v713_v17  ;;  %681 = vst [vmem:[#allocation4 + $0x3d4] sm:$0xf] %v935_v62  ;;  %v7541_v17 = vld [vmem:[#allocation4 + $0x38c] sm:$0xf0] }
 0x1b0   : > { %v9950_v54 = vpop.f32.mrf.mxu1 }
 0x1b1   : > { %2971 = vmatmul.bf16.gmra.mxu2 %v7468_v40  ;;  %v3108_v3 = vadd.f32 %v3107_v30, %v3019_v42  ;;  %v9030_v30 = vld [vmem:[%s11402_s1 + $0x1c8] sm:$0xff]  ;;  %966 = vst [vmem:[#allocation4 + $0x374] sm:$0xf] %v934_v60  ;;  %v809_v40 = vld [vmem:[#allocation2 + $0x159] sm:$0xff]  ;;  %v840_v42 = vpack.c.bf16 %v808_v50, %v808_v50 }
 0x1b2   : > { %3364 = vmatpush.bf16.msra.mxu3 %v9030_v30  ;;  %680 = vst [vmem:[#allocation4 + $0x3b0] sm:$0xf] %v934_v60  ;;  %v841_v35 = vpack.c.bf16 %v809_v40, %v809_v40 }
 0x1b3   : > { %v9956_v26 = vadd.f32 %v9930_v33, %v3108_v3  ;;  %v744_v33 = vpack.c.bf16 %v712_v47, %v712_v47  ;;  %777 = vst [vmem:[#allocation4 + $0x3d8] sm:$0xf] %v745_v58  ;;  %v8933_v3 = vld [vmem:[#allocation4 + $0x340] sm:$0xf0]  ;;  %v8938_v47 = vld [vmem:[#allocation4 + $0x36c] sm:$0xf] }
 0x1b4   : > { %v2932_v61 = vpop.f32.mrf.mxu2  ;;  %v3023_v23 = vpop.f32.mrf.mxu3  ;;  %872 = vst [vmem:[#allocation4 + $0x3b8] sm:$0xf] %v840_v42 }
 0x1b5   : > { %v2933_v34 = vadd.f32 %v2932_v61, %v9828_v16  ;;  %v9962_v36 = vpop.f32.mrf.mxu0  ;;  %776 = vst [vmem:[#allocation4 + $0x3b4] sm:$0xf] %v744_v33  ;;  %v7503_v16 = vld [vmem:[#allocation4 + $0x320] sm:$0xf]  ;;  %v7549_v40 = vld [vmem:[#allocation4 + $0x394] sm:$0xf0] }
 0x1b6   : > { %873 = vst [vmem:[#allocation4 + $0x3dc] sm:$0xf] %v841_v35  ;;  %v7504_v62 = vor.u32 %v8933_v3, %v7503_v16  ;;  %v905_v61 = vld [vmem:[#allocation2 + $0x15a] sm:$0xff]  ;;  %v7544_v35 = vor.u32 %v8938_v47, %v7541_v17  ;;  %v309_v47 = vld [vmem:[%s9557_s23 + $0xf0] sm:$0xff] }
 0x1b7   : > { %v3022_v22 = vadd.f32 %v3021_v52, %v2933_v34  ;;  %3154 = vmatmul.bf16.gmra.mxu0 %v7512_v4  ;;  %v9038_v52 = vld [vmem:[%s11402_s1 + $0x208] sm:$0xff]  ;;  %v7547_v4 = vld [vmem:[#allocation4 + $0x370] sm:$0xf]  ;;  %v937_v34 = vpack.c.bf16 %v905_v61, %v905_v61  ;;  %v310_v17 = vld [vmem:[%s9557_s23 + $0xf8] sm:$0xff]  ;;  %396 = vst [vmem:[#allocation2 + $0x181] sm:$0xff] %v309_v47 }
 0x1b8   : > { %v3204_v20 = vpop.f32.mrf.mxu1  ;;  %3453 = vmatpush.bf16.msra.mxu0 %v9038_v52  ;;  %v7548_v33 = vor.u32 %v8943_v9, %v7547_v4  ;;  %v8939_v58 = vld [vmem:[#allocation4 + $0x374] sm:$0xf]  ;;  %v7539_v9 = vld [vmem:[#allocation4 + $0x368] sm:$0xf]  ;;  %397 = vst [vmem:[#allocation2 + $0x189] sm:$0xff] %v310_v17 }
 0x1b9   : > { %v3111_v8 = vadd.f32 %v9937_v12, %v3022_v22  ;;  %3065 = vmatmul.bf16.gmra.mxu3 %v7508_v27  ;;  %969 = vst [vmem:[#allocation4 + $0x3e0] sm:$0xf] %v937_v34  ;;  %v714_v22 = vld [vmem:[#allocation2 + $0x168] sm:$0xff] }
 0x1ba   : > { %v746_v3 = vpack.c.bf16 %v714_v22, %v714_v22  ;;  %683 = vst [vmem:[#allocation4 + $0x41c] sm:$0xf] %v937_v34  ;;  %v907_v22 = vld [vmem:[#allocation2 + $0x172] sm:$0xff] }
 0x1bb   : > { %v9966_v28 = vadd.f32 %v9939_v31, %v3111_v8  ;;  %3243 = vmatmul.bf16.gmra.mxu1 %v7516_v13  ;;  %v904_v31 = vld [vmem:[#allocation2 + $0x152] sm:$0xff]  ;;  %v810_v8 = vld [vmem:[#allocation2 + $0x169] sm:$0xff] }
 0x1bc   : > { %v2934_v7 = vpop.f32.mrf.mxu2  ;;  %v3026_v2 = vpop.f32.mrf.mxu3  ;;  %v936_v50 = vpack.c.bf16 %v904_v31, %v904_v31  ;;  %v715_v13 = vld [vmem:[#allocation2 + $0x170] sm:$0xff]  ;;  %778 = vst [vmem:[#allocation4 + $0x3fc] sm:$0xf] %v746_v3  ;;  %v8942_v31 = vld [vmem:[#allocation4 + $0x388] sm:$0xf0]  ;;  %v939_v3 = vpack.c.bf16 %v907_v22, %v907_v22 }
 0x1bd   : > { %v2935_v60 = vadd.f32 %v2934_v7, %v9832_v57  ;;  %v9972_v5 = vpop.f32.mrf.mxu0  ;;  %v747_v52 = vpack.c.bf16 %v715_v13, %v715_v13  ;;  %v842_v7 = vpack.c.bf16 %v810_v8, %v810_v8  ;;  %v7540_v34 = vor.u32 %v8942_v31, %v7539_v9  ;;  %v7577_v8 = vld [vmem:[#allocation4 + $0x3d4] sm:$0xf0] }
 0x1be   : > { %968 = vst [vmem:[#allocation4 + $0x3bc] sm:$0xf] %v936_v50  ;;  %v716_v9 = vld [vmem:[#allocation2 + $0x180] sm:$0xff] }
 0x1bf   : > { %v3024_v12 = vadd.f32 %v3023_v23, %v2935_v60  ;;  %682 = vst [vmem:[#allocation4 + $0x3f8] sm:$0xf] %v936_v50 }
 0x1c0   : > { %v9974_v30 = vpop.f32.mrf.mxu1  ;;  %779 = vst [vmem:[#allocation4 + $0x420] sm:$0xf] %v747_v52 }
 0x1c1   : > { %2976 = vmatmul.bf16.gmra.mxu2 %v7504_v62  ;;  %v3113_v27 = vadd.f32 %v9945_v21, %v3024_v12  ;;  %v7552_v12 = vor.u32 %v8939_v58, %v7549_v40  ;;  %874 = vst [vmem:[#allocation4 + $0x400] sm:$0xf] %v842_v7  ;;  %v9194_v40 = vld [vmem:[%s11405_s4 + $0x28] sm:$0xff] }
 0x1c2   : > { %6066 = vmatpush.bf16.msra.mxu1 %v9194_v40  ;;  %971 = vst [vmem:[#allocation4 + $0x428] sm:$0xf] %v939_v3 }
 0x1c3   : > { %v9978_v57 = vadd.f32 %v9950_v54, %v3113_v27  ;;  %v811_v54 = vld [vmem:[#allocation2 + $0x171] sm:$0xff]  ;;  %685 = vst [vmem:[#allocation4 + $0x464] sm:$0xf] %v939_v3 }
 0x1c4   : > { %v2937_v23 = vpop.f32.mrf.mxu2  ;;  %v3028_v42 = vpop.f32.mrf.mxu3  ;;  %v843_v60 = vpack.c.bf16 %v811_v54, %v811_v54 }
 0x1c5   : > { %v2938_v21 = vadd.f32 %v2937_v23, %v9845_v46  ;;  %v9981_v16 = vpop.f32.mrf.mxu0  ;;  %v8948_v7 = vld [vmem:[#allocation4 + $0x3bc] sm:$0xf] }
 0x1c6   : > { %875 = vst [vmem:[#allocation4 + $0x424] sm:$0xf] %v843_v60  ;;  %v9029_v60 = vld [vmem:[%s11402_s1 + $0x1c0] sm:$0xff] }
 0x1c7   : > { %v3027_v62 = vadd.f32 %v3026_v2, %v2938_v21  ;;  %3159 = vmatmul.bf16.gmra.mxu0 %v7548_v33  ;;  %3365 = vmatpush.bf16.msra.mxu3 %v9029_v60  ;;  %v909_v60 = vld [vmem:[#allocation2 + $0x18a] sm:$0xff] }
 0x1c8   : > { %v9983_v4 = vpop.f32.mrf.mxu1  ;;  %v7619_v3 = vld [vmem:[#allocation4 + $0x400] sm:$0xf] }
 0x1c9   : > { %v3116_v46 = vadd.f32 %v9962_v36, %v3027_v62  ;;  %3070 = vmatmul.bf16.gmra.mxu3 %v7544_v35  ;;  %v7583_v36 = vld [vmem:[#allocation4 + $0x3b8] sm:$0xf]  ;;  %v906_v35 = vld [vmem:[#allocation2 + $0x16a] sm:$0xff] }
 0x1ca   : > { %v938_v21 = vpack.c.bf16 %v906_v35, %v906_v35 }
 0x1cb   : > { %v9986_v61 = vadd.f32 %v3204_v20, %v3116_v46  ;;  %3248 = vmatmul.bf16.gmra.mxu1 %v7552_v12  ;;  %v8952_v20 = vld [vmem:[#allocation4 + $0x3d8] sm:$0xf0]  ;;  %v7585_v46 = vld [vmem:[#allocation4 + $0x3dc] sm:$0xf0] }
 0x1cc   : > { %v2939_v27 = vpop.f32.mrf.mxu2  ;;  %v3031_v2 = vpop.f32.mrf.mxu3  ;;  %v7584_v54 = vor.u32 %v8952_v20, %v7583_v36  ;;  %970 = vst [vmem:[#allocation4 + $0x404] sm:$0xf] %v938_v21  ;;  %v7588_v40 = vor.u32 %v8948_v7, %v7585_v46  ;;  %v7613_v46 = vld [vmem:[#allocation4 + $0x41c] sm:$0xf0] }
 0x1cd   : > { %v2940_v50 = vadd.f32 %v2939_v27, %v9849_v45  ;;  %v9991_v33 = vpop.f32.mrf.mxu0  ;;  %v8947_v45 = vld [vmem:[#allocation4 + $0x3b4] sm:$0xf]  ;;  %684 = vst [vmem:[#allocation4 + $0x440] sm:$0xf] %v938_v21 }
 0x1ce   : > { %v7580_v12 = vor.u32 %v8947_v45, %v7577_v8 }
 0x1cf   : > { %v3029_v58 = vadd.f32 %v3028_v42, %v2940_v50  ;;  %v9021_v42 = vld [vmem:[%s11402_s1 + $0x180] sm:$0xff]  ;;  %v844_v50 = vpack.c.bf16 %v309_v47, %v309_v47 }
 0x1d0   : > { %v9996_v23 = vpop.f32.mrf.mxu1  ;;  %3276 = vmatpush.bf16.msra.mxu2 %v9021_v42 }
 0x1d1   : > { %2981 = vmatmul.bf16.gmra.mxu2 %v7540_v34  ;;  %v3118_v13 = vadd.f32 %v9972_v5, %v3029_v58  ;;  %v717_v34 = vld [vmem:[#allocation2 + $0x188] sm:$0xff]  ;;  %v845_v58 = vpack.c.bf16 %v310_v17, %v310_v17  ;;  %876 = vst [vmem:[#allocation4 + $0x448] sm:$0xf] %v844_v50 }
 0x1d2   : > { %v749_v20 = vpack.c.bf16 %v717_v34, %v717_v34  ;;  %v7621_v50 = vld [vmem:[#allocation4 + $0x424] sm:$0xf0] }
 0x1d3   : > { %v10003_v52 = vadd.f32 %v9974_v30, %v3118_v13  ;;  %v748_v30 = vpack.c.bf16 %v716_v9, %v716_v9  ;;  %v8951_v13 = vld [vmem:[#allocation4 + $0x3d0] sm:$0xf0]  ;;  %877 = vst [vmem:[#allocation4 + $0x46c] sm:$0xf] %v845_v58 }
 0x1d4   : > { %v2942_v5 = vpop.f32.mrf.mxu2  ;;  %v3033_v62 = vpop.f32.mrf.mxu3  ;;  %781 = vst [vmem:[#allocation4 + $0x468] sm:$0xf] %v749_v20  ;;  %v1071_v20 = vld [vmem:[#allocation2 + $0x31] sm:$0xff] }
 0x1d5   : > { %v2943_v31 = vadd.f32 %v2942_v5, %v9853_v29  ;;  %v10009_v27 = vpop.f32.mrf.mxu0  ;;  %780 = vst [vmem:[#allocation4 + $0x444] sm:$0xf] %v748_v30  ;;  %v7575_v29 = vld [vmem:[#allocation4 + $0x3b0] sm:$0xf]  ;;  %v8957_v30 = vld [vmem:[#allocation4 + $0x404] sm:$0xf] }
 0x1d6   : > { %v7576_v42 = vor.u32 %v8951_v13, %v7575_v29 }
 0x1d7   : > { %v3032_v36 = vadd.f32 %v3031_v2, %v2943_v31  ;;  %3164 = vmatmul.bf16.gmra.mxu0 %v7584_v54  ;;  %v9037_v2 = vld [vmem:[%s11402_s1 + $0x200] sm:$0xff]  ;;  %v941_v31 = vpack.c.bf16 %v909_v60, %v909_v60 }
 0x1d8   : > { %v10011_v35 = vpop.f32.mrf.mxu1  ;;  %3454 = vmatpush.bf16.msra.mxu0 %v9037_v2  ;;  %v8961_v54 = vld [vmem:[#allocation4 + $0x420] sm:$0xf0]  ;;  %v1072_v2 = vld [vmem:[#allocation2 + $0x39] sm:$0xff] }
 0x1d9   : > { %v3121_v22 = vadd.f32 %v9981_v16, %v3032_v36  ;;  %3075 = vmatmul.bf16.gmra.mxu3 %v7580_v12  ;;  %v8956_v12 = vld [vmem:[#allocation4 + $0x3fc] sm:$0xf]  ;;  %973 = vst [vmem:[#allocation4 + $0x470] sm:$0xf] %v941_v31  ;;  %v975_v36 = vld [vmem:[#allocation2 + $0x30] sm:$0xff] }
 0x1da   : > { %v7616_v58 = vor.u32 %v8956_v12, %v7613_v46 }
 0x1db   : > { %v10015_v47 = vadd.f32 %v9983_v4, %v3121_v22  ;;  %3253 = vmatmul.bf16.gmra.mxu1 %v7588_v40  ;;  %v908_v4 = vld [vmem:[#allocation2 + $0x182] sm:$0xff]  ;;  %v976_v40 = vld [vmem:[#allocation2 + $0x38] sm:$0xff] }
 0x1dc   : > { %v2944_v17 = vpop.f32.mrf.mxu2  ;;  %v3036_v45 = vpop.f32.mrf.mxu3  ;;  %v940_v9 = vpack.c.bf16 %v908_v4, %v908_v4  ;;  %v1008_v13 = vpack.c.bf16 %v976_v40, %v976_v40  ;;  %v8970_v40 = vld [vmem:[#allocation4 + $0x468] sm:$0xf0] }
 0x1dd   : > { %v2945_v8 = vadd.f32 %v2944_v17, %v9857_v37  ;;  %v10021_v21 = vpop.f32.mrf.mxu0  ;;  %v7620_v37 = vor.u32 %v8961_v54, %v7619_v3  ;;  %v1103_v17 = vpack.c.bf16 %v1071_v20, %v1071_v20  ;;  %v7624_v54 = vor.u32 %v8957_v30, %v7621_v50 }
 0x1de   : > { %972 = vst [vmem:[#allocation4 + $0x44c] sm:$0xf] %v940_v9  ;;  %v8960_v9 = vld [vmem:[#allocation4 + $0x418] sm:$0xf0] }
 0x1df   : > { %v3034_v16 = vadd.f32 %v3033_v62, %v2945_v8  ;;  %v1167_v8 = vld [vmem:[#allocation2 + $0x32] sm:$0xff]  ;;  %1040 = vst [vmem:[#allocation4 + $0x3c] sm:$0xf] %v1008_v13 }
 0x1e0   : > { %v10023_v7 = vpop.f32.mrf.mxu1  ;;  %v1199_v4 = vpack.c.bf16 %v1167_v8, %v1167_v8  ;;  %1135 = vst [vmem:[#allocation4 + $0x1c] sm:$0xf] %v1103_v17 }
 0x1e1   : > { %2986 = vmatmul.bf16.gmra.mxu2 %v7576_v42  ;;  %v10026_v5 = vadd.f32 %v9991_v33, %v3034_v16  ;;  %v1007_v33 = vpack.c.bf16 %v975_v36, %v975_v36  ;;  %v1168_v42 = vld [vmem:[#allocation2 + $0x3a] sm:$0xff]  ;;  %v1104_v16 = vpack.c.bf16 %v1072_v2, %v1072_v2  ;;  %v7657_v2 = vld [vmem:[#allocation4 + $0x46c] sm:$0xf0] }
 0x1e2   : > { %v1200_v12 = vpack.c.bf16 %v1168_v42, %v1168_v42  ;;  %1231 = vst [vmem:[#allocation4 + $0x20] sm:$0xf] %v1199_v4  ;;  %v977_v42 = vld [vmem:[#allocation2 + $0x48] sm:$0xff] }
 0x1e3   : > { %1039 = vst [vmem:[#allocation4 + $0x18] sm:$0xf] %v1007_v33  ;;  %v7649_v33 = vld [vmem:[#allocation4 + $0x464] sm:$0xf0] }
 0x1e4   : > { %v2947_v34 = vpop.f32.mrf.mxu2  ;;  %v3038_v62 = vpop.f32.mrf.mxu3  ;;  %1136 = vst [vmem:[#allocation4 + $0x40] sm:$0xf] %v1104_v16  ;;  %v978_v16 = vld [vmem:[#allocation2 + $0x50] sm:$0xff] }
 0x1e5   : > { %v2948_v22 = vadd.f32 %v2947_v34, %v9870_v6  ;;  %v10029_v29 = vpop.f32.mrf.mxu0  ;;  %v7611_v6 = vld [vmem:[#allocation4 + $0x3f8] sm:$0xf]  ;;  %1232 = vst [vmem:[#allocation4 + $0x44] sm:$0xf] %v1200_v12  ;;  %v1009_v12 = vpack.c.bf16 %v977_v42, %v977_v42 }
 0x1e6   : > { %v7612_v50 = vor.u32 %v8960_v9, %v7611_v6  ;;  %v1074_v6 = vld [vmem:[#allocation2 + $0x51] sm:$0xff] }
 0x1e7   : > { %v3037_v3 = vadd.f32 %v3036_v45, %v2948_v22  ;;  %3169 = vmatmul.bf16.gmra.mxu0 %v7620_v37  ;;  %v8965_v22 = vld [vmem:[#allocation4 + $0x444] sm:$0xf]  ;;  %v1169_v9 = vld [vmem:[#allocation2 + $0x4a] sm:$0xff]  ;;  %1041 = vst [vmem:[#allocation4 + $0x60] sm:$0xf] %v1009_v12 }
 0x1e8   : > { %v3219_v60 = vpop.f32.mrf.mxu1  ;;  %v7652_v8 = vor.u32 %v8965_v22, %v7649_v33  ;;  %v8969_v33 = vld [vmem:[#allocation4 + $0x460] sm:$0xf0]  ;;  %v8832_v12 = vld [vmem:[#allocation4 + $0x1c] sm:$0xf] }
 0x1e9   : > { %v3126_v46 = vadd.f32 %v10009_v27, %v3037_v3  ;;  %3080 = vmatmul.bf16.gmra.mxu3 %v7616_v58  ;;  %v9193_v27 = vld [vmem:[%s11405_s4 + $0x20] sm:$0xff]  ;;  %v7655_v58 = vld [vmem:[#allocation4 + $0x448] sm:$0xf] }
 0x1ea   : > { %6067 = vmatpush.bf16.msra.mxu1 %v9193_v27  ;;  %v7656_v13 = vor.u32 %v8970_v40, %v7655_v58  ;;  %v1073_v3 = vld [vmem:[#allocation2 + $0x49] sm:$0xff]  ;;  %v1201_v27 = vpack.c.bf16 %v1169_v9, %v1169_v9 }
 0x1eb   : > { %v10033_v31 = vadd.f32 %v10011_v35, %v3126_v46  ;;  %3258 = vmatmul.bf16.gmra.mxu1 %v7624_v54  ;;  %v1010_v46 = vpack.c.bf16 %v978_v16, %v978_v16 }
 0x1ec   : > { %v2949_v45 = vpop.f32.mrf.mxu2  ;;  %v3041_v37 = vpop.f32.mrf.mxu3  ;;  %1233 = vst [vmem:[#allocation4 + $0x68] sm:$0xf] %v1201_v27 }
 0x1ed   : > { %v2950_v30 = vadd.f32 %v2949_v45, %v9874_v24  ;;  %v3132_v34 = vpop.f32.mrf.mxu0  ;;  %v8966_v24 = vld [vmem:[#allocation4 + $0x44c] sm:$0xf]  ;;  %v1170_v45 = vld [vmem:[#allocation2 + $0x52] sm:$0xff]  ;;  %1042 = vst [vmem:[#allocation4 + $0x84] sm:$0xf] %v1010_v46 }
 0x1ee   : > { %v1202_v40 = vpack.c.bf16 %v1170_v45, %v1170_v45  ;;  %v979_v45 = vld [vmem:[#allocation2 + $0x60] sm:$0xff] }
 0x1ef   : > { %v3039_v36 = vadd.f32 %v3038_v62, %v2950_v30  ;;  %v1106_v30 = vpack.c.bf16 %v1074_v6, %v1074_v6 }
 0x1f0   : > { %v10039_v20 = vpop.f32.mrf.mxu1  ;;  %1234 = vst [vmem:[#allocation4 + $0x8c] sm:$0xf] %v1202_v40  ;;  %v1076_v40 = vld [vmem:[#allocation2 + $0x69] sm:$0xff] }
 0x1f1   : > { %2991 = vmatmul.bf16.gmra.mxu2 %v7612_v50  ;;  %v10042_v35 = vadd.f32 %v10021_v21, %v3039_v36  ;;  %v1105_v21 = vpack.c.bf16 %v1073_v3, %v1073_v3  ;;  %v7660_v36 = vor.u32 %v8966_v24, %v7657_v2  ;;  %1138 = vst [vmem:[#allocation4 + $0x88] sm:$0xf] %v1106_v30  ;;  %v7131_v3 = vld [vmem:[#allocation4 + $0x20] sm:$0xf]  ;;  %v980_v30 = vld [vmem:[#allocation2 + $0x68] sm:$0xff] }
 0x1f2   : > { %v1012_v27 = vpack.c.bf16 %v980_v30, %v980_v30 }
 0x1f3   : > { %1137 = vst [vmem:[#allocation4 + $0x64] sm:$0xf] %v1105_v21 }
 0x1f4   : > { %v2952_v17 = vpop.f32.mrf.mxu2  ;;  %v3043_v62 = vpop.f32.mrf.mxu3  ;;  %1044 = vst [vmem:[#allocation4 + $0xcc] sm:$0xf] %v1012_v27 }
 0x1f5   : > { %v2953_v54 = vadd.f32 %v2952_v17, %v9878_v59  ;;  %v3135_v4 = vpop.f32.mrf.mxu0  ;;  %v7647_v59 = vld [vmem:[#allocation4 + $0x440] sm:$0xf] }
 0x1f6   : > { %v7648_v24 = vor.u32 %v8969_v33, %v7647_v59  ;;  %v1171_v59 = vld [vmem:[#allocation2 + $0x62] sm:$0xff]  ;;  %v1172_v33 = vld [vmem:[#allocation2 + $0x6a] sm:$0xff] }
 0x1f7   : > { %v3042_v50 = vadd.f32 %v3041_v37, %v2953_v54  ;;  %3174 = vmatmul.bf16.gmra.mxu0 %v7656_v13  ;;  %v8837_v54 = vld [vmem:[#allocation4 + $0x40] sm:$0xf0] }
 0x1f8   : > { %v3224_v58 = vpop.f32.mrf.mxu1  ;;  %v7132_v46 = vor.u32 %v8837_v54, %v7131_v3  ;;  %v7123_v54 = vld [vmem:[#allocation4 + $0x18] sm:$0xf]  ;;  %v7161_v27 = vld [vmem:[#allocation4 + $0x84] sm:$0xf0] }
 0x1f9   : > { %v3131_v22 = vadd.f32 %v10029_v29, %v3042_v50  ;;  %3085 = vmatmul.bf16.gmra.mxu3 %v7652_v8  ;;  %v1075_v50 = vld [vmem:[#allocation2 + $0x61] sm:$0xff] }
 0x1fb   : > { %v10046_v17 = vadd.f32 %v3219_v60, %v3131_v22  ;;  %3263 = vmatmul.bf16.gmra.mxu1 %v7660_v36  ;;  %v7125_v60 = vld [vmem:[#allocation4 + $0x3c] sm:$0xf0]  ;;  %v1107_v22 = vpack.c.bf16 %v1075_v50, %v1075_v50  ;;  %v8846_v50 = vld [vmem:[#allocation4 + $0x88] sm:$0xf0] }
 0x1fc   : > { %v2954_v42 = vpop.f32.mrf.mxu2  ;;  %v3046_v37 = vpop.f32.mrf.mxu3  ;;  %v7128_v9 = vor.u32 %v8832_v12, %v7125_v60 }
 0x1fd   : > { %v2955_v13 = vadd.f32 %v2954_v42, %v9882_v1  ;;  %v3137_v2 = vpop.f32.mrf.mxu0  ;;  %1139 = vst [vmem:[#allocation4 + $0xac] sm:$0xf] %v1107_v22 }
 0x1ff   : > { %v3044_v16 = vadd.f32 %v3043_v62, %v2955_v13  ;;  %v1011_v62 = vpack.c.bf16 %v979_v45, %v979_v45  ;;  %v1203_v13 = vpack.c.bf16 %v1171_v59, %v1171_v59 }
 0x200   : > { %v10049_v29 = vpop.f32.mrf.mxu1 }
 0x201   : > { %2996 = vmatmul.bf16.gmra.mxu2 %v7648_v24  ;;  %v10051_v8 = vadd.f32 %v3132_v34, %v3044_v16  ;;  %v1108_v34 = vpack.c.bf16 %v1076_v40, %v1076_v40  ;;  %1043 = vst [vmem:[#allocation4 + $0xa8] sm:$0xf] %v1011_v62  ;;  %v1204_v16 = vpack.c.bf16 %v1172_v33, %v1172_v33  ;;  %v8841_v62 = vld [vmem:[#allocation4 + $0x64] sm:$0xf]  ;;  %v981_v33 = vld [vmem:[#allocation2 + $0x78] sm:$0xff] }
 0x202   : > { %1235 = vst [vmem:[#allocation4 + $0xb0] sm:$0xf] %v1203_v13  ;;  %v7164_v59 = vor.u32 %v8841_v62, %v7161_v27  ;;  %v7159_v62 = vld [vmem:[#allocation4 + $0x60] sm:$0xf] }
 0x203   : > { %1140 = vst [vmem:[#allocation4 + $0xd0] sm:$0xf] %v1108_v34  ;;  %v1077_v34 = vld [vmem:[#allocation2 + $0x79] sm:$0xff] }
 0x204   : > { %v2957_v6 = vpop.f32.mrf.mxu2  ;;  %v3048_v21 = vpop.f32.mrf.mxu3  ;;  %1236 = vst [vmem:[#allocation4 + $0xd4] sm:$0xf] %v1204_v16  ;;  %v1013_v16 = vpack.c.bf16 %v981_v33, %v981_v33 }
 0x205   : > { %v2958_v1 = vadd.f32 %v2957_v6, %v9892_v11  ;;  %v3140_v36 = vpop.f32.mrf.mxu0  ;;  %v8836_v11 = vld [vmem:[#allocation4 + $0x38] sm:$0xf0] }
 0x206   : > { %1045 = vst [vmem:[#allocation4 + $0xf0] sm:$0xf] %v1013_v16 }
 0x207   : > { %v3047_v42 = vadd.f32 %v3046_v37, %v2958_v1  ;;  %3455 = vmatmul.bf16.vlgmr.msra.gmra.mxu0 %v7132_v46  ;;  %v7124_v46 = vor.u32 %v8836_v11, %v7123_v54  ;;  %v1078_v54 = vld [vmem:[#allocation2 + $0x81] sm:$0xff]  ;;  %v1109_v11 = vpack.c.bf16 %v1077_v34, %v1077_v34 }
 0x208   : > { %v3229_v24 = vpop.f32.mrf.mxu1 }
 0x209   : > { %v3136_v3 = vadd.f32 %v3135_v4, %v3047_v42  ;;  %3366 = vmatmul.bf16.vlgmr.msra.gmra.mxu3 %v7128_v9  ;;  %v9192_v4 = vld [vmem:[%s11405_s4 + $0x18] sm:$0xff]  ;;  %v7167_v9 = vld [vmem:[#allocation4 + $0x68] sm:$0xf]  ;;  %1141 = vst [vmem:[#allocation4 + $0xf4] sm:$0xf] %v1109_v11 }
 0x20a   : > { %6068 = vmatpush.bf16.msra.mxu1 %v9192_v4  ;;  %v7168_v40 = vor.u32 %v8846_v50, %v7167_v9 }
 0x20b   : > { %v10054_v12 = vadd.f32 %v3224_v58, %v3136_v3  ;;  %v8855_v16 = vld [vmem:[#allocation4 + $0xd0] sm:$0xf0] }
 0x20c   : > { %v2959_v60 = vpop.f32.mrf.mxu2  ;;  %v3051_v6 = vpop.f32.mrf.mxu3 }
 0x20d   : > { %v2960_v37 = vadd.f32 %v2959_v60, %v9899_v32  ;;  %v3142_v45 = vpop.f32.mrf.mxu0  ;;  %v1173_v60 = vld [vmem:[#allocation2 + $0x7a] sm:$0xff] }
 0x20f   : > { %v3049_v30 = vadd.f32 %v3048_v21, %v2960_v37  ;;  %v982_v21 = vld [vmem:[#allocation2 + $0x80] sm:$0xff]  ;;  %v1110_v37 = vpack.c.bf16 %v1078_v54, %v1078_v54  ;;  %v7197_v54 = vld [vmem:[#allocation4 + $0xcc] sm:$0xf0] }
 0x210   : > { %v10060_v1 = vpop.f32.mrf.mxu1  ;;  %v1014_v3 = vpack.c.bf16 %v982_v21, %v982_v21 }
 0x211   : > { %3277 = vmatmul.bf16.vlgmr.msra.gmra.mxu2 %v7124_v46  ;;  %v10062_v58 = vadd.f32 %v3137_v2, %v3049_v30  ;;  %v1174_v2 = vld [vmem:[#allocation2 + $0x82] sm:$0xff]  ;;  %v1205_v30 = vpack.c.bf16 %v1173_v60, %v1173_v60  ;;  %1142 = vst [vmem:[#allocation4 + $0x118] sm:$0xf] %v1110_v37  ;;  %v983_v37 = vld [vmem:[#allocation2 + $0x90] sm:$0xff] }
 0x212   : > { %1046 = vst [vmem:[#allocation4 + $0x114] sm:$0xf] %v1014_v3  ;;  %v1206_v9 = vpack.c.bf16 %v1174_v2, %v1174_v2 }
 0x213   : > { %1237 = vst [vmem:[#allocation4 + $0xf8] sm:$0xf] %v1205_v30  ;;  %v1079_v30 = vld [vmem:[#allocation2 + $0x91] sm:$0xff] }
 0x214   : > { %v2962_v22 = vpop.f32.mrf.mxu2  ;;  %v3053_v32 = vpop.f32.mrf.mxu3  ;;  %1238 = vst [vmem:[#allocation4 + $0x11c] sm:$0xf] %v1206_v9 }
 0x215   : > { %v2963_v42 = vadd.f32 %v2962_v22, %v9815_v41  ;;  %v3145_v13 = vpop.f32.mrf.mxu0  ;;  %v8845_v41 = vld [vmem:[#allocation4 + $0x80] sm:$0xf0] }
 0x217   : > { %v3052_v46 = vadd.f32 %v3051_v6, %v2963_v42  ;;  %3460 = vmatmul.bf16.gmra.mxu0 %v7168_v40  ;;  %v7160_v40 = vor.u32 %v8845_v41, %v7159_v62  ;;  %v7203_v42 = vld [vmem:[#allocation4 + $0xb0] sm:$0xf]  ;;  %v1080_v62 = vld [vmem:[#allocation2 + $0x99] sm:$0xff]  ;;  %v1111_v41 = vpack.c.bf16 %v1079_v30, %v1079_v30 }
 0x218   : > { %v3234_v4 = vpop.f32.mrf.mxu1 }
 0x219   : > { %v3141_v50 = vadd.f32 %v3140_v36, %v3052_v46  ;;  %3371 = vmatmul.bf16.gmra.mxu3 %v7164_v59  ;;  %v8850_v59 = vld [vmem:[#allocation4 + $0xac] sm:$0xf]  ;;  %v984_v46 = vld [vmem:[#allocation2 + $0x98] sm:$0xff]  ;;  %1143 = vst [vmem:[#allocation4 + $0x13c] sm:$0xf] %v1111_v41 }
 0x21a   : > { %v7200_v2 = vor.u32 %v8850_v59, %v7197_v54  ;;  %v7195_v54 = vld [vmem:[#allocation4 + $0xa8] sm:$0xf]  ;;  %v7233_v41 = vld [vmem:[#allocation4 + $0x114] sm:$0xf0] }
 0x21b   : > { %v10065_v27 = vadd.f32 %v3229_v24, %v3141_v50  ;;  %v7204_v24 = vor.u32 %v8855_v16, %v7203_v42  ;;  %v1016_v50 = vpack.c.bf16 %v984_v46, %v984_v46 }
 0x21c   : > { %v2964_v22 = vpop.f32.mrf.mxu2  ;;  %v3056_v33 = vpop.f32.mrf.mxu3 }
 0x21d   : > { %v2965_v6 = vadd.f32 %v2964_v22, %v9822_v51  ;;  %v3147_v21 = vpop.f32.mrf.mxu0  ;;  %v1175_v22 = vld [vmem:[#allocation2 + $0x92] sm:$0xff]  ;;  %1048 = vst [vmem:[#allocation4 + $0x15c] sm:$0xf] %v1016_v50 }
 0x21f   : > { %v3054_v34 = vadd.f32 %v3053_v32, %v2965_v6  ;;  %v1015_v32 = vpack.c.bf16 %v983_v37, %v983_v37  ;;  %v1176_v6 = vld [vmem:[#allocation2 + $0x9a] sm:$0xff] }
 0x220   : > { %v10068_v3 = vpop.f32.mrf.mxu1  ;;  %v1208_v16 = vpack.c.bf16 %v1176_v6, %v1176_v6 }
 0x221   : > { %3282 = vmatmul.bf16.gmra.mxu2 %v7160_v40  ;;  %v10070_v36 = vadd.f32 %v3142_v45, %v3054_v34  ;;  %v1112_v45 = vpack.c.bf16 %v1080_v62, %v1080_v62  ;;  %1047 = vst [vmem:[#allocation4 + $0x138] sm:$0xf] %v1015_v32  ;;  %v1207_v34 = vpack.c.bf16 %v1175_v22, %v1175_v22  ;;  %v8864_v32 = vld [vmem:[#allocation4 + $0x118] sm:$0xf0]  ;;  %v8859_v62 = vld [vmem:[#allocation4 + $0xf4] sm:$0xf] }
 0x222   : > { %1240 = vst [vmem:[#allocation4 + $0x164] sm:$0xf] %v1208_v16 }
 0x223   : > { %1144 = vst [vmem:[#allocation4 + $0x160] sm:$0xf] %v1112_v45  ;;  %v7236_v45 = vor.u32 %v8859_v62, %v7233_v41  ;;  %v7231_v41 = vld [vmem:[#allocation4 + $0xf0] sm:$0xf] }
 0x224   : > { %v2967_v11 = vpop.f32.mrf.mxu2  ;;  %v3058_v60 = vpop.f32.mrf.mxu3  ;;  %1239 = vst [vmem:[#allocation4 + $0x140] sm:$0xf] %v1207_v34  ;;  %v1081_v34 = vld [vmem:[#allocation2 + $0xa9] sm:$0xff] }
 0x225   : > { %v2968_v51 = vadd.f32 %v2967_v11, %v9826_v10  ;;  %v3150_v9 = vpop.f32.mrf.mxu0  ;;  %v8854_v10 = vld [vmem:[#allocation4 + $0xc8] sm:$0xf0] }
 0x227   : > { %v3057_v40 = vadd.f32 %v3056_v33, %v2968_v51  ;;  %3465 = vmatmul.bf16.gmra.mxu0 %v7204_v24  ;;  %v7196_v24 = vor.u32 %v8854_v10, %v7195_v54 }
 0x228   : > { %v3239_v42 = vpop.f32.mrf.mxu1 }
 0x229   : > { %v3146_v59 = vadd.f32 %v3145_v13, %v3057_v40  ;;  %3376 = vmatmul.bf16.gmra.mxu3 %v7200_v2  ;;  %v9191_v13 = vld [vmem:[%s11405_s4 + $0x10] sm:$0xff]  ;;  %v7239_v2 = vld [vmem:[#allocation4 + $0xf8] sm:$0xf]  ;;  %v985_v40 = vld [vmem:[#allocation2 + $0xa8] sm:$0xff] }
 0x22a   : > { %6069 = vmatpush.bf16.msra.mxu1 %v9191_v13  ;;  %v7240_v22 = vor.u32 %v8864_v32, %v7239_v2  ;;  %v1017_v54 = vpack.c.bf16 %v985_v40, %v985_v40 }
 0x22b   : > { %v10073_v11 = vadd.f32 %v3234_v4, %v3146_v59 }
 0x22c   : > { %v2969_v37 = vpop.f32.mrf.mxu2  ;;  %v3061_v46 = vpop.f32.mrf.mxu3  ;;  %1049 = vst [vmem:[#allocation4 + $0x180] sm:$0xf] %v1017_v54  ;;  %v7275_v54 = vld [vmem:[#allocation4 + $0x140] sm:$0xf] }
 0x22d   : > { %v2970_v33 = vadd.f32 %v2969_v37, %v9830_v19  ;;  %v3152_v30 = vpop.f32.mrf.mxu0  ;;  %v1082_v37 = vld [vmem:[#allocation2 + $0xb1] sm:$0xff] }
 0x22f   : > { %v3059_v51 = vadd.f32 %v3058_v60, %v2970_v33  ;;  %v986_v60 = vld [vmem:[#allocation2 + $0xb0] sm:$0xff]  ;;  %v1113_v33 = vpack.c.bf16 %v1081_v34, %v1081_v34 }
 0x230   : > { %v10079_v50 = vpop.f32.mrf.mxu1  ;;  %v1018_v10 = vpack.c.bf16 %v986_v60, %v986_v60 }
 0x231   : > { %11409 = vst [vmem:[#allocation5_spill] sm:$0xff] %v10079_v50  ;;  %3287 = vmatmul.bf16.gmra.mxu2 %v7196_v24  ;;  %v10081_v4 = vadd.f32 %v3147_v21, %v3059_v51  ;;  %v1177_v24 = vld [vmem:[#allocation2 + $0xaa] sm:$0xff]  ;;  %v1178_v21 = vld [vmem:[#allocation2 + $0xb2] sm:$0xff]  ;;  %v1114_v51 = vpack.c.bf16 %v1082_v37, %v1082_v37 }
 0x232   : > { %v1209_v13 = vpack.c.bf16 %v1177_v24, %v1177_v24  ;;  %1050 = vst [vmem:[#allocation4 + $0x1a4] sm:$0xf] %v1018_v10  ;;  %v1210_v32 = vpack.c.bf16 %v1178_v21, %v1178_v21  ;;  %v8873_v10 = vld [vmem:[#allocation4 + $0x160] sm:$0xf0] }
 0x233   : > { %1145 = vst [vmem:[#allocation4 + $0x184] sm:$0xf] %v1113_v33 }
 0x234   : > { %v2972_v6 = vpop.f32.mrf.mxu2  ;;  %v3063_v19 = vpop.f32.mrf.mxu3  ;;  %1146 = vst [vmem:[#allocation4 + $0x1a8] sm:$0xf] %v1114_v51  ;;  %v987_v51 = vld [vmem:[#allocation2 + $0xc0] sm:$0xff] }
 0x235   : > { %v2973_v16 = vadd.f32 %v2972_v6, %v9840_v48  ;;  %v3155_v59 = vpop.f32.mrf.mxu0  ;;  %v8863_v48 = vld [vmem:[#allocation4 + $0x110] sm:$0xf0]  ;;  %1241 = vst [vmem:[#allocation4 + $0x188] sm:$0xf] %v1209_v13  ;;  %v988_v13 = vld [vmem:[#allocation2 + $0xc8] sm:$0xff] }
 0x236   : > { %1242 = vst [vmem:[#allocation4 + $0x1ac] sm:$0xf] %v1210_v32  ;;  %v1083_v32 = vld [vmem:[#allocation2 + $0xc1] sm:$0xff] }
 0x237   : > { %v3062_v50 = vadd.f32 %v3061_v46, %v2973_v16  ;;  %3470 = vmatmul.bf16.gmra.mxu0 %v7240_v22  ;;  %v7232_v22 = vor.u32 %v8863_v48, %v7231_v41  ;;  %v1020_v41 = vpack.c.bf16 %v988_v13, %v988_v13  ;;  %v1084_v48 = vld [vmem:[#allocation2 + $0xc9] sm:$0xff] }
 0x238   : > { %v3244_v2 = vpop.f32.mrf.mxu1 }
 0x239   : > { %v3151_v62 = vadd.f32 %v3150_v9, %v3062_v50  ;;  %3381 = vmatmul.bf16.gmra.mxu3 %v7236_v45  ;;  %v8868_v50 = vld [vmem:[#allocation4 + $0x13c] sm:$0xf]  ;;  %v7269_v45 = vld [vmem:[#allocation4 + $0x15c] sm:$0xf0]  ;;  %1052 = vst [vmem:[#allocation4 + $0x1ec] sm:$0xf] %v1020_v41 }
 0x23a   : > { %v7272_v21 = vor.u32 %v8868_v50, %v7269_v45  ;;  %v7267_v45 = vld [vmem:[#allocation4 + $0x138] sm:$0xf] }
 0x23b   : > { %v10084_v6 = vadd.f32 %v3239_v42, %v3151_v62  ;;  %v7276_v42 = vor.u32 %v8873_v10, %v7275_v54 }
 0x23c   : > { %v2974_v40 = vpop.f32.mrf.mxu2  ;;  %v3066_v60 = vpop.f32.mrf.mxu3 }
 0x23d   : > { %v2975_v46 = vadd.f32 %v2974_v40, %v9847_v56  ;;  %v3157_v34 = vpop.f32.mrf.mxu0  ;;  %v1115_v40 = vpack.c.bf16 %v1083_v32, %v1083_v32 }
 0x23f   : > { %v3064_v16 = vadd.f32 %v3063_v19, %v2975_v46  ;;  %v1019_v19 = vpack.c.bf16 %v987_v51, %v987_v51  ;;  %v1180_v46 = vld [vmem:[#allocation2 + $0xca] sm:$0xff]  ;;  %1147 = vst [vmem:[#allocation4 + $0x1cc] sm:$0xf] %v1115_v40 }
 0x240   : > { %v10089_v37 = vpop.f32.mrf.mxu1  ;;  %v1212_v10 = vpack.c.bf16 %v1180_v46, %v1180_v46 }
 0x241   : > { %3292 = vmatmul.bf16.gmra.mxu2 %v7232_v22  ;;  %v10087_v9 = vadd.f32 %v3152_v30, %v3064_v16  ;;  %11410 = vst [vmem:[#allocation6_spill] sm:$0xff] %v10089_v37  ;;  %v1179_v30 = vld [vmem:[#allocation2 + $0xc2] sm:$0xff]  ;;  %v1116_v22 = vpack.c.bf16 %v1084_v48, %v1084_v48  ;;  %v8872_v37 = vld [vmem:[#allocation4 + $0x158] sm:$0xf0] }
 0x242   : > { %1051 = vst [vmem:[#allocation4 + $0x1c8] sm:$0xf] %v1019_v19  ;;  %v1211_v54 = vpack.c.bf16 %v1179_v30, %v1179_v30  ;;  %v8882_v19 = vld [vmem:[#allocation4 + $0x1a8] sm:$0xf0]  ;;  %v7305_v48 = vld [vmem:[#allocation4 + $0x1a4] sm:$0xf0] }
 0x243   : > { %1148 = vst [vmem:[#allocation4 + $0x1f0] sm:$0xf] %v1116_v22 }
 0x244   : > { %v2977_v33 = vpop.f32.mrf.mxu2  ;;  %v3068_v24 = vpop.f32.mrf.mxu3  ;;  %1243 = vst [vmem:[#allocation4 + $0x1d0] sm:$0xf] %v1211_v54 }
 0x245   : > { %v2978_v56 = vadd.f32 %v2977_v33, %v9851_v15  ;;  %v3160_v62 = vpop.f32.mrf.mxu0  ;;  %1244 = vst [vmem:[#allocation4 + $0x1f4] sm:$0xf] %v1212_v10 }
 0x247   : > { %v3067_v16 = vadd.f32 %v3066_v60, %v2978_v56  ;;  %3475 = vmatmul.bf16.gmra.mxu0 %v7276_v42  ;;  %v7268_v42 = vor.u32 %v8872_v37, %v7267_v45  ;;  %v990_v37 = vld [vmem:[#allocation2 + $0xe0] sm:$0xff] }
 0x248   : > { %v3249_v33 = vpop.f32.mrf.mxu1  ;;  %v1022_v45 = vpack.c.bf16 %v990_v37, %v990_v37 }
 0x249   : > { %v3156_v50 = vadd.f32 %v3155_v59, %v3067_v16  ;;  %3386 = vmatmul.bf16.gmra.mxu3 %v7272_v21  ;;  %v9190_v59 = vld [vmem:[%s11405_s4 + $0x8] sm:$0xff]  ;;  %v1085_v16 = vld [vmem:[#allocation2 + $0xd9] sm:$0xff] }
 0x24a   : > { %v7311_v21 = vld [vmem:[#allocation4 + $0x188] sm:$0xf]  ;;  %6070 = vmatpush.bf16.msra.mxu1 %v9190_v59  ;;  %1054 = vst [vmem:[#allocation4 + $0x234] sm:$0xf] %v1022_v45 }
 0x24b   : > { %v10092_v15 = vadd.f32 %v3244_v2, %v3156_v50  ;;  %v8877_v2 = vld [vmem:[#allocation4 + $0x184] sm:$0xf]  ;;  %v7312_v40 = vor.u32 %v8882_v19, %v7311_v21  ;;  %v7347_v45 = vld [vmem:[#allocation4 + $0x1d0] sm:$0xf] }
 0x24c   : > { %v2979_v51 = vpop.f32.mrf.mxu2  ;;  %v3071_v13 = vpop.f32.mrf.mxu3  ;;  %v7308_v22 = vor.u32 %v8877_v2, %v7305_v48  ;;  %v8881_v48 = vld [vmem:[#allocation4 + $0x1a0] sm:$0xf0] }
 0x24d   : > { %v2980_v60 = vadd.f32 %v2979_v51, %v9855_v25  ;;  %v3162_v32 = vpop.f32.mrf.mxu0  ;;  %v989_v25 = vld [vmem:[#allocation2 + $0xd8] sm:$0xff]  ;;  %v1086_v51 = vld [vmem:[#allocation2 + $0xe1] sm:$0xff] }
 0x24e   : > { %v1021_v50 = vpack.c.bf16 %v989_v25, %v989_v25 }
 0x24f   : > { %v3069_v56 = vadd.f32 %v3068_v24, %v2980_v60  ;;  %v1181_v60 = vld [vmem:[#allocation2 + $0xda] sm:$0xff] }
 0x250   : > { %v10101_v10 = vpop.f32.mrf.mxu1  ;;  %1053 = vst [vmem:[#allocation4 + $0x210] sm:$0xf] %v1021_v50  ;;  %v1213_v21 = vpack.c.bf16 %v1181_v60, %v1181_v60 }
 0x251   : > { %3297 = vmatmul.bf16.gmra.mxu2 %v7268_v42  ;;  %v10098_v41 = vadd.f32 %v3157_v34, %v3069_v56  ;;  %v1117_v34 = vpack.c.bf16 %v1085_v16, %v1085_v16  ;;  %v1182_v42 = vld [vmem:[#allocation2 + $0xe2] sm:$0xff]  ;;  %v1118_v56 = vpack.c.bf16 %v1086_v51, %v1086_v51  ;;  %v8891_v51 = vld [vmem:[#allocation4 + $0x1f0] sm:$0xf0] }
 0x252   : > { %v1214_v19 = vpack.c.bf16 %v1182_v42, %v1182_v42  ;;  %1245 = vst [vmem:[#allocation4 + $0x218] sm:$0xf] %v1213_v21  ;;  %v7348_v60 = vor.u32 %v8891_v51, %v7347_v45  ;;  %v992_v21 = vld [vmem:[#allocation2 + $0xf8] sm:$0xff] }
 0x253   : > { %1149 = vst [vmem:[#allocation4 + $0x214] sm:$0xf] %v1117_v34  ;;  %v7341_v34 = vld [vmem:[#allocation4 + $0x1ec] sm:$0xf0] }
 0x254   : > { %v2982_v30 = vpop.f32.mrf.mxu2  ;;  %v3073_v46 = vpop.f32.mrf.mxu3  ;;  %1150 = vst [vmem:[#allocation4 + $0x238] sm:$0xf] %v1118_v56 }
 0x255   : > { %v2983_v24 = vadd.f32 %v2982_v30, %v9865_v55  ;;  %v3165_v54 = vpop.f32.mrf.mxu0  ;;  %v7303_v55 = vld [vmem:[#allocation4 + $0x180] sm:$0xf]  ;;  %1246 = vst [vmem:[#allocation4 + $0x23c] sm:$0xf] %v1214_v19  ;;  %v1087_v19 = vld [vmem:[#allocation2 + $0xf1] sm:$0xff] }
 0x257   : > { %v3072_v59 = vadd.f32 %v3071_v13, %v2983_v24  ;;  %3480 = vmatmul.bf16.gmra.mxu0 %v7312_v40  ;;  %v7304_v13 = vor.u32 %v8881_v48, %v7303_v55  ;;  %v1088_v48 = vld [vmem:[#allocation2 + $0xf9] sm:$0xff] }
 0x258   : > { %v3254_v50 = vpop.f32.mrf.mxu1 }
 0x259   : > { %v3161_v2 = vadd.f32 %v3160_v62, %v3072_v59  ;;  %3391 = vmatmul.bf16.gmra.mxu3 %v7308_v22  ;;  %v8886_v22 = vld [vmem:[#allocation4 + $0x1cc] sm:$0xf]  ;;  %v991_v59 = vld [vmem:[#allocation2 + $0xf0] sm:$0xff] }
 0x25a   : > { %v7344_v56 = vor.u32 %v8886_v22, %v7341_v34  ;;  %v1023_v55 = vpack.c.bf16 %v991_v59, %v991_v59 }
 0x25b   : > { %v10103_v30 = vadd.f32 %v3249_v33, %v3161_v2 }
 0x25c   : > { %v2984_v25 = vpop.f32.mrf.mxu2  ;;  %v3076_v37 = vpop.f32.mrf.mxu3  ;;  %1055 = vst [vmem:[#allocation4 + $0x258] sm:$0xf] %v1023_v55 }
 0x25d   : > { %v2985_v16 = vadd.f32 %v2984_v25, %v9872_v14  ;;  %v3167_v40 = vpop.f32.mrf.mxu0  ;;  %v1119_v25 = vpack.c.bf16 %v1087_v19, %v1087_v19 }
 0x25f   : > { %v3074_v24 = vadd.f32 %v3073_v46, %v2985_v16  ;;  %v1024_v46 = vpack.c.bf16 %v992_v21, %v992_v21  ;;  %v1183_v16 = vld [vmem:[#allocation2 + $0xf2] sm:$0xff]  ;;  %1151 = vst [vmem:[#allocation4 + $0x25c] sm:$0xf] %v1119_v25 }
 0x260   : > { %v1215_v45 = vpack.c.bf16 %v1183_v16, %v1183_v16  ;;  %v10109_v34 = vpop.f32.mrf.mxu1  ;;  %v7377_v25 = vld [vmem:[#allocation4 + $0x234] sm:$0xf0] }
 0x261   : > { %3302 = vmatmul.bf16.gmra.mxu2 %v7304_v13  ;;  %v10106_v62 = vadd.f32 %v3162_v32, %v3074_v24  ;;  %v1184_v13 = vld [vmem:[#allocation2 + $0xfa] sm:$0xff]  ;;  %v1120_v32 = vpack.c.bf16 %v1088_v48, %v1088_v48  ;;  %1056 = vst [vmem:[#allocation4 + $0x27c] sm:$0xf] %v1024_v46 }
 0x262   : > { %v1216_v51 = vpack.c.bf16 %v1184_v13, %v1184_v13  ;;  %11411 = vst [vmem:[#allocation7_spill] sm:$0xff] %v10109_v34  ;;  %v8900_v46 = vld [vmem:[#allocation4 + $0x238] sm:$0xf0] }
 0x263   : > { %1152 = vst [vmem:[#allocation4 + $0x280] sm:$0xf] %v1120_v32 }
 0x264   : > { %v2987_v33 = vpop.f32.mrf.mxu2  ;;  %v3078_v42 = vpop.f32.mrf.mxu3  ;;  %1247 = vst [vmem:[#allocation4 + $0x260] sm:$0xf] %v1215_v45 }
 0x265   : > { %v2988_v14 = vadd.f32 %v2987_v33, %v9876_v53  ;;  %v3170_v2 = vpop.f32.mrf.mxu0  ;;  %v7339_v53 = vld [vmem:[#allocation4 + $0x1c8] sm:$0xf]  ;;  %v8890_v33 = vld [vmem:[#allocation4 + $0x1e8] sm:$0xf0]  ;;  %1248 = vst [vmem:[#allocation4 + $0x284] sm:$0xf] %v1216_v51 }
 0x266   : > { %v993_v51 = vld [vmem:[#allocation2 + $0x108] sm:$0xff] }
 0x267   : > { %v3077_v24 = vadd.f32 %v3076_v37, %v2988_v14  ;;  %3485 = vmatmul.bf16.gmra.mxu0 %v7348_v60  ;;  %v7340_v60 = vor.u32 %v8890_v33, %v7339_v53  ;;  %v1089_v53 = vld [vmem:[#allocation2 + $0x109] sm:$0xff] }
 0x268   : > { %v3259_v16 = vpop.f32.mrf.mxu1 }
 0x269   : > { %v3166_v22 = vadd.f32 %v3165_v54, %v3077_v24  ;;  %3396 = vmatmul.bf16.gmra.mxu3 %v7344_v56  ;;  %v9189_v54 = vld [vmem:[%s11405_s4] sm:$0xff]  ;;  %v7383_v56 = vld [vmem:[#allocation4 + $0x218] sm:$0xf] }
 0x26a   : > { %6071 = vmatpush.bf16.msra.mxu1 %v9189_v54  ;;  %v7384_v13 = vor.u32 %v8900_v46, %v7383_v56  ;;  %v1186_v54 = vld [vmem:[#allocation2 + $0x112] sm:$0xff] }
 0x26b   : > { %v10111_v59 = vadd.f32 %v3254_v50, %v3166_v22  ;;  %v8895_v50 = vld [vmem:[#allocation4 + $0x214] sm:$0xf]  ;;  %v7375_v46 = vld [vmem:[#allocation4 + $0x210] sm:$0xf] }
 0x26c   : > { %v2989_v21 = vpop.f32.mrf.mxu2  ;;  %v3081_v19 = vpop.f32.mrf.mxu3  ;;  %v994_v22 = vld [vmem:[#allocation2 + $0x110] sm:$0xff] }
 0x26d   : > { %v2990_v37 = vadd.f32 %v2989_v21, %v9880_v0  ;;  %v3172_v14 = vpop.f32.mrf.mxu0  ;;  %v1025_v21 = vpack.c.bf16 %v993_v51, %v993_v51 }
 0x26f   : > { %v3079_v55 = vadd.f32 %v3078_v42, %v2990_v37  ;;  %v7380_v42 = vor.u32 %v8895_v50, %v7377_v25  ;;  %v1026_v37 = vpack.c.bf16 %v994_v22, %v994_v22  ;;  %1057 = vst [vmem:[#allocation4 + $0x2a0] sm:$0xf] %v1025_v21  ;;  %v1218_v50 = vpack.c.bf16 %v1186_v54, %v1186_v54  ;;  %v9049_v54 = vld [vmem:[#allocation4 + $0x20] sm:$0xf0] }
 0x270   : > { %v10123_v22 = vpop.f32.mrf.mxu1 }
 0x271   : > { %3307 = vmatmul.bf16.gmra.mxu2 %v7340_v60  ;;  %v10117_v48 = vadd.f32 %v3167_v40, %v3079_v55  ;;  %v1090_v40 = vld [vmem:[#allocation2 + $0x111] sm:$0xff]  ;;  %v1121_v60 = vpack.c.bf16 %v1089_v53, %v1089_v53  ;;  %1058 = vst [vmem:[#allocation4 + $0x2c4] sm:$0xf] %v1026_v37  ;;  %v8909_v53 = vld [vmem:[#allocation4 + $0x280] sm:$0xf0] }
 0x272   : > { %v1185_v55 = vld [vmem:[#allocation2 + $0x10a] sm:$0xff]  ;;  %v1122_v34 = vpack.c.bf16 %v1090_v40, %v1090_v40  ;;  %11413 = vst [vmem:[#allocation9_spill] sm:$0xff] %v10123_v22 }
 0x273   : > { %11412 = vst [vmem:[#allocation8_spill] sm:$0xff] %v10117_v48  ;;  %v1217_v56 = vpack.c.bf16 %v1185_v55, %v1185_v55  ;;  %v7963_v55 = vld [vmem:[#allocation4] sm:$0xf] }
 0x274   : > { %v2992_v32 = vpop.f32.mrf.mxu2  ;;  %v3083_v24 = vpop.f32.mrf.mxu3  ;;  %1153 = vst [vmem:[#allocation4 + $0x2a4] sm:$0xf] %v1121_v60 }
 0x275   : > { %v2993_v0 = vadd.f32 %v2992_v32, %v9890_v39  ;;  %v3175_v45 = vpop.f32.mrf.mxu0  ;;  %v8899_v39 = vld [vmem:[#allocation4 + $0x230] sm:$0xf0]  ;;  %1154 = vst [vmem:[#allocation4 + $0x2c8] sm:$0xf] %v1122_v34 }
 0x276   : > { %1249 = vst [vmem:[#allocation4 + $0x2a8] sm:$0xf] %v1217_v56  ;;  %v7964_v56 = vor.u32 %v9049_v54, %v7963_v55 }
 0x277   : > { %v3082_v33 = vadd.f32 %v3081_v19, %v2993_v0  ;;  %3490 = vmatmul.bf16.gmra.mxu0 %v7384_v13  ;;  %v7376_v0 = vor.u32 %v8899_v39, %v7375_v46  ;;  %1250 = vst [vmem:[#allocation4 + $0x2cc] sm:$0xf] %v1218_v50  ;;  %v996_v39 = vld [vmem:[#allocation2 + $0x128] sm:$0xff] }
 0x278   : > { %v1091_v50 = vld [vmem:[#allocation2 + $0x121] sm:$0xff]  ;;  %6072 = vmatmul.bf16.vlgmr.msra.gmra.mxu1 %v7964_v56 }
 0x279   : > { %v3171_v48 = vadd.f32 %v3170_v2, %v3082_v33  ;;  %3401 = vmatmul.bf16.gmra.mxu3 %v7380_v42  ;;  %v7419_v42 = vld [vmem:[#allocation4 + $0x260] sm:$0xf] }
 0x27a   : > { %v7420_v21 = vor.u32 %v8909_v53, %v7419_v42  ;;  %v1187_v42 = vld [vmem:[#allocation2 + $0x122] sm:$0xff]  ;;  %v1188_v53 = vld [vmem:[#allocation2 + $0x12a] sm:$0xff] }
 0x27b   : > { %v10120_v25 = vadd.f32 %v3259_v16, %v3171_v48  ;;  %v8904_v48 = vld [vmem:[#allocation4 + $0x25c] sm:$0xf]  ;;  %v7413_v16 = vld [vmem:[#allocation4 + $0x27c] sm:$0xf0] }
 0x27c   : > { %v2994_v19 = vpop.f32.mrf.mxu2  ;;  %v3086_v13 = vpop.f32.mrf.mxu3  ;;  %v7416_v60 = vor.u32 %v8904_v48, %v7413_v16  ;;  %v7411_v48 = vld [vmem:[#allocation4 + $0x258] sm:$0xf]  ;;  %v8908_v16 = vld [vmem:[#allocation4 + $0x278] sm:$0xf0] }
 0x27d   : > { %v2995_v32 = vadd.f32 %v2994_v19, %v9897_v63  ;;  %v3177_v51 = vpop.f32.mrf.mxu0  ;;  %v3264_v19 = vpop.f32.mrf.mxu1  ;;  %v7412_v56 = vor.u32 %v8908_v16, %v7411_v48  ;;  %v998_v48 = vld [vmem:[#allocation2 + $0x140] sm:$0xff] }
 0x27e   : > { %v1093_v16 = vld [vmem:[#allocation2 + $0x139] sm:$0xff] }
 0x27f   : > { %v3084_v2 = vadd.f32 %v3083_v24, %v2995_v32  ;;  %v995_v24 = vld [vmem:[#allocation2 + $0x120] sm:$0xff]  ;;  %v1028_v32 = vpack.c.bf16 %v996_v39, %v996_v39 }
 0x281   : > { %3312 = vmatmul.bf16.gmra.mxu2 %v7376_v0  ;;  %v10125_v33 = vadd.f32 %v3172_v14, %v3084_v2  ;;  %v1027_v14 = vpack.c.bf16 %v995_v24, %v995_v24  ;;  %v1092_v0 = vld [vmem:[#allocation2 + $0x129] sm:$0xff]  ;;  %v1123_v2 = vpack.c.bf16 %v1091_v50, %v1091_v50  ;;  %1060 = vst [vmem:[#allocation4 + $0x30c] sm:$0xf] %v1028_v32 }
 0x282   : > { %v7449_v50 = vld [vmem:[#allocation4 + $0x2c4] sm:$0xf0] }
 0x283   : > { %1059 = vst [vmem:[#allocation4 + $0x2e8] sm:$0xf] %v1027_v14 }
 0x284   : > { %v2997_v37 = vpop.f32.mrf.mxu2  ;;  %v3088_v40 = vpop.f32.mrf.mxu3  ;;  %1155 = vst [vmem:[#allocation4 + $0x2ec] sm:$0xf] %v1123_v2 }
 0x285   : > { %v2998_v34 = vadd.f32 %v2997_v37, %v9901_v38  ;;  %v3456_v63 = vpop.f32.mrf.mxu0  ;;  %v1124_v38 = vpack.c.bf16 %v1092_v0, %v1092_v0  ;;  %v1219_v37 = vpack.c.bf16 %v1187_v42, %v1187_v42  ;;  %v9212_v42 = vld [vmem:[%s11405_s4 + $0xb8] sm:$0xff] }
 0x286   : > { %6242 = vmatpush.bf16.msrb.mxu3 %v9212_v42 }
 0x287   : > { %v3087_v46 = vadd.f32 %v3086_v13, %v2998_v34  ;;  %3495 = vmatmul.bf16.gmra.mxu0 %v7420_v21  ;;  %v1220_v21 = vpack.c.bf16 %v1188_v53, %v1188_v53  ;;  %1156 = vst [vmem:[#allocation4 + $0x310] sm:$0xf] %v1124_v38  ;;  %v10145_v53 = vld [vmem:[%s11403_s2] ss:$0 sm:$0xff]  ;;  %v997_v38 = vld [vmem:[#allocation2 + $0x138] sm:$0xff] }
 0x288   : > { %1251 = vst [vmem:[#allocation4 + $0x2f0] sm:$0xf] %v1219_v37 }
 0x289   : > { %v3176_v22 = vadd.f32 %v3175_v45, %v3087_v46  ;;  %3406 = vmatmul.bf16.gmra.mxu3 %v7416_v60  ;;  %1252 = vst [vmem:[#allocation4 + $0x314] sm:$0xf] %v1220_v21  ;;  %v7455_v60 = vld [vmem:[#allocation4 + $0x2a8] sm:$0xf]  ;;  %v8918_v46 = vld [vmem:[#allocation4 + $0x2c8] sm:$0xf0]  ;;  %v1029_v21 = vpack.c.bf16 %v997_v38, %v997_v38 }
 0x28b   : > { %v10128_v13 = vadd.f32 %v3264_v19, %v3176_v22  ;;  %v8913_v22 = vld [vmem:[#allocation4 + $0x2a4] sm:$0xf]  ;;  %v7456_v19 = vor.u32 %v8918_v46, %v7455_v60  ;;  %v7447_v60 = vld [vmem:[#allocation4 + $0x2a0] sm:$0xf]  ;;  %1061 = vst [vmem:[#allocation4 + $0x330] sm:$0xf] %v1029_v21 }
 0x28c   : > { %v2999_v34 = vpop.f32.mrf.mxu2  ;;  %v3367_v55 = vpop.f32.mrf.mxu3  ;;  %v8917_v46 = vld [vmem:[#allocation4 + $0x2c0] sm:$0xf0] }
 0x28d   : > { %v3000_v54 = vadd.f32 %v2999_v34, %v9905_v44  ;;  %v3458_v24 = vpop.f32.mrf.mxu0  ;;  %v7452_v44 = vor.u32 %v8913_v22, %v7449_v50  ;;  %v1030_v34 = vpack.c.bf16 %v998_v48, %v998_v48 }
 0x28f   : > { %v3089_v45 = vadd.f32 %v3088_v40, %v3000_v54  ;;  %v9204_v40 = vld [vmem:[%s11405_s4 + $0x78] sm:$0xff]  ;;  %v1125_v54 = vpack.c.bf16 %v1093_v16, %v1093_v16  ;;  %1062 = vst [vmem:[#allocation4 + $0x354] sm:$0xf] %v1030_v34 }
 0x290   : > { %6153 = vmatpush.bf16.msrb.mxu2 %v9204_v40  ;;  %v8927_v21 = vld [vmem:[#allocation4 + $0x310] sm:$0xf0] }
 0x291   : > { %3317 = vmatmul.bf16.gmra.mxu2 %v7412_v56  ;;  %v10131_v39 = vadd.f32 %v3177_v51, %v3089_v45  ;;  %v1189_v56 = vld [vmem:[#allocation2 + $0x13a] sm:$0xff]  ;;  %v1190_v45 = vld [vmem:[#allocation2 + $0x142] sm:$0xff]  ;;  %1157 = vst [vmem:[#allocation4 + $0x334] sm:$0xf] %v1125_v54 }
 0x294   : > { %v3278_v14 = vpop.f32.mrf.mxu2  ;;  %v3369_v32 = vpop.f32.mrf.mxu3 }
 0x295   : > { %v3279_v0 = vadd.f32 %v3278_v14, %v9924_v18  ;;  %v10134_v2 = vpop.f32.mrf.mxu0  ;;  %v10150_v18 = vld [vmem:[%s11404_s3] ss:$0 sm:$0xff]  ;;  %v1221_v14 = vpack.c.bf16 %v1189_v56, %v1189_v56  ;;  %v8922_v56 = vld [vmem:[#allocation4 + $0x2ec] sm:$0xf] }
 0x297   : > { %v3368_v51 = vadd.f32 %v3367_v55, %v3279_v0  ;;  %3500 = vmatmul.bf16.gmra.mxu0 %v7456_v19  ;;  %v1094_v55 = vld [vmem:[#allocation2 + $0x141] sm:$0xff]  ;;  %v9220_v19 = vld [vmem:[%s11405_s4 + $0xf8] sm:$0xff]  ;;  %1253 = vst [vmem:[#allocation4 + $0x338] sm:$0xf] %v1221_v14 }
 0x298   : > { %v1126_v22 = vpack.c.bf16 %v1094_v55, %v1094_v55  ;;  %6331 = vmatpush.bf16.msrb.mxu0 %v9220_v19 }
 0x299   : > { %v3457_v37 = vadd.f32 %v3456_v63, %v3368_v51  ;;  %3411 = vmatmul.bf16.gmra.mxu3 %v7452_v44  ;;  %v1222_v44 = vpack.c.bf16 %v1190_v45, %v1190_v45  ;;  %v7448_v51 = vor.u32 %v8917_v46, %v7447_v60  ;;  %v7485_v45 = vld [vmem:[#allocation4 + $0x30c] sm:$0xf0] }
 0x29a   : > { %1158 = vst [vmem:[#allocation4 + $0x358] sm:$0xf] %v1126_v22  ;;  %v7488_v19 = vor.u32 %v8922_v56, %v7485_v45  ;;  %v8926_v56 = vld [vmem:[#allocation4 + $0x308] sm:$0xf0] }
 0x29b   : > { %v3540_v50 = vmul.f32 %v10145_v53, %v3457_v37  ;;  %v7491_v37 = vld [vmem:[#allocation4 + $0x2f0] sm:$0xf]  ;;  %1254 = vst [vmem:[#allocation4 + $0x35c] sm:$0xf] %v1222_v44 }
 0x29c   : > { %v3280_v0 = vpop.f32.mrf.mxu2  ;;  %v3372_v63 = vpop.f32.mrf.mxu3  ;;  %v7492_v60 = vor.u32 %v8927_v21, %v7491_v37  ;;  %v9211_v37 = vld [vmem:[%s11405_s4 + $0xb0] sm:$0xff]  ;;  %v7483_v21 = vld [vmem:[#allocation4 + $0x2e8] sm:$0xf] }
 0x29d   : > { %v3576_v40 = vadd.f32 %v10150_v18, %v3540_v50  ;;  %v3281_v42 = vadd.f32 %v3280_v0, %v9934_v43  ;;  %v10158_v38 = vpop.f32.mrf.mxu0  ;;  %6243 = vmatpush.bf16.msrb.mxu3 %v9211_v37 }
 0x29f   : > { %v3608_v48 = vmax.f32 %v3576_v40, 0.0  ;;  %v3370_v16 = vadd.f32 %v3369_v32, %v3281_v42  ;;  %v999_v40 = vld [vmem:[#allocation2 + $0x150] sm:$0xff]  ;;  %v1000_v42 = vld [vmem:[#allocation2 + $0x158] sm:$0xff] }
 0x2a0   : > { %v1032_v45 = vpack.c.bf16 %v1000_v42, %v1000_v42 }
 0x2a1   : > { %3695 = vst [vmem:[#allocation3 + $0x19] sm:$0xff] %v3608_v48  ;;  %v4143_v55 = vpack.c.bf16 %v3608_v48, %v3608_v48  ;;  %v3459_v34 = vadd.f32 %v3458_v24, %v3370_v16  ;;  %3322 = vmatmul.bf16.gmra.mxu2 %v7448_v51  ;;  %v9228_v24 = vld [vmem:[%s11405_s4 + $0x138] sm:$0xff] }
 0x2a2   : > { %6420 = vmatpush.bf16.msrb.mxu1 %v9228_v24  ;;  %v7484_v24 = vor.u32 %v8926_v56, %v7483_v21  ;;  %1064 = vst [vmem:[#allocation4 + $0x39c] sm:$0xf] %v1032_v45  ;;  %v1191_v21 = vld [vmem:[#allocation2 + $0x152] sm:$0xff]  ;;  %v1192_v45 = vld [vmem:[#allocation2 + $0x15a] sm:$0xff] }
 0x2a3   : > { %4175 = vst [vmem:[#allocation4 + $0x10] sm:$0xf] %v4143_v55  ;;  %v3541_v43 = vmul.f32 %v10145_v53, %v3459_v34  ;;  %v1031_v55 = vpack.c.bf16 %v999_v40, %v999_v40 }
 0x2a4   : > { %v3283_v46 = vpop.f32.mrf.mxu2  ;;  %v3374_v50 = vpop.f32.mrf.mxu3 }
 0x2a5   : > { %v3577_v54 = vadd.f32 %v10150_v18, %v3541_v43  ;;  %v3284_v32 = vadd.f32 %v3283_v46, %v9942_v49  ;;  %v10163_v22 = vpop.f32.mrf.mxu0  ;;  %v9203_v49 = vld [vmem:[%s11405_s4 + $0x70] sm:$0xff]  ;;  %1063 = vst [vmem:[#allocation4 + $0x378] sm:$0xf] %v1031_v55 }
 0x2a6   : > { %6154 = vmatpush.bf16.msrb.mxu2 %v9203_v49 }
 0x2a7   : > { %v3609_v14 = vmax.f32 %v3577_v54, 0.0  ;;  %v3373_v0 = vadd.f32 %v3372_v63, %v3284_v32  ;;  %3505 = vmatmul.bf16.gmra.mxu0 %v7492_v60  ;;  %v1095_v63 = vld [vmem:[#allocation2 + $0x151] sm:$0xff] }
 0x2a8   : > { %v4015_v44 = vld [vmem:[#allocation3 + $0x18] sm:$0xff]  ;;  %v1127_v46 = vpack.c.bf16 %v1095_v63, %v1095_v63 }
 0x2a9   : > { %v4047_v51 = vpack.c.bf16 %v4015_v44, %v4015_v44  ;;  %3696 = vst [vmem:[#allocation3 + $0x21] sm:$0xff] %v3609_v14  ;;  %v4144_v48 = vpack.c.bf16 %v3609_v14, %v3609_v14  ;;  %v3462_v16 = vadd.f32 %v10134_v2, %v3373_v0  ;;  %3416 = vmatmul.bf16.gmra.mxu3 %v7488_v19  ;;  %v1096_v2 = vld [vmem:[#allocation2 + $0x159] sm:$0xff] }
 0x2aa   : > { %v7527_v14 = vld [vmem:[#allocation4 + $0x338] sm:$0xf]  ;;  %v1128_v0 = vpack.c.bf16 %v1096_v2, %v1096_v2  ;;  %1159 = vst [vmem:[#allocation4 + $0x37c] sm:$0xf] %v1127_v46 }
 0x2ab   : > { %4079 = vst [vmem:[#allocation4 + $0xc] sm:$0xf] %v4047_v51  ;;  %v3542_v34 = vmul.f32 %v10145_v53, %v3462_v16  ;;  %v8936_v16 = vld [vmem:[#allocation4 + $0x358] sm:$0xf0] }
 0x2ac   : > { %4176 = vst [vmem:[#allocation4 + $0x34] sm:$0xf] %v4144_v48  ;;  %v3285_v43 = vpop.f32.mrf.mxu2  ;;  %v3377_v60 = vpop.f32.mrf.mxu3  ;;  %v7528_v2 = vor.u32 %v8936_v16, %v7527_v14  ;;  %v1001_v16 = vld [vmem:[#allocation2 + $0x168] sm:$0xff] }
 0x2ad   : > { %v3578_v54 = vadd.f32 %v10150_v18, %v3542_v34  ;;  %v3286_v32 = vadd.f32 %v3285_v43, %v9956_v26  ;;  %v10178_v19 = vpop.f32.mrf.mxu0  ;;  %3793 = vst [vmem:[#allocation4 + $0x48] sm:$0xf] %v4047_v51  ;;  %v8931_v26 = vld [vmem:[#allocation4 + $0x334] sm:$0xf] }
 0x2ae   : > { %v9219_v51 = vld [vmem:[%s11405_s4 + $0xf0] sm:$0xff]  ;;  %1160 = vst [vmem:[#allocation4 + $0x3a0] sm:$0xf] %v1128_v0 }
 0x2af   : > { %v3610_v44 = vmax.f32 %v3578_v54, 0.0  ;;  %v3375_v40 = vadd.f32 %v3374_v50, %v3286_v32  ;;  %v7521_v50 = vld [vmem:[#allocation4 + $0x354] sm:$0xf0]  ;;  %6332 = vmatpush.bf16.msrb.mxu0 %v9219_v51  ;;  %v1223_v32 = vpack.c.bf16 %v1191_v21, %v1191_v21 }
 0x2b0   : > { %v4016_v42 = vld [vmem:[#allocation3 + $0x20] sm:$0xff] }
 0x2b1   : > { %v4207_v48 = vld [vmem:[#allocation3 + $0x1a] sm:$0xff]  ;;  %v4208_v49 = vld [vmem:[#allocation3 + $0x22] sm:$0xff]  ;;  %v4048_v37 = vpack.c.bf16 %v4016_v42, %v4016_v42  ;;  %3697 = vst [vmem:[#allocation3 + $0x31] sm:$0xff] %v3610_v44  ;;  %v4432_v55 = vpack.c.bf16 %v3610_v44, %v3610_v44  ;;  %v3464_v56 = vadd.f32 %v10158_v38, %v3375_v40  ;;  %3327 = vmatmul.bf16.gmra.mxu2 %v7484_v24 }
 0x2b2   : > { %v4239_v63 = vpack.c.bf16 %v4207_v48, %v4207_v48  ;;  %v4240_v34 = vpack.c.bf16 %v4208_v49, %v4208_v49  ;;  %v7524_v44 = vor.u32 %v8931_v26, %v7521_v50  ;;  %v1224_v38 = vpack.c.bf16 %v1192_v45, %v1192_v45  ;;  %1255 = vst [vmem:[#allocation4 + $0x380] sm:$0xf] %v1223_v32  ;;  %v1002_v49 = vld [vmem:[#allocation2 + $0x170] sm:$0xff] }
 0x2b3   : > { %4080 = vst [vmem:[#allocation4 + $0x30] sm:$0xf] %v4048_v37  ;;  %v3543_v43 = vmul.f32 %v10145_v53, %v3464_v56  ;;  %v1097_v26 = vld [vmem:[#allocation2 + $0x169] sm:$0xff]  ;;  %v1034_v56 = vpack.c.bf16 %v1002_v49, %v1002_v49  ;;  %v1098_v50 = vld [vmem:[#allocation2 + $0x171] sm:$0xff] }
 0x2b4   : > { %4271 = vst [vmem:[#allocation4 + $0x14] sm:$0xf] %v4239_v63  ;;  %v3288_v46 = vpop.f32.mrf.mxu2  ;;  %v3379_v54 = vpop.f32.mrf.mxu3  ;;  %v1194_v49 = vld [vmem:[#allocation2 + $0x172] sm:$0xff] }
 0x2b5   : > { %4272 = vst [vmem:[#allocation4 + $0x38] sm:$0xf] %v4240_v34  ;;  %v3289_v42 = vadd.f32 %v3288_v46, %v9966_v28  ;;  %v10186_v48 = vpop.f32.mrf.mxu0  ;;  %v3579_v24 = vadd.f32 %v10150_v18, %v3543_v43  ;;  %v9227_v28 = vld [vmem:[%s11405_s4 + $0x130] sm:$0xff] }
 0x2b6   : > { %4464 = vst [vmem:[#allocation4 + $0x1c] sm:$0xf] %v4432_v55  ;;  %v8935_v55 = vld [vmem:[#allocation4 + $0x350] sm:$0xf0]  ;;  %6421 = vmatpush.bf16.msrb.mxu1 %v9227_v28  ;;  %v1193_v43 = vld [vmem:[#allocation2 + $0x16a] sm:$0xff] }
 0x2b7   : > { %v3378_v0 = vadd.f32 %v3377_v60, %v3289_v42  ;;  %3794 = vst [vmem:[#allocation4 + $0x6c] sm:$0xf] %v4048_v37  ;;  %3510 = vmatmul.bf16.gmra.mxu0 %v7528_v2  ;;  %v3611_v40 = vmax.f32 %v3579_v24, 0.0  ;;  %v7519_v60 = vld [vmem:[#allocation4 + $0x330] sm:$0xf]  ;;  %v1033_v37 = vpack.c.bf16 %v1001_v16, %v1001_v16  ;;  %v1129_v2 = vpack.c.bf16 %v1097_v26, %v1097_v26 }
 0x2b8   : > { %v4304_v14 = vld [vmem:[#allocation3 + $0x30] sm:$0xff]  ;;  %1256 = vst [vmem:[#allocation4 + $0x3a4] sm:$0xf] %v1224_v38  ;;  %v7520_v24 = vor.u32 %v8935_v55, %v7519_v60  ;;  %v8940_v55 = vld [vmem:[#allocation4 + $0x37c] sm:$0xf] }
 0x2b9   : > { %v4336_v63 = vpack.c.bf16 %v4304_v14, %v4304_v14  ;;  %v3467_v34 = vadd.f32 %v10163_v22, %v3378_v0  ;;  %3421 = vmatmul.bf16.gmra.mxu3 %v7524_v44  ;;  %3698 = vst [vmem:[#allocation3 + $0x39] sm:$0xff] %v3611_v40  ;;  %v4433_v51 = vpack.c.bf16 %v3611_v40, %v3611_v40  ;;  %v7999_v44 = vld [vmem:[#allocation4 + $0x48] sm:$0xf]  ;;  %v7563_v28 = vld [vmem:[#allocation4 + $0x380] sm:$0xf] }
 0x2ba   : > { %1065 = vst [vmem:[#allocation4 + $0x3c0] sm:$0xf] %v1033_v37  ;;  %v1130_v0 = vpack.c.bf16 %v1098_v50, %v1098_v50 }
 0x2bb   : > { %4368 = vst [vmem:[#allocation4 + $0x18] sm:$0xf] %v4336_v63  ;;  %v3544_v21 = vmul.f32 %v10145_v53, %v3467_v34  ;;  %v1225_v34 = vpack.c.bf16 %v1193_v43, %v1193_v43  ;;  %v3825_v43 = vld [vmem:[#allocation3 + $0x19] sm:$0xff] }
 0x2bc   : > { %4465 = vst [vmem:[#allocation4 + $0x40] sm:$0xf] %v4433_v51  ;;  %v3290_v22 = vpop.f32.mrf.mxu2  ;;  %v3382_v45 = vpop.f32.mrf.mxu3 }
 0x2bd   : > { %v3580_v46 = vadd.f32 %v10150_v18, %v3544_v21  ;;  %v3291_v32 = vadd.f32 %v3290_v22, %v9978_v57  ;;  %v10196_v42 = vpop.f32.mrf.mxu0  ;;  %3795 = vst [vmem:[#allocation4 + $0x90] sm:$0xf] %v4336_v63 }
 0x2be   : > { %v9058_v38 = vld [vmem:[#allocation4 + $0x68] sm:$0xf0]  ;;  %1066 = vst [vmem:[#allocation4 + $0x3e4] sm:$0xf] %v1034_v56 }
 0x2bf   : > { %v3612_v14 = vmax.f32 %v3580_v46, 0.0  ;;  %v3380_v40 = vadd.f32 %v3379_v54, %v3291_v32  ;;  %v8000_v16 = vor.u32 %v9058_v38, %v7999_v44  ;;  %v8945_v26 = vld [vmem:[#allocation4 + $0x3a0] sm:$0xf0]  ;;  %1161 = vst [vmem:[#allocation4 + $0x3c4] sm:$0xf] %v1129_v2  ;;  %v1226_v32 = vpack.c.bf16 %v1194_v49, %v1194_v49 }
 0x2c0   : > { %v4305_v51 = vld [vmem:[#allocation3 + $0x38] sm:$0xff]  ;;  %v7557_v54 = vld [vmem:[#allocation4 + $0x39c] sm:$0xf0]  ;;  %1162 = vst [vmem:[#allocation4 + $0x3e8] sm:$0xf] %v1130_v0  ;;  %v7564_v50 = vor.u32 %v8945_v26, %v7563_v28 }
 0x2c1   : > { %v4496_v21 = vld [vmem:[#allocation3 + $0x32] sm:$0xff]  ;;  %v4497_v57 = vld [vmem:[#allocation3 + $0x3a] sm:$0xff]  ;;  %3699 = vst [vmem:[#allocation3 + $0x49] sm:$0xff] %v3612_v14  ;;  %v3469_v63 = vadd.f32 %v10178_v19, %v3380_v40  ;;  %6077 = vmatmul.bf16.gmra.mxu1 %v8000_v16  ;;  %v4337_v22 = vpack.c.bf16 %v4305_v51, %v4305_v51  ;;  %3332 = vmatmul.bf16.gmra.mxu2 %v7520_v24 }
 0x2c2   : > { %v4528_v60 = vpack.c.bf16 %v4496_v21, %v4496_v21  ;;  %v4529_v37 = vpack.c.bf16 %v4497_v57, %v4497_v57  ;;  %1257 = vst [vmem:[#allocation4 + $0x3c8] sm:$0xf] %v1225_v34  ;;  %v7560_v24 = vor.u32 %v8940_v55, %v7557_v54  ;;  %v3857_v14 = vpack.c.bf16 %v3825_v43, %v3825_v43  ;;  %v1003_v34 = vld [vmem:[#allocation2 + $0x180] sm:$0xff]  ;;  %v1004_v28 = vld [vmem:[#allocation2 + $0x188] sm:$0xff]  ;;  %v7555_v21 = vld [vmem:[#allocation4 + $0x378] sm:$0xf] }
 0x2c3   : > { %v3545_v56 = vmul.f32 %v10145_v53, %v3469_v63  ;;  %4369 = vst [vmem:[#allocation4 + $0x3c] sm:$0xf] %v4337_v22  ;;  %v1035_v51 = vpack.c.bf16 %v1003_v34, %v1003_v34  ;;  %v1036_v57 = vpack.c.bf16 %v1004_v28, %v1004_v28  ;;  %v1099_v63 = vld [vmem:[#allocation2 + $0x181] sm:$0xff] }
 0x2c4   : > { %v3293_v2 = vpop.f32.mrf.mxu2  ;;  %v3384_v46 = vpop.f32.mrf.mxu3  ;;  %4560 = vst [vmem:[#allocation4 + $0x20] sm:$0xf] %v4528_v60  ;;  %v1195_v54 = vld [vmem:[#allocation2 + $0x182] sm:$0xff] }
 0x2c5   : > { %v3581_v19 = vadd.f32 %v10150_v18, %v3545_v56  ;;  %v3294_v44 = vadd.f32 %v3293_v2, %v9986_v61  ;;  %v10202_v38 = vpop.f32.mrf.mxu0  ;;  %4561 = vst [vmem:[#allocation4 + $0x44] sm:$0xf] %v4529_v37  ;;  %v9202_v61 = vld [vmem:[%s11405_s4 + $0x68] sm:$0xff]  ;;  %v1131_v37 = vpack.c.bf16 %v1099_v63, %v1099_v63  ;;  %v1227_v2 = vpack.c.bf16 %v1195_v54, %v1195_v54 }
 0x2c6   : > { %3796 = vst [vmem:[#allocation4 + $0xb4] sm:$0xf] %v4337_v22  ;;  %v1100_v22 = vld [vmem:[#allocation2 + $0x189] sm:$0xff]  ;;  %6155 = vmatpush.bf16.msrb.mxu2 %v9202_v61 }
 0x2c7   : > { %v3613_v0 = vmax.f32 %v3581_v19, 0.0  ;;  %v3383_v40 = vadd.f32 %v3382_v45, %v3294_v44  ;;  %3515 = vmatmul.bf16.gmra.mxu0 %v7564_v50  ;;  %1258 = vst [vmem:[#allocation4 + $0x3ec] sm:$0xf] %v1226_v32  ;;  %v9210_v45 = vld [vmem:[%s11405_s4 + $0xa8] sm:$0xff]  ;;  %v1132_v55 = vpack.c.bf16 %v1100_v22, %v1100_v22 }
 0x2c8   : > { %v3733_v16 = vld [vmem:[#allocation3 + $0x48] sm:$0xff]  ;;  %3889 = vst [vmem:[#allocation4 + $0x4c] sm:$0xf] %v3857_v14  ;;  %6244 = vmatpush.bf16.msrb.mxu3 %v9210_v45  ;;  %v1196_v56 = vld [vmem:[#allocation2 + $0x18a] sm:$0xff] }
 0x2c9   : > { %3700 = vst [vmem:[#allocation3 + $0x51] sm:$0xff] %v3613_v0  ;;  %v3472_v49 = vadd.f32 %v10186_v48, %v3383_v40  ;;  %3426 = vmatmul.bf16.gmra.mxu3 %v7560_v24  ;;  %v10205_v26 = vpack.c.bf16 %v3733_v16, %v3733_v16  ;;  %v8944_v48 = vld [vmem:[#allocation4 + $0x398] sm:$0xf0]  ;;  %v3826_v24 = vld [vmem:[#allocation3 + $0x21] sm:$0xff]  ;;  %v1228_v34 = vpack.c.bf16 %v1196_v56, %v1196_v56  ;;  %v7599_v45 = vld [vmem:[#allocation4 + $0x3c8] sm:$0xf] }
 0x2ca   : > { %1067 = vst [vmem:[#allocation4 + $0x408] sm:$0xf] %v1035_v51  ;;  %v3921_v14 = vld [vmem:[#allocation3 + $0x1a] sm:$0xff]  ;;  %v7556_v16 = vor.u32 %v8944_v48, %v7555_v21  ;;  %v3922_v51 = vld [vmem:[#allocation3 + $0x22] sm:$0xff] }
 0x2cb   : > { %v3546_v60 = vmul.f32 %v10145_v53, %v3472_v49  ;;  %3797 = vst [vmem:[#allocation4 + $0xd8] sm:$0xf] %v10205_v26  ;;  %v8035_v0 = vld [vmem:[#allocation4 + $0x90] sm:$0xf]  ;;  %v9218_v21 = vld [vmem:[%s11405_s4 + $0xe8] sm:$0xff]  ;;  %v3954_v56 = vpack.c.bf16 %v3922_v51, %v3922_v51  ;;  %v1101_v51 = vld [vmem:[#allocation2 + $0x199] sm:$0xff] }
 0x2cc   : > { %v3295_v50 = vpop.f32.mrf.mxu2  ;;  %v3387_v43 = vpop.f32.mrf.mxu3  ;;  %1068 = vst [vmem:[#allocation4 + $0x42c] sm:$0xf] %v1036_v57  ;;  %v4018_v48 = vld [vmem:[#allocation3 + $0x38] sm:$0xff]  ;;  %6333 = vmatpush.bf16.msrb.mxu0 %v9218_v21 }
 0x2cd   : > { %v3582_v32 = vadd.f32 %v10150_v18, %v3546_v60  ;;  %v3296_v19 = vadd.f32 %v3295_v50, %v10003_v52  ;;  %v10217_v44 = vpop.f32.mrf.mxu0  ;;  %v9067_v40 = vld [vmem:[#allocation4 + $0xb0] sm:$0xf0]  ;;  %1163 = vst [vmem:[#allocation4 + $0x40c] sm:$0xf] %v1131_v37  ;;  %v3858_v52 = vpack.c.bf16 %v3826_v24, %v3826_v24  ;;  %v4017_v60 = vld [vmem:[#allocation3 + $0x30] sm:$0xff] }
 0x2ce   : > { %v8036_v61 = vor.u32 %v9067_v40, %v8035_v0  ;;  %1164 = vst [vmem:[#allocation4 + $0x430] sm:$0xf] %v1132_v55  ;;  %v8954_v22 = vld [vmem:[#allocation4 + $0x3e8] sm:$0xf0]  ;;  %v8949_v37 = vld [vmem:[#allocation4 + $0x3c4] sm:$0xf]  ;;  %v4050_v0 = vpack.c.bf16 %v4018_v48, %v4018_v48  ;;  %v1133_v48 = vpack.c.bf16 %v1101_v51, %v1101_v51 }
 0x2cf   : > { %v3614_v28 = vmax.f32 %v3582_v32, 0.0  ;;  %v3385_v49 = vadd.f32 %v3384_v46, %v3296_v19  ;;  %1259 = vst [vmem:[#allocation4 + $0x410] sm:$0xf] %v1227_v2  ;;  %v3953_v46 = vpack.c.bf16 %v3921_v14, %v3921_v14  ;;  %v7593_v55 = vld [vmem:[#allocation4 + $0x3e4] sm:$0xf0]  ;;  %v7600_v2 = vor.u32 %v8954_v22, %v7599_v45 }
 0x2d0   : > { %v3734_v63 = vld [vmem:[#allocation3 + $0x50] sm:$0xff]  ;;  %1260 = vst [vmem:[#allocation4 + $0x434] sm:$0xf] %v1228_v34  ;;  %v7596_v34 = vor.u32 %v8949_v37, %v7593_v55  ;;  %v3212_v37 = vadd.f32 %v9996_v23, %v10026_v5 }
 0x2d1   : > { %3701 = vst [vmem:[#allocation3 + $0x61] sm:$0xff] %v3614_v28  ;;  %v3474_v57 = vadd.f32 %v10196_v42, %v3385_v49  ;;  %6082 = vmatmul.bf16.gmra.mxu1 %v8036_v61  ;;  %v10220_v54 = vpack.c.bf16 %v3734_v63, %v3734_v63  ;;  %3337 = vmatmul.bf16.gmra.mxu2 %v7556_v16  ;;  %v3827_v32 = vld [vmem:[#allocation3 + $0x31] sm:$0xff] }
 0x2d2   : > { %v4049_v42 = vpack.c.bf16 %v4017_v60, %v4017_v60  ;;  %3890 = vst [vmem:[#allocation4 + $0x70] sm:$0xf] %v3858_v52  ;;  %v3859_v28 = vpack.c.bf16 %v3827_v32, %v3827_v32  ;;  %v1102_v63 = vld [vmem:[#allocation2 + $0x1a1] sm:$0xff] }
 0x2d3   : > { %v3547_v50 = vmul.f32 %v10145_v53, %v3474_v57  ;;  %3798 = vst [vmem:[#allocation4 + $0xfc] sm:$0xf] %v10220_v54  ;;  %v9290_v60 = vld [vmem:[#allocation2] sm:$0xff] }
 0x2d4   : > { %v3298_v19 = vpop.f32.mrf.mxu2  ;;  %v3389_v24 = vpop.f32.mrf.mxu3  ;;  %3985 = vst [vmem:[#allocation4 + $0x50] sm:$0xf] %v3953_v46  ;;  %v10237_v57 = vpack.c.bf16 %v9290_v60, %v9290_v60  ;;  %v7591_v46 = vld [vmem:[#allocation4 + $0x3c0] sm:$0xf]  ;;  %v8953_v55 = vld [vmem:[#allocation4 + $0x3e0] sm:$0xf0] }
 0x2d5   : > { %v3583_v14 = vadd.f32 %v10150_v18, %v3547_v50  ;;  %v3299_v40 = vadd.f32 %v3298_v19, %v10015_v47  ;;  %v10229_v16 = vpop.f32.mrf.mxu0  ;;  %3986 = vst [vmem:[#allocation4 + $0x74] sm:$0xf] %v3954_v56  ;;  %v9226_v47 = vld [vmem:[%s11405_s4 + $0x128] sm:$0xff]  ;;  %v1134_v56 = vpack.c.bf16 %v1102_v63, %v1102_v63  ;;  %v7592_v23 = vor.u32 %v8953_v55, %v7591_v46  ;;  %v9209_v60 = vld [vmem:[%s11405_s4 + $0xa0] sm:$0xff] }
 0x2d6   : > { %4081 = vst [vmem:[#allocation4 + $0x54] sm:$0xf] %v4049_v42  ;;  %6422 = vmatpush.bf16.msrb.mxu1 %v9226_v47  ;;  %v1198_v50 = vld [vmem:[#allocation2 + $0x1a2] sm:$0xff]  ;;  %v8071_v42 = vld [vmem:[#allocation4 + $0xd8] sm:$0xf]  ;;  %v3924_v46 = vld [vmem:[#allocation3 + $0x3a] sm:$0xff]  ;;  %6245 = vmatpush.bf16.msrb.mxu3 %v9209_v60 }
 0x2d7   : > { %v3615_v49 = vmax.f32 %v3583_v14, 0.0  ;;  %v3388_v61 = vadd.f32 %v3387_v43, %v3299_v40  ;;  %3520 = vmatmul.bf16.gmra.mxu0 %v7600_v2  ;;  %4082 = vst [vmem:[#allocation4 + $0x78] sm:$0xf] %v4050_v0  ;;  %v1197_v43 = vld [vmem:[#allocation2 + $0x19a] sm:$0xff]  ;;  %v7635_v5 = vld [vmem:[#allocation4 + $0x410] sm:$0xf] }
 0x2d8   : > { %v3735_v45 = vld [vmem:[#allocation3 + $0x60] sm:$0xff]  ;;  %3891 = vst [vmem:[#allocation4 + $0x94] sm:$0xf] %v3859_v28  ;;  %v1229_v19 = vpack.c.bf16 %v1197_v43, %v1197_v43  ;;  %v1230_v28 = vpack.c.bf16 %v1198_v50, %v1198_v50  ;;  %v3923_v63 = vld [vmem:[#allocation3 + $0x32] sm:$0xff]  ;;  %v8962_v60 = vld [vmem:[#allocation4 + $0x428] sm:$0xf0] }
 0x2d9   : > { %3702 = vst [vmem:[#allocation3 + $0x69] sm:$0xff] %v3615_v49  ;;  %v3477_v22 = vadd.f32 %v10202_v38, %v3388_v61  ;;  %3431 = vmatmul.bf16.gmra.mxu3 %v7596_v34  ;;  %v10232_v52 = vpack.c.bf16 %v3735_v45, %v3735_v45  ;;  %v3828_v49 = vld [vmem:[#allocation3 + $0x39] sm:$0xff]  ;;  %v8963_v51 = vld [vmem:[#allocation4 + $0x430] sm:$0xf0]  ;;  %v9201_v47 = vld [vmem:[%s11405_s4 + $0x60] sm:$0xff]  ;;  %v3955_v50 = vpack.c.bf16 %v3923_v63, %v3923_v63 }
 0x2da   : > { %v9076_v21 = vld [vmem:[#allocation4 + $0xf8] sm:$0xf0]  ;;  %1069 = vst [vmem:[#allocation4 + $0x450] sm:$0xf] %v10237_v57  ;;  %6156 = vmatpush.bf16.msrb.mxu2 %v9201_v47  ;;  %v7627_v47 = vld [vmem:[#allocation4 + $0x408] sm:$0xf] }
 0x2db   : > { %v3548_v38 = vmul.f32 %v10145_v53, %v3477_v22  ;;  %3799 = vst [vmem:[#allocation4 + $0x120] sm:$0xf] %v10232_v52  ;;  %v8072_v40 = vor.u32 %v9076_v21, %v8071_v42 }
 0x2dc   : > { %v3300_v2 = vpop.f32.mrf.mxu2  ;;  %v3392_v32 = vpop.f32.mrf.mxu3  ;;  %1070 = vst [vmem:[#allocation4 + $0x474] sm:$0xf] %v10237_v57 }
 0x2dd   : > { %v3584_v0 = vadd.f32 %v10150_v18, %v3548_v38  ;;  %v3301_v14 = vadd.f32 %v3300_v2, %v3212_v37  ;;  %v10245_v34 = vpop.f32.mrf.mxu0  ;;  %1165 = vst [vmem:[#allocation4 + $0x454] sm:$0xf] %v1133_v48  ;;  %v8958_v48 = vld [vmem:[#allocation4 + $0x40c] sm:$0xf]  ;;  %v7629_v37 = vld [vmem:[#allocation4 + $0x42c] sm:$0xf0]  ;;  %v3860_v38 = vpack.c.bf16 %v3828_v49, %v3828_v49 }
 0x2de   : > { %1166 = vst [vmem:[#allocation4 + $0x478] sm:$0xf] %v1134_v56  ;;  %v7636_v56 = vor.u32 %v8963_v51, %v7635_v5  ;;  %v7632_v49 = vor.u32 %v8958_v48, %v7629_v37 }
 0x2df   : > { %v3616_v61 = vmax.f32 %v3584_v0, 0.0  ;;  %v3390_v45 = vadd.f32 %v3389_v24, %v3301_v14  ;;  %1261 = vst [vmem:[#allocation4 + $0x458] sm:$0xf] %v1229_v19  ;;  %v9217_v24 = vld [vmem:[%s11405_s4 + $0xe0] sm:$0xff]  ;;  %v9200_v0 = vld [vmem:[%s11405_s4 + $0x58] sm:$0xff] }
 0x2e0   : > { %v3736_v22 = vld [vmem:[#allocation3 + $0x68] sm:$0xff]  ;;  %1262 = vst [vmem:[#allocation4 + $0x47c] sm:$0xf] %v1230_v28  ;;  %6334 = vmatpush.bf16.msrb.mxu0 %v9217_v24  ;;  %6157 = vmatpush.bf16.msrb.mxu2 %v9200_v0 }
 0x2e1   : > { %3703 = vst [vmem:[#allocation3 + $0x79] sm:$0xff] %v3616_v61  ;;  %v3479_v43 = vadd.f32 %v10217_v44, %v3390_v45  ;;  %6087 = vmatmul.bf16.gmra.mxu1 %v8072_v40  ;;  %v10255_v21 = vpack.c.bf16 %v3736_v22, %v3736_v22  ;;  %3342 = vmatmul.bf16.gmra.mxu2 %v7592_v23  ;;  %v10262_v44 = vld [vmem:[#allocation4 + $0x450] sm:$0xf]  ;;  %v9208_v14 = vld [vmem:[%s11405_s4 + $0x98] sm:$0xff] }
 0x2e2   : > { %4398 = vst [vmem:[#allocation4 + $0x450] sm:$0xf] %v10237_v57  ;;  %v3956_v40 = vpack.c.bf16 %v3924_v46, %v3924_v46  ;;  %v9216_v61 = vld [vmem:[%s11405_s4 + $0xd8] sm:$0xff]  ;;  %6246 = vmatpush.bf16.msrb.mxu3 %v9208_v14  ;;  %v8107_v46 = vld [vmem:[#allocation4 + $0x120] sm:$0xf] }
 0x2e3   : > { %v3549_v55 = vmul.f32 %v10145_v53, %v3479_v43  ;;  %3800 = vst [vmem:[#allocation4 + $0x144] sm:$0xf] %v10255_v21  ;;  %v10266_v19 = vld [vmem:[#allocation4 + $0x470] sm:$0xf0]  ;;  %v4430_v43 = vld [vmem:[#allocation3 + $0x199] sm:$0xff] }
 0x2e4   : > { %v3303_v2 = vpop.f32.mrf.mxu2  ;;  %v10264_v42 = vpop.f32.mrf.mxu3  ;;  %4399 = vst [vmem:[#allocation4 + $0x474] sm:$0xf] %v10237_v57  ;;  %6335 = vmatpush.bf16.msrb.mxu0 %v9216_v61  ;;  %v9207_v57 = vld [vmem:[%s11405_s4 + $0x90] sm:$0xff]  ;;  %v4462_v37 = vpack.c.bf16 %v4430_v43, %v4430_v43 }
 0x2e5   : > { %v3585_v23 = vadd.f32 %v10150_v18, %v3549_v55  ;;  %v3304_v5 = vadd.f32 %v3303_v2, %v10033_v31  ;;  %v10277_v28 = vpop.f32.mrf.mxu0  ;;  %3892 = vst [vmem:[#allocation4 + $0xb8] sm:$0xf] %v3860_v38  ;;  %v9199_v31 = vld [vmem:[%s11405_s4 + $0x50] sm:$0xff] }
 0x2e6   : > { %3987 = vst [vmem:[#allocation4 + $0x98] sm:$0xf] %v3955_v50  ;;  %v4431_v24 = vld [vmem:[#allocation3 + $0x1a1] sm:$0xff]  ;;  %6247 = vmatpush.bf16.msrb.mxu3 %v9207_v57  ;;  %v3217_v50 = vadd.f32 %v10023_v7, %v10042_v35  ;;  %6158 = vmatpush.bf16.msrb.mxu2 %v9199_v31  ;;  %v9198_v7 = vld [vmem:[%s11405_s4 + $0x48] sm:$0xff]  ;;  %v3829_v57 = vld [vmem:[#allocation3 + $0x49] sm:$0xff] }
 0x2e7   : > { %v3617_v45 = vmax.f32 %v3585_v23, 0.0  ;;  %v3393_v51 = vadd.f32 %v3392_v32, %v3304_v5  ;;  %3525 = vmatmul.bf16.gmra.mxu0 %v7636_v56  ;;  %3988 = vst [vmem:[#allocation4 + $0xbc] sm:$0xf] %v3956_v40  ;;  %v4463_v38 = vpack.c.bf16 %v4431_v24, %v4431_v24  ;;  %v4526_v55 = vld [vmem:[#allocation3 + $0x19a] sm:$0xff]  ;;  %v4527_v56 = vld [vmem:[#allocation3 + $0x1a2] sm:$0xff]  ;;  %v3830_v24 = vld [vmem:[#allocation3 + $0x51] sm:$0xff] }
 0x2e8   : > { %v3737_v63 = vld [vmem:[#allocation3 + $0x78] sm:$0xff]  ;;  %4083 = vst [vmem:[#allocation4 + $0x9c] sm:$0xf] %v10205_v26  ;;  %v10297_v2 = vld [vmem:[#allocation4 + $0x454] sm:$0xf]  ;;  %v4558_v0 = vpack.c.bf16 %v4526_v55, %v4526_v55  ;;  %v4559_v14 = vpack.c.bf16 %v4527_v56, %v4527_v56 }
 0x2e9   : > { %3704 = vst [vmem:[#allocation3 + $0x81] sm:$0xff] %v3617_v45  ;;  %v3482_v22 = vadd.f32 %v10229_v16, %v3393_v51  ;;  %3436 = vmatmul.bf16.gmra.mxu3 %v7632_v49  ;;  %v10290_v32 = vpack.c.bf16 %v3737_v63, %v3737_v63  ;;  %v9215_v40 = vld [vmem:[%s11405_s4 + $0xd0] sm:$0xff]  ;;  %v10302_v49 = vld [vmem:[#allocation4 + $0x474] sm:$0xf0]  ;;  %v9206_v35 = vld [vmem:[%s11405_s4 + $0x88] sm:$0xff] }
 0x2ea   : > { %v9085_v48 = vld [vmem:[#allocation4 + $0x140] sm:$0xf0]  ;;  %4494 = vst [vmem:[#allocation4 + $0x454] sm:$0xf] %v4462_v37  ;;  %v7671_v63 = vld [vmem:[#allocation4 + $0x458] sm:$0xf]  ;;  %6336 = vmatpush.bf16.msrb.mxu0 %v9215_v40  ;;  %6248 = vmatpush.bf16.msrb.mxu3 %v9206_v35 }
 0x2eb   : > { %v3550_v16 = vmul.f32 %v10145_v53, %v3482_v22  ;;  %3801 = vst [vmem:[#allocation4 + $0x168] sm:$0xf] %v10290_v32  ;;  %v8108_v45 = vor.u32 %v9085_v48, %v8107_v46  ;;  %v9214_v31 = vld [vmem:[%s11405_s4 + $0xc8] sm:$0xff]  ;;  %v7628_v22 = vor.u32 %v8962_v60, %v7627_v47  ;;  %v8972_v43 = vld [vmem:[#allocation4 + $0x478] sm:$0xf0]  ;;  %6159 = vmatpush.bf16.msrb.mxu2 %v9198_v7  ;;  %v9205_v47 = vld [vmem:[%s11405_s4 + $0x80] sm:$0xff] }
 0x2ec   : > { %v3305_v23 = vpop.f32.mrf.mxu2  ;;  %v3397_v5 = vpop.f32.mrf.mxu3  ;;  %4495 = vst [vmem:[#allocation4 + $0x478] sm:$0xf] %v4463_v38  ;;  %v3925_v46 = vld [vmem:[#allocation3 + $0x4a] sm:$0xff]  ;;  %v3926_v48 = vld [vmem:[#allocation3 + $0x52] sm:$0xff]  ;;  %v3861_v60 = vpack.c.bf16 %v3829_v57, %v3829_v57 }
 0x2ed   : > { %v3586_v26 = vadd.f32 %v10150_v18, %v3550_v16  ;;  %v3306_v61 = vadd.f32 %v3305_v23, %v3217_v50  ;;  %v10311_v51 = vpop.f32.mrf.mxu0  ;;  %4590 = vst [vmem:[#allocation4 + $0x458] sm:$0xf] %v4558_v0  ;;  %v9197_v38 = vld [vmem:[%s11405_s4 + $0x40] sm:$0xff]  ;;  %v3862_v0 = vpack.c.bf16 %v3830_v24, %v3830_v24  ;;  %v3958_v23 = vpack.c.bf16 %v3926_v48, %v3926_v48 }
 0x2ee   : > { %4591 = vst [vmem:[#allocation4 + $0x47c] sm:$0xf] %v4559_v14  ;;  %6337 = vmatpush.bf16.msrb.mxu0 %v9214_v31  ;;  %v9213_v16 = vld [vmem:[%s11405_s4 + $0xc0] sm:$0xff]  ;;  %6249 = vmatpush.bf16.msrb.mxu3 %v9205_v47  ;;  %v3957_v14 = vpack.c.bf16 %v3925_v46, %v3925_v46  ;;  %v3831_v31 = vld [vmem:[#allocation3 + $0x61] sm:$0xff] }
 0x2ef   : > { %v3618_v37 = vmax.f32 %v3586_v26, 0.0  ;;  %v3395_v55 = vadd.f32 %v10264_v42, %v3306_v61  ;;  %4084 = vst [vmem:[#allocation4 + $0xc0] sm:$0xf] %v10220_v54  ;;  %v7672_v54 = vor.u32 %v8972_v43, %v7671_v63  ;;  %6160 = vmatpush.bf16.msrb.mxu2 %v9197_v38  ;;  %v3832_v57 = vld [vmem:[#allocation3 + $0x69] sm:$0xff] }
 0x2f0   : > { %v3738_v56 = vld [vmem:[#allocation3 + $0x80] sm:$0xff]  ;;  %3893 = vst [vmem:[#allocation4 + $0xdc] sm:$0xf] %v3861_v60  ;;  %v3864_v46 = vpack.c.bf16 %v3832_v57, %v3832_v57  ;;  %v10361_v57 = vld [vmem:[%s11403_s2] ss:$0 sm:$0xff] }
 0x2f1   : > { %3705 = vst [vmem:[#allocation3 + $0x91] sm:$0xff] %v3618_v37  ;;  %v3484_v50 = vadd.f32 %v10245_v34, %v3395_v55  ;;  %6092 = vmatmul.bf16.gmra.mxu1 %v8108_v45  ;;  %v10325_v42 = vpack.c.bf16 %v3738_v56, %v3738_v56  ;;  %3347 = vmatmul.bf16.gmra.mxu2 %v7628_v22  ;;  %v3927_v43 = vld [vmem:[#allocation3 + $0x62] sm:$0xff] }
 0x2f2   : > { %v7668_v45 = vor.u32 %v10297_v2, %v10302_v49  ;;  %6338 = vmatpush.bf16.msrb.mxu0 %v9213_v16  ;;  %3894 = vst [vmem:[#allocation4 + $0x100] sm:$0xf] %v3862_v0  ;;  %v3863_v37 = vpack.c.bf16 %v3831_v31, %v3831_v31  ;;  %v9225_v49 = vld [vmem:[%s11405_s4 + $0x120] sm:$0xff]  ;;  %v3959_v48 = vpack.c.bf16 %v3927_v43, %v3927_v43  ;;  %v8143_v47 = vld [vmem:[#allocation4 + $0x168] sm:$0xf] }
 0x2f3   : > { %v3551_v40 = vmul.f32 %v10145_v53, %v3484_v50  ;;  %3802 = vst [vmem:[#allocation4 + $0x18c] sm:$0xf] %v10325_v42  ;;  %6423 = vmatpush.bf16.msrb.mxu1 %v9225_v49  ;;  %v9046_v43 = vld [vmem:[#allocation4 + $0xc] sm:$0xf] }
 0x2f4   : > { %v3308_v7 = vpop.f32.mrf.mxu2  ;;  %v3399_v34 = vpop.f32.mrf.mxu3  ;;  %3989 = vst [vmem:[#allocation4 + $0xe0] sm:$0xf] %v3957_v14 }
 0x2f5   : > { %v3587_v35 = vadd.f32 %v10150_v18, %v3551_v40  ;;  %v3309_v26 = vadd.f32 %v3308_v7, %v10046_v17  ;;  %v10334_v61 = vpop.f32.mrf.mxu0  ;;  %3990 = vst [vmem:[#allocation4 + $0x104] sm:$0xf] %v3958_v23  ;;  %v3928_v17 = vld [vmem:[#allocation3 + $0x6a] sm:$0xff] }
 0x2f6   : > { %4085 = vst [vmem:[#allocation4 + $0xe4] sm:$0xf] %v10232_v52  ;;  %v3222_v52 = vadd.f32 %v10039_v20, %v10051_v8  ;;  %v7664_v20 = vor.u32 %v10266_v19, %v10262_v44  ;;  %v3834_v8 = vld [vmem:[#allocation3 + $0x81] sm:$0xff]  ;;  %v7971_v44 = vld [vmem:[#allocation4 + $0x8] sm:$0xf] }
 0x2f7   : > { %v3619_v63 = vmax.f32 %v3587_v35, 0.0  ;;  %v3398_v22 = vadd.f32 %v3397_v5, %v3309_v26  ;;  %3530 = vmatmul.bf16.gmra.mxu0 %v7672_v54  ;;  %4086 = vst [vmem:[#allocation4 + $0x108] sm:$0xf] %v10255_v21  ;;  %v3833_v21 = vld [vmem:[#allocation3 + $0x79] sm:$0xff]  ;;  %v3866_v31 = vpack.c.bf16 %v3834_v8, %v3834_v8 }
 0x2f8   : > { %v3739_v24 = vld [vmem:[#allocation3 + $0x90] sm:$0xff]  ;;  %3895 = vst [vmem:[#allocation4 + $0x124] sm:$0xf] %v3863_v37  ;;  %v3929_v54 = vld [vmem:[#allocation3 + $0x7a] sm:$0xff]  ;;  %v3865_v7 = vpack.c.bf16 %v3833_v21, %v3833_v21 }
 0x2f9   : > { %3706 = vst [vmem:[#allocation3 + $0x99] sm:$0xff] %v3619_v63  ;;  %v3487_v55 = vadd.f32 %v10277_v28, %v3398_v22  ;;  %3441 = vmatmul.bf16.gmra.mxu3 %v7668_v45  ;;  %v10340_v2 = vpack.c.bf16 %v3739_v24, %v3739_v24  ;;  %v3960_v28 = vpack.c.bf16 %v3928_v17, %v3928_v17  ;;  %v7973_v45 = vld [vmem:[#allocation4 + $0x2c] sm:$0xf0]  ;;  %v9050_v19 = vld [vmem:[#allocation4 + $0x28] sm:$0xf0] }
 0x2fa   : > { %v9094_v5 = vld [vmem:[#allocation4 + $0x188] sm:$0xf0]  ;;  %3896 = vst [vmem:[#allocation4 + $0x148] sm:$0xf] %v3864_v46  ;;  %v10367_v24 = vld [vmem:[%s11404_s3] ss:$0 sm:$0xff]  ;;  %v7976_v49 = vor.u32 %v9046_v43, %v7973_v45 }
 0x2fb   : > { %v3552_v56 = vmul.f32 %v10145_v53, %v3487_v55  ;;  %3803 = vst [vmem:[#allocation4 + $0x1b0] sm:$0xf] %v10340_v2  ;;  %v8144_v0 = vor.u32 %v9094_v5, %v8143_v47  ;;  %v7972_v55 = vor.u32 %v9050_v19, %v7971_v44  ;;  %v3835_v46 = vld [vmem:[#allocation3 + $0x91] sm:$0xff]  ;;  %v4114_v44 = vld [vmem:[#allocation3 + $0x39] sm:$0xff] }
 0x2fc   : > { %v3310_v38 = vpop.f32.mrf.mxu2  ;;  %v3402_v60 = vpop.f32.mrf.mxu3  ;;  %3991 = vst [vmem:[#allocation4 + $0x128] sm:$0xf] %v3959_v48  ;;  %v4116_v43 = vld [vmem:[#allocation3 + $0x51] sm:$0xff] }
 0x2fd   : > { %v3588_v50 = vadd.f32 %v10150_v18, %v3552_v56  ;;  %v3311_v16 = vadd.f32 %v3310_v38, %v3222_v52  ;;  %v10351_v14 = vpop.f32.mrf.mxu0  ;;  %3992 = vst [vmem:[#allocation4 + $0x14c] sm:$0xf] %v3960_v28  ;;  %v3930_v18 = vld [vmem:[#allocation3 + $0x82] sm:$0xff]  ;;  %v3867_v56 = vpack.c.bf16 %v3835_v46, %v3835_v46 }
 0x2fe   : > { %4087 = vst [vmem:[#allocation4 + $0x12c] sm:$0xf] %v10290_v32  ;;  %v3962_v63 = vpack.c.bf16 %v3930_v18, %v3930_v18 }
 0x2ff   : > { %v3620_v53 = vmax.f32 %v3588_v50, 0.0  ;;  %v3400_v40 = vadd.f32 %v3399_v34, %v3311_v16  ;;  %4088 = vst [vmem:[#allocation4 + $0x150] sm:$0xf] %v10325_v42  ;;  %v3961_v34 = vpack.c.bf16 %v3929_v54, %v3929_v54 }
 0x300   : > { %v3740_v23 = vld [vmem:[#allocation3 + $0x98] sm:$0xff]  ;;  %3897 = vst [vmem:[#allocation4 + $0x16c] sm:$0xf] %v3865_v7 }
 0x301   : > { %3707 = vst [vmem:[#allocation3 + $0xa9] sm:$0xff] %v3620_v53  ;;  %v3489_v35 = vadd.f32 %v10311_v51, %v3400_v40  ;;  %6097 = vmatmul.bf16.gmra.mxu1 %v8144_v0  ;;  %v3772_v26 = vpack.c.bf16 %v3740_v23, %v3740_v23  ;;  %3352 = vmatmul.bf16.gmra.mxu2 %v7664_v20  ;;  %v3836_v38 = vld [vmem:[#allocation3 + $0x99] sm:$0xff]  ;;  %v4113_v20 = vld [vmem:[#allocation3 + $0x31] sm:$0xff] }
 0x302   : > { %3898 = vst [vmem:[#allocation4 + $0x190] sm:$0xf] %v3866_v31  ;;  %v3931_v47 = vld [vmem:[#allocation3 + $0x92] sm:$0xff]  ;;  %v3868_v16 = vpack.c.bf16 %v3836_v38, %v3836_v38  ;;  %v3932_v0 = vld [vmem:[#allocation3 + $0x9a] sm:$0xff] }
 0x303   : > { %v3553_v32 = vmul.f32 %v10361_v57, %v3489_v35  ;;  %3804 = vst [vmem:[#allocation4 + $0x1d4] sm:$0xf] %v3772_v26  ;;  %v3963_v21 = vpack.c.bf16 %v3931_v47, %v3931_v47  ;;  %v7965_v53 = vld [vmem:[#allocation4 + $0x24] sm:$0xf0]  ;;  %v3964_v40 = vpack.c.bf16 %v3932_v0, %v3932_v0  ;;  %v8179_v54 = vld [vmem:[#allocation4 + $0x1b0] sm:$0xf] }
 0x304   : > { %v3313_v51 = vpop.f32.mrf.mxu2  ;;  %v3404_v22 = vpop.f32.mrf.mxu3  ;;  %3993 = vst [vmem:[#allocation4 + $0x170] sm:$0xf] %v3961_v34  ;;  %v4115_v34 = vld [vmem:[#allocation3 + $0x49] sm:$0xff] }
 0x305   : > { %v3589_v42 = vadd.f32 %v10367_v24, %v3553_v32  ;;  %v3314_v37 = vadd.f32 %v3313_v51, %v10054_v12  ;;  %v10371_v17 = vpop.f32.mrf.mxu0  ;;  %3994 = vst [vmem:[#allocation4 + $0x194] sm:$0xf] %v3962_v63  ;;  %v10383_v46 = vpack.c.bf16 %v4115_v34, %v4115_v34 }
 0x306   : > { %4089 = vst [vmem:[#allocation4 + $0x174] sm:$0xf] %v10340_v2  ;;  %v9045_v2 = vld [vmem:[#allocation4 + $0x4] sm:$0xf] }
 0x307   : > { %v3621_v5 = vmax.f32 %v3589_v42, 0.0  ;;  %v3403_v48 = vadd.f32 %v3402_v60, %v3314_v37  ;;  %6339 = vmatmul.bf16.vlgmr.msrb.gmra.mxu0 %v7976_v49  ;;  %4090 = vst [vmem:[#allocation4 + $0x198] sm:$0xf] %v3772_v26  ;;  %v3227_v60 = vadd.f32 %v10049_v29, %v10062_v58  ;;  %v7968_v45 = vor.u32 %v9045_v2, %v7965_v53  ;;  %v8009_v42 = vld [vmem:[#allocation4 + $0x74] sm:$0xf0] }
 0x308   : > { %v3741_v52 = vld [vmem:[#allocation3 + $0xa8] sm:$0xff]  ;;  %3899 = vst [vmem:[#allocation4 + $0x1b4] sm:$0xf] %v3867_v56  ;;  %v4145_v29 = vpack.c.bf16 %v4113_v20, %v4113_v20  ;;  %v9059_v56 = vld [vmem:[#allocation4 + $0x70] sm:$0xf0] }
 0x309   : > { %3708 = vst [vmem:[#allocation3 + $0xb1] sm:$0xff] %v3621_v5  ;;  %v3492_v28 = vadd.f32 %v10334_v61, %v3403_v48  ;;  %6250 = vmatmul.bf16.vlgmr.msrb.gmra.mxu3 %v7972_v55  ;;  %v3773_v12 = vpack.c.bf16 %v3741_v52, %v3741_v52  ;;  %v3837_v51 = vld [vmem:[#allocation3 + $0xa9] sm:$0xff]  ;;  %v4146_v55 = vpack.c.bf16 %v4114_v44, %v4114_v44  ;;  %v4117_v5 = vld [vmem:[#allocation3 + $0x61] sm:$0xff] }
 0x30a   : > { %v9103_v50 = vld [vmem:[#allocation4 + $0x1d0] sm:$0xf0]  ;;  %3900 = vst [vmem:[#allocation4 + $0x1d8] sm:$0xf] %v3868_v16  ;;  %v3869_v37 = vpack.c.bf16 %v3837_v51, %v3837_v51  ;;  %v10391_v16 = vpack.c.bf16 %v4117_v5, %v4117_v5 }
 0x30b   : > { %v3554_v8 = vmul.f32 %v10361_v57, %v3492_v28  ;;  %3805 = vst [vmem:[#allocation4 + $0x1f8] sm:$0xf] %v3773_v12  ;;  %v8180_v35 = vor.u32 %v9103_v50, %v8179_v54  ;;  %v10385_v28 = vpack.c.bf16 %v4116_v43, %v4116_v43  ;;  %v9054_v43 = vld [vmem:[#allocation4 + $0x4c] sm:$0xf] }
 0x30c   : > { %v3315_v61 = vpop.f32.mrf.mxu2  ;;  %v3407_v23 = vpop.f32.mrf.mxu3  ;;  %3995 = vst [vmem:[#allocation4 + $0x1b8] sm:$0xf] %v3963_v21 }
 0x30d   : > { %v3590_v7 = vadd.f32 %v10367_v24, %v3554_v8  ;;  %v3316_v18 = vadd.f32 %v3315_v61, %v3227_v60  ;;  %v10379_v26 = vpop.f32.mrf.mxu0  ;;  %3996 = vst [vmem:[#allocation4 + $0x1dc] sm:$0xf] %v3964_v40  ;;  %v9224_v8 = vld [vmem:[%s11405_s4 + $0x118] sm:$0xff] }
 0x30e   : > { %4091 = vst [vmem:[#allocation4 + $0x1bc] sm:$0xf] %v3773_v12  ;;  %6424 = vmatpush.bf16.msrb.mxu1 %v9224_v8 }
 0x30f   : > { %v3622_v58 = vmax.f32 %v3590_v7, 0.0  ;;  %v3405_v31 = vadd.f32 %v3404_v22, %v3316_v18  ;;  %4177 = vst [vmem:[#allocation4 + $0x58] sm:$0xf] %v4145_v29  ;;  %v8007_v22 = vld [vmem:[#allocation4 + $0x50] sm:$0xf]  ;;  %v3232_v7 = vadd.f32 %v10060_v1, %v10070_v36 }
 0x310   : > { %v3742_v19 = vld [vmem:[#allocation3 + $0xb0] sm:$0xff]  ;;  %3901 = vst [vmem:[#allocation4 + $0x1fc] sm:$0xf] %v3869_v37  ;;  %v8008_v20 = vor.u32 %v9059_v56, %v8007_v22  ;;  %v4210_v56 = vld [vmem:[#allocation3 + $0x3a] sm:$0xff] }
 0x311   : > { %3709 = vst [vmem:[#allocation3 + $0xc1] sm:$0xff] %v3622_v58  ;;  %v3494_v32 = vadd.f32 %v10351_v14, %v3405_v31  ;;  %6102 = vmatmul.bf16.gmra.mxu1 %v8180_v35  ;;  %v3774_v63 = vpack.c.bf16 %v3742_v19, %v3742_v19  ;;  %6161 = vmatmul.bf16.vlgmr.msrb.gmra.mxu2 %v7968_v45  ;;  %v9055_v14 = vld [vmem:[#allocation4 + $0x54] sm:$0xf]  ;;  %v3838_v2 = vld [vmem:[#allocation3 + $0xb1] sm:$0xff]  ;;  %v4118_v45 = vld [vmem:[#allocation3 + $0x69] sm:$0xff] }
 0x312   : > { %v8012_v50 = vor.u32 %v9055_v14, %v8009_v42  ;;  %4178 = vst [vmem:[#allocation4 + $0x7c] sm:$0xf] %v4146_v55  ;;  %v3870_v61 = vpack.c.bf16 %v3838_v2, %v3838_v2  ;;  %v3933_v54 = vld [vmem:[#allocation3 + $0xaa] sm:$0xff]  ;;  %v10406_v1 = vpack.c.bf16 %v4118_v45, %v4118_v45  ;;  %v4209_v55 = vld [vmem:[#allocation3 + $0x32] sm:$0xff]  ;;  %v4242_v8 = vpack.c.bf16 %v4210_v56, %v4210_v56 }
 0x313   : > { %v3555_v49 = vmul.f32 %v10361_v57, %v3494_v32  ;;  %3806 = vst [vmem:[#allocation4 + $0x21c] sm:$0xf] %v3774_v63  ;;  %v8215_v58 = vld [vmem:[#allocation4 + $0x1f8] sm:$0xf]  ;;  %v8001_v32 = vld [vmem:[#allocation4 + $0x6c] sm:$0xf0] }
 0x314   : > { %v3318_v48 = vpop.f32.mrf.mxu2  ;;  %v3409_v52 = vpop.f32.mrf.mxu3  ;;  %4092 = vst [vmem:[#allocation4 + $0x1e0] sm:$0xf] %v3774_v63  ;;  %v8004_v42 = vor.u32 %v9054_v43, %v8001_v32  ;;  %v8045_v14 = vld [vmem:[#allocation4 + $0xbc] sm:$0xf0]  ;;  %v4306_v2 = vld [vmem:[#allocation3 + $0x48] sm:$0xff]  ;;  %v3237_v32 = vadd.f32 %v10068_v3, %v10081_v4 }
 0x315   : > { %v3591_v12 = vadd.f32 %v10367_v24, %v3555_v49  ;;  %v3319_v38 = vadd.f32 %v3318_v48, %v10065_v27  ;;  %v10389_v47 = vpop.f32.mrf.mxu0  ;;  %4179 = vst [vmem:[#allocation4 + $0xa0] sm:$0xf] %v10383_v46  ;;  %v4119_v48 = vld [vmem:[#allocation3 + $0x79] sm:$0xff] }
 0x316   : > { %4180 = vst [vmem:[#allocation4 + $0xc4] sm:$0xf] %v10385_v28 }
 0x317   : > { %v3623_v0 = vmax.f32 %v3591_v12, 0.0  ;;  %v3408_v21 = vadd.f32 %v3407_v23, %v3319_v38  ;;  %6344 = vmatmul.bf16.gmra.mxu0 %v8012_v50  ;;  %v3934_v23 = vld [vmem:[#allocation3 + $0xb2] sm:$0xff]  ;;  %4181 = vst [vmem:[#allocation4 + $0xe8] sm:$0xf] %v10391_v16  ;;  %v10412_v38 = vpop.f32.mrf.mxu1 }
 0x318   : > { %v3743_v27 = vld [vmem:[#allocation3 + $0xc0] sm:$0xff]  ;;  %v3966_v35 = vpack.c.bf16 %v3934_v23, %v3934_v23  ;;  %3902 = vst [vmem:[#allocation4 + $0x220] sm:$0xf] %v3870_v61 }
 0x319   : > { %3710 = vst [vmem:[#allocation3 + $0xc9] sm:$0xff] %v3623_v0  ;;  %v3497_v60 = vadd.f32 %v10371_v17, %v3408_v21  ;;  %6255 = vmatmul.bf16.gmra.mxu3 %v8008_v20  ;;  %v3775_v40 = vpack.c.bf16 %v3743_v27, %v3743_v27  ;;  %v3965_v17 = vpack.c.bf16 %v3933_v54, %v3933_v54  ;;  %v3839_v5 = vld [vmem:[#allocation3 + $0xc1] sm:$0xff]  ;;  %v9068_v21 = vld [vmem:[#allocation4 + $0xb8] sm:$0xf0] }
 0x31a   : > { %v9112_v53 = vld [vmem:[#allocation4 + $0x218] sm:$0xf0]  ;;  %3998 = vst [vmem:[#allocation4 + $0x224] sm:$0xf] %v3966_v35  ;;  %v3871_v12 = vpack.c.bf16 %v3839_v5, %v3839_v5  ;;  %v8043_v0 = vld [vmem:[#allocation4 + $0x98] sm:$0xf] }
 0x31b   : > { %v3556_v18 = vmul.f32 %v10361_v57, %v3497_v60  ;;  %3807 = vst [vmem:[#allocation4 + $0x240] sm:$0xf] %v3775_v40  ;;  %v8216_v34 = vor.u32 %v9112_v53, %v8215_v58  ;;  %v9064_v27 = vld [vmem:[#allocation4 + $0x9c] sm:$0xf] }
 0x31c   : > { %v3320_v29 = vpop.f32.mrf.mxu2  ;;  %v3412_v31 = vpop.f32.mrf.mxu3  ;;  %3997 = vst [vmem:[#allocation4 + $0x200] sm:$0xf] %v3965_v17  ;;  %v8048_v54 = vor.u32 %v9064_v27, %v8045_v14  ;;  %v4338_v17 = vpack.c.bf16 %v4306_v2, %v4306_v2  ;;  %v8081_v2 = vld [vmem:[#allocation4 + $0x104] sm:$0xf0] }
 0x31d   : > { %v3592_v44 = vadd.f32 %v10367_v24, %v3556_v18  ;;  %v3321_v19 = vadd.f32 %v3320_v29, %v3232_v7  ;;  %v10404_v63 = vpop.f32.mrf.mxu0  ;;  %4093 = vst [vmem:[#allocation4 + $0x204] sm:$0xf] %v3775_v40  ;;  %v8044_v18 = vor.u32 %v9068_v21, %v8043_v0  ;;  %v4307_v21 = vld [vmem:[#allocation3 + $0x50] sm:$0xff] }
 0x31e   : > { %4182 = vst [vmem:[#allocation4 + $0x10c] sm:$0xf] %v10406_v1 }
 0x31f   : > { %v3624_v36 = vmax.f32 %v3592_v44, 0.0  ;;  %v3410_v51 = vadd.f32 %v3409_v52, %v3321_v19  ;;  %v10410_v52 = vpack.c.bf16 %v4119_v48, %v4119_v48  ;;  %3903 = vst [vmem:[#allocation4 + $0x244] sm:$0xf] %v3871_v12  ;;  %v8037_v48 = vld [vmem:[#allocation4 + $0xb4] sm:$0xf0] }
 0x320   : > { %v3744_v37 = vld [vmem:[#allocation3 + $0xc8] sm:$0xff]  ;;  %4274 = vst [vmem:[#allocation4 + $0x80] sm:$0xf] %v4242_v8  ;;  %v9063_v12 = vld [vmem:[#allocation4 + $0x94] sm:$0xf]  ;;  %v4121_v8 = vld [vmem:[#allocation3 + $0x91] sm:$0xff] }
 0x321   : > { %3711 = vst [vmem:[#allocation3 + $0xd9] sm:$0xff] %v3624_v36  ;;  %v3499_v49 = vadd.f32 %v10379_v26, %v3410_v51  ;;  %6107 = vmatmul.bf16.gmra.mxu1 %v8216_v34  ;;  %v3776_v22 = vpack.c.bf16 %v3744_v37, %v3744_v37  ;;  %6166 = vmatmul.bf16.gmra.mxu2 %v8004_v42  ;;  %v3840_v45 = vld [vmem:[#allocation3 + $0xc9] sm:$0xff]  ;;  %v4120_v42 = vld [vmem:[#allocation3 + $0x81] sm:$0xff] }
 0x322   : > { %v4241_v26 = vpack.c.bf16 %v4209_v55, %v4209_v55  ;;  %4183 = vst [vmem:[#allocation4 + $0x130] sm:$0xf] %v10410_v52  ;;  %v3935_v29 = vld [vmem:[#allocation3 + $0xc2] sm:$0xff]  ;;  %v3872_v19 = vpack.c.bf16 %v3840_v45, %v3840_v45  ;;  %v8251_v37 = vld [vmem:[#allocation4 + $0x240] sm:$0xf]  ;;  %v10429_v3 = vpack.c.bf16 %v4120_v42, %v4120_v42 }
 0x323   : > { %v3557_v50 = vmul.f32 %v10361_v57, %v3499_v49  ;;  %3808 = vst [vmem:[#allocation4 + $0x264] sm:$0xf] %v3776_v22  ;;  %v3967_v34 = vpack.c.bf16 %v3935_v29, %v3935_v29 }
 0x324   : > { %v3323_v20 = vpop.f32.mrf.mxu2  ;;  %v3414_v60 = vpop.f32.mrf.mxu3  ;;  %4094 = vst [vmem:[#allocation4 + $0x228] sm:$0xf] %v3776_v22 }
 0x325   : > { %v3593_v53 = vadd.f32 %v10367_v24, %v3557_v50  ;;  %v3324_v40 = vadd.f32 %v3323_v20, %v10073_v11  ;;  %v10417_v61 = vpop.f32.mrf.mxu0  ;;  %4273 = vst [vmem:[#allocation4 + $0x5c] sm:$0xf] %v4241_v26  ;;  %v3936_v11 = vld [vmem:[#allocation3 + $0xca] sm:$0xff]  ;;  %v8040_v50 = vor.u32 %v9063_v12, %v8037_v48 }
 0x326   : > { %v3968_v43 = vpack.c.bf16 %v3936_v11, %v3936_v11  ;;  %4370 = vst [vmem:[#allocation4 + $0x60] sm:$0xf] %v4338_v17  ;;  %v9073_v17 = vld [vmem:[#allocation4 + $0xe4] sm:$0xf] }
 0x327   : > { %v3625_v23 = vmax.f32 %v3593_v53, 0.0  ;;  %v3413_v7 = vadd.f32 %v3412_v31, %v3324_v40  ;;  %6349 = vmatmul.bf16.gmra.mxu0 %v8048_v54  ;;  %v10423_v31 = vpop.f32.mrf.mxu1  ;;  %3904 = vst [vmem:[#allocation4 + $0x268] sm:$0xf] %v3872_v19  ;;  %v10433_v40 = vpack.c.bf16 %v4121_v8, %v4121_v8  ;;  %v8079_v54 = vld [vmem:[#allocation4 + $0xe0] sm:$0xf]  ;;  %v8084_v29 = vor.u32 %v9073_v17, %v8081_v2 }
 0x328   : > { %v3745_v44 = vld [vmem:[#allocation3 + $0xd8] sm:$0xff]  ;;  %3999 = vst [vmem:[#allocation4 + $0x248] sm:$0xf] %v3967_v34  ;;  %v4123_v17 = vld [vmem:[#allocation3 + $0xa9] sm:$0xff] }
 0x329   : > { %3712 = vst [vmem:[#allocation3 + $0xe1] sm:$0xff] %v3625_v23  ;;  %v3502_v35 = vadd.f32 %v10389_v47, %v3413_v7  ;;  %6260 = vmatmul.bf16.gmra.mxu3 %v8044_v18  ;;  %v3777_v51 = vpack.c.bf16 %v3745_v44, %v3745_v44  ;;  %v3841_v27 = vld [vmem:[#allocation3 + $0xd9] sm:$0xff]  ;;  %v4339_v23 = vpack.c.bf16 %v4307_v21, %v4307_v21  ;;  %v9077_v18 = vld [vmem:[#allocation4 + $0x100] sm:$0xf0] }
 0x32a   : > { %v9121_v58 = vld [vmem:[#allocation4 + $0x260] sm:$0xf0]  ;;  %4000 = vst [vmem:[#allocation4 + $0x26c] sm:$0xf] %v3968_v43  ;;  %v3873_v53 = vpack.c.bf16 %v3841_v27, %v3841_v27  ;;  %v8080_v19 = vor.u32 %v9077_v18, %v8079_v54  ;;  %v4211_v54 = vld [vmem:[#allocation3 + $0x4a] sm:$0xff] }
 0x32b   : > { %v3558_v36 = vmul.f32 %v10361_v57, %v3502_v35  ;;  %v8252_v5 = vor.u32 %v9121_v58, %v8251_v37  ;;  %3809 = vst [vmem:[#allocation4 + $0x288] sm:$0xf] %v3777_v51 }
 0x32c   : > { %v3325_v47 = vpop.f32.mrf.mxu2  ;;  %v3417_v55 = vpop.f32.mrf.mxu3  ;;  %4095 = vst [vmem:[#allocation4 + $0x24c] sm:$0xf] %v3777_v51 }
 0x32d   : > { %v3594_v49 = vadd.f32 %v10367_v24, %v3558_v36  ;;  %v3326_v22 = vadd.f32 %v3325_v47, %v3237_v32  ;;  %v10427_v56 = vpop.f32.mrf.mxu0  ;;  %4184 = vst [vmem:[#allocation4 + $0x154] sm:$0xf] %v10429_v3 }
 0x32e   : > { %3905 = vst [vmem:[#allocation4 + $0x28c] sm:$0xf] %v3873_v53 }
 0x32f   : > { %v3626_v4 = vmax.f32 %v3594_v49, 0.0  ;;  %v3415_v14 = vadd.f32 %v3414_v60, %v3326_v22  ;;  %v10439_v11 = vpop.f32.mrf.mxu1  ;;  %4185 = vst [vmem:[#allocation4 + $0x178] sm:$0xf] %v10433_v40 }
 0x330   : > { %v3746_v0 = vld [vmem:[#allocation3 + $0xe0] sm:$0xff]  ;;  %4371 = vst [vmem:[#allocation4 + $0x84] sm:$0xf] %v4339_v23 }
 0x331   : > { %3713 = vst [vmem:[#allocation3 + $0xf1] sm:$0xff] %v3626_v4  ;;  %v3504_v26 = vadd.f32 %v10404_v63, %v3415_v14  ;;  %6112 = vmatmul.bf16.gmra.mxu1 %v8252_v5  ;;  %v3778_v20 = vpack.c.bf16 %v3746_v0, %v3746_v0  ;;  %6171 = vmatmul.bf16.gmra.mxu2 %v8040_v50  ;;  %v3842_v32 = vld [vmem:[#allocation3 + $0xe1] sm:$0xff]  ;;  %v11414_v5 = vld [vmem:[#allocation5_spill] sm:$0xff] }
 0x332   : > { %4466 = vst [vmem:[#allocation4 + $0x64] sm:$0xf] %v10383_v46  ;;  %v3937_v36 = vld [vmem:[#allocation3 + $0xda] sm:$0xff]  ;;  %v3938_v51 = vld [vmem:[#allocation3 + $0xe2] sm:$0xff]  ;;  %v3874_v37 = vpack.c.bf16 %v3842_v32, %v3842_v32  ;;  %v3242_v48 = vadd.f32 %v11414_v5, %v10087_v9  ;;  %v8073_v0 = vld [vmem:[#allocation4 + $0xfc] sm:$0xf0]  ;;  %v10466_v32 = vpack.c.bf16 %v4211_v54, %v4211_v54 }
 0x333   : > { %v3559_v60 = vmul.f32 %v10361_v57, %v3504_v26  ;;  %3810 = vst [vmem:[#allocation4 + $0x2ac] sm:$0xf] %v3778_v20  ;;  %v3969_v49 = vpack.c.bf16 %v3937_v36, %v3937_v36  ;;  %v3970_v22 = vpack.c.bf16 %v3938_v51, %v3938_v51  ;;  %v4122_v46 = vld [vmem:[#allocation3 + $0x99] sm:$0xff]  ;;  %v9072_v9 = vld [vmem:[#allocation4 + $0xdc] sm:$0xf] }
 0x334   : > { %v3419_v7 = vpop.f32.mrf.mxu3  ;;  %4096 = vst [vmem:[#allocation4 + $0x270] sm:$0xf] %v3778_v20  ;;  %v3328_v35 = vpop.f32.mrf.mxu2  ;;  %v8287_v14 = vld [vmem:[#allocation4 + $0x288] sm:$0xf]  ;;  %v10454_v26 = vpack.c.bf16 %v4122_v46, %v4122_v46  ;;  %v8076_v53 = vor.u32 %v9072_v9, %v8073_v0 }
 0x335   : > { %v3595_v63 = vadd.f32 %v10367_v24, %v3559_v60  ;;  %v10437_v45 = vpop.f32.mrf.mxu0  ;;  %v3329_v58 = vadd.f32 %v3328_v35, %v10084_v6  ;;  %v9223_v6 = vld [vmem:[%s11405_s4 + $0x110] sm:$0xff]  ;;  %4467 = vst [vmem:[#allocation4 + $0x88] sm:$0xf] %v10385_v28 }
 0x336   : > { %6425 = vmatpush.bf16.msrb.mxu1 %v9223_v6  ;;  %3906 = vst [vmem:[#allocation4 + $0x2b0] sm:$0xf] %v3874_v37 }
 0x337   : > { %v3627_v44 = vmax.f32 %v3595_v63, 0.0  ;;  %6354 = vmatmul.bf16.gmra.mxu0 %v8084_v29  ;;  %v3418_v34 = vadd.f32 %v3417_v55, %v3329_v58  ;;  %4001 = vst [vmem:[#allocation4 + $0x290] sm:$0xf] %v3969_v49  ;;  %v4212_v63 = vld [vmem:[#allocation3 + $0x52] sm:$0xff]  ;;  %v8117_v29 = vld [vmem:[#allocation4 + $0x14c] sm:$0xf0] }
 0x338   : > { %v3747_v47 = vld [vmem:[#allocation3 + $0xf0] sm:$0xff]  ;;  %4002 = vst [vmem:[#allocation4 + $0x2b4] sm:$0xf] %v3970_v22 }
 0x339   : > { %3714 = vst [vmem:[#allocation3 + $0xf9] sm:$0xff] %v3627_v44  ;;  %6265 = vmatmul.bf16.gmra.mxu3 %v8080_v19  ;;  %v3507_v43 = vadd.f32 %v10417_v61, %v3418_v34  ;;  %v3779_v55 = vpack.c.bf16 %v3747_v47, %v3747_v47  ;;  %v3843_v18 = vld [vmem:[#allocation3 + $0xf1] sm:$0xff]  ;;  %v10464_v44 = vpack.c.bf16 %v4123_v17, %v4123_v17  ;;  %v9086_v34 = vld [vmem:[#allocation4 + $0x148] sm:$0xf0]  ;;  %v4309_v47 = vld [vmem:[#allocation3 + $0x68] sm:$0xff] }
 0x33a   : > { %v9130_v42 = vld [vmem:[#allocation4 + $0x2a8] sm:$0xf0]  ;;  %4186 = vst [vmem:[#allocation4 + $0x19c] sm:$0xf] %v10454_v26  ;;  %v3875_v58 = vpack.c.bf16 %v3843_v18, %v3843_v18  ;;  %v8115_v19 = vld [vmem:[#allocation4 + $0x128] sm:$0xf] }
 0x33b   : > { %v3560_v4 = vmul.f32 %v10361_v57, %v3507_v43  ;;  %v8288_v50 = vor.u32 %v9130_v42, %v8287_v14  ;;  %3811 = vst [vmem:[#allocation4 + $0x2d0] sm:$0xf] %v3779_v55  ;;  %v9082_v43 = vld [vmem:[#allocation4 + $0x12c] sm:$0xf]  ;;  %v10469_v42 = vpack.c.bf16 %v4212_v63, %v4212_v63  ;;  %v8116_v5 = vor.u32 %v9086_v34, %v8115_v19 }
 0x33c   : > { %v3422_v61 = vpop.f32.mrf.mxu3  ;;  %v3330_v12 = vpop.f32.mrf.mxu2  ;;  %4097 = vst [vmem:[#allocation4 + $0x294] sm:$0xf] %v3779_v55  ;;  %v8120_v37 = vor.u32 %v9082_v43, %v8117_v29 }
 0x33d   : > { %v10452_v21 = vpop.f32.mrf.mxu0  ;;  %v3596_v28 = vadd.f32 %v10367_v24, %v3560_v4  ;;  %v3331_v27 = vadd.f32 %v3330_v12, %v3242_v48  ;;  %3907 = vst [vmem:[#allocation4 + $0x2d4] sm:$0xf] %v3875_v58  ;;  %v4341_v48 = vpack.c.bf16 %v4309_v47, %v4309_v47  ;;  %v8109_v58 = vld [vmem:[#allocation4 + $0x144] sm:$0xf0] }
 0x33e   : > { %v10457_v20 = vpop.f32.mrf.mxu1  ;;  %4187 = vst [vmem:[#allocation4 + $0x1c0] sm:$0xf] %v10464_v44 }
 0x33f   : > { %v10459_v8 = vmax.f32 %v3596_v28, 0.0  ;;  %v3420_v2 = vadd.f32 %v3419_v7, %v3331_v27  ;;  %v4308_v7 = vld [vmem:[#allocation3 + $0x60] sm:$0xff]  ;;  %4275 = vst [vmem:[#allocation4 + $0xa4] sm:$0xf] %v10466_v32 }
 0x340   : > { %v3748_v60 = vld [vmem:[#allocation3 + $0xf8] sm:$0xff]  ;;  %v4340_v49 = vpack.c.bf16 %v4308_v7, %v4308_v7  ;;  %4276 = vst [vmem:[#allocation4 + $0xc8] sm:$0xf] %v10469_v42 }
 0x341   : > { %6117 = vmatmul.bf16.gmra.mxu1 %v8288_v50  ;;  %v3780_v23 = vpack.c.bf16 %v3748_v60, %v3748_v60  ;;  %3715 = vst [vmem:[#allocation3 + $0x109] sm:$0xff] %v10459_v8  ;;  %v3509_v35 = vadd.f32 %v10427_v56, %v3420_v2  ;;  %6176 = vmatmul.bf16.gmra.mxu2 %v8076_v53  ;;  %v3844_v12 = vld [vmem:[#allocation3 + $0xf9] sm:$0xff]  ;;  %v4124_v53 = vld [vmem:[#allocation3 + $0xb1] sm:$0xff] }
 0x342   : > { %v3939_v50 = vld [vmem:[#allocation3 + $0xf2] sm:$0xff]  ;;  %v3940_v0 = vld [vmem:[#allocation3 + $0xfa] sm:$0xff]  ;;  %4372 = vst [vmem:[#allocation4 + $0xa8] sm:$0xf] %v4340_v49  ;;  %v3876_v9 = vpack.c.bf16 %v3844_v12, %v3844_v12  ;;  %v10489_v7 = vpack.c.bf16 %v4124_v53, %v4124_v53  ;;  %v4214_v12 = vld [vmem:[#allocation3 + $0x6a] sm:$0xff] }
 0x343   : > { %3812 = vst [vmem:[#allocation4 + $0x2f4] sm:$0xf] %v3780_v23  ;;  %v3561_v36 = vmul.f32 %v10361_v57, %v3509_v35  ;;  %v3971_v2 = vpack.c.bf16 %v3939_v50, %v3939_v50  ;;  %v3972_v54 = vpack.c.bf16 %v3940_v0, %v3940_v0  ;;  %v8323_v17 = vld [vmem:[#allocation4 + $0x2d0] sm:$0xf]  ;;  %v9095_v0 = vld [vmem:[#allocation4 + $0x190] sm:$0xf0] }
 0x344   : > { %v3424_v51 = vpop.f32.mrf.mxu3  ;;  %4098 = vst [vmem:[#allocation4 + $0x2b8] sm:$0xf] %v3780_v23  ;;  %v3333_v56 = vpop.f32.mrf.mxu2  ;;  %v4125_v49 = vld [vmem:[#allocation3 + $0xc1] sm:$0xff] }
 0x345   : > { %v10471_v6 = vpop.f32.mrf.mxu0  ;;  %v3597_v55 = vadd.f32 %v10367_v24, %v3561_v36  ;;  %v3334_v46 = vadd.f32 %v3333_v56, %v10092_v15  ;;  %4373 = vst [vmem:[#allocation4 + $0xcc] sm:$0xf] %v4341_v48  ;;  %v8153_v48 = vld [vmem:[#allocation4 + $0x194] sm:$0xf0]  ;;  %v8151_v50 = vld [vmem:[#allocation4 + $0x170] sm:$0xf] }
 0x346   : > { %v10474_v22 = vpop.f32.mrf.mxu1  ;;  %3908 = vst [vmem:[#allocation4 + $0x2f8] sm:$0xf] %v3876_v9  ;;  %v4310_v9 = vld [vmem:[#allocation3 + $0x78] sm:$0xff] }
 0x347   : > { %6359 = vmatmul.bf16.gmra.mxu0 %v8120_v37  ;;  %v10479_v4 = vmax.f32 %v3597_v55, 0.0  ;;  %v3423_v14 = vadd.f32 %v3422_v61, %v3334_v46  ;;  %v11415_v61 = vld [vmem:[#allocation6_spill] sm:$0xff]  ;;  %4003 = vst [vmem:[#allocation4 + $0x2d8] sm:$0xf] %v3971_v2  ;;  %v4213_v55 = vld [vmem:[#allocation3 + $0x62] sm:$0xff] }
 0x348   : > { %v3749_v27 = vld [vmem:[#allocation3 + $0x108] sm:$0xff]  ;;  %v3247_v23 = vadd.f32 %v11415_v61, %v10098_v41  ;;  %v9081_v41 = vld [vmem:[#allocation4 + $0x124] sm:$0xf]  ;;  %4004 = vst [vmem:[#allocation4 + $0x2fc] sm:$0xf] %v3972_v54 }
 0x349   : > { %6270 = vmatmul.bf16.gmra.mxu3 %v8116_v5  ;;  %3716 = vst [vmem:[#allocation3 + $0x111] sm:$0xff] %v10479_v4  ;;  %v3512_v15 = vadd.f32 %v10437_v45, %v3423_v14  ;;  %v3781_v60 = vpack.c.bf16 %v3749_v27, %v3749_v27  ;;  %v8112_v56 = vor.u32 %v9081_v41, %v8109_v58  ;;  %v4126_v58 = vld [vmem:[#allocation3 + $0xc9] sm:$0xff] }
 0x34a   : > { %v9139_v28 = vld [vmem:[#allocation4 + $0x2f0] sm:$0xf0]  ;;  %4188 = vst [vmem:[#allocation4 + $0x1e4] sm:$0xf] %v10489_v7  ;;  %v10496_v14 = vpack.c.bf16 %v4125_v49, %v4125_v49  ;;  %v10500_v27 = vpack.c.bf16 %v4213_v55, %v4213_v55 }
 0x34b   : > { %v3562_v18 = vmul.f32 %v10361_v57, %v3512_v15  ;;  %v8324_v29 = vor.u32 %v9139_v28, %v8323_v17  ;;  %3813 = vst [vmem:[#allocation4 + $0x318] sm:$0xf] %v3781_v60  ;;  %v9091_v28 = vld [vmem:[#allocation4 + $0x174] sm:$0xf] }
 0x34c   : > { %v3427_v63 = vpop.f32.mrf.mxu3  ;;  %v3335_v35 = vpop.f32.mrf.mxu2  ;;  %4099 = vst [vmem:[#allocation4 + $0x2dc] sm:$0xf] %v3781_v60  ;;  %v8156_v53 = vor.u32 %v9091_v28, %v8153_v48  ;;  %v10504_v60 = vpack.c.bf16 %v4214_v12, %v4214_v12 }
 0x34d   : > { %v10487_v45 = vpop.f32.mrf.mxu0  ;;  %v3598_v19 = vadd.f32 %v10367_v24, %v3562_v18  ;;  %v3336_v36 = vadd.f32 %v3335_v35, %v3247_v23  ;;  %4468 = vst [vmem:[#allocation4 + $0xac] sm:$0xf] %v10391_v16  ;;  %v8152_v23 = vor.u32 %v9095_v0, %v8151_v50  ;;  %v4342_v18 = vpack.c.bf16 %v4310_v9, %v4310_v9 }
 0x34e   : > { %v10492_v34 = vpop.f32.mrf.mxu1  ;;  %4189 = vst [vmem:[#allocation4 + $0x208] sm:$0xf] %v10496_v14 }
 0x34f   : > { %v3630_v43 = vmax.f32 %v3598_v19, 0.0  ;;  %v3425_v47 = vadd.f32 %v3424_v51, %v3336_v36  ;;  %4469 = vst [vmem:[#allocation4 + $0xd0] sm:$0xf] %v10406_v1  ;;  %v9222_v1 = vld [vmem:[%s11405_s4 + $0x108] sm:$0xff]  ;;  %v10521_v36 = vpack.c.bf16 %v4126_v58, %v4126_v58  ;;  %v8187_v58 = vld [vmem:[#allocation4 + $0x1b8] sm:$0xf] }
 0x350   : > { %v3750_v37 = vld [vmem:[#allocation3 + $0x110] sm:$0xff]  ;;  %4277 = vst [vmem:[#allocation4 + $0xec] sm:$0xf] %v10500_v27  ;;  %6426 = vmatpush.bf16.msrb.mxu1 %v9222_v1 }
 0x351   : > { %6122 = vmatmul.bf16.gmra.mxu1 %v8324_v29  ;;  %3717 = vst [vmem:[#allocation3 + $0x121] sm:$0xff] %v3630_v43  ;;  %v3514_v46 = vadd.f32 %v10452_v21, %v3425_v47  ;;  %6181 = vmatmul.bf16.gmra.mxu2 %v8112_v56  ;;  %v3782_v5 = vpack.c.bf16 %v3750_v37, %v3750_v37  ;;  %v4311_v29 = vld [vmem:[#allocation3 + $0x80] sm:$0xff] }
 0x352   : > { %4278 = vst [vmem:[#allocation4 + $0x110] sm:$0xf] %v10504_v60  ;;  %v4343_v43 = vpack.c.bf16 %v4311_v29, %v4311_v29  ;;  %v3252_v47 = vadd.f32 %v10101_v10, %v10106_v62  ;;  %v8359_v37 = vld [vmem:[#allocation4 + $0x318] sm:$0xf]  ;;  %v9090_v10 = vld [vmem:[#allocation4 + $0x16c] sm:$0xf] }
 0x353   : > { %v3563_v51 = vmul.f32 %v10361_v57, %v3514_v46  ;;  %3814 = vst [vmem:[#allocation4 + $0x33c] sm:$0xf] %v3782_v5  ;;  %v4216_v62 = vld [vmem:[#allocation3 + $0x82] sm:$0xff] }
 0x354   : > { %v3429_v15 = vpop.f32.mrf.mxu3  ;;  %v3338_v2 = vpop.f32.mrf.mxu2  ;;  %4100 = vst [vmem:[#allocation4 + $0x300] sm:$0xf] %v3782_v5  ;;  %v8145_v5 = vld [vmem:[#allocation4 + $0x18c] sm:$0xf0]  ;;  %v10540_v29 = vpack.c.bf16 %v4216_v62, %v4216_v62  ;;  %v4315_v62 = vld [vmem:[#allocation3 + $0xb0] sm:$0xff] }
 0x355   : > { %v10502_v21 = vpop.f32.mrf.mxu0  ;;  %v3599_v54 = vadd.f32 %v10367_v24, %v3563_v51  ;;  %v3339_v16 = vadd.f32 %v3338_v2, %v10103_v30  ;;  %4374 = vst [vmem:[#allocation4 + $0xf0] sm:$0xf] %v4342_v18  ;;  %v8148_v2 = vor.u32 %v9090_v10, %v8145_v5  ;;  %v4218_v5 = vld [vmem:[#allocation3 + $0x9a] sm:$0xff] }
 0x356   : > { %v10507_v61 = vpop.f32.mrf.mxu1  ;;  %4190 = vst [vmem:[#allocation4 + $0x22c] sm:$0xf] %v10521_v36 }
 0x357   : > { %6364 = vmatmul.bf16.gmra.mxu0 %v8156_v53  ;;  %v10512_v17 = vmax.f32 %v3599_v54, 0.0  ;;  %v3428_v35 = vadd.f32 %v3427_v63, %v3339_v16  ;;  %4375 = vst [vmem:[#allocation4 + $0x114] sm:$0xf] %v4343_v43  ;;  %v4312_v53 = vld [vmem:[#allocation3 + $0x90] sm:$0xff]  ;;  %v4313_v16 = vld [vmem:[#allocation3 + $0x98] sm:$0xff] }
 0x358   : > { %v3751_v19 = vld [vmem:[#allocation3 + $0x120] sm:$0xff]  ;;  %4470 = vst [vmem:[#allocation4 + $0xf4] sm:$0xf] %v10410_v52  ;;  %v4345_v1 = vpack.c.bf16 %v4313_v16, %v4313_v16  ;;  %v4217_v43 = vld [vmem:[#allocation3 + $0x92] sm:$0xff] }
 0x359   : > { %6275 = vmatmul.bf16.gmra.mxu3 %v8152_v23  ;;  %3718 = vst [vmem:[#allocation3 + $0x129] sm:$0xff] %v10512_v17  ;;  %v3517_v30 = vadd.f32 %v10471_v6, %v3428_v35  ;;  %v3783_v63 = vpack.c.bf16 %v3751_v19, %v3751_v19  ;;  %v4215_v6 = vld [vmem:[#allocation3 + $0x7a] sm:$0xff]  ;;  %v8189_v35 = vld [vmem:[#allocation4 + $0x1dc] sm:$0xf0]  ;;  %v9104_v19 = vld [vmem:[#allocation4 + $0x1d8] sm:$0xf0] }
 0x35a   : > { %v9148_v41 = vld [vmem:[#allocation4 + $0x338] sm:$0xf0]  ;;  %v10532_v51 = vpack.c.bf16 %v4215_v6, %v4215_v6  ;;  %4471 = vst [vmem:[#allocation4 + $0x118] sm:$0xf] %v10429_v3  ;;  %v8188_v6 = vor.u32 %v9104_v19, %v8187_v58  ;;  %v4347_v19 = vpack.c.bf16 %v4315_v62, %v4315_v62 }
 0x35b   : > { %v3564_v56 = vmul.f32 %v10361_v57, %v3517_v30  ;;  %v8360_v46 = vor.u32 %v9148_v41, %v8359_v37  ;;  %3815 = vst [vmem:[#allocation4 + $0x360] sm:$0xf] %v3783_v63  ;;  %v9100_v3 = vld [vmem:[#allocation4 + $0x1bc] sm:$0xf] }
 0x35c   : > { %v3432_v49 = vpop.f32.mrf.mxu3  ;;  %v3340_v55 = vpop.f32.mrf.mxu2  ;;  %4101 = vst [vmem:[#allocation4 + $0x324] sm:$0xf] %v3783_v63 }
 0x35d   : > { %v10527_v48 = vpop.f32.mrf.mxu0  ;;  %v3600_v12 = vadd.f32 %v10367_v24, %v3564_v56  ;;  %v3341_v0 = vadd.f32 %v3340_v55, %v3252_v47  ;;  %4279 = vst [vmem:[#allocation4 + $0x134] sm:$0xf] %v10532_v51 }
 0x35e   : > { %v10530_v50 = vpop.f32.mrf.mxu1  ;;  %4280 = vst [vmem:[#allocation4 + $0x158] sm:$0xf] %v10540_v29 }
 0x35f   : > { %v10534_v28 = vmax.f32 %v3600_v12, 0.0  ;;  %v3430_v9 = vadd.f32 %v3429_v15, %v3341_v0  ;;  %v4344_v15 = vpack.c.bf16 %v4312_v53, %v4312_v53  ;;  %4377 = vst [vmem:[#allocation4 + $0x15c] sm:$0xf] %v4345_v1  ;;  %v10553_v12 = vpack.c.bf16 %v4217_v43, %v4217_v43  ;;  %v4314_v0 = vld [vmem:[#allocation3 + $0xa8] sm:$0xff] }
 0x360   : > { %v3752_v54 = vld [vmem:[#allocation3 + $0x128] sm:$0xff]  ;;  %4472 = vst [vmem:[#allocation4 + $0x13c] sm:$0xf] %v10433_v40  ;;  %v10559_v53 = vpack.c.bf16 %v4218_v5, %v4218_v5  ;;  %v8225_v5 = vld [vmem:[#allocation4 + $0x224] sm:$0xf0] }
 0x361   : > { %6127 = vmatmul.bf16.gmra.mxu1 %v8360_v46  ;;  %3719 = vst [vmem:[#allocation3 + $0x139] sm:$0xff] %v10534_v28  ;;  %v3519_v23 = vadd.f32 %v10487_v45, %v3430_v9  ;;  %6186 = vmatmul.bf16.gmra.mxu2 %v8148_v2  ;;  %v3784_v18 = vpack.c.bf16 %v3752_v54, %v3752_v54  ;;  %v11417_v54 = vld [vmem:[#allocation7_spill] sm:$0xff] }
 0x362   : > { %v8192_v45 = vor.u32 %v9100_v3, %v8189_v35  ;;  %4376 = vst [vmem:[#allocation4 + $0x138] sm:$0xf] %v4344_v15  ;;  %v4346_v35 = vpack.c.bf16 %v4314_v0, %v4314_v0  ;;  %v8181_v15 = vld [vmem:[#allocation4 + $0x1d4] sm:$0xf0]  ;;  %v4220_v0 = vld [vmem:[#allocation3 + $0xb2] sm:$0xff] }
 0x363   : > { %v3565_v52 = vmul.f32 %v10361_v57, %v3519_v23  ;;  %3816 = vst [vmem:[#allocation4 + $0x384] sm:$0xf] %v3784_v18 }
 0x364   : > { %v3434_v30 = vpop.f32.mrf.mxu3  ;;  %v3343_v41 = vpop.f32.mrf.mxu2  ;;  %4102 = vst [vmem:[#allocation4 + $0x348] sm:$0xf] %v3784_v18  ;;  %v8395_v18 = vld [vmem:[#allocation4 + $0x360] sm:$0xf] }
 0x365   : > { %v10544_v63 = vpop.f32.mrf.mxu0  ;;  %v3601_v47 = vadd.f32 %v10367_v24, %v3565_v52  ;;  %v3344_v37 = vadd.f32 %v3343_v41, %v10111_v59  ;;  %4473 = vst [vmem:[#allocation4 + $0x160] sm:$0xf] %v10454_v26  ;;  %v9099_v41 = vld [vmem:[#allocation4 + $0x1b4] sm:$0xf] }
 0x366   : > { %v10547_v56 = vpop.f32.mrf.mxu1  ;;  %4281 = vst [vmem:[#allocation4 + $0x17c] sm:$0xf] %v10553_v12 }
 0x367   : > { %6369 = vmatmul.bf16.gmra.mxu0 %v8192_v45  ;;  %v10551_v55 = vmax.f32 %v3601_v47, 0.0  ;;  %v3433_v46 = vadd.f32 %v3432_v49, %v3344_v37  ;;  %v11416_v49 = vld [vmem:[#allocation8_spill] sm:$0xff]  ;;  %4282 = vst [vmem:[#allocation4 + $0x1a0] sm:$0xf] %v10559_v53  ;;  %v8184_v47 = vor.u32 %v9099_v41, %v8181_v15 }
 0x368   : > { %v3753_v10 = vld [vmem:[#allocation3 + $0x138] sm:$0xff]  ;;  %v3257_v16 = vadd.f32 %v11417_v54, %v11416_v49  ;;  %4378 = vst [vmem:[#allocation4 + $0x180] sm:$0xf] %v4346_v35  ;;  %v4219_v37 = vld [vmem:[#allocation3 + $0xaa] sm:$0xff]  ;;  %v4316_v49 = vld [vmem:[#allocation3 + $0xc0] sm:$0xff] }
 0x369   : > { %6280 = vmatmul.bf16.gmra.mxu3 %v8188_v6  ;;  %3720 = vst [vmem:[#allocation3 + $0x141] sm:$0xff] %v10551_v55  ;;  %v3522_v59 = vadd.f32 %v10502_v21, %v3433_v46  ;;  %v3785_v2 = vpack.c.bf16 %v3753_v10, %v3753_v10  ;;  %v9113_v10 = vld [vmem:[#allocation4 + $0x220] sm:$0xf0]  ;;  %v10576_v62 = vpack.c.bf16 %v4219_v37, %v4219_v37  ;;  %v4317_v41 = vld [vmem:[#allocation3 + $0xc8] sm:$0xff] }
 0x36a   : > { %v9157_v9 = vld [vmem:[#allocation4 + $0x380] sm:$0xf0]  ;;  %4379 = vst [vmem:[#allocation4 + $0x1a4] sm:$0xf] %v4347_v19  ;;  %v4348_v19 = vpack.c.bf16 %v4316_v49, %v4316_v49  ;;  %v4128_v49 = vld [vmem:[#allocation3 + $0xe1] sm:$0xff] }
 0x36b   : > { %v3566_v23 = vmul.f32 %v10361_v57, %v3522_v59  ;;  %v8396_v21 = vor.u32 %v9157_v9, %v8395_v18  ;;  %3817 = vst [vmem:[#allocation4 + $0x3a8] sm:$0xf] %v3785_v2  ;;  %v8223_v59 = vld [vmem:[#allocation4 + $0x200] sm:$0xf]  ;;  %v10581_v18 = vpack.c.bf16 %v4220_v0, %v4220_v0 }
 0x36c   : > { %v3437_v40 = vpop.f32.mrf.mxu3  ;;  %v3345_v58 = vpop.f32.mrf.mxu2  ;;  %4103 = vst [vmem:[#allocation4 + $0x36c] sm:$0xf] %v3785_v2  ;;  %v9109_v2 = vld [vmem:[#allocation4 + $0x204] sm:$0xf]  ;;  %v8224_v15 = vor.u32 %v9113_v10, %v8223_v59 }
 0x36d   : > { %v10565_v52 = vpop.f32.mrf.mxu0  ;;  %v3602_v26 = vadd.f32 %v10367_v24, %v3566_v23  ;;  %v3346_v1 = vadd.f32 %v3345_v58, %v3257_v16  ;;  %4474 = vst [vmem:[#allocation4 + $0x184] sm:$0xf] %v10464_v44  ;;  %v4127_v23 = vld [vmem:[#allocation3 + $0xd9] sm:$0xff]  ;;  %v10586_v44 = vld [vmem:[%s11404_s3] ss:$0 sm:$0xff] }
 0x36e   : > { %v10568_v3 = vpop.f32.mrf.mxu1  ;;  %4475 = vst [vmem:[#allocation4 + $0x1a8] sm:$0xf] %v10489_v7  ;;  %v9221_v7 = vld [vmem:[%s11405_s4 + $0x100] sm:$0xff] }
 0x36f   : > { %v10571_v45 = vmax.f32 %v3602_v26, 0.0  ;;  %v3435_v43 = vadd.f32 %v3434_v30, %v3346_v1  ;;  %4283 = vst [vmem:[#allocation4 + $0x1c4] sm:$0xf] %v10576_v62  ;;  %6427 = vmatpush.bf16.msrb.mxu1 %v9221_v7 }
 0x370   : > { %v3754_v6 = vld [vmem:[#allocation3 + $0x140] sm:$0xff]  ;;  %4284 = vst [vmem:[#allocation4 + $0x1e8] sm:$0xf] %v10581_v18 }
 0x371   : > { %6132 = vmatmul.bf16.gmra.mxu1 %v8396_v21  ;;  %3721 = vst [vmem:[#allocation3 + $0x151] sm:$0xff] %v10571_v45  ;;  %v3524_v24 = vadd.f32 %v10527_v48, %v3435_v43  ;;  %6191 = vmatmul.bf16.gmra.mxu2 %v8184_v47  ;;  %v3786_v46 = vpack.c.bf16 %v3754_v6, %v3754_v6 }
 0x372   : > { %v8228_v48 = vor.u32 %v9109_v2, %v8225_v5  ;;  %v10592_v21 = vpack.c.bf16 %v4127_v23, %v4127_v23  ;;  %v3877_v47 = vpack.c.bf16 %v10459_v8, %v10459_v8  ;;  %v4349_v6 = vpack.c.bf16 %v4317_v41, %v4317_v41  ;;  %4380 = vst [vmem:[#allocation4 + $0x1c8] sm:$0xf] %v4348_v19  ;;  %v10612_v5 = vld [vmem:[%s11403_s2] ss:$0 sm:$0xff]  ;;  %v8431_v0 = vld [vmem:[#allocation4 + $0x3a8] sm:$0xf] }
 0x373   : > { %v3567_v30 = vmul.f32 %v10361_v57, %v3524_v24  ;;  %3818 = vst [vmem:[#allocation4 + $0x3cc] sm:$0xf] %v3786_v46  ;;  %v11418_v24 = vld [vmem:[#allocation9_spill] sm:$0xff]  ;;  %v10620_v23 = vpack.c.bf16 %v4128_v49, %v4128_v49 }
 0x374   : > { %v3439_v9 = vpop.f32.mrf.mxu3  ;;  %v3348_v54 = vpop.f32.mrf.mxu2  ;;  %4104 = vst [vmem:[#allocation4 + $0x390] sm:$0xf] %v3786_v46  ;;  %v3262_v46 = vadd.f32 %v11418_v24, %v10125_v33 }
 0x375   : > { %v10579_v16 = vpop.f32.mrf.mxu0  ;;  %v3603_v35 = vadd.f32 %v10586_v44, %v3567_v30  ;;  %v3349_v58 = vadd.f32 %v3348_v54, %v10120_v25  ;;  %4191 = vst [vmem:[#allocation4 + $0x250] sm:$0xf] %v10592_v21  ;;  %v8217_v30 = vld [vmem:[#allocation4 + $0x21c] sm:$0xf0] }
 0x376   : > { %v10589_v57 = vpop.f32.mrf.mxu1  ;;  %3909 = vst [vmem:[#allocation4 + $0x31c] sm:$0xf] %v3877_v47  ;;  %v8261_v47 = vld [vmem:[#allocation4 + $0x26c] sm:$0xf0] }
 0x377   : > { %6374 = vmatmul.bf16.gmra.mxu0 %v8228_v48  ;;  %v10596_v26 = vmax.f32 %v3603_v35, 0.0  ;;  %v3438_v1 = vadd.f32 %v3437_v40, %v3349_v58  ;;  %v9108_v35 = vld [vmem:[#allocation4 + $0x1fc] sm:$0xf]  ;;  %4381 = vst [vmem:[#allocation4 + $0x1ec] sm:$0xf] %v4349_v6 }
 0x378   : > { %v3755_v43 = vld [vmem:[#allocation3 + $0x150] sm:$0xff]  ;;  %v8220_v19 = vor.u32 %v9108_v35, %v8217_v30  ;;  %4192 = vst [vmem:[#allocation4 + $0x274] sm:$0xf] %v10620_v23  ;;  %v8259_v6 = vld [vmem:[#allocation4 + $0x248] sm:$0xf] }
 0x379   : > { %6285 = vmatmul.bf16.gmra.mxu3 %v8224_v15  ;;  %3722 = vst [vmem:[#allocation3 + $0x159] sm:$0xff] %v10596_v26  ;;  %v3527_v25 = vadd.f32 %v10544_v63, %v3438_v1  ;;  %v3787_v40 = vpack.c.bf16 %v3755_v43, %v3755_v43  ;;  %v4221_v1 = vld [vmem:[#allocation3 + $0xc2] sm:$0xff] }
 0x37a   : > { %v9166_v37 = vld [vmem:[#allocation4 + $0x3c8] sm:$0xf0]  ;;  %4476 = vst [vmem:[#allocation4 + $0x1cc] sm:$0xf] %v10496_v14  ;;  %v10634_v14 = vpack.c.bf16 %v4221_v1, %v4221_v1  ;;  %v4319_v1 = vld [vmem:[#allocation3 + $0xe0] sm:$0xff] }
 0x37b   : > { %v3568_v63 = vmul.f32 %v10612_v5, %v3527_v25  ;;  %v8432_v8 = vor.u32 %v9166_v37, %v8431_v0  ;;  %3819 = vst [vmem:[#allocation4 + $0x3f0] sm:$0xf] %v3787_v40  ;;  %v4222_v25 = vld [vmem:[#allocation3 + $0xca] sm:$0xff]  ;;  %v3878_v37 = vpack.c.bf16 %v10479_v4, %v10479_v4 }
 0x37c   : > { %v3442_v59 = vpop.f32.mrf.mxu3  ;;  %v3350_v10 = vpop.f32.mrf.mxu2  ;;  %4105 = vst [vmem:[#allocation4 + $0x3b4] sm:$0xf] %v3787_v40  ;;  %v4318_v40 = vld [vmem:[#allocation3 + $0xd8] sm:$0xff]  ;;  %v10637_v0 = vpack.c.bf16 %v4222_v25, %v4222_v25  ;;  %v3941_v25 = vld [vmem:[#allocation3 + $0x10a] sm:$0xff] }
 0x37d   : > { %v10615_v2 = vpop.f32.mrf.mxu0  ;;  %v3604_v33 = vadd.f32 %v10586_v44, %v3568_v63  ;;  %v3351_v48 = vadd.f32 %v3350_v10, %v3262_v46  ;;  %4477 = vst [vmem:[#allocation4 + $0x1f0] sm:$0xf] %v10521_v36  ;;  %v9118_v63 = vld [vmem:[#allocation4 + $0x24c] sm:$0xf]  ;;  %v4350_v4 = vpack.c.bf16 %v4318_v40, %v4318_v40 }
 0x37e   : > { %v10618_v54 = vpop.f32.mrf.mxu1  ;;  %v8264_v30 = vor.u32 %v9118_v63, %v8261_v47  ;;  %3910 = vst [vmem:[#allocation4 + $0x340] sm:$0xf] %v3878_v37 }
 0x37f   : > { %v10622_v58 = vmax.f32 %v3604_v33, 0.0  ;;  %v3440_v15 = vadd.f32 %v3439_v9, %v3351_v48  ;;  %v9236_v9 = vld [vmem:[%s11405_s4 + $0x178] sm:$0xff]  ;;  %4285 = vst [vmem:[#allocation4 + $0x20c] sm:$0xf] %v10634_v14 }
 0x380   : > { %v3756_v41 = vld [vmem:[#allocation3 + $0x158] sm:$0xff]  ;;  %6509 = vmatpush.bf16.msra.mxu2 %v9236_v9  ;;  %v9244_v48 = vld [vmem:[%s11405_s4 + $0x1b8] sm:$0xff]  ;;  %4286 = vst [vmem:[#allocation4 + $0x230] sm:$0xf] %v10637_v0  ;;  %v3973_v9 = vpack.c.bf16 %v3941_v25, %v3941_v25 }
 0x381   : > { %6137 = vmatmul.bf16.gmra.mxu1 %v8432_v8  ;;  %3723 = vst [vmem:[#allocation3 + $0x169] sm:$0xff] %v10622_v58  ;;  %v3529_v43 = vadd.f32 %v10565_v52, %v3440_v15  ;;  %6196 = vmatmul.bf16.gmra.mxu2 %v8220_v19  ;;  %v3788_v7 = vpack.c.bf16 %v3756_v41, %v3756_v41  ;;  %v9122_v52 = vld [vmem:[#allocation4 + $0x268] sm:$0xf0] }
 0x382   : > { %v8260_v35 = vor.u32 %v9122_v52, %v8259_v6  ;;  %6598 = vmatpush.bf16.msra.mxu3 %v9244_v48  ;;  %4382 = vst [vmem:[#allocation4 + $0x210] sm:$0xf] %v4350_v4 }
 0x383   : > { %v3569_v24 = vmul.f32 %v10612_v5, %v3529_v43  ;;  %3820 = vst [vmem:[#allocation4 + $0x414] sm:$0xf] %v3788_v7  ;;  %v4351_v43 = vpack.c.bf16 %v4319_v1, %v4319_v1  ;;  %v4129_v1 = vld [vmem:[#allocation3 + $0xf1] sm:$0xff] }
 0x384   : > { %v3444_v46 = vpop.f32.mrf.mxu3  ;;  %v3353_v10 = vpop.f32.mrf.mxu2  ;;  %4106 = vst [vmem:[#allocation4 + $0x3d8] sm:$0xf] %v3788_v7 }
 0x385   : > { %v10639_v8 = vpop.f32.mrf.mxu0  ;;  %v3605_v49 = vadd.f32 %v10586_v44, %v3569_v24  ;;  %v3354_v33 = vadd.f32 %v3353_v10, %v10128_v13  ;;  %v3942_v13 = vld [vmem:[#allocation3 + $0x112] sm:$0xff]  ;;  %4383 = vst [vmem:[#allocation4 + $0x234] sm:$0xf] %v4351_v43  ;;  %v8467_v24 = vld [vmem:[#allocation4 + $0x3f0] sm:$0xf] }
 0x386   : > { %v10642_v36 = vpop.f32.mrf.mxu1  ;;  %v3974_v37 = vpack.c.bf16 %v3942_v13, %v3942_v13  ;;  %4005 = vst [vmem:[#allocation4 + $0x320] sm:$0xf] %v3973_v9  ;;  %v9260_v13 = vld [vmem:[%s11405_s4 + $0x238] sm:$0xff] }
 0x387   : > { %6379 = vmatmul.bf16.gmra.mxu0 %v8264_v30  ;;  %v10649_v15 = vmax.f32 %v3605_v49, 0.0  ;;  %v3443_v19 = vadd.f32 %v3442_v59, %v3354_v33  ;;  %v3267_v59 = vadd.f32 %v10412_v38, %v10131_v39  ;;  %v8253_v30 = vld [vmem:[#allocation4 + $0x264] sm:$0xf0]  ;;  %v9252_v39 = vld [vmem:[%s11405_s4 + $0x1f8] sm:$0xff]  ;;  %v9117_v38 = vld [vmem:[#allocation4 + $0x244] sm:$0xf]  ;;  %6776 = vmatpush.bf16.msra.mxu1 %v9260_v13 }
 0x388   : > { %v3757_v41 = vld [vmem:[#allocation3 + $0x168] sm:$0xff]  ;;  %4006 = vst [vmem:[#allocation4 + $0x344] sm:$0xf] %v3974_v37  ;;  %6687 = vmatpush.bf16.msra.mxu0 %v9252_v39 }
 0x389   : > { %6290 = vmatmul.bf16.gmra.mxu3 %v8260_v35  ;;  %3724 = vst [vmem:[#allocation3 + $0x171] sm:$0xff] %v10649_v15  ;;  %v3532_v7 = vadd.f32 %v10579_v16, %v3443_v19  ;;  %v3789_v47 = vpack.c.bf16 %v3757_v41, %v3757_v41  ;;  %v8256_v19 = vor.u32 %v9117_v38, %v8253_v30  ;;  %v4223_v41 = vld [vmem:[#allocation3 + $0xda] sm:$0xff]  ;;  %v8297_v9 = vld [vmem:[#allocation4 + $0x2b4] sm:$0xf0] }
 0x38a   : > { %v9175_v40 = vld [vmem:[#allocation4 + $0x410] sm:$0xf0]  ;;  %4478 = vst [vmem:[#allocation4 + $0x214] sm:$0xf] %v10592_v21 }
 0x38b   : > { %v3570_v6 = vmul.f32 %v10612_v5, %v3532_v7  ;;  %3821 = vst [vmem:[#allocation4 + $0x438] sm:$0xf] %v3789_v47  ;;  %v8468_v10 = vor.u32 %v9175_v40, %v8467_v24  ;;  %v3847_v43 = vld [vmem:[#allocation3 + $0x121] sm:$0xff]  ;;  %v10669_v7 = vpack.c.bf16 %v4129_v1, %v4129_v1  ;;  %v4320_v1 = vld [vmem:[#allocation3 + $0xf0] sm:$0xff] }
 0x38c   : > { %v6251_v52 = vpop.f32.mrf.mxu3  ;;  %v3355_v63 = vpop.f32.mrf.mxu2  ;;  %4107 = vst [vmem:[#allocation4 + $0x3fc] sm:$0xf] %v3789_v47  ;;  %v3879_v37 = vpack.c.bf16 %v3847_v43, %v3847_v43  ;;  %v4224_v21 = vld [vmem:[#allocation3 + $0xe2] sm:$0xff] }
 0x38d   : > { %v10657_v4 = vpop.f32.mrf.mxu0  ;;  %v3606_v16 = vadd.f32 %v10586_v44, %v3570_v6  ;;  %v3356_v33 = vadd.f32 %v3355_v63, %v3267_v59  ;;  %4479 = vst [vmem:[#allocation4 + $0x238] sm:$0xf] %v10620_v23  ;;  %v8295_v40 = vld [vmem:[#allocation4 + $0x290] sm:$0xf]  ;;  %v3880_v59 = vpack.c.bf16 %v10512_v17, %v10512_v17  ;;  %v9131_v23 = vld [vmem:[#allocation4 + $0x2b0] sm:$0xf0] }
 0x38e   : > { %v10660_v49 = vpop.f32.mrf.mxu1  ;;  %4193 = vst [vmem:[#allocation4 + $0x298] sm:$0xf] %v10669_v7  ;;  %v9127_v63 = vld [vmem:[#allocation4 + $0x294] sm:$0xf] }
 0x38f   : > { %v3638_v48 = vmax.f32 %v3606_v16, 0.0  ;;  %v3445_v35 = vadd.f32 %v3444_v46, %v3356_v33  ;;  %v8300_v16 = vor.u32 %v9127_v63, %v8297_v9  ;;  %3911 = vst [vmem:[#allocation4 + $0x364] sm:$0xf] %v3879_v37  ;;  %v10681_v33 = vpack.c.bf16 %v4224_v21, %v4224_v21 }
 0x390   : > { %v3758_v25 = vld [vmem:[#allocation3 + $0x170] sm:$0xff]  ;;  %3912 = vst [vmem:[#allocation4 + $0x388] sm:$0xf] %v3880_v59 }
 0x391   : > { %6142 = vmatmul.bf16.gmra.mxu1 %v8468_v10  ;;  %3725 = vst [vmem:[#allocation3 + $0x181] sm:$0xff] %v3638_v48  ;;  %v3534_v46 = vadd.f32 %v10615_v2, %v3445_v35  ;;  %6201 = vmatmul.bf16.gmra.mxu2 %v8256_v19  ;;  %v3790_v47 = vpack.c.bf16 %v3758_v25, %v3758_v25  ;;  %v4130_v19 = vld [vmem:[#allocation3 + $0xf9] sm:$0xff]  ;;  %v3944_v25 = vld [vmem:[#allocation3 + $0x12a] sm:$0xff] }
 0x392   : > { %v10677_v10 = vpack.c.bf16 %v4223_v41, %v4223_v41  ;;  %v3943_v41 = vld [vmem:[#allocation3 + $0x122] sm:$0xff]  ;;  %v4162_v13 = vpack.c.bf16 %v4130_v19, %v4130_v19  ;;  %4288 = vst [vmem:[#allocation4 + $0x278] sm:$0xf] %v10681_v33  ;;  %v3976_v43 = vpack.c.bf16 %v3944_v25, %v3944_v25  ;;  %v3882_v25 = vpack.c.bf16 %v10551_v55, %v10551_v55 }
 0x393   : > { %v3571_v6 = vmul.f32 %v10612_v5, %v3534_v46  ;;  %3822 = vst [vmem:[#allocation4 + $0x45c] sm:$0xf] %v3790_v47  ;;  %v8296_v5 = vor.u32 %v9131_v23, %v8295_v40  ;;  %v3881_v46 = vpack.c.bf16 %v10534_v28, %v10534_v28  ;;  %v8503_v9 = vld [vmem:[#allocation4 + $0x438] sm:$0xf]  ;;  %v4225_v28 = vld [vmem:[#allocation3 + $0xf2] sm:$0xff] }
 0x394   : > { %v6253_v24 = vpop.f32.mrf.mxu3  ;;  %v6162_v2 = vpop.f32.mrf.mxu2  ;;  %4108 = vst [vmem:[#allocation4 + $0x420] sm:$0xf] %v3790_v47 }
 0x395   : > { %v10679_v30 = vpop.f32.mrf.mxu0  ;;  %v3607_v39 = vadd.f32 %v10586_v44, %v3571_v6  ;;  %v6163_v38 = vadd.f32 %v6162_v2, %v10423_v31  ;;  %4287 = vst [vmem:[#allocation4 + $0x254] sm:$0xf] %v10677_v10  ;;  %v4321_v44 = vld [vmem:[#allocation3 + $0xf8] sm:$0xff]  ;;  %v3975_v31 = vpack.c.bf16 %v3943_v41, %v3943_v41  ;;  %v8289_v6 = vld [vmem:[#allocation4 + $0x2ac] sm:$0xf0] }
 0x396   : > { %v10684_v17 = vpop.f32.mrf.mxu1  ;;  %4194 = vst [vmem:[#allocation4 + $0x2bc] sm:$0xf] %v4162_v13  ;;  %v4353_v21 = vpack.c.bf16 %v4321_v44, %v4321_v44  ;;  %v8333_v41 = vld [vmem:[#allocation4 + $0x2fc] sm:$0xf0]  ;;  %v8331_v44 = vld [vmem:[#allocation4 + $0x2d8] sm:$0xf] }
 0x397   : > { %6384 = vmatmul.bf16.gmra.mxu0 %v8300_v16  ;;  %v3639_v48 = vmax.f32 %v3607_v39, 0.0  ;;  %v10687_v35 = vadd.f32 %v6251_v52, %v6163_v38  ;;  %v4352_v52 = vpack.c.bf16 %v4320_v1, %v4320_v1  ;;  %4007 = vst [vmem:[#allocation4 + $0x368] sm:$0xf] %v3975_v31  ;;  %v9126_v16 = vld [vmem:[#allocation4 + $0x28c] sm:$0xf]  ;;  %v4322_v1 = vld [vmem:[#allocation3 + $0x108] sm:$0xff] }
 0x398   : > { %4008 = vst [vmem:[#allocation4 + $0x38c] sm:$0xf] %v3976_v43  ;;  %v8292_v38 = vor.u32 %v9126_v16, %v8289_v6  ;;  %v4132_v16 = vld [vmem:[#allocation3 + $0x111] sm:$0xff] }
 0x399   : > { %6295 = vmatmul.bf16.gmra.mxu3 %v8296_v5  ;;  %3726 = vst [vmem:[#allocation3 + $0x189] sm:$0xff] %v3639_v48  ;;  %v4131_v5 = vld [vmem:[#allocation3 + $0x109] sm:$0xff]  ;;  %v4226_v48 = vld [vmem:[#allocation3 + $0xfa] sm:$0xff] }
 0x39a   : > { %v9184_v47 = vld [vmem:[#allocation4 + $0x458] sm:$0xf0]  ;;  %3913 = vst [vmem:[#allocation4 + $0x3ac] sm:$0xf] %v3881_v46  ;;  %v4163_v19 = vpack.c.bf16 %v4131_v5, %v4131_v5  ;;  %v10708_v31 = vpack.c.bf16 %v4226_v48, %v4226_v48 }
 0x39b   : > { %v8504_v59 = vor.u32 %v9184_v47, %v8503_v9  ;;  %4384 = vst [vmem:[#allocation4 + $0x258] sm:$0xf] %v4352_v52  ;;  %v9140_v46 = vld [vmem:[#allocation4 + $0x2f8] sm:$0xf0] }
 0x39c   : > { %v6256_v37 = vpop.f32.mrf.mxu3  ;;  %v6164_v40 = vpop.f32.mrf.mxu2  ;;  %4385 = vst [vmem:[#allocation4 + $0x27c] sm:$0xf] %v4353_v21  ;;  %v9136_v47 = vld [vmem:[#allocation4 + $0x2dc] sm:$0xf]  ;;  %v8332_v6 = vor.u32 %v9140_v46, %v8331_v44 }
 0x39d   : > { %v10693_v23 = vpop.f32.mrf.mxu0  ;;  %v6165_v2 = vadd.f32 %v6164_v40, %v10439_v11  ;;  %4480 = vst [vmem:[#allocation4 + $0x25c] sm:$0xf] %v10669_v7  ;;  %v9235_v11 = vld [vmem:[%s11405_s4 + $0x170] sm:$0xff]  ;;  %v4354_v7 = vpack.c.bf16 %v4322_v1, %v4322_v1  ;;  %v8336_v21 = vor.u32 %v9136_v47, %v8333_v41  ;;  %v3883_v1 = vpack.c.bf16 %v10571_v45, %v10571_v45  ;;  %v4227_v41 = vld [vmem:[#allocation3 + $0x10a] sm:$0xff] }
 0x39e   : > { %v10695_v63 = vpop.f32.mrf.mxu1  ;;  %4195 = vst [vmem:[#allocation4 + $0x2e0] sm:$0xf] %v4163_v19  ;;  %6510 = vmatpush.bf16.msra.mxu2 %v9235_v11  ;;  %v4228_v11 = vld [vmem:[#allocation3 + $0x112] sm:$0xff]  ;;  %v8325_v47 = vld [vmem:[#allocation4 + $0x2f4] sm:$0xf0] }
 0x39f   : > { %v10698_v39 = vadd.f32 %v6253_v24, %v6165_v2  ;;  %v10706_v24 = vpack.c.bf16 %v4225_v28, %v4225_v28  ;;  %3914 = vst [vmem:[#allocation4 + $0x3d0] sm:$0xf] %v3882_v25  ;;  %v4323_v28 = vld [vmem:[#allocation3 + $0x110] sm:$0xff]  ;;  %v9051_v25 = vld [vmem:[#allocation4 + $0x30] sm:$0xf0] }
 0x3a0   : > { %4481 = vst [vmem:[#allocation4 + $0x280] sm:$0xf] %v4162_v13  ;;  %v3945_v13 = vld [vmem:[#allocation3 + $0x13a] sm:$0xff] }
 0x3a1   : > { %6147 = vmatmul.bf16.gmra.mxu1 %v8504_v59  ;;  %6206 = vmatmul.bf16.gmra.mxu2 %v8292_v38  ;;  %v9243_v59 = vld [vmem:[%s11405_s4 + $0x1b0] sm:$0xff]  ;;  %4289 = vst [vmem:[#allocation4 + $0x29c] sm:$0xf] %v10706_v24  ;;  %v3977_v5 = vpack.c.bf16 %v3945_v13, %v3945_v13 }
 0x3a2   : > { %4290 = vst [vmem:[#allocation4 + $0x2c0] sm:$0xf] %v10708_v31  ;;  %6599 = vmatpush.bf16.msra.mxu3 %v9243_v59  ;;  %v3946_v38 = vld [vmem:[#allocation3 + $0x142] sm:$0xff] }
 0x3a3   : > { %4386 = vst [vmem:[#allocation4 + $0x2a0] sm:$0xf] %v4354_v7  ;;  %v3978_v48 = vpack.c.bf16 %v3946_v38, %v3946_v38  ;;  %v4133_v13 = vld [vmem:[#allocation3 + $0x121] sm:$0xff] }
 0x3a4   : > { %v6258_v43 = vpop.f32.mrf.mxu3  ;;  %v6167_v52 = vpop.f32.mrf.mxu2  ;;  %4482 = vst [vmem:[#allocation4 + $0x2a4] sm:$0xf] %v4163_v19  ;;  %v10727_v19 = vpack.c.bf16 %v4227_v41, %v4227_v41  ;;  %v4324_v38 = vld [vmem:[#allocation3 + $0x120] sm:$0xff]  ;;  %v8367_v41 = vld [vmem:[#allocation4 + $0x320] sm:$0xf] }
 0x3a5   : > { %v10710_v9 = vpop.f32.mrf.mxu0  ;;  %v6168_v55 = vadd.f32 %v6167_v52, %v10457_v20  ;;  %v4164_v20 = vpack.c.bf16 %v4132_v16, %v4132_v16  ;;  %4562 = vst [vmem:[#allocation4 + $0x68] sm:$0xf] %v10466_v32  ;;  %v9251_v32 = vld [vmem:[%s11405_s4 + $0x1f0] sm:$0xff] }
 0x3a6   : > { %v10712_v40 = vpop.f32.mrf.mxu1  ;;  %4009 = vst [vmem:[#allocation4 + $0x3b0] sm:$0xf] %v3977_v5  ;;  %6688 = vmatpush.bf16.msra.mxu0 %v9251_v32  ;;  %v4165_v5 = vpack.c.bf16 %v4133_v13, %v4133_v13  ;;  %v3948_v13 = vld [vmem:[#allocation3 + $0x15a] sm:$0xff] }
 0x3a7   : > { %6389 = vmatmul.bf16.gmra.mxu0 %v8336_v21  ;;  %v10720_v2 = vadd.f32 %v6256_v37, %v6168_v55  ;;  %4196 = vst [vmem:[#allocation4 + $0x304] sm:$0xf] %v4164_v20  ;;  %v4355_v37 = vpack.c.bf16 %v4323_v28, %v4323_v28  ;;  %v7979_v21 = vld [vmem:[#allocation4 + $0x10] sm:$0xf]  ;;  %v10735_v55 = vpack.c.bf16 %v4228_v11, %v4228_v11  ;;  %v9145_v11 = vld [vmem:[#allocation4 + $0x324] sm:$0xf] }
 0x3a8   : > { %4010 = vst [vmem:[#allocation4 + $0x3d4] sm:$0xf] %v3978_v48  ;;  %v7980_v59 = vor.u32 %v9051_v25, %v7979_v21  ;;  %v4356_v48 = vpack.c.bf16 %v4324_v38, %v4324_v38 }
 0x3a9   : > { %6300 = vmatmul.bf16.gmra.mxu3 %v8332_v6  ;;  %3915 = vst [vmem:[#allocation4 + $0x3f4] sm:$0xf] %v3883_v1  ;;  %v9135_v6 = vld [vmem:[#allocation4 + $0x2d4] sm:$0xf]  ;;  %v8369_v1 = vld [vmem:[#allocation4 + $0x344] sm:$0xf0] }
 0x3aa   : > { %4387 = vst [vmem:[#allocation4 + $0x2c4] sm:$0xf] %v4355_v37  ;;  %v8328_v28 = vor.u32 %v9135_v6, %v8325_v47  ;;  %v9149_v37 = vld [vmem:[#allocation4 + $0x340] sm:$0xf0]  ;;  %v8372_v47 = vor.u32 %v9145_v11, %v8369_v1  ;;  %v4325_v6 = vld [vmem:[#allocation3 + $0x128] sm:$0xff] }
 0x3ab   : > { %4483 = vst [vmem:[#allocation4 + $0x2c8] sm:$0xf] %v4164_v20 }
 0x3ac   : > { %v6261_v44 = vpop.f32.mrf.mxu3  ;;  %v6169_v46 = vpop.f32.mrf.mxu2  ;;  %4291 = vst [vmem:[#allocation4 + $0x2e4] sm:$0xf] %v10727_v19 }
 0x3ad   : > { %v10725_v7 = vpop.f32.mrf.mxu0  ;;  %v6170_v45 = vadd.f32 %v6169_v46, %v10474_v22  ;;  %v9259_v22 = vld [vmem:[%s11405_s4 + $0x230] sm:$0xff]  ;;  %4292 = vst [vmem:[#allocation4 + $0x308] sm:$0xf] %v10735_v55 }
 0x3ae   : > { %v10729_v52 = vpop.f32.mrf.mxu1  ;;  %6777 = vmatpush.bf16.msra.mxu1 %v9259_v22  ;;  %4197 = vst [vmem:[#allocation4 + $0x328] sm:$0xf] %v4165_v5 }
 0x3af   : > { %v10737_v16 = vadd.f32 %v6258_v43, %v6170_v45  ;;  %v3884_v43 = vpack.c.bf16 %v10596_v26, %v10596_v26  ;;  %4388 = vst [vmem:[#allocation4 + $0x2e8] sm:$0xf] %v4356_v48  ;;  %v8368_v26 = vor.u32 %v9149_v37, %v8367_v41  ;;  %v3980_v48 = vpack.c.bf16 %v3948_v13, %v3948_v13  ;;  %v8015_v37 = vld [vmem:[#allocation4 + $0x58] sm:$0xf]  ;;  %v9154_v13 = vld [vmem:[#allocation4 + $0x36c] sm:$0xf] }
 0x3b0   : > { %4484 = vst [vmem:[#allocation4 + $0x2ec] sm:$0xf] %v4165_v5 }
 0x3b1   : > { %6428 = vmatmul.bf16.vlgmr.msrb.gmra.mxu1 %v7980_v59  ;;  %6211 = vmatmul.bf16.gmra.mxu2 %v8328_v28  ;;  %3916 = vst [vmem:[#allocation4 + $0x418] sm:$0xf] %v3884_v43  ;;  %v4134_v59 = vld [vmem:[#allocation3 + $0x129] sm:$0xff]  ;;  %v3947_v28 = vld [vmem:[#allocation3 + $0x152] sm:$0xff] }
 0x3b2   : > { %4563 = vst [vmem:[#allocation4 + $0x8c] sm:$0xf] %v10469_v42  ;;  %v4166_v38 = vpack.c.bf16 %v4134_v59, %v4134_v59  ;;  %v3979_v22 = vpack.c.bf16 %v3947_v28, %v3947_v28  ;;  %v4357_v42 = vpack.c.bf16 %v4325_v6, %v4325_v6  ;;  %v3886_v59 = vpack.c.bf16 %v10649_v15, %v10649_v15  ;;  %v8403_v6 = vld [vmem:[#allocation4 + $0x368] sm:$0xf]  ;;  %v9158_v28 = vld [vmem:[#allocation4 + $0x388] sm:$0xf0] }
 0x3b3   : > { %4564 = vst [vmem:[#allocation4 + $0xb0] sm:$0xf] %v10500_v27  ;;  %v8361_v27 = vld [vmem:[#allocation4 + $0x33c] sm:$0xf0]  ;;  %v9242_v15 = vld [vmem:[%s11405_s4 + $0x1a8] sm:$0xff] }
 0x3b4   : > { %v6263_v20 = vpop.f32.mrf.mxu3  ;;  %v6172_v25 = vpop.f32.mrf.mxu2  ;;  %4565 = vst [vmem:[#allocation4 + $0xd4] sm:$0xf] %v10504_v60  ;;  %6600 = vmatpush.bf16.msra.mxu3 %v9242_v15 }
 0x3b5   : > { %v10746_v46 = vpop.f32.mrf.mxu0  ;;  %v6173_v21 = vadd.f32 %v6172_v25, %v10492_v34  ;;  %v3885_v34 = vpack.c.bf16 %v10622_v58, %v10622_v58  ;;  %4566 = vst [vmem:[#allocation4 + $0xf8] sm:$0xf] %v10532_v51  ;;  %v9144_v58 = vld [vmem:[#allocation4 + $0x31c] sm:$0xf] }
 0x3b6   : > { %v10748_v45 = vpop.f32.mrf.mxu1  ;;  %4198 = vst [vmem:[#allocation4 + $0x34c] sm:$0xf] %v4166_v38  ;;  %v8364_v25 = vor.u32 %v9144_v58, %v8361_v27  ;;  %v3949_v27 = vld [vmem:[#allocation3 + $0x16a] sm:$0xff] }
 0x3b7   : > { %6394 = vmatmul.bf16.gmra.mxu0 %v8372_v47  ;;  %v10752_v32 = vadd.f32 %v6261_v44, %v6173_v21  ;;  %v9060_v44 = vld [vmem:[#allocation4 + $0x78] sm:$0xf0]  ;;  %4011 = vst [vmem:[#allocation4 + $0x3f8] sm:$0xf] %v3979_v22  ;;  %v4135_v47 = vld [vmem:[#allocation3 + $0x139] sm:$0xff] }
 0x3b8   : > { %4012 = vst [vmem:[#allocation4 + $0x41c] sm:$0xf] %v3980_v48  ;;  %v8016_v11 = vor.u32 %v9060_v44, %v8015_v37  ;;  %v4167_v21 = vpack.c.bf16 %v4135_v47, %v4135_v47  ;;  %v3981_v37 = vpack.c.bf16 %v3949_v27, %v3949_v27 }
 0x3b9   : > { %6305 = vmatmul.bf16.gmra.mxu3 %v8368_v26  ;;  %3917 = vst [vmem:[#allocation4 + $0x43c] sm:$0xf] %v3885_v34  ;;  %v8405_v26 = vld [vmem:[#allocation4 + $0x38c] sm:$0xf0] }
 0x3ba   : > { %4389 = vst [vmem:[#allocation4 + $0x30c] sm:$0xf] %v4357_v42  ;;  %v8404_v42 = vor.u32 %v9158_v28, %v8403_v6  ;;  %v4137_v6 = vld [vmem:[#allocation3 + $0x151] sm:$0xff]  ;;  %v4045_v28 = vld [vmem:[#allocation3 + $0x180] sm:$0xff] }
 0x3bb   : > { %4485 = vst [vmem:[#allocation4 + $0x310] sm:$0xf] %v4166_v38 }
 0x3bc   : > { %v6266_v5 = vpop.f32.mrf.mxu3  ;;  %v6174_v1 = vpop.f32.mrf.mxu2  ;;  %4567 = vst [vmem:[#allocation4 + $0x11c] sm:$0xf] %v10540_v29  ;;  %v8408_v29 = vor.u32 %v9154_v13, %v8405_v26  ;;  %v8051_v26 = vld [vmem:[#allocation4 + $0xa0] sm:$0xf]  ;;  %v4169_v13 = vpack.c.bf16 %v4137_v6, %v4137_v6 }
 0x3bd   : > { %v10759_v43 = vpop.f32.mrf.mxu0  ;;  %v6175_v60 = vadd.f32 %v6174_v1, %v10507_v61  ;;  %v9234_v61 = vld [vmem:[%s11405_s4 + $0x168] sm:$0xff]  ;;  %4199 = vst [vmem:[#allocation4 + $0x370] sm:$0xf] %v4167_v21  ;;  %v4136_v1 = vld [vmem:[#allocation3 + $0x141] sm:$0xff]  ;;  %v9233_v6 = vld [vmem:[%s11405_s4 + $0x160] sm:$0xff] }
 0x3be   : > { %v10761_v41 = vpop.f32.mrf.mxu1  ;;  %6511 = vmatpush.bf16.msra.mxu2 %v9234_v61  ;;  %3918 = vst [vmem:[#allocation4 + $0x460] sm:$0xf] %v3886_v59 }
 0x3bf   : > { %v10764_v51 = vadd.f32 %v6263_v20, %v6175_v60  ;;  %4486 = vst [vmem:[#allocation4 + $0x334] sm:$0xf] %v4167_v21  ;;  %v3950_v60 = vld [vmem:[#allocation3 + $0x172] sm:$0xff] }
 0x3c0   : > { %4568 = vst [vmem:[#allocation4 + $0x140] sm:$0xf] %v10553_v12  ;;  %v9069_v12 = vld [vmem:[#allocation4 + $0xc0] sm:$0xf0] }
 0x3c1   : > { %6433 = vmatmul.bf16.gmra.mxu1 %v8016_v11  ;;  %6216 = vmatmul.bf16.gmra.mxu2 %v8364_v25  ;;  %4569 = vst [vmem:[#allocation4 + $0x164] sm:$0xf] %v10559_v53  ;;  %v3982_v11 = vpack.c.bf16 %v3950_v60, %v3950_v60  ;;  %v8397_v25 = vld [vmem:[#allocation4 + $0x384] sm:$0xf0] }
 0x3c2   : > { %4570 = vst [vmem:[#allocation4 + $0x188] sm:$0xf] %v10576_v62  ;;  %6512 = vmatpush.bf16.msra.mxu2 %v9233_v6 }
 0x3c3   : > { %4571 = vst [vmem:[#allocation4 + $0x1ac] sm:$0xf] %v10581_v18  ;;  %v9250_v18 = vld [vmem:[%s11405_s4 + $0x1e8] sm:$0xff] }
 0x3c4   : > { %v6268_v20 = vpop.f32.mrf.mxu3  ;;  %v6177_v38 = vpop.f32.mrf.mxu2  ;;  %4572 = vst [vmem:[#allocation4 + $0x1d0] sm:$0xf] %v10634_v14  ;;  %v8052_v14 = vor.u32 %v9069_v12, %v8051_v26  ;;  %6689 = vmatpush.bf16.msra.mxu0 %v9250_v18 }
 0x3c5   : > { %v10772_v22 = vpop.f32.mrf.mxu0  ;;  %v6178_v34 = vadd.f32 %v6177_v38, %v10530_v50  ;;  %v4168_v50 = vpack.c.bf16 %v4136_v1, %v4136_v1  ;;  %4013 = vst [vmem:[#allocation4 + $0x440] sm:$0xf] %v3981_v37  ;;  %v8441_v38 = vld [vmem:[#allocation4 + $0x3d4] sm:$0xf0] }
 0x3c6   : > { %v10774_v48 = vpop.f32.mrf.mxu1  ;;  %4014 = vst [vmem:[#allocation4 + $0x464] sm:$0xf] %v3982_v11  ;;  %v4046_v37 = vld [vmem:[#allocation3 + $0x188] sm:$0xff] }
 0x3c7   : > { %6399 = vmatmul.bf16.gmra.mxu0 %v8408_v29  ;;  %v10782_v44 = vadd.f32 %v6266_v5, %v6178_v34  ;;  %4200 = vst [vmem:[#allocation4 + $0x394] sm:$0xf] %v4168_v50  ;;  %v9153_v5 = vld [vmem:[#allocation4 + $0x364] sm:$0xf]  ;;  %v4077_v29 = vpack.c.bf16 %v4045_v28, %v4045_v28  ;;  %v9167_v34 = vld [vmem:[#allocation4 + $0x3d0] sm:$0xf0]  ;;  %v4078_v12 = vpack.c.bf16 %v4046_v37, %v4046_v37 }
 0x3c8   : > { %4487 = vst [vmem:[#allocation4 + $0x358] sm:$0xf] %v4168_v50  ;;  %v8400_v59 = vor.u32 %v9153_v5, %v8397_v25  ;;  %v4138_v50 = vld [vmem:[#allocation3 + $0x159] sm:$0xff] }
 0x3c9   : > { %6310 = vmatmul.bf16.gmra.mxu3 %v8404_v42  ;;  %4573 = vst [vmem:[#allocation4 + $0x1f4] sm:$0xf] %v10637_v0  ;;  %v8439_v0 = vld [vmem:[#allocation4 + $0x3b0] sm:$0xf]  ;;  %v4170_v11 = vpack.c.bf16 %v4138_v50, %v4138_v50  ;;  %v9248_v50 = vld [vmem:[%s11405_s4 + $0x1d8] sm:$0xff] }
 0x3ca   : > { %4574 = vst [vmem:[#allocation4 + $0x218] sm:$0xf] %v10677_v10  ;;  %v9163_v10 = vld [vmem:[#allocation4 + $0x3b4] sm:$0xf]  ;;  %v8440_v60 = vor.u32 %v9167_v34, %v8439_v0  ;;  %v8433_v25 = vld [vmem:[#allocation4 + $0x3cc] sm:$0xf0] }
 0x3cb   : > { %4575 = vst [vmem:[#allocation4 + $0x23c] sm:$0xf] %v10681_v33  ;;  %v8444_v1 = vor.u32 %v9163_v10, %v8441_v38  ;;  %v8475_v38 = vld [vmem:[#allocation4 + $0x3f8] sm:$0xf]  ;;  %v9176_v0 = vld [vmem:[#allocation4 + $0x418] sm:$0xf0] }
 0x3cc   : > { %v6271_v58 = vpop.f32.mrf.mxu3  ;;  %v6179_v53 = vpop.f32.mrf.mxu2  ;;  %4576 = vst [vmem:[#allocation4 + $0x260] sm:$0xf] %v10706_v24  ;;  %v8476_v37 = vor.u32 %v9176_v0, %v8475_v38  ;;  %v9171_v38 = vld [vmem:[#allocation4 + $0x3f4] sm:$0xf] }
 0x3cd   : > { %v10787_v47 = vpop.f32.mrf.mxu0  ;;  %v6180_v21 = vadd.f32 %v6179_v53, %v10547_v56  ;;  %v9258_v56 = vld [vmem:[%s11405_s4 + $0x228] sm:$0xff]  ;;  %4201 = vst [vmem:[#allocation4 + $0x3b8] sm:$0xf] %v4169_v13 }
 0x3ce   : > { %v10789_v62 = vpop.f32.mrf.mxu1  ;;  %6778 = vmatpush.bf16.msra.mxu1 %v9258_v56  ;;  %4109 = vst [vmem:[#allocation4 + $0x444] sm:$0xf] %v4077_v29  ;;  %v9078_v53 = vld [vmem:[#allocation4 + $0x108] sm:$0xf0]  ;;  %v9241_v56 = vld [vmem:[%s11405_s4 + $0x1a0] sm:$0xff] }
 0x3cf   : > { %v10796_v61 = vadd.f32 %v6268_v20, %v6180_v21  ;;  %4488 = vst [vmem:[#allocation4 + $0x37c] sm:$0xf] %v4169_v13  ;;  %v8477_v13 = vld [vmem:[#allocation4 + $0x41c] sm:$0xf0]  ;;  %6601 = vmatpush.bf16.msra.mxu3 %v9241_v56  ;;  %v9230_v56 = vld [vmem:[%s11405_s4 + $0x148] sm:$0xff] }
 0x3d0   : > { %4577 = vst [vmem:[#allocation4 + $0x284] sm:$0xf] %v10708_v31 }
 0x3d1   : > { %6438 = vmatmul.bf16.gmra.mxu1 %v8052_v14  ;;  %6221 = vmatmul.bf16.gmra.mxu2 %v8400_v59  ;;  %4578 = vst [vmem:[#allocation4 + $0x2a8] sm:$0xf] %v10727_v19  ;;  %v4139_v59 = vld [vmem:[#allocation3 + $0x169] sm:$0xff] }
 0x3d2   : > { %4579 = vst [vmem:[#allocation4 + $0x2cc] sm:$0xf] %v10735_v55  ;;  %v9162_v55 = vld [vmem:[#allocation4 + $0x3ac] sm:$0xf]  ;;  %v4171_v28 = vpack.c.bf16 %v4139_v59, %v4139_v59 }
 0x3d3   : > { %4202 = vst [vmem:[#allocation4 + $0x3dc] sm:$0xf] %v4170_v11  ;;  %v8436_v14 = vor.u32 %v9162_v55, %v8433_v25  ;;  %v8123_v55 = vld [vmem:[#allocation4 + $0x130] sm:$0xf] }
 0x3d4   : > { %v6273_v20 = vpop.f32.mrf.mxu3  ;;  %v6182_v15 = vpop.f32.mrf.mxu2  ;;  %4110 = vst [vmem:[#allocation4 + $0x468] sm:$0xf] %v4078_v12 }
 0x3d5   : > { %v10804_v42 = vpop.f32.mrf.mxu0  ;;  %v6183_v33 = vadd.f32 %v6182_v15, %v10568_v3  ;;  %4489 = vst [vmem:[#allocation4 + $0x3a0] sm:$0xf] %v4170_v11 }
 0x3d6   : > { %v10806_v27 = vpop.f32.mrf.mxu1  ;;  %4203 = vst [vmem:[#allocation4 + $0x400] sm:$0xf] %v4171_v28 }
 0x3d7   : > { %6404 = vmatmul.bf16.gmra.mxu0 %v8444_v1  ;;  %v10811_v24 = vadd.f32 %v6271_v58, %v6183_v33  ;;  %v8087_v58 = vld [vmem:[#allocation4 + $0xe8] sm:$0xf]  ;;  %4490 = vst [vmem:[#allocation4 + $0x3c4] sm:$0xf] %v4171_v28  ;;  %v9232_v33 = vld [vmem:[%s11405_s4 + $0x158] sm:$0xff] }
 0x3d8   : > { %v8088_v26 = vor.u32 %v9078_v53, %v8087_v58  ;;  %6513 = vmatpush.bf16.msra.mxu2 %v9232_v33  ;;  %v9239_v53 = vld [vmem:[%s11405_s4 + $0x190] sm:$0xff]  ;;  %v9246_v28 = vld [vmem:[%s11405_s4 + $0x1c8] sm:$0xff] }
 0x3d9   : > { %6315 = vmatmul.bf16.gmra.mxu3 %v8440_v60  ;;  %v9240_v60 = vld [vmem:[%s11405_s4 + $0x198] sm:$0xff] }
 0x3da   : > { %6602 = vmatpush.bf16.msra.mxu3 %v9240_v60 }
 0x3db   : > { %v8513_v60 = vld [vmem:[#allocation4 + $0x464] sm:$0xf0] }
 0x3dc   : > { %v6276_v5 = vpop.f32.mrf.mxu3  ;;  %v6184_v3 = vpop.f32.mrf.mxu2 }
 0x3dd   : > { %v6185_v19 = vadd.f32 %v6184_v3, %v10589_v57  ;;  %v10817_v21 = vpop.f32.mrf.mxu0  ;;  %v9249_v57 = vld [vmem:[%s11405_s4 + $0x1e0] sm:$0xff]  ;;  %v9247_v3 = vld [vmem:[%s11405_s4 + $0x1d0] sm:$0xff] }
 0x3de   : > { %v10814_v31 = vpop.f32.mrf.mxu1  ;;  %6690 = vmatpush.bf16.msra.mxu0 %v9249_v57  ;;  %6603 = vmatpush.bf16.msra.mxu3 %v9239_v53  ;;  %v9238_v57 = vld [vmem:[%s11405_s4 + $0x188] sm:$0xff]  ;;  %v9185_v53 = vld [vmem:[#allocation4 + $0x460] sm:$0xf0] }
 0x3df   : > { %v10819_v18 = vadd.f32 %v6273_v20, %v6185_v19  ;;  %v9172_v20 = vld [vmem:[#allocation4 + $0x3fc] sm:$0xf]  ;;  %v9087_v19 = vld [vmem:[#allocation4 + $0x150] sm:$0xf0] }
 0x3e0   : > { %v8480_v10 = vor.u32 %v9172_v20, %v8477_v13  ;;  %v8124_v13 = vor.u32 %v9087_v19, %v8123_v55 }
 0x3e1   : > { %6443 = vmatmul.bf16.gmra.mxu1 %v8088_v26  ;;  %6226 = vmatmul.bf16.gmra.mxu2 %v8436_v14  ;;  %v8469_v14 = vld [vmem:[#allocation4 + $0x414] sm:$0xf0] }
 0x3e2   : > { %6691 = vmatpush.bf16.msra.mxu0 %v9248_v50  ;;  %v8472_v20 = vor.u32 %v9171_v38, %v8469_v14  ;;  %6604 = vmatpush.bf16.msra.mxu3 %v9238_v57  ;;  %v9245_v50 = vld [vmem:[%s11405_s4 + $0x1c0] sm:$0xff]  ;;  %v9096_v57 = vld [vmem:[#allocation4 + $0x198] sm:$0xf0] }
 0x3e4   : > { %v6278_v29 = vpop.f32.mrf.mxu3  ;;  %v6187_v34 = vpop.f32.mrf.mxu2 }
 0x3e5   : > { %v6188_v1 = vadd.f32 %v6187_v34, %v10618_v54  ;;  %v10844_v12 = vpop.f32.mrf.mxu0  ;;  %v9231_v54 = vld [vmem:[%s11405_s4 + $0x150] sm:$0xff]  ;;  %v9257_v34 = vld [vmem:[%s11405_s4 + $0x220] sm:$0xff] }
 0x3e6   : > { %v10830_v15 = vpop.f32.mrf.mxu1  ;;  %6514 = vmatpush.bf16.msra.mxu2 %v9231_v54  ;;  %6692 = vmatpush.bf16.msra.mxu0 %v9247_v3  ;;  %v9181_v3 = vld [vmem:[#allocation4 + $0x444] sm:$0xf] }
 0x3e7   : > { %6409 = vmatmul.bf16.gmra.mxu0 %v8480_v10  ;;  %v10842_v11 = vadd.f32 %v6276_v5, %v6188_v1  ;;  %v4140_v5 = vld [vmem:[#allocation3 + $0x171] sm:$0xff]  ;;  %6779 = vmatpush.bf16.msra.mxu1 %v9257_v34 }
 0x3e8   : > { %v4172_v25 = vpack.c.bf16 %v4140_v5, %v4140_v5  ;;  %v9229_v10 = vld [vmem:[%s11405_s4 + $0x140] sm:$0xff] }
 0x3e9   : > { %6320 = vmatmul.bf16.gmra.mxu3 %v8476_v37  ;;  %v9237_v1 = vld [vmem:[%s11405_s4 + $0x180] sm:$0xff] }
 0x3ea   : > { %4204 = vst [vmem:[#allocation4 + $0x424] sm:$0xf] %v4172_v25  ;;  %6515 = vmatpush.bf16.msra.mxu2 %v9230_v56  ;;  %6693 = vmatpush.bf16.msra.mxu0 %v9246_v28  ;;  %v8511_v37 = vld [vmem:[#allocation4 + $0x440] sm:$0xf] }
 0x3eb   : > { %4491 = vst [vmem:[#allocation4 + $0x3e8] sm:$0xf] %v4172_v25  ;;  %6605 = vmatpush.bf16.msra.mxu3 %v9237_v1  ;;  %v8516_v25 = vor.u32 %v9181_v3, %v8513_v60  ;;  %v8512_v55 = vor.u32 %v9185_v53, %v8511_v37  ;;  %v9180_v1 = vld [vmem:[#allocation4 + $0x43c] sm:$0xf]  ;;  %v7989_v60 = vld [vmem:[#allocation4 + $0x3c] sm:$0xf0] }
 0x3ec   : > { %v6281_v58 = vpop.f32.mrf.mxu3  ;;  %v6189_v26 = vpop.f32.mrf.mxu2  ;;  %v9052_v37 = vld [vmem:[#allocation4 + $0x38] sm:$0xf0] }
 0x3ed   : > { %v6190_v6 = vadd.f32 %v6189_v26, %v10642_v36  ;;  %v4141_v36 = vld [vmem:[#allocation3 + $0x181] sm:$0xff]  ;;  %v10878_v33 = vpop.f32.mrf.mxu0  ;;  %v9048_v53 = vld [vmem:[#allocation4 + $0x1c] sm:$0xf] }
 0x3ee   : > { %v10855_v59 = vpop.f32.mrf.mxu1  ;;  %6516 = vmatpush.bf16.msra.mxu2 %v9229_v10  ;;  %6694 = vmatpush.bf16.msra.mxu0 %v9245_v50 }
 0x3ef   : > { %v10867_v0 = vadd.f32 %v6278_v29, %v6190_v6  ;;  %v4173_v29 = vpack.c.bf16 %v4141_v36, %v4141_v36  ;;  %v4142_v6 = vld [vmem:[#allocation3 + $0x189] sm:$0xff] }
 0x3f0   : > { %v4174_v56 = vpack.c.bf16 %v4142_v6, %v4142_v6 }
 0x3f1   : > { %6448 = vmatmul.bf16.gmra.mxu1 %v8124_v13  ;;  %6231 = vmatmul.bf16.gmra.mxu2 %v8472_v20  ;;  %4205 = vst [vmem:[#allocation4 + $0x448] sm:$0xf] %v4173_v29  ;;  %v8505_v20 = vld [vmem:[#allocation4 + $0x45c] sm:$0xf0] }
 0x3f2   : > { %4492 = vst [vmem:[#allocation4 + $0x40c] sm:$0xf] %v4173_v29  ;;  %v8508_v29 = vor.u32 %v9180_v1, %v8505_v20  ;;  %v9047_v20 = vld [vmem:[#allocation4 + $0x14] sm:$0xf]  ;;  %v8195_v1 = vld [vmem:[#allocation4 + $0x1c0] sm:$0xf] }
 0x3f3   : > { %4206 = vst [vmem:[#allocation4 + $0x46c] sm:$0xf] %v4174_v56 }
 0x3f4   : > { %v6283_v54 = vpop.f32.mrf.mxu3  ;;  %v6192_v5 = vpop.f32.mrf.mxu2  ;;  %4493 = vst [vmem:[#allocation4 + $0x430] sm:$0xf] %v4174_v56  ;;  %v9105_v56 = vld [vmem:[#allocation4 + $0x1e0] sm:$0xf0] }
 0x3f5   : > { %v6193_v26 = vadd.f32 %v6192_v5, %v10660_v49  ;;  %v10888_v28 = vpop.f32.mrf.mxu0  ;;  %v8159_v49 = vld [vmem:[#allocation4 + $0x178] sm:$0xf]  ;;  %v7992_v5 = vor.u32 %v9048_v53, %v7989_v60  ;;  %v8025_v53 = vld [vmem:[#allocation4 + $0x84] sm:$0xf0] }
 0x3f6   : > { %v10883_v19 = vpop.f32.mrf.mxu1  ;;  %11419 = vst [vmem:[#allocation5_spill] sm:$0xff] %v10888_v28  ;;  %v8160_v10 = vor.u32 %v9096_v57, %v8159_v49 }
 0x3f7   : > { %6414 = vmatmul.bf16.gmra.mxu0 %v8516_v25  ;;  %v10886_v14 = vadd.f32 %v6281_v58, %v6193_v26 }
 0x3f9   : > { %6325 = vmatmul.bf16.gmra.mxu3 %v8512_v55 }
 0x3fc   : > { %v6286_v13 = vpop.f32.mrf.mxu3  ;;  %v6194_v38 = vpop.f32.mrf.mxu2 }
 0x3fd   : > { %v6195_v34 = vadd.f32 %v6194_v38, %v10684_v17  ;;  %v10898_v55 = vpop.f32.mrf.mxu0  ;;  %v7987_v17 = vld [vmem:[#allocation4 + $0x18] sm:$0xf] }
 0x3fe   : > { %v10890_v36 = vpop.f32.mrf.mxu1  ;;  %11420 = vst [vmem:[#allocation6_spill] sm:$0xff] %v10898_v55  ;;  %v7988_v6 = vor.u32 %v9052_v37, %v7987_v17 }
 0x3ff   : > { %v10893_v58 = vadd.f32 %v6283_v54, %v6195_v34  ;;  %v7981_v34 = vld [vmem:[#allocation4 + $0x34] sm:$0xf0] }
 0x400   : > { %v7984_v37 = vor.u32 %v9047_v20, %v7981_v34 }
 0x401   : > { %6453 = vmatmul.bf16.gmra.mxu1 %v8160_v10  ;;  %6236 = vmatmul.bf16.gmra.mxu2 %v8508_v29  ;;  %v8196_v29 = vor.u32 %v9105_v56, %v8195_v1  ;;  %v8023_v56 = vld [vmem:[#allocation4 + $0x60] sm:$0xf] }
 0x404   : > { %v6288_v50 = vpop.f32.mrf.mxu3  ;;  %v6197_v3 = vpop.f32.mrf.mxu2 }
 0x405   : > { %v6198_v26 = vadd.f32 %v6197_v3, %v10695_v63  ;;  %v10907_v60 = vpop.f32.mrf.mxu0 }
 0x406   : > { %v10895_v25 = vpop.f32.mrf.mxu1  ;;  %11423 = vst [vmem:[#allocation9_spill] sm:$0xff] %v10907_v60 }
 0x407   : > { %6695 = vmatmul.bf16.vlgmr.msra.gmra.mxu0 %v7992_v5  ;;  %v10900_v54 = vadd.f32 %v6286_v13, %v6198_v26  ;;  %v9256_v13 = vld [vmem:[%s11405_s4 + $0x218] sm:$0xff]  ;;  %v9061_v5 = vld [vmem:[#allocation4 + $0x80] sm:$0xf0] }
 0x408   : > { %6780 = vmatpush.bf16.msra.mxu1 %v9256_v13  ;;  %v9057_v26 = vld [vmem:[#allocation4 + $0x64] sm:$0xf]  ;;  %v8017_v13 = vld [vmem:[#allocation4 + $0x7c] sm:$0xf0] }
 0x409   : > { %11421 = vst [vmem:[#allocation8_spill] sm:$0xff] %v10900_v54  ;;  %6606 = vmatmul.bf16.vlgmr.msra.gmra.mxu3 %v7988_v6 }
 0x40c   : > { %v6291_v57 = vpop.f32.mrf.mxu3  ;;  %v6199_v38 = vpop.f32.mrf.mxu2 }
 0x40d   : > { %v6200_v10 = vadd.f32 %v6199_v38, %v10712_v40  ;;  %v8028_v40 = vor.u32 %v9057_v26, %v8025_v53  ;;  %v8024_v38 = vor.u32 %v9061_v5, %v8023_v56  ;;  %v10917_v34 = vpop.f32.mrf.mxu0  ;;  %v8231_v26 = vld [vmem:[#allocation4 + $0x208] sm:$0xf]  ;;  %v9066_v56 = vld [vmem:[#allocation4 + $0xac] sm:$0xf] }
 0x40e   : > { %v10902_v49 = vpop.f32.mrf.mxu1  ;;  %11425 = vst [vmem:[#allocation11_spill] sm:$0xff] %v10917_v34  ;;  %v4230_v34 = vld [vmem:[#allocation3 + $0x12a] sm:$0xff] }
 0x40f   : > { %v10905_v63 = vadd.f32 %v6288_v50, %v6200_v10  ;;  %v9114_v10 = vld [vmem:[#allocation4 + $0x228] sm:$0xf0]  ;;  %v4262_v54 = vpack.c.bf16 %v4230_v34, %v4230_v34  ;;  %v6341_v34 = vadd.f32 %v10639_v8, %v10687_v35  ;;  %v9255_v8 = vld [vmem:[%s11405_s4 + $0x210] sm:$0xff] }
 0x410   : > { %v8232_v55 = vor.u32 %v9114_v10, %v8231_v26  ;;  %v8059_v10 = vld [vmem:[#allocation4 + $0xa8] sm:$0xf]  ;;  %v9079_v35 = vld [vmem:[#allocation4 + $0x110] sm:$0xf0]  ;;  %6781 = vmatpush.bf16.msra.mxu1 %v9255_v8 }
 0x411   : > { %11422 = vst [vmem:[#allocation7_spill] sm:$0xff] %v10905_v63  ;;  %6458 = vmatmul.bf16.gmra.mxu1 %v8196_v29  ;;  %6517 = vmatmul.bf16.vlgmr.msra.gmra.mxu2 %v7984_v37  ;;  %v9056_v37 = vld [vmem:[#allocation4 + $0x5c] sm:$0xf] }
 0x412   : > { %v8020_v5 = vor.u32 %v9056_v37, %v8017_v13  ;;  %4294 = vst [vmem:[#allocation4 + $0x350] sm:$0xf] %v4262_v54  ;;  %v9123_v37 = vld [vmem:[#allocation4 + $0x270] sm:$0xf0] }
 0x413   : > { %4581 = vst [vmem:[#allocation4 + $0x314] sm:$0xf] %v4262_v54 }
 0x414   : > { %v6293_v3 = vpop.f32.mrf.mxu3  ;;  %v6202_v17 = vpop.f32.mrf.mxu2 }
 0x415   : > { %v6203_v50 = vadd.f32 %v6202_v17, %v10729_v52  ;;  %v9070_v17 = vld [vmem:[#allocation4 + $0xc8] sm:$0xf0] }
 0x416   : > { %v10912_v6 = vpop.f32.mrf.mxu1 }
 0x417   : > { %6700 = vmatmul.bf16.gmra.mxu0 %v8028_v40  ;;  %v10915_v20 = vadd.f32 %v6291_v57, %v6203_v50  ;;  %v8061_v57 = vld [vmem:[#allocation4 + $0xcc] sm:$0xf0]  ;;  %v10924_v40 = vpop.f32.mrf.mxu0 }
 0x418   : > { %v8064_v63 = vor.u32 %v9066_v56, %v8061_v57  ;;  %v8053_v57 = vld [vmem:[#allocation4 + $0xc4] sm:$0xf0] }
 0x419   : > { %11424 = vst [vmem:[#allocation10_spill] sm:$0xff] %v10915_v20  ;;  %6611 = vmatmul.bf16.gmra.mxu3 %v8024_v38  ;;  %v4229_v38 = vld [vmem:[#allocation3 + $0x122] sm:$0xff] }
 0x41a   : > { %v4261_v28 = vpack.c.bf16 %v4229_v38, %v4229_v38 }
 0x41c   : > { %v6296_v1 = vpop.f32.mrf.mxu3  ;;  %v6204_v29 = vpop.f32.mrf.mxu2  ;;  %4293 = vst [vmem:[#allocation4 + $0x32c] sm:$0xf] %v4261_v28 }
 0x41d   : > { %v6205_v53 = vadd.f32 %v6204_v29, %v10748_v45  ;;  %v8060_v29 = vor.u32 %v9070_v17, %v8059_v10  ;;  %4580 = vst [vmem:[#allocation4 + $0x2f0] sm:$0xf] %v4261_v28  ;;  %v8267_v17 = vld [vmem:[#allocation4 + $0x250] sm:$0xf]  ;;  %v9075_v10 = vld [vmem:[#allocation4 + $0xf4] sm:$0xf] }
 0x41e   : > { %v10919_v60 = vpop.f32.mrf.mxu1  ;;  %v8268_v28 = vor.u32 %v9123_v37, %v8267_v17  ;;  %v8095_v17 = vld [vmem:[#allocation4 + $0xf0] sm:$0xf] }
 0x41f   : > { %v10922_v52 = vadd.f32 %v6293_v3, %v6205_v53  ;;  %v4326_v53 = vld [vmem:[#allocation3 + $0x138] sm:$0xff] }
 0x421   : > { %6463 = vmatmul.bf16.gmra.mxu1 %v8232_v55  ;;  %6522 = vmatmul.bf16.gmra.mxu2 %v8020_v5  ;;  %v9065_v5 = vld [vmem:[#allocation4 + $0xa4] sm:$0xf] }
 0x422   : > { %v8056_v38 = vor.u32 %v9065_v5, %v8053_v57 }
 0x424   : > { %v6298_v50 = vpop.f32.mrf.mxu3  ;;  %v6207_v20 = vpop.f32.mrf.mxu2 }
 0x425   : > { %v6208_v3 = vadd.f32 %v6207_v20, %v10761_v41  ;;  %v4358_v41 = vpack.c.bf16 %v4326_v53, %v4326_v53  ;;  %v10933_v20 = vpop.f32.mrf.mxu0  ;;  %v4327_v53 = vld [vmem:[#allocation3 + $0x140] sm:$0xff] }
 0x426   : > { %v10926_v45 = vpop.f32.mrf.mxu1  ;;  %v4359_v5 = vpack.c.bf16 %v4327_v53, %v4327_v53 }
 0x427   : > { %6705 = vmatmul.bf16.gmra.mxu0 %v8064_v63  ;;  %v10929_v55 = vadd.f32 %v6296_v1, %v6208_v3  ;;  %4390 = vst [vmem:[#allocation4 + $0x330] sm:$0xf] %v4358_v41  ;;  %v8097_v3 = vld [vmem:[#allocation4 + $0x114] sm:$0xf0] }
 0x428   : > { %4391 = vst [vmem:[#allocation4 + $0x354] sm:$0xf] %v4359_v5 }
 0x429   : > { %6616 = vmatmul.bf16.gmra.mxu3 %v8060_v29 }
 0x42c   : > { %v6301_v13 = vpop.f32.mrf.mxu3  ;;  %v6209_v26 = vpop.f32.mrf.mxu2 }
 0x42d   : > { %v6210_v1 = vadd.f32 %v6209_v26, %v10774_v48  ;;  %v8100_v48 = vor.u32 %v9075_v10, %v8097_v3  ;;  %v4232_v26 = vld [vmem:[#allocation3 + $0x142] sm:$0xff]  ;;  %v10948_v3 = vpop.f32.mrf.mxu0  ;;  %v4328_v10 = vld [vmem:[#allocation3 + $0x150] sm:$0xff] }
 0x42e   : > { %v6429_v63 = vpop.f32.mrf.mxu1  ;;  %v4264_v41 = vpack.c.bf16 %v4232_v26, %v4232_v26  ;;  %11426 = vst [vmem:[#allocation12_spill] sm:$0xff] %v10948_v3  ;;  %v4233_v3 = vld [vmem:[#allocation3 + $0x152] sm:$0xff] }
 0x42f   : > { %v10936_v56 = vadd.f32 %v6429_v63, %v6341_v34  ;;  %v10938_v54 = vadd.f32 %v6298_v50, %v6210_v1  ;;  %v4231_v34 = vld [vmem:[#allocation3 + $0x13a] sm:$0xff]  ;;  %v6343_v50 = vadd.f32 %v10657_v4, %v10698_v39  ;;  %v9132_v4 = vld [vmem:[#allocation4 + $0x2b8] sm:$0xf0] }
 0x430   : > { %v4263_v57 = vpack.c.bf16 %v4231_v34, %v4231_v34  ;;  %4296 = vst [vmem:[#allocation4 + $0x398] sm:$0xf] %v4264_v41  ;;  %v9074_v34 = vld [vmem:[#allocation4 + $0xec] sm:$0xf] }
 0x431   : > { %6468 = vmatmul.bf16.gmra.mxu1 %v8268_v28  ;;  %6527 = vmatmul.bf16.gmra.mxu2 %v8056_v38  ;;  %v8096_v38 = vor.u32 %v9079_v35, %v8095_v17  ;;  %4583 = vst [vmem:[#allocation4 + $0x35c] sm:$0xf] %v4264_v41  ;;  %v8089_v35 = vld [vmem:[#allocation4 + $0x10c] sm:$0xf0] }
 0x432   : > { %4295 = vst [vmem:[#allocation4 + $0x374] sm:$0xf] %v4263_v57  ;;  %v8092_v41 = vor.u32 %v9074_v34, %v8089_v35 }
 0x433   : > { %4582 = vst [vmem:[#allocation4 + $0x338] sm:$0xf] %v4263_v57 }
 0x434   : > { %v6303_v29 = vpop.f32.mrf.mxu3  ;;  %v6212_v37 = vpop.f32.mrf.mxu2 }
 0x435   : > { %v6213_v1 = vadd.f32 %v6212_v37, %v10789_v62  ;;  %v6346_v62 = vadd.f32 %v10679_v30, %v10720_v2  ;;  %v9088_v30 = vld [vmem:[#allocation4 + $0x158] sm:$0xf0] }
 0x436   : > { %v6431_v63 = vpop.f32.mrf.mxu1  ;;  %v9084_v2 = vld [vmem:[#allocation4 + $0x13c] sm:$0xf] }
 0x437   : > { %v10946_v28 = vadd.f32 %v6431_v63, %v6343_v50  ;;  %6710 = vmatmul.bf16.gmra.mxu0 %v8100_v48  ;;  %v10950_v8 = vadd.f32 %v6301_v13, %v6213_v1  ;;  %v4360_v48 = vpack.c.bf16 %v4328_v10, %v4328_v10  ;;  %v8303_v13 = vld [vmem:[#allocation4 + $0x298] sm:$0xf]  ;;  %v8133_v63 = vld [vmem:[#allocation4 + $0x15c] sm:$0xf0]  ;;  %v10959_v1 = vpop.f32.mrf.mxu0  ;;  %v4329_v10 = vld [vmem:[#allocation3 + $0x158] sm:$0xff] }
 0x438   : > { %v8304_v5 = vor.u32 %v9132_v4, %v8303_v13 }
 0x439   : > { %6621 = vmatmul.bf16.gmra.mxu3 %v8096_v38  ;;  %4392 = vst [vmem:[#allocation4 + $0x378] sm:$0xf] %v4360_v48  ;;  %v8136_v38 = vor.u32 %v9084_v2, %v8133_v63  ;;  %v9083_v2 = vld [vmem:[#allocation4 + $0x134] sm:$0xf] }
 0x43c   : > { %v6306_v39 = vpop.f32.mrf.mxu3  ;;  %v6214_v53 = vpop.f32.mrf.mxu2 }
 0x43d   : > { %v6215_v50 = vadd.f32 %v6214_v53, %v10806_v27  ;;  %v4234_v27 = vld [vmem:[#allocation3 + $0x15a] sm:$0xff]  ;;  %v4361_v53 = vpack.c.bf16 %v4329_v10, %v4329_v10 }
 0x43e   : > { %v6434_v26 = vpop.f32.mrf.mxu1  ;;  %v4266_v48 = vpack.c.bf16 %v4234_v27, %v4234_v27  ;;  %v8339_v27 = vld [vmem:[#allocation4 + $0x2e0] sm:$0xf] }
 0x43f   : > { %v10955_v37 = vadd.f32 %v6434_v26, %v6346_v62  ;;  %v10957_v57 = vadd.f32 %v6303_v29, %v6215_v50  ;;  %v6348_v62 = vadd.f32 %v10693_v23, %v10737_v16  ;;  %v4265_v29 = vpack.c.bf16 %v4233_v3, %v4233_v3  ;;  %v8131_v26 = vld [vmem:[#allocation4 + $0x138] sm:$0xf]  ;;  %4393 = vst [vmem:[#allocation4 + $0x39c] sm:$0xf] %v4361_v53  ;;  %v10968_v23 = vpop.f32.mrf.mxu0  ;;  %v9141_v16 = vld [vmem:[#allocation4 + $0x300] sm:$0xf0] }
 0x440   : > { %v8132_v13 = vor.u32 %v9088_v30, %v8131_v26  ;;  %4298 = vst [vmem:[#allocation4 + $0x3e0] sm:$0xf] %v4266_v48  ;;  %v8125_v30 = vld [vmem:[#allocation4 + $0x154] sm:$0xf0]  ;;  %v4331_v26 = vld [vmem:[#allocation3 + $0x170] sm:$0xff] }
 0x441   : > { %6473 = vmatmul.bf16.gmra.mxu1 %v8304_v5  ;;  %6532 = vmatmul.bf16.gmra.mxu2 %v8092_v41  ;;  %4297 = vst [vmem:[#allocation4 + $0x3bc] sm:$0xf] %v4265_v29  ;;  %v4330_v41 = vld [vmem:[#allocation3 + $0x168] sm:$0xff] }
 0x442   : > { %4584 = vst [vmem:[#allocation4 + $0x380] sm:$0xf] %v4265_v29  ;;  %v8128_v29 = vor.u32 %v9083_v2, %v8125_v30 }
 0x443   : > { %4585 = vst [vmem:[#allocation4 + $0x3a4] sm:$0xf] %v4266_v48  ;;  %v8169_v48 = vld [vmem:[#allocation4 + $0x1a4] sm:$0xf0] }
 0x444   : > { %v6308_v17 = vpop.f32.mrf.mxu3  ;;  %v6217_v4 = vpop.f32.mrf.mxu2 }
 0x445   : > { %v6218_v35 = vadd.f32 %v6217_v4, %v10814_v31  ;;  %v6351_v31 = vadd.f32 %v10710_v9, %v10752_v32  ;;  %v8340_v4 = vor.u32 %v9141_v16, %v8339_v27  ;;  %v9254_v9 = vld [vmem:[%s11405_s4 + $0x208] sm:$0xff]  ;;  %v9097_v32 = vld [vmem:[#allocation4 + $0x1a0] sm:$0xf0] }
 0x446   : > { %v6436_v34 = vpop.f32.mrf.mxu1  ;;  %6782 = vmatpush.bf16.msra.mxu1 %v9254_v9  ;;  %v6356_v9 = vadd.f32 %v10746_v46, %v10782_v44  ;;  %v9106_v46 = vld [vmem:[#allocation4 + $0x1e8] sm:$0xf0] }
 0x447   : > { %v10964_v50 = vadd.f32 %v6436_v34, %v6348_v62  ;;  %6715 = vmatmul.bf16.gmra.mxu0 %v8136_v38  ;;  %v10966_v5 = vadd.f32 %v6306_v39, %v6218_v35  ;;  %v4362_v38 = vpack.c.bf16 %v4330_v41, %v4330_v41  ;;  %v9093_v34 = vld [vmem:[#allocation4 + $0x184] sm:$0xf]  ;;  %v10982_v30 = vpop.f32.mrf.mxu0  ;;  %v9102_v44 = vld [vmem:[#allocation4 + $0x1cc] sm:$0xf] }
 0x448   : > { %v4236_v41 = vld [vmem:[#allocation3 + $0x172] sm:$0xff] }
 0x449   : > { %6626 = vmatmul.bf16.gmra.mxu3 %v8132_v13  ;;  %4394 = vst [vmem:[#allocation4 + $0x3c0] sm:$0xf] %v4362_v38  ;;  %v4235_v13 = vld [vmem:[#allocation3 + $0x16a] sm:$0xff]  ;;  %v4268_v2 = vpack.c.bf16 %v4236_v41, %v4236_v41 }
 0x44b   : > { %4300 = vst [vmem:[#allocation4 + $0x428] sm:$0xf] %v4268_v2 }
 0x44c   : > { %v6311_v3 = vpop.f32.mrf.mxu3  ;;  %v6219_v63 = vpop.f32.mrf.mxu2  ;;  %4587 = vst [vmem:[#allocation4 + $0x3ec] sm:$0xf] %v4268_v2  ;;  %v8205_v2 = vld [vmem:[#allocation4 + $0x1ec] sm:$0xf0] }
 0x44d   : > { %v6220_v39 = vadd.f32 %v6219_v63, %v10830_v15  ;;  %v8172_v15 = vor.u32 %v9093_v34, %v8169_v48  ;;  %v4267_v63 = vpack.c.bf16 %v4235_v13, %v4235_v13  ;;  %v4332_v48 = vld [vmem:[#allocation3 + $0x180] sm:$0xff]  ;;  %v9092_v34 = vld [vmem:[#allocation4 + $0x17c] sm:$0xf] }
 0x44e   : > { %v6439_v10 = vpop.f32.mrf.mxu1  ;;  %v4364_v13 = vpack.c.bf16 %v4332_v48, %v4332_v48  ;;  %v6358_v48 = vadd.f32 %v10759_v43, %v10796_v61  ;;  %v9159_v43 = vld [vmem:[#allocation4 + $0x390] sm:$0xf0] }
 0x44f   : > { %v10973_v62 = vadd.f32 %v6439_v10, %v6351_v31  ;;  %v10975_v53 = vadd.f32 %v6308_v17, %v6220_v39  ;;  %v6353_v17 = vadd.f32 %v10725_v7, %v10764_v51  ;;  %v4363_v31 = vpack.c.bf16 %v4331_v26, %v4331_v26  ;;  %v8167_v39 = vld [vmem:[#allocation4 + $0x180] sm:$0xf]  ;;  %4299 = vst [vmem:[#allocation4 + $0x404] sm:$0xf] %v4267_v63  ;;  %v9150_v7 = vld [vmem:[#allocation4 + $0x348] sm:$0xf0] }
 0x450   : > { %4586 = vst [vmem:[#allocation4 + $0x3c8] sm:$0xf] %v4267_v63  ;;  %v8161_v26 = vld [vmem:[#allocation4 + $0x19c] sm:$0xf0] }
 0x451   : > { %6478 = vmatmul.bf16.gmra.mxu1 %v8340_v4  ;;  %6537 = vmatmul.bf16.gmra.mxu2 %v8128_v29  ;;  %v8168_v4 = vor.u32 %v9097_v32, %v8167_v39  ;;  %4395 = vst [vmem:[#allocation4 + $0x3e4] sm:$0xf] %v4363_v31  ;;  %v8164_v63 = vor.u32 %v9092_v34, %v8161_v26  ;;  %v4333_v39 = vld [vmem:[#allocation3 + $0x188] sm:$0xff]  ;;  %v8203_v26 = vld [vmem:[#allocation4 + $0x1c8] sm:$0xf] }
 0x452   : > { %4396 = vst [vmem:[#allocation4 + $0x408] sm:$0xf] %v4364_v13 }
 0x454   : > { %v6313_v35 = vpop.f32.mrf.mxu3  ;;  %v6222_v16 = vpop.f32.mrf.mxu2 }
 0x455   : > { %v6223_v10 = vadd.f32 %v6222_v16, %v10855_v59  ;;  %v10994_v16 = vpop.f32.mrf.mxu0 }
 0x456   : > { %v6441_v38 = vpop.f32.mrf.mxu1 }
 0x457   : > { %v10985_v27 = vadd.f32 %v6441_v38, %v6353_v17  ;;  %6720 = vmatmul.bf16.gmra.mxu0 %v8172_v15  ;;  %v10987_v29 = vadd.f32 %v6311_v3, %v6223_v10  ;;  %v8375_v3 = vld [vmem:[#allocation4 + $0x328] sm:$0xf]  ;;  %v8208_v10 = vor.u32 %v9102_v44, %v8205_v2  ;;  %v9101_v2 = vld [vmem:[#allocation4 + $0x1c4] sm:$0xf] }
 0x458   : > { %v8376_v17 = vor.u32 %v9150_v7, %v8375_v3  ;;  %v8197_v44 = vld [vmem:[#allocation4 + $0x1e4] sm:$0xf0] }
 0x459   : > { %6631 = vmatmul.bf16.gmra.mxu3 %v8168_v4  ;;  %v4237_v4 = vld [vmem:[#allocation3 + $0x182] sm:$0xff] }
 0x45c   : > { %v6316_v51 = vpop.f32.mrf.mxu3  ;;  %v6224_v59 = vpop.f32.mrf.mxu2 }
 0x45d   : > { %v6225_v15 = vadd.f32 %v6224_v59, %v10883_v19  ;;  %v4238_v19 = vld [vmem:[#allocation3 + $0x18a] sm:$0xff]  ;;  %v4269_v59 = vpack.c.bf16 %v4237_v4, %v4237_v4 }
 0x45e   : > { %v6444_v32 = vpop.f32.mrf.mxu1  ;;  %v4270_v13 = vpack.c.bf16 %v4238_v19, %v4238_v19 }
 0x45f   : > { %v10992_v41 = vadd.f32 %v6444_v32, %v6356_v9  ;;  %v10996_v31 = vadd.f32 %v6313_v35, %v6225_v15  ;;  %v4365_v9 = vpack.c.bf16 %v4333_v39, %v4333_v39  ;;  %v8204_v15 = vor.u32 %v9106_v46, %v8203_v26  ;;  %4301 = vst [vmem:[#allocation4 + $0x44c] sm:$0xf] %v4269_v59 }
 0x460   : > { %4302 = vst [vmem:[#allocation4 + $0x470] sm:$0xf] %v4270_v13 }
 0x461   : > { %6483 = vmatmul.bf16.gmra.mxu1 %v8376_v17  ;;  %6542 = vmatmul.bf16.gmra.mxu2 %v8164_v63  ;;  %4397 = vst [vmem:[#allocation4 + $0x42c] sm:$0xf] %v4365_v9  ;;  %v11005_v17 = vpop.f32.mrf.mxu0 }
 0x462   : > { %4588 = vst [vmem:[#allocation4 + $0x410] sm:$0xf] %v4269_v59  ;;  %v9115_v59 = vld [vmem:[#allocation4 + $0x230] sm:$0xf0] }
 0x463   : > { %4589 = vst [vmem:[#allocation4 + $0x434] sm:$0xf] %v4270_v13  ;;  %v6363_v13 = vadd.f32 %v10787_v47, %v10819_v18  ;;  %v9110_v47 = vld [vmem:[#allocation4 + $0x20c] sm:$0xf]  ;;  %v8233_v18 = vld [vmem:[#allocation4 + $0x22c] sm:$0xf0] }
 0x464   : > { %v6318_v38 = vpop.f32.mrf.mxu3  ;;  %v6227_v7 = vpop.f32.mrf.mxu2 }
 0x465   : > { %v6228_v34 = vadd.f32 %v6227_v7, %v10890_v36  ;;  %v6361_v36 = vadd.f32 %v10772_v22, %v10811_v24  ;;  %v9253_v7 = vld [vmem:[%s11405_s4 + $0x200] sm:$0xff]  ;;  %v8241_v22 = vld [vmem:[#allocation4 + $0x234] sm:$0xf0] }
 0x466   : > { %v6446_v35 = vpop.f32.mrf.mxu1  ;;  %6783 = vmatpush.bf16.msra.mxu1 %v9253_v7 }
 0x467   : > { %v11001_v32 = vadd.f32 %v6446_v35, %v6358_v48  ;;  %6725 = vmatmul.bf16.gmra.mxu0 %v8208_v10  ;;  %v11003_v3 = vadd.f32 %v6316_v51, %v6228_v34  ;;  %v8411_v51 = vld [vmem:[#allocation4 + $0x370] sm:$0xf]  ;;  %v8200_v48 = vor.u32 %v9101_v2, %v8197_v44  ;;  %v9168_v2 = vld [vmem:[#allocation4 + $0x3d8] sm:$0xf0] }
 0x468   : > { %v8412_v4 = vor.u32 %v9159_v43, %v8411_v51 }
 0x469   : > { %6636 = vmatmul.bf16.gmra.mxu3 %v8204_v15  ;;  %v11017_v24 = vpop.f32.mrf.mxu0  ;;  %v8239_v15 = vld [vmem:[#allocation4 + $0x210] sm:$0xf] }
 0x46c   : > { %v6321_v61 = vpop.f32.mrf.mxu3  ;;  %v6229_v63 = vpop.f32.mrf.mxu2 }
 0x46d   : > { %v6230_v10 = vadd.f32 %v6229_v63, %v10895_v25  ;;  %v9111_v25 = vld [vmem:[#allocation4 + $0x214] sm:$0xf] }
 0x46e   : > { %v6449_v46 = vpop.f32.mrf.mxu1 }
 0x46f   : > { %v11010_v39 = vadd.f32 %v6449_v46, %v6361_v36  ;;  %v11012_v19 = vadd.f32 %v6318_v38, %v6230_v10  ;;  %v8244_v38 = vor.u32 %v9111_v25, %v8241_v22  ;;  %v8240_v36 = vor.u32 %v9115_v59, %v8239_v15  ;;  %v8277_v25 = vld [vmem:[#allocation4 + $0x27c] sm:$0xf0]  ;;  %v8275_v15 = vld [vmem:[#allocation4 + $0x258] sm:$0xf] }
 0x470   : > { %v6366_v46 = vadd.f32 %v10804_v42, %v10842_v11  ;;  %v8236_v59 = vor.u32 %v9110_v47, %v8233_v18  ;;  %v9124_v42 = vld [vmem:[#allocation4 + $0x278] sm:$0xf0]  ;;  %v9119_v18 = vld [vmem:[#allocation4 + $0x254] sm:$0xf] }
 0x471   : > { %6488 = vmatmul.bf16.gmra.mxu1 %v8412_v4  ;;  %6547 = vmatmul.bf16.gmra.mxu2 %v8200_v48  ;;  %v11028_v51 = vpop.f32.mrf.mxu0  ;;  %v8447_v48 = vld [vmem:[#allocation4 + $0x3b8] sm:$0xf]  ;;  %v9120_v11 = vld [vmem:[#allocation4 + $0x25c] sm:$0xf] }
 0x472   : > { %v8448_v22 = vor.u32 %v9168_v2, %v8447_v48  ;;  %v8483_v48 = vld [vmem:[#allocation4 + $0x400] sm:$0xf] }
 0x474   : > { %v6323_v9 = vpop.f32.mrf.mxu3  ;;  %v6232_v35 = vpop.f32.mrf.mxu2 }
 0x475   : > { %v6233_v26 = vadd.f32 %v6232_v35, %v10902_v49  ;;  %v6368_v35 = vadd.f32 %v10817_v21, %v10867_v0  ;;  %v6371_v21 = vadd.f32 %v10844_v12, %v10886_v14  ;;  %v9133_v12 = vld [vmem:[#allocation4 + $0x2c0] sm:$0xf0] }
 0x476   : > { %v6451_v34 = vpop.f32.mrf.mxu1  ;;  %v9129_v14 = vld [vmem:[#allocation4 + $0x2a4] sm:$0xf] }
 0x477   : > { %v11022_v43 = vadd.f32 %v6451_v34, %v6363_v13  ;;  %6730 = vmatmul.bf16.gmra.mxu0 %v8244_v38  ;;  %v11024_v63 = vadd.f32 %v6321_v61, %v6233_v26  ;;  %v8280_v34 = vor.u32 %v9120_v11, %v8277_v25  ;;  %v8313_v11 = vld [vmem:[#allocation4 + $0x2c4] sm:$0xf0] }
 0x479   : > { %6641 = vmatmul.bf16.gmra.mxu3 %v8240_v36  ;;  %v11040_v2 = vpop.f32.mrf.mxu0 }
 0x47c   : > { %v6326_v44 = vpop.f32.mrf.mxu3  ;;  %v6234_v10 = vpop.f32.mrf.mxu2 }
 0x47d   : > { %v6235_v49 = vadd.f32 %v6234_v10, %v10912_v6  ;;  %v9177_v10 = vld [vmem:[#allocation4 + $0x420] sm:$0xf0] }
 0x47e   : > { %v6454_v4 = vpop.f32.mrf.mxu1 }
 0x47f   : > { %v11031_v7 = vadd.f32 %v6454_v4, %v6366_v46  ;;  %v11033_v61 = vadd.f32 %v6323_v9, %v6235_v49  ;;  %v8276_v9 = vor.u32 %v9124_v42, %v8275_v15  ;;  %v8269_v4 = vld [vmem:[#allocation4 + $0x274] sm:$0xf0]  ;;  %v8311_v15 = vld [vmem:[#allocation4 + $0x2a0] sm:$0xf] }
 0x481   : > { %6493 = vmatmul.bf16.gmra.mxu1 %v8448_v22  ;;  %6552 = vmatmul.bf16.gmra.mxu2 %v8236_v59  ;;  %v8484_v59 = vor.u32 %v9177_v10, %v8483_v48  ;;  %v11051_v42 = vpop.f32.mrf.mxu0 }
 0x484   : > { %v6328_v13 = vpop.f32.mrf.mxu3  ;;  %v6237_v38 = vpop.f32.mrf.mxu2 }
 0x485   : > { %v6238_v6 = vadd.f32 %v6237_v38, %v10919_v60  ;;  %v6373_v38 = vadd.f32 %v10878_v33, %v10893_v58  ;;  %v9128_v58 = vld [vmem:[#allocation4 + $0x29c] sm:$0xf] }
 0x486   : > { %v6456_v26 = vpop.f32.mrf.mxu1 }
 0x487   : > { %v11038_v36 = vadd.f32 %v6456_v26, %v6368_v35  ;;  %6735 = vmatmul.bf16.gmra.mxu0 %v8280_v34  ;;  %v11042_v46 = vadd.f32 %v6326_v44, %v6238_v6  ;;  %v8272_v44 = vor.u32 %v9119_v18, %v8269_v4  ;;  %v11427_v18 = vld [vmem:[#allocation8_spill] sm:$0xff]  ;;  %v11428_v4 = vld [vmem:[#allocation5_spill] sm:$0xff] }
 0x489   : > { %6646 = vmatmul.bf16.gmra.mxu3 %v8276_v9  ;;  %v8312_v9 = vor.u32 %v9133_v12, %v8311_v15 }
 0x48c   : > { %v6607_v47 = vpop.f32.mrf.mxu3  ;;  %v6239_v0 = vpop.f32.mrf.mxu2 }
 0x48d   : > { %v6240_v60 = vadd.f32 %v6239_v0, %v10926_v45  ;;  %v8316_v45 = vor.u32 %v9129_v14, %v8313_v11  ;;  %v9186_v0 = vld [vmem:[#allocation4 + $0x468] sm:$0xf0] }
 0x48e   : > { %v6459_v49 = vpop.f32.mrf.mxu1 }
 0x48f   : > { %v11047_v22 = vadd.f32 %v6459_v49, %v6371_v21  ;;  %v11049_v25 = vadd.f32 %v6328_v13, %v6240_v60  ;;  %v11060_v21 = vpop.f32.mrf.mxu0  ;;  %v6376_v49 = vadd.f32 %v11428_v4, %v11427_v18  ;;  %v8305_v60 = vld [vmem:[#allocation4 + $0x2bc] sm:$0xf0] }
 0x490   : > { %v8308_v14 = vor.u32 %v9128_v58, %v8305_v60 }
 0x491   : > { %6498 = vmatmul.bf16.gmra.mxu1 %v8484_v59  ;;  %6557 = vmatmul.bf16.gmra.mxu2 %v8272_v44  ;;  %v8519_v44 = vld [vmem:[#allocation4 + $0x448] sm:$0xf] }
 0x492   : > { %v8520_v12 = vor.u32 %v9186_v0, %v8519_v44  ;;  %v11433_v44 = vld [vmem:[#allocation10_spill] sm:$0xff] }
 0x494   : > { %v6609_v35 = vpop.f32.mrf.mxu3  ;;  %v6518_v34 = vpop.f32.mrf.mxu2 }
 0x495   : > { %v6519_v6 = vadd.f32 %v6518_v34, %v10936_v56  ;;  %v9142_v34 = vld [vmem:[#allocation4 + $0x308] sm:$0xf0] }
 0x496   : > { %v6461_v26 = vpop.f32.mrf.mxu1 }
 0x497   : > { %v11056_v13 = vadd.f32 %v6461_v26, %v6373_v38  ;;  %6740 = vmatmul.bf16.gmra.mxu0 %v8316_v45  ;;  %v11058_v10 = vadd.f32 %v6607_v47, %v6519_v6  ;;  %v8349_v38 = vld [vmem:[#allocation4 + $0x30c] sm:$0xf0]  ;;  %v9138_v45 = vld [vmem:[#allocation4 + $0x2ec] sm:$0xf]  ;;  %v11071_v4 = vpop.f32.mrf.mxu0 }
 0x498   : > { %v11430_v26 = vld [vmem:[#allocation7_spill] sm:$0xff]  ;;  %v11431_v6 = vld [vmem:[#allocation6_spill] sm:$0xff]  ;;  %v8352_v18 = vor.u32 %v9138_v45, %v8349_v38  ;;  %v9137_v45 = vld [vmem:[#allocation4 + $0x2e4] sm:$0xf] }
 0x499   : > { %6651 = vmatmul.bf16.gmra.mxu3 %v8312_v9  ;;  %v6378_v15 = vadd.f32 %v11431_v6, %v11430_v26  ;;  %v8341_v26 = vld [vmem:[#allocation4 + $0x304] sm:$0xf0] }
 0x49c   : > { %v6520_v33 = vpop.f32.mrf.mxu2  ;;  %v6612_v48 = vpop.f32.mrf.mxu3 }
 0x49d   : > { %v6521_v56 = vadd.f32 %v6520_v33, %v10946_v28  ;;  %v8347_v33 = vld [vmem:[#allocation4 + $0x2e8] sm:$0xf] }
 0x49e   : > { %v6464_v59 = vpop.f32.mrf.mxu1  ;;  %v8348_v58 = vor.u32 %v9142_v34, %v8347_v33  ;;  %v9151_v33 = vld [vmem:[#allocation4 + $0x350] sm:$0xf0] }
 0x49f   : > { %v11065_v11 = vadd.f32 %v6464_v59, %v6376_v49  ;;  %v11067_v47 = vadd.f32 %v6609_v35, %v6521_v56  ;;  %v7995_v59 = vld [vmem:[#allocation4 + $0x20] sm:$0xf]  ;;  %v9053_v56 = vld [vmem:[#allocation4 + $0x40] sm:$0xf0] }
 0x4a1   : > { %11429 = vst [vmem:[#allocation8_spill] sm:$0xff] %v11065_v11  ;;  %6503 = vmatmul.bf16.gmra.mxu1 %v8520_v12  ;;  %6562 = vmatmul.bf16.gmra.mxu2 %v8308_v14  ;;  %v11434_v12 = vld [vmem:[#allocation9_spill] sm:$0xff] }
 0x4a2   : > { %v6381_v14 = vadd.f32 %v11434_v12, %v11433_v44  ;;  %v11435_v44 = vld [vmem:[#allocation11_spill] sm:$0xff] }
 0x4a3   : > { %v6383_v12 = vadd.f32 %v11435_v44, %v10922_v52  ;;  %v6386_v52 = vadd.f32 %v10924_v40, %v10929_v55  ;;  %v8421_v44 = vld [vmem:[#allocation4 + $0x39c] sm:$0xf0]  ;;  %v6388_v40 = vadd.f32 %v10933_v20, %v10938_v54  ;;  %v9155_v54 = vld [vmem:[#allocation4 + $0x374] sm:$0xf] }
 0x4a4   : > { %v6523_v9 = vpop.f32.mrf.mxu2  ;;  %v6614_v35 = vpop.f32.mrf.mxu3 }
 0x4a5   : > { %v6524_v49 = vadd.f32 %v6523_v9, %v10955_v37 }
 0x4a6   : > { %v6466_v28 = vpop.f32.mrf.mxu1 }
 0x4a7   : > { %v11074_v0 = vadd.f32 %v6466_v28, %v6378_v15  ;;  %6745 = vmatmul.bf16.gmra.mxu0 %v8352_v18  ;;  %v11076_v60 = vadd.f32 %v6612_v48, %v6524_v49  ;;  %v7996_v15 = vor.u32 %v9053_v56, %v7995_v59  ;;  %v11083_v28 = vpop.f32.mrf.mxu0  ;;  %v8344_v48 = vor.u32 %v9137_v45, %v8341_v26  ;;  %v8385_v49 = vld [vmem:[#allocation4 + $0x354] sm:$0xf0]  ;;  %v8383_v59 = vld [vmem:[#allocation4 + $0x330] sm:$0xf] }
 0x4a9   : > { %11432 = vst [vmem:[#allocation5_spill] sm:$0xff] %v11074_v0  ;;  %6656 = vmatmul.bf16.gmra.mxu3 %v8348_v58  ;;  %v9147_v58 = vld [vmem:[#allocation4 + $0x334] sm:$0xf] }
 0x4aa   : > { %v8388_v11 = vor.u32 %v9147_v58, %v8385_v49  ;;  %v8377_v49 = vld [vmem:[#allocation4 + $0x34c] sm:$0xf0] }
 0x4ac   : > { %v6525_v38 = vpop.f32.mrf.mxu2  ;;  %v6617_v18 = vpop.f32.mrf.mxu3 }
 0x4ad   : > { %v6526_v37 = vadd.f32 %v6525_v38, %v10964_v50 }
 0x4ae   : > { %v6469_v6 = vpop.f32.mrf.mxu1 }
 0x4af   : > { %v11081_v9 = vadd.f32 %v6469_v6, %v6381_v14  ;;  %v11085_v34 = vadd.f32 %v6614_v35, %v6526_v37  ;;  %v8384_v35 = vor.u32 %v9151_v33, %v8383_v59  ;;  %v11094_v45 = vpop.f32.mrf.mxu0  ;;  %v8031_v6 = vld [vmem:[#allocation4 + $0x68] sm:$0xf]  ;;  %v9062_v37 = vld [vmem:[#allocation4 + $0x88] sm:$0xf0] }
 0x4b1   : > { %6784 = vmatmul.bf16.vlgmr.msra.gmra.mxu1 %v7996_v15  ;;  %6567 = vmatmul.bf16.gmra.mxu2 %v8344_v48  ;;  %v9146_v48 = vld [vmem:[#allocation4 + $0x32c] sm:$0xf] }
 0x4b2   : > { %v8380_v33 = vor.u32 %v9146_v48, %v8377_v49  ;;  %v8067_v48 = vld [vmem:[#allocation4 + $0xb0] sm:$0xf]  ;;  %v9071_v49 = vld [vmem:[#allocation4 + $0xd0] sm:$0xf0] }
 0x4b4   : > { %v6528_v0 = vpop.f32.mrf.mxu2  ;;  %v6619_v26 = vpop.f32.mrf.mxu3 }
 0x4b5   : > { %v6529_v14 = vadd.f32 %v6528_v0, %v10973_v62 }
 0x4b6   : > { %v6471_v50 = vpop.f32.mrf.mxu1 }
 0x4b7   : > { %v11090_v56 = vadd.f32 %v6471_v50, %v6383_v12  ;;  %6750 = vmatmul.bf16.gmra.mxu0 %v8388_v11  ;;  %v11092_v38 = vadd.f32 %v6617_v18, %v6529_v14  ;;  %v8032_v11 = vor.u32 %v9062_v37, %v8031_v6  ;;  %v11103_v12 = vpop.f32.mrf.mxu0  ;;  %v9160_v50 = vld [vmem:[#allocation4 + $0x398] sm:$0xf0]  ;;  %v8419_v6 = vld [vmem:[#allocation4 + $0x378] sm:$0xf] }
 0x4b8   : > { %v9156_v14 = vld [vmem:[#allocation4 + $0x37c] sm:$0xf]  ;;  %v8420_v37 = vor.u32 %v9160_v50, %v8419_v6 }
 0x4b9   : > { %6661 = vmatmul.bf16.gmra.mxu3 %v8384_v35  ;;  %v8424_v35 = vor.u32 %v9156_v14, %v8421_v44 }
 0x4bc   : > { %v6530_v15 = vpop.f32.mrf.mxu2  ;;  %v6622_v59 = vpop.f32.mrf.mxu3 }
 0x4bd   : > { %v6531_v0 = vadd.f32 %v6530_v15, %v10985_v27 }
 0x4be   : > { %v6474_v62 = vpop.f32.mrf.mxu1 }
 0x4bf   : > { %v11099_v58 = vadd.f32 %v6474_v62, %v6386_v52  ;;  %v11101_v18 = vadd.f32 %v6619_v26, %v6531_v0  ;;  %v11436_v62 = vld [vmem:[#allocation12_spill] sm:$0xff] }
 0x4c0   : > { %v6391_v0 = vadd.f32 %v11436_v62, %v10950_v8  ;;  %v9165_v8 = vld [vmem:[#allocation4 + $0x3c4] sm:$0xf] }
 0x4c1   : > { %6789 = vmatmul.bf16.gmra.mxu1 %v8032_v11  ;;  %6572 = vmatmul.bf16.gmra.mxu2 %v8380_v33  ;;  %v8413_v11 = vld [vmem:[#allocation4 + $0x394] sm:$0xf0] }
 0x4c4   : > { %v6533_v55 = vpop.f32.mrf.mxu2  ;;  %v6624_v50 = vpop.f32.mrf.mxu3 }
 0x4c5   : > { %v6534_v52 = vadd.f32 %v6533_v55, %v10992_v41  ;;  %v11115_v41 = vpop.f32.mrf.mxu0 }
 0x4c6   : > { %v6476_v27 = vpop.f32.mrf.mxu1 }
 0x4c7   : > { %v11108_v26 = vadd.f32 %v6476_v27, %v6388_v40  ;;  %6755 = vmatmul.bf16.gmra.mxu0 %v8424_v35  ;;  %v11110_v15 = vadd.f32 %v6622_v59, %v6534_v52  ;;  %v8068_v40 = vor.u32 %v9071_v49, %v8067_v48  ;;  %v8416_v59 = vor.u32 %v9155_v54, %v8413_v11  ;;  %v8457_v35 = vld [vmem:[#allocation4 + $0x3e4] sm:$0xf0]  ;;  %v9169_v27 = vld [vmem:[#allocation4 + $0x3e0] sm:$0xf0]  ;;  %v8103_v48 = vld [vmem:[#allocation4 + $0xf8] sm:$0xf] }
 0x4c8   : > { %v6393_v52 = vadd.f32 %v10959_v1, %v10957_v57  ;;  %v8460_v6 = vor.u32 %v9165_v8, %v8457_v35  ;;  %v9080_v49 = vld [vmem:[#allocation4 + $0x118] sm:$0xf0]  ;;  %v6396_v54 = vadd.f32 %v10968_v23, %v10966_v5  ;;  %v9178_v35 = vld [vmem:[#allocation4 + $0x428] sm:$0xf0]  ;;  %v6398_v8 = vadd.f32 %v10982_v30, %v10975_v53  ;;  %v8491_v5 = vld [vmem:[#allocation4 + $0x408] sm:$0xf] }
 0x4c9   : > { %6666 = vmatmul.bf16.gmra.mxu3 %v8420_v37  ;;  %v9164_v11 = vld [vmem:[#allocation4 + $0x3bc] sm:$0xf]  ;;  %v8104_v57 = vor.u32 %v9080_v49, %v8103_v48  ;;  %v6401_v49 = vadd.f32 %v10994_v16, %v10987_v29 }
 0x4cc   : > { %v6535_v20 = vpop.f32.mrf.mxu2 }
 0x4cd   : > { %v6536_v44 = vadd.f32 %v6535_v20, %v11001_v32  ;;  %v8455_v32 = vld [vmem:[#allocation4 + $0x3c0] sm:$0xf]  ;;  %v11125_v20 = vpop.f32.mrf.mxu0 }
 0x4ce   : > { %v6479_v33 = vpop.f32.mrf.mxu1 }
 0x4cf   : > { %v11117_v14 = vadd.f32 %v6479_v33, %v6391_v0  ;;  %v11119_v55 = vadd.f32 %v6624_v50, %v6536_v44  ;;  %v8456_v0 = vor.u32 %v9169_v27, %v8455_v32  ;;  %v8449_v33 = vld [vmem:[#allocation4 + $0x3dc] sm:$0xf0]  ;;  %v9174_v27 = vld [vmem:[#allocation4 + $0x40c] sm:$0xf] }
 0x4d0   : > { %v8452_v1 = vor.u32 %v9164_v11, %v8449_v33  ;;  %v8139_v32 = vld [vmem:[#allocation4 + $0x140] sm:$0xf]  ;;  %v8485_v11 = vld [vmem:[#allocation4 + $0x424] sm:$0xf0] }
 0x4d1   : > { %6794 = vmatmul.bf16.gmra.mxu1 %v8068_v40  ;;  %6577 = vmatmul.bf16.gmra.mxu2 %v8416_v59  ;;  %v8493_v40 = vld [vmem:[#allocation4 + $0x42c] sm:$0xf0] }
 0x4d5   : > { %v11131_v59 = vpop.f32.mrf.mxu0 }
 0x4d6   : > { %v6481_v37 = vpop.f32.mrf.mxu1 }
 0x4d7   : > { %v11123_v62 = vadd.f32 %v6481_v37, %v6393_v52  ;;  %6760 = vmatmul.bf16.gmra.mxu0 %v8460_v6  ;;  %v8496_v52 = vor.u32 %v9174_v27, %v8493_v40  ;;  %v8492_v37 = vor.u32 %v9178_v35, %v8491_v5  ;;  %v8527_v40 = vld [vmem:[#allocation4 + $0x450] sm:$0xf]  ;;  %v9187_v35 = vld [vmem:[#allocation4 + $0x470] sm:$0xf0]  ;;  %v8175_v5 = vld [vmem:[#allocation4 + $0x188] sm:$0xf] }
 0x4d9   : > { %6671 = vmatmul.bf16.gmra.mxu3 %v8456_v0  ;;  %v9089_v0 = vld [vmem:[#allocation4 + $0x160] sm:$0xf0] }
 0x4da   : > { %v8140_v53 = vor.u32 %v9089_v0, %v8139_v32  ;;  %v6406_v32 = vadd.f32 %v11017_v24, %v11003_v3  ;;  %v9182_v0 = vld [vmem:[#allocation4 + $0x44c] sm:$0xf]  ;;  %v6411_v3 = vadd.f32 %v11040_v2, %v11024_v63  ;;  %v6418_v2 = vadd.f32 %v11071_v4, %v11049_v25  ;;  %v11183_v25 = vld [vmem:[%s11407_s6] ss:$0 sm:$0xff] }
 0x4dd   : > { %v11137_v48 = vpop.f32.mrf.mxu0 }
 0x4de   : > { %v6484_v44 = vpop.f32.mrf.mxu1 }
 0x4df   : > { %v11129_v50 = vadd.f32 %v6484_v44, %v6396_v54  ;;  %v9173_v54 = vld [vmem:[#allocation4 + $0x404] sm:$0xf] }
 0x4e0   : > { %v8488_v30 = vor.u32 %v9173_v54, %v8485_v11 }
 0x4e1   : > { %6799 = vmatmul.bf16.gmra.mxu1 %v8104_v57  ;;  %6582 = vmatmul.bf16.gmra.mxu2 %v8452_v1  ;;  %v9183_v57 = vld [vmem:[#allocation4 + $0x454] sm:$0xf]  ;;  %v8529_v1 = vld [vmem:[#allocation4 + $0x474] sm:$0xf0] }
 0x4e2   : > { %v8532_v27 = vor.u32 %v9183_v57, %v8529_v1  ;;  %v8211_v57 = vld [vmem:[#allocation4 + $0x1d0] sm:$0xf]  ;;  %v9107_v1 = vld [vmem:[#allocation4 + $0x1f0] sm:$0xf0] }
 0x4e5   : > { %v11145_v29 = vpop.f32.mrf.mxu0 }
 0x4e6   : > { %v6486_v6 = vpop.f32.mrf.mxu1 }
 0x4e7   : > { %v11135_v23 = vadd.f32 %v6486_v6, %v6398_v8  ;;  %6765 = vmatmul.bf16.gmra.mxu0 %v8496_v52  ;;  %v6403_v8 = vadd.f32 %v11005_v17, %v10996_v31  ;;  %v8528_v52 = vor.u32 %v9187_v35, %v8527_v40  ;;  %v6408_v17 = vadd.f32 %v11028_v51, %v11012_v19  ;;  %v8247_v19 = vld [vmem:[#allocation4 + $0x218] sm:$0xf]  ;;  %v9116_v51 = vld [vmem:[#allocation4 + $0x238] sm:$0xf0] }
 0x4e8   : > { %v8212_v35 = vor.u32 %v9107_v1, %v8211_v57  ;;  %v8248_v63 = vor.u32 %v9116_v51, %v8247_v19  ;;  %v9296_v19 = vld [vmem:[#allocation2 + $0x21] sm:$0xff] }
 0x4e9   : > { %6676 = vmatmul.bf16.gmra.mxu3 %v8492_v37  ;;  %v9098_v37 = vld [vmem:[#allocation4 + $0x1a8] sm:$0xf0] }
 0x4ee   : > { %v6489_v33 = vpop.f32.mrf.mxu1 }
 0x4ef   : > { %v11141_v44 = vadd.f32 %v6489_v33, %v6401_v49  ;;  %v8521_v49 = vld [vmem:[#allocation4 + $0x46c] sm:$0xf0]  ;;  %v8176_v33 = vor.u32 %v9098_v37, %v8175_v5 }
 0x4f0   : > { %v8524_v31 = vor.u32 %v9182_v0, %v8521_v49  ;;  %v6697_v49 = vadd.f32 %v11083_v28, %v11058_v10  ;;  %v9295_v10 = vld [vmem:[#allocation2 + $0x19] sm:$0xff] }
 0x4f1   : > { %6804 = vmatmul.bf16.gmra.mxu1 %v8140_v53  ;;  %6587 = vmatmul.bf16.gmra.mxu2 %v8488_v30 }
 0x4f6   : > { %v6491_v6 = vpop.f32.mrf.mxu1 }
 0x4f7   : > { %v11147_v16 = vadd.f32 %v6491_v6, %v6403_v8  ;;  %6770 = vmatmul.bf16.gmra.mxu0 %v8532_v27  ;;  %v6413_v27 = vadd.f32 %v11051_v42, %v11033_v61  ;;  %v6416_v6 = vadd.f32 %v11060_v21, %v11042_v46  ;;  %v8283_v61 = vld [vmem:[#allocation4 + $0x260] sm:$0xf]  ;;  %v9125_v42 = vld [vmem:[#allocation4 + $0x280] sm:$0xf0] }
 0x4f8   : > { %v11178_v46 = vld [vmem:[%s11406_s5] ss:$0 sm:$0xff]  ;;  %v8284_v4 = vor.u32 %v9125_v42, %v8283_v61 }
 0x4f9   : > { %6681 = vmatmul.bf16.gmra.mxu3 %v8528_v52 }
 0x4fe   : > { %v6494_v54 = vpop.f32.mrf.mxu1 }
 0x4ff   : > { %v11151_v11 = vadd.f32 %v6494_v54, %v6406_v32 }
 0x501   : > { %6809 = vmatmul.bf16.gmra.mxu1 %v8176_v33  ;;  %6592 = vmatmul.bf16.gmra.mxu2 %v8524_v31 }
 0x506   : > { %v6496_v53 = vpop.f32.mrf.mxu1 }
 0x507   : > { %v11155_v30 = vadd.f32 %v6496_v53, %v6408_v17  ;;  %v11187_v17 = vpop.f32.mrf.mxu2  ;;  %v6699_v53 = vadd.f32 %v11094_v45, %v11067_v47  ;;  %v9134_v47 = vld [vmem:[#allocation4 + $0x2c8] sm:$0xf0]  ;;  %v11203_v45 = vpop.f32.mrf.mxu0 }
 0x50e   : > { %v6499_v24 = vpop.f32.mrf.mxu1 }
 0x50f   : > { %v11159_v40 = vadd.f32 %v6499_v24, %v6411_v3 }
 0x511   : > { %6814 = vmatmul.bf16.gmra.mxu1 %v8212_v35  ;;  %v11200_v35 = vpop.f32.mrf.mxu3 }
 0x516   : > { %v6501_v8 = vpop.f32.mrf.mxu1 }
 0x517   : > { %v11163_v52 = vadd.f32 %v6501_v8, %v6413_v27  ;;  %v8319_v8 = vld [vmem:[#allocation4 + $0x2a8] sm:$0xf] }
 0x518   : > { %v8320_v61 = vor.u32 %v9134_v47, %v8319_v8 }
 0x51e   : > { %v6504_v5 = vpop.f32.mrf.mxu1 }
 0x51f   : > { %v11167_v37 = vadd.f32 %v6504_v5, %v6416_v6  ;;  %v6702_v6 = vadd.f32 %v11103_v12, %v11076_v60  ;;  %v11207_v5 = vpop.f32.mrf.mxu2  ;;  %v6704_v60 = vadd.f32 %v11115_v41, %v11085_v34  ;;  %v6707_v34 = vadd.f32 %v11125_v20, %v11092_v38 }
 0x520   : > { %v6709_v38 = vadd.f32 %v11131_v59, %v11101_v18  ;;  %v6712_v18 = vadd.f32 %v11137_v48, %v11110_v15  ;;  %v6714_v48 = vadd.f32 %v11145_v29, %v11119_v55  ;;  %v6541_v55 = vadd.f32 %v11207_v5, %v11022_v43  ;;  %v9302_v29 = vld [vmem:[#allocation2 + $0x69] sm:$0xff]  ;;  %v9303_v5 = vld [vmem:[#allocation2 + $0x79] sm:$0xff] }
 0x521   : > { %6819 = vmatmul.bf16.gmra.mxu1 %v8248_v63 }
 0x526   : > { %v6506_v32 = vpop.f32.mrf.mxu1 }
 0x527   : > { %v11171_v0 = vadd.f32 %v6506_v32, %v6418_v2 }
 0x52e   : > { %v6785_v21 = vpop.f32.mrf.mxu1 }
 0x52f   : > { %v6786_v54 = vadd.f32 %v6785_v21, %v6697_v49  ;;  %v11212_v21 = vpop.f32.mrf.mxu3 }
 0x531   : > { %v6869_v33 = vmul.f32 %v11178_v46, %v6786_v54  ;;  %6824 = vmatmul.bf16.gmra.mxu1 %v8284_v4  ;;  %v9297_v54 = vld [vmem:[#allocation2 + $0x31] sm:$0xff] }
 0x533   : > { %v6905_v31 = vadd.f32 %v11183_v25, %v6869_v33  ;;  %v11216_v33 = vpop.f32.mrf.mxu0 }
 0x535   : > { %v6937_v28 = vadd.f32 %v9295_v10, %v6905_v31 }
 0x536   : > { %v6787_v57 = vpop.f32.mrf.mxu1 }
 0x537   : > { %v6969_v1 = vmax.f32 %v6937_v28, 0.0  ;;  %v6788_v3 = vadd.f32 %v6787_v57, %v6699_v53  ;;  %v11218_v28 = vpop.f32.mrf.mxu2  ;;  %v11225_v41 = vpop.f32.mrf.mxu3 }
 0x539   : > { %7001 = vst [vmem:[%s11196_s15] sm:$0xff] %v6969_v1  ;;  %v6870_v24 = vmul.f32 %v11178_v46, %v6788_v3  ;;  %v8355_v1 = vld [vmem:[#allocation4 + $0x2f0] sm:$0xf]  ;;  %v9143_v3 = vld [vmem:[#allocation4 + $0x310] sm:$0xf0] }
 0x53b   : > { %v6906_v27 = vadd.f32 %v11183_v25, %v6870_v24  ;;  %v9298_v24 = vld [vmem:[#allocation2 + $0x39] sm:$0xff] }
 0x53d   : > { %v6938_v51 = vadd.f32 %v9296_v19, %v6906_v27 }
 0x53e   : > { %v6790_v63 = vpop.f32.mrf.mxu1 }
 0x53f   : > { %v6970_v2 = vmax.f32 %v6938_v51, 0.0  ;;  %v6791_v32 = vadd.f32 %v6790_v63, %v6702_v6  ;;  %v8356_v51 = vor.u32 %v9143_v3, %v8355_v1  ;;  %v11227_v6 = vpop.f32.mrf.mxu0  ;;  %v9300_v1 = vld [vmem:[#allocation2 + $0x51] sm:$0xff] }
 0x541   : > { %7002 = vst [vmem:[%s11196_s15 + $0x8] sm:$0xff] %v6970_v2  ;;  %v6871_v42 = vmul.f32 %v11178_v46, %v6791_v32  ;;  %6829 = vmatmul.bf16.gmra.mxu1 %v8320_v61  ;;  %v11231_v2 = vpop.f32.mrf.mxu2  ;;  %v9299_v61 = vld [vmem:[#allocation2 + $0x49] sm:$0xff] }
 0x543   : > { %v6907_v49 = vadd.f32 %v11183_v25, %v6871_v42 }
 0x545   : > { %v6939_v4 = vadd.f32 %v9297_v54, %v6907_v49 }
 0x546   : > { %v6792_v12 = vpop.f32.mrf.mxu1 }
 0x547   : > { %v6971_v31 = vmax.f32 %v6939_v4, 0.0  ;;  %v6793_v10 = vadd.f32 %v6792_v12, %v6704_v60  ;;  %v11236_v4 = vpop.f32.mrf.mxu3  ;;  %v11240_v12 = vpop.f32.mrf.mxu0 }
 0x549   : > { %7003 = vst [vmem:[%s11196_s15 + $0x10] sm:$0xff] %v6971_v31  ;;  %v6872_v53 = vmul.f32 %v11178_v46, %v6793_v10  ;;  %v11243_v10 = vpop.f32.mrf.mxu2 }
 0x54b   : > { %v6908_v57 = vadd.f32 %v11183_v25, %v6872_v53  ;;  %v8391_v53 = vld [vmem:[#allocation4 + $0x338] sm:$0xf] }
 0x54d   : > { %v6940_v27 = vadd.f32 %v9298_v24, %v6908_v57  ;;  %v9152_v57 = vld [vmem:[#allocation4 + $0x358] sm:$0xf0] }
 0x54e   : > { %v6795_v8 = vpop.f32.mrf.mxu1 }
 0x54f   : > { %v6972_v47 = vmax.f32 %v6940_v27, 0.0  ;;  %v6796_v19 = vadd.f32 %v6795_v8, %v6707_v34  ;;  %v8392_v34 = vor.u32 %v9152_v57, %v8391_v53 }
 0x551   : > { %7004 = vst [vmem:[%s11196_s15 + $0x18] sm:$0xff] %v6972_v47  ;;  %v6873_v63 = vmul.f32 %v11178_v46, %v6796_v19  ;;  %6834 = vmatmul.bf16.gmra.mxu1 %v8356_v51  ;;  %v11249_v47 = vpop.f32.mrf.mxu3  ;;  %v6539_v51 = vadd.f32 %v11187_v17, %v11010_v39 }
 0x553   : > { %v6909_v32 = vadd.f32 %v11183_v25, %v6873_v63  ;;  %v11254_v63 = vpop.f32.mrf.mxu0 }
 0x555   : > { %v6941_v42 = vadd.f32 %v9299_v61, %v6909_v32  ;;  %v9301_v32 = vld [vmem:[#allocation2 + $0x61] sm:$0xff]  ;;  %v11258_v61 = vpop.f32.mrf.mxu2 }
 0x556   : > { %v6797_v20 = vpop.f32.mrf.mxu1 }
 0x557   : > { %v6973_v49 = vmax.f32 %v6941_v42, 0.0  ;;  %v6798_v54 = vadd.f32 %v6797_v20, %v6709_v38 }
 0x559   : > { %7005 = vst [vmem:[%s11196_s15 + $0x20] sm:$0xff] %v6973_v49  ;;  %v6874_v60 = vmul.f32 %v11178_v46, %v6798_v54  ;;  %v6628_v49 = vadd.f32 %v11200_v35, %v6539_v51  ;;  %v11264_v17 = vpop.f32.mrf.mxu3 }
 0x55b   : > { %v6910_v31 = vadd.f32 %v11183_v25, %v6874_v60  ;;  %v8427_v60 = vld [vmem:[#allocation4 + $0x380] sm:$0xf]  ;;  %v6717_v57 = vadd.f32 %v11203_v45, %v6628_v49  ;;  %v6544_v45 = vadd.f32 %v11218_v28, %v11031_v7  ;;  %v8463_v28 = vld [vmem:[#allocation4 + $0x3c8] sm:$0xf]  ;;  %v9170_v49 = vld [vmem:[#allocation4 + $0x3e8] sm:$0xf0] }
 0x55d   : > { %v6942_v3 = vadd.f32 %v9300_v1, %v6910_v31  ;;  %v9161_v31 = vld [vmem:[#allocation4 + $0x3a0] sm:$0xf0] }
 0x55e   : > { %v6800_v59 = vpop.f32.mrf.mxu1 }
 0x55f   : > { %v6974_v24 = vmax.f32 %v6942_v3, 0.0  ;;  %v6801_v27 = vadd.f32 %v6800_v59, %v6712_v18  ;;  %v11269_v3 = vpop.f32.mrf.mxu0  ;;  %v8428_v59 = vor.u32 %v9161_v31, %v8427_v60 }
 0x561   : > { %7006 = vst [vmem:[%s11196_s15 + $0x28] sm:$0xff] %v6974_v24  ;;  %v6875_v8 = vmul.f32 %v11178_v46, %v6801_v27  ;;  %6839 = vmatmul.bf16.gmra.mxu1 %v8392_v34  ;;  %v11271_v24 = vpop.f32.mrf.mxu2  ;;  %v6630_v27 = vadd.f32 %v11212_v21, %v6541_v55  ;;  %v11280_v51 = vpop.f32.mrf.mxu3  ;;  %v6633_v21 = vadd.f32 %v11225_v41, %v6544_v45 }
 0x563   : > { %v6911_v19 = vadd.f32 %v11183_v25, %v6875_v8  ;;  %v6722_v60 = vadd.f32 %v11227_v6, %v6633_v21  ;;  %v6549_v6 = vadd.f32 %v11243_v10, %v11047_v22  ;;  %v6551_v22 = vadd.f32 %v11258_v61, %v11056_v13 }
 0x565   : > { %v6943_v15 = vadd.f32 %v9301_v32, %v6911_v19  ;;  %v6719_v19 = vadd.f32 %v11216_v33, %v6630_v27  ;;  %v6546_v33 = vadd.f32 %v11231_v2, %v11038_v36 }
 0x566   : > { %v6802_v42 = vpop.f32.mrf.mxu1 }
 0x567   : > { %v6975_v38 = vmax.f32 %v6943_v15, 0.0  ;;  %v6803_v20 = vadd.f32 %v6802_v42, %v6714_v48  ;;  %v11283_v42 = vpop.f32.mrf.mxu0 }
 0x569   : > { %7007 = vst [vmem:[%s11196_s15 + $0x30] sm:$0xff] %v6975_v38  ;;  %v6876_v54 = vmul.f32 %v11178_v46, %v6803_v20  ;;  %v11287_v20 = vpop.f32.mrf.mxu2 }
 0x56b   : > { %v6912_v39 = vadd.f32 %v11183_v25, %v6876_v54  ;;  %v9304_v54 = vld [vmem:[#allocation2 + $0x81] sm:$0xff] }
 0x56d   : > { %v6944_v53 = vadd.f32 %v9302_v29, %v6912_v39  ;;  %v8464_v29 = vor.u32 %v9170_v49, %v8463_v28 }
 0x56e   : > { %v6805_v1 = vpop.f32.mrf.mxu1 }
 0x56f   : > { %v6976_v35 = vmax.f32 %v6944_v53, 0.0  ;;  %v6806_v18 = vadd.f32 %v6805_v1, %v6717_v57  ;;  %v6644_v53 = vpop.f32.mrf.mxu3  ;;  %v6635_v57 = vadd.f32 %v11236_v4, %v6546_v33  ;;  %v6638_v4 = vadd.f32 %v11249_v47, %v6549_v6 }
 0x570   : > { %v6640_v33 = vadd.f32 %v11264_v17, %v6551_v22 }
 0x571   : > { %7008 = vst [vmem:[%s11196_s15 + $0x38] sm:$0xff] %v6976_v35  ;;  %v6877_v34 = vmul.f32 %v11178_v46, %v6806_v18  ;;  %6844 = vmatmul.bf16.gmra.mxu1 %v8428_v59  ;;  %v11296_v35 = vpop.f32.mrf.mxu0  ;;  %v6558_v2 = vpop.f32.mrf.mxu2  ;;  %v9305_v18 = vld [vmem:[#allocation2 + $0x91] sm:$0xff]  ;;  %v6724_v27 = vadd.f32 %v11240_v12, %v6635_v57  ;;  %v9306_v12 = vld [vmem:[#allocation2 + $0x99] sm:$0xff]  ;;  %v6727_v21 = vadd.f32 %v11254_v63, %v6638_v4 }
 0x573   : > { %v6913_v43 = vadd.f32 %v11183_v25, %v6877_v34 }
 0x575   : > { %v6945_v8 = vadd.f32 %v9303_v5, %v6913_v43 }
 0x576   : > { %v6807_v32 = vpop.f32.mrf.mxu1 }
 0x577   : > { %v6977_v15 = vmax.f32 %v6945_v8, 0.0  ;;  %v6808_v48 = vadd.f32 %v6807_v32, %v6719_v19  ;;  %v6647_v8 = vpop.f32.mrf.mxu3  ;;  %v8499_v32 = vld [vmem:[#allocation4 + $0x410] sm:$0xf] }
 0x579   : > { %7009 = vst [vmem:[%s11196_s15 + $0x40] sm:$0xff] %v6977_v15  ;;  %v6878_v38 = vmul.f32 %v11178_v46, %v6808_v48  ;;  %v9179_v15 = vld [vmem:[#allocation4 + $0x430] sm:$0xf0]  ;;  %v11308_v10 = vpop.f32.mrf.mxu0 }
 0x57a   : > { %v8500_v49 = vor.u32 %v9179_v15, %v8499_v32 }
 0x57b   : > { %v6914_v7 = vadd.f32 %v11183_v25, %v6878_v38  ;;  %v6560_v38 = vpop.f32.mrf.mxu2 }
 0x57d   : > { %v6946_v39 = vadd.f32 %v9304_v54, %v6914_v7 }
 0x57e   : > { %v6810_v41 = vpop.f32.mrf.mxu1 }
 0x57f   : > { %v6978_v31 = vmax.f32 %v6946_v39, 0.0  ;;  %v6811_v55 = vadd.f32 %v6810_v41, %v6722_v60  ;;  %v6649_v61 = vpop.f32.mrf.mxu3  ;;  %v11437_v39 = vld [vmem:[#allocation8_spill] sm:$0xff]  ;;  %v9307_v41 = vld [vmem:[#allocation2 + $0xa9] sm:$0xff] }
 0x580   : > { %v6554_v60 = vadd.f32 %v11271_v24, %v11437_v39  ;;  %v11438_v24 = vld [vmem:[#allocation5_spill] sm:$0xff] }
 0x581   : > { %7010 = vst [vmem:[%s11196_s15 + $0x48] sm:$0xff] %v6978_v31  ;;  %v6879_v1 = vmul.f32 %v11178_v46, %v6811_v55  ;;  %6849 = vmatmul.bf16.gmra.mxu1 %v8464_v29  ;;  %v6729_v31 = vadd.f32 %v11269_v3, %v6640_v33  ;;  %v6738_v29 = vpop.f32.mrf.mxu0 }
 0x583   : > { %v6915_v36 = vadd.f32 %v11183_v25, %v6879_v1  ;;  %v6563_v17 = vpop.f32.mrf.mxu2 }
 0x585   : > { %v6947_v59 = vadd.f32 %v9305_v18, %v6915_v36  ;;  %v6643_v36 = vadd.f32 %v11280_v51, %v6554_v60  ;;  %v8535_v18 = vld [vmem:[#allocation4 + $0x458] sm:$0xf] }
 0x586   : > { %v6812_v34 = vpop.f32.mrf.mxu1 }
 0x587   : > { %v6979_v43 = vmax.f32 %v6947_v59, 0.0  ;;  %v6813_v45 = vadd.f32 %v6812_v34, %v6724_v27  ;;  %v9188_v59 = vld [vmem:[#allocation4 + $0x478] sm:$0xf0]  ;;  %v6556_v34 = vadd.f32 %v11287_v20, %v11438_v24  ;;  %v6559_v20 = vadd.f32 %v6558_v2, %v11081_v9  ;;  %v9310_v9 = vld [vmem:[#allocation2 + $0xc9] sm:$0xff] }
 0x588   : > { %v8536_v4 = vor.u32 %v9188_v59, %v8535_v18  ;;  %v6564_v18 = vadd.f32 %v6563_v17, %v11099_v58 }
 0x589   : > { %7011 = vst [vmem:[%s11196_s15 + $0x50] sm:$0xff] %v6979_v43  ;;  %v6880_v5 = vmul.f32 %v11178_v46, %v6813_v45  ;;  %v9308_v43 = vld [vmem:[#allocation2 + $0xb1] sm:$0xff]  ;;  %v6732_v45 = vadd.f32 %v11283_v42, %v6643_v36  ;;  %v6645_v15 = vadd.f32 %v6644_v53, %v6556_v34  ;;  %v6741_v22 = vpop.f32.mrf.mxu0 }
 0x58b   : > { %v6916_v19 = vadd.f32 %v11183_v25, %v6880_v5  ;;  %v6652_v5 = vpop.f32.mrf.mxu3  ;;  %v6734_v42 = vadd.f32 %v11296_v35, %v6645_v15 }
 0x58d   : > { %v6948_v48 = vadd.f32 %v9306_v12, %v6916_v19 }
 0x58e   : > { %v6815_v47 = vpop.f32.mrf.mxu1 }
 0x58f   : > { %v6980_v7 = vmax.f32 %v6948_v48, 0.0  ;;  %v6816_v28 = vadd.f32 %v6815_v47, %v6727_v21  ;;  %v6565_v48 = vpop.f32.mrf.mxu2  ;;  %v9309_v47 = vld [vmem:[#allocation2 + $0xc1] sm:$0xff] }
 0x591   : > { %7012 = vst [vmem:[%s11196_s15 + $0x58] sm:$0xff] %v6980_v7  ;;  %v6881_v54 = vmul.f32 %v11178_v46, %v6816_v28  ;;  %6854 = vmatmul.bf16.gmra.mxu1 %v8500_v49  ;;  %v6743_v39 = vpop.f32.mrf.mxu0 }
 0x593   : > { %v6917_v13 = vadd.f32 %v11183_v25, %v6881_v54  ;;  %v6654_v53 = vpop.f32.mrf.mxu3  ;;  %v6648_v54 = vadd.f32 %v6647_v8, %v6559_v20 }
 0x595   : > { %v6949_v63 = vadd.f32 %v9307_v41, %v6917_v13 }
 0x596   : > { %v6817_v55 = vpop.f32.mrf.mxu1 }
 0x597   : > { %v6981_v57 = vmax.f32 %v6949_v63, 0.0  ;;  %v6818_v1 = vadd.f32 %v6817_v55, %v6729_v31  ;;  %v6568_v41 = vpop.f32.mrf.mxu2  ;;  %v6561_v63 = vadd.f32 %v6560_v38, %v11090_v56  ;;  %v6737_v31 = vadd.f32 %v11308_v10, %v6648_v54 }
 0x599   : > { %7013 = vst [vmem:[%s11196_s15 + $0x60] sm:$0xff] %v6981_v57  ;;  %v6882_v6 = vmul.f32 %v11178_v46, %v6818_v1  ;;  %v6650_v1 = vadd.f32 %v6649_v61, %v6561_v63  ;;  %v6746_v59 = vpop.f32.mrf.mxu0 }
 0x59b   : > { %v6918_v27 = vadd.f32 %v11183_v25, %v6882_v6  ;;  %v6657_v36 = vpop.f32.mrf.mxu3  ;;  %v6739_v38 = vadd.f32 %v6738_v29, %v6650_v1 }
 0x59d   : > { %v6950_v3 = vadd.f32 %v9308_v43, %v6918_v27  ;;  %v9311_v27 = vld [vmem:[#allocation2 + $0xd9] sm:$0xff] }
 0x59e   : > { %v6820_v19 = vpop.f32.mrf.mxu1 }
 0x59f   : > { %v6982_v32 = vmax.f32 %v6950_v3, 0.0  ;;  %v6821_v51 = vadd.f32 %v6820_v19, %v6732_v45  ;;  %v6570_v24 = vpop.f32.mrf.mxu2  ;;  %v6653_v3 = vadd.f32 %v6652_v5, %v6564_v18  ;;  %v6566_v19 = vadd.f32 %v6565_v48, %v11108_v26 }
 0x5a1   : > { %7014 = vst [vmem:[%s11196_s15 + $0x68] sm:$0xff] %v6982_v32  ;;  %v6883_v12 = vmul.f32 %v11178_v46, %v6821_v51  ;;  %6859 = vmatmul.bf16.gmra.mxu1 %v8536_v4  ;;  %v9312_v32 = vld [vmem:[#allocation2 + $0xe1] sm:$0xff]  ;;  %v6742_v17 = vadd.f32 %v6741_v22, %v6653_v3  ;;  %v6748_v15 = vpop.f32.mrf.mxu0  ;;  %v6655_v20 = vadd.f32 %v6654_v53, %v6566_v19 }
 0x5a3   : > { %v6919_v21 = vadd.f32 %v11183_v25, %v6883_v12  ;;  %v6659_v4 = vpop.f32.mrf.mxu3  ;;  %v6744_v26 = vadd.f32 %v6743_v39, %v6655_v20 }
 0x5a5   : > { %v6951_v7 = vadd.f32 %v9309_v47, %v6919_v21 }
 0x5a6   : > { %v6822_v28 = vpop.f32.mrf.mxu1 }
 0x5a7   : > { %v6983_v49 = vmax.f32 %v6951_v7, 0.0  ;;  %v6823_v33 = vadd.f32 %v6822_v28, %v6734_v42  ;;  %v6573_v21 = vpop.f32.mrf.mxu2  ;;  %v6569_v7 = vadd.f32 %v6568_v41, %v11117_v14  ;;  %v9313_v42 = vld [vmem:[#allocation2 + $0xf1] sm:$0xff] }
 0x5a8   : > { %v6574_v18 = vadd.f32 %v6573_v21, %v11129_v50 }
 0x5a9   : > { %7015 = vst [vmem:[%s11196_s15 + $0x70] sm:$0xff] %v6983_v49  ;;  %v6884_v13 = vmul.f32 %v11178_v46, %v6823_v33  ;;  %v6658_v54 = vadd.f32 %v6657_v36, %v6569_v7 }
 0x5ab   : > { %v6920_v60 = vadd.f32 %v11183_v25, %v6884_v13  ;;  %v6662_v48 = vpop.f32.mrf.mxu3  ;;  %v6751_v13 = vpop.f32.mrf.mxu0  ;;  %v6747_v41 = vadd.f32 %v6746_v59, %v6658_v54 }
 0x5ad   : > { %v6952_v2 = vadd.f32 %v9310_v9, %v6920_v60  ;;  %v6571_v9 = vadd.f32 %v6570_v24, %v11123_v62 }
 0x5ae   : > { %v6825_v35 = vpop.f32.mrf.mxu1 }
 0x5af   : > { %v6984_v55 = vmax.f32 %v6952_v2, 0.0  ;;  %v6826_v57 = vadd.f32 %v6825_v35, %v6737_v31  ;;  %v6575_v60 = vpop.f32.mrf.mxu2  ;;  %v9314_v2 = vld [vmem:[#allocation2 + $0xf9] sm:$0xff] }
 0x5b1   : > { %7016 = vst [vmem:[%s11196_s15 + $0x78] sm:$0xff] %v6984_v55  ;;  %v6885_v8 = vmul.f32 %v11178_v46, %v6826_v57  ;;  %v6660_v57 = vadd.f32 %v6659_v4, %v6571_v9  ;;  %v9316_v4 = vld [vmem:[#allocation2 + $0x111] sm:$0xff] }
 0x5b3   : > { %v6921_v6 = vadd.f32 %v11183_v25, %v6885_v8  ;;  %v6664_v55 = vpop.f32.mrf.mxu3  ;;  %v6753_v8 = vpop.f32.mrf.mxu0 }
 0x5b5   : > { %v6953_v56 = vadd.f32 %v9311_v27, %v6921_v6  ;;  %v9315_v27 = vld [vmem:[#allocation2 + $0x109] sm:$0xff] }
 0x5b6   : > { %v6827_v34 = vpop.f32.mrf.mxu1 }
 0x5b7   : > { %v6985_v10 = vmax.f32 %v6953_v56, 0.0  ;;  %v6828_v43 = vadd.f32 %v6827_v34, %v6739_v38  ;;  %v6578_v6 = vpop.f32.mrf.mxu2  ;;  %v6749_v56 = vadd.f32 %v6748_v15, %v6660_v57  ;;  %v6663_v34 = vadd.f32 %v6662_v48, %v6574_v18  ;;  %v9319_v57 = vld [vmem:[#allocation2 + $0x139] sm:$0xff] }
 0x5b8   : > { %v6579_v20 = vadd.f32 %v6578_v6, %v11141_v44 }
 0x5b9   : > { %7017 = vst [vmem:[%s11196_s15 + $0x80] sm:$0xff] %v6985_v10  ;;  %v6886_v61 = vmul.f32 %v11178_v46, %v6828_v43  ;;  %v6752_v50 = vadd.f32 %v6751_v13, %v6663_v34  ;;  %v9318_v13 = vld [vmem:[#allocation2 + $0x129] sm:$0xff]  ;;  %v9320_v34 = vld [vmem:[#allocation2 + $0x141] sm:$0xff] }
 0x5bb   : > { %v6922_v45 = vadd.f32 %v11183_v25, %v6886_v61  ;;  %v6667_v43 = vpop.f32.mrf.mxu3  ;;  %v6576_v61 = vadd.f32 %v6575_v60, %v11135_v23 }
 0x5bd   : > { %v6954_v58 = vadd.f32 %v9312_v32, %v6922_v45  ;;  %v6756_v45 = vpop.f32.mrf.mxu0  ;;  %v6665_v15 = vadd.f32 %v6664_v55, %v6576_v61 }
 0x5be   : > { %v6830_v51 = vpop.f32.mrf.mxu1 }
 0x5bf   : > { %v6986_v29 = vmax.f32 %v6954_v58, 0.0  ;;  %v6831_v12 = vadd.f32 %v6830_v51, %v6742_v17  ;;  %v6580_v32 = vpop.f32.mrf.mxu2 }
 0x5c0   : > { %v6581_v54 = vadd.f32 %v6580_v32, %v11147_v16 }
 0x5c1   : > { %7018 = vst [vmem:[%s11196_s15 + $0x88] sm:$0xff] %v6986_v29  ;;  %v6887_v5 = vmul.f32 %v11178_v46, %v6831_v12 }
 0x5c3   : > { %v6923_v47 = vadd.f32 %v11183_v25, %v6887_v5  ;;  %v6669_v21 = vpop.f32.mrf.mxu3  ;;  %v9317_v5 = vld [vmem:[#allocation2 + $0x121] sm:$0xff] }
 0x5c5   : > { %v6955_v28 = vadd.f32 %v9313_v42, %v6923_v47  ;;  %v6754_v47 = vadd.f32 %v6753_v8, %v6665_v15  ;;  %v6758_v42 = vpop.f32.mrf.mxu0 }
 0x5c6   : > { %v6832_v49 = vpop.f32.mrf.mxu1 }
 0x5c7   : > { %v6987_v22 = vmax.f32 %v6955_v28, 0.0  ;;  %v6833_v33 = vadd.f32 %v6832_v49, %v6744_v26  ;;  %v6583_v48 = vpop.f32.mrf.mxu2  ;;  %v6668_v49 = vadd.f32 %v6667_v43, %v6579_v20 }
 0x5c8   : > { %v6584_v55 = vadd.f32 %v6583_v48, %v11151_v11 }
 0x5c9   : > { %7019 = vst [vmem:[%s11196_s15 + $0x90] sm:$0xff] %v6987_v22  ;;  %v6888_v53 = vmul.f32 %v11178_v46, %v6833_v33  ;;  %v6757_v44 = vadd.f32 %v6756_v45, %v6668_v49 }
 0x5cb   : > { %v6924_v63 = vadd.f32 %v11183_v25, %v6888_v53  ;;  %v6672_v60 = vpop.f32.mrf.mxu3 }
 0x5cd   : > { %v6956_v14 = vadd.f32 %v9314_v2, %v6924_v63 }
 0x5ce   : > { %v6835_v31 = vpop.f32.mrf.mxu1 }
 0x5cf   : > { %v6988_v39 = vmax.f32 %v6956_v14, 0.0  ;;  %v6836_v35 = vadd.f32 %v6835_v31, %v6747_v41  ;;  %v6670_v14 = vadd.f32 %v6669_v21, %v6581_v54  ;;  %v6761_v41 = vpop.f32.mrf.mxu0 }
 0x5d1   : > { %7020 = vst [vmem:[%s11196_s15 + $0x98] sm:$0xff] %v6988_v39  ;;  %v6889_v1 = vmul.f32 %v11178_v46, %v6836_v35  ;;  %v6585_v39 = vpop.f32.mrf.mxu2 }
 0x5d3   : > { %v6925_v36 = vadd.f32 %v11183_v25, %v6889_v1  ;;  %v6759_v1 = vadd.f32 %v6758_v42, %v6670_v14  ;;  %v6674_v18 = vpop.f32.mrf.mxu3  ;;  %v9322_v42 = vld [vmem:[#allocation2 + $0x159] sm:$0xff] }
 0x5d5   : > { %v6957_v62 = vadd.f32 %v9315_v27, %v6925_v36  ;;  %v6673_v27 = vadd.f32 %v6672_v60, %v6584_v55 }
 0x5d6   : > { %v6837_v38 = vpop.f32.mrf.mxu1 }
 0x5d7   : > { %v6989_v59 = vmax.f32 %v6957_v62, 0.0  ;;  %v6838_v24 = vadd.f32 %v6837_v38, %v6749_v56  ;;  %v6763_v56 = vpop.f32.mrf.mxu0 }
 0x5d9   : > { %7021 = vst [vmem:[%s11196_s15 + $0xa0] sm:$0xff] %v6989_v59  ;;  %v6890_v10 = vmul.f32 %v11178_v46, %v6838_v24  ;;  %v6588_v59 = vpop.f32.mrf.mxu2  ;;  %v6586_v24 = vadd.f32 %v6585_v39, %v11155_v30 }
 0x5db   : > { %v6926_v3 = vadd.f32 %v11183_v25, %v6890_v10  ;;  %v6762_v10 = vadd.f32 %v6761_v41, %v6673_v27  ;;  %v6675_v45 = vadd.f32 %v6674_v18, %v6586_v24 }
 0x5dd   : > { %v6958_v19 = vadd.f32 %v9316_v4, %v6926_v3  ;;  %v6764_v30 = vadd.f32 %v6763_v56, %v6675_v45  ;;  %v9326_v45 = vld [vmem:[#allocation2 + $0x189] sm:$0xff] }
 0x5de   : > { %v6840_v58 = vpop.f32.mrf.mxu1 }
 0x5df   : > { %v6990_v17 = vmax.f32 %v6958_v19, 0.0  ;;  %v6841_v51 = vadd.f32 %v6840_v58, %v6752_v50  ;;  %v6677_v19 = vpop.f32.mrf.mxu3  ;;  %v6766_v32 = vpop.f32.mrf.mxu0  ;;  %v6589_v58 = vadd.f32 %v6588_v59, %v11159_v40 }
 0x5e1   : > { %7022 = vst [vmem:[%s11196_s15 + $0xa8] sm:$0xff] %v6990_v17  ;;  %v6891_v29 = vmul.f32 %v11178_v46, %v6841_v51  ;;  %v9321_v17 = vld [vmem:[#allocation2 + $0x151] sm:$0xff]  ;;  %v6590_v15 = vpop.f32.mrf.mxu2  ;;  %v6678_v20 = vadd.f32 %v6677_v19, %v6589_v58 }
 0x5e3   : > { %v6927_v12 = vadd.f32 %v11183_v25, %v6891_v29  ;;  %v6767_v40 = vadd.f32 %v6766_v32, %v6678_v20 }
 0x5e5   : > { %v6959_v23 = vadd.f32 %v9317_v5, %v6927_v12 }
 0x5e6   : > { %v6842_v7 = vpop.f32.mrf.mxu1 }
 0x5e7   : > { %v6991_v28 = vmax.f32 %v6959_v23, 0.0  ;;  %v6843_v26 = vadd.f32 %v6842_v7, %v6754_v47  ;;  %v6679_v47 = vpop.f32.mrf.mxu3  ;;  %v6591_v7 = vadd.f32 %v6590_v15, %v11163_v52 }
 0x5e9   : > { %7023 = vst [vmem:[%s11196_s15 + $0xb0] sm:$0xff] %v6991_v28  ;;  %v6892_v22 = vmul.f32 %v11178_v46, %v6843_v26  ;;  %v6680_v54 = vadd.f32 %v6679_v47, %v6591_v7 }
 0x5eb   : > { %v6928_v33 = vadd.f32 %v11183_v25, %v6892_v22  ;;  %v6768_v22 = vpop.f32.mrf.mxu0 }
 0x5ed   : > { %v6960_v53 = vadd.f32 %v9318_v13, %v6928_v33  ;;  %v6593_v33 = vpop.f32.mrf.mxu2 }
 0x5ee   : > { %v6845_v63 = vpop.f32.mrf.mxu1  ;;  %v6594_v60 = vadd.f32 %v6593_v33, %v11167_v37 }
 0x5ef   : > { %v6992_v9 = vmax.f32 %v6960_v53, 0.0  ;;  %v6846_v2 = vadd.f32 %v6845_v63, %v6757_v44  ;;  %v6682_v44 = vpop.f32.mrf.mxu3  ;;  %v9323_v63 = vld [vmem:[#allocation2 + $0x169] sm:$0xff] }
 0x5f0   : > { %v6683_v39 = vadd.f32 %v6682_v44, %v6594_v60 }
 0x5f1   : > { %7024 = vst [vmem:[%s11196_s15 + $0xb8] sm:$0xff] %v6992_v9  ;;  %v6893_v31 = vmul.f32 %v11178_v46, %v6846_v2  ;;  %v6769_v9 = vadd.f32 %v6768_v22, %v6680_v54 }
 0x5f3   : > { %v6929_v35 = vadd.f32 %v11183_v25, %v6893_v31  ;;  %v6771_v31 = vpop.f32.mrf.mxu0 }
 0x5f5   : > { %v6961_v16 = vadd.f32 %v9319_v57, %v6929_v35  ;;  %v6595_v55 = vpop.f32.mrf.mxu2 }
 0x5f6   : > { %v6847_v8 = vpop.f32.mrf.mxu1 }
 0x5f7   : > { %v6993_v36 = vmax.f32 %v6961_v16, 0.0  ;;  %v6848_v6 = vadd.f32 %v6847_v8, %v6759_v1  ;;  %v6772_v16 = vadd.f32 %v6771_v31, %v6683_v39  ;;  %v6596_v1 = vadd.f32 %v6595_v55, %v11171_v0  ;;  %v9324_v8 = vld [vmem:[#allocation2 + $0x171] sm:$0xff] }
 0x5f9   : > { %7025 = vst [vmem:[%s11196_s15 + $0xc0] sm:$0xff] %v6993_v36  ;;  %v6894_v62 = vmul.f32 %v11178_v46, %v6848_v6  ;;  %v6684_v36 = vpop.f32.mrf.mxu3 }
 0x5fb   : > { %v6930_v38 = vadd.f32 %v11183_v25, %v6894_v62  ;;  %v6685_v62 = vadd.f32 %v6684_v36, %v6596_v1 }
 0x5fd   : > { %v6962_v11 = vadd.f32 %v9320_v34, %v6930_v38  ;;  %v6773_v38 = vpop.f32.mrf.mxu0  ;;  %v9325_v34 = vld [vmem:[#allocation2 + $0x181] sm:$0xff] }
 0x5fe   : > { %v6850_v43 = vpop.f32.mrf.mxu1  ;;  %v6774_v24 = vadd.f32 %v6773_v38, %v6685_v62 }
 0x5ff   : > { %v6994_v3 = vmax.f32 %v6962_v11, 0.0  ;;  %v6851_v61 = vadd.f32 %v6850_v43, %v6762_v10 }
 0x601   : > { %7026 = vst [vmem:[%s11196_s15 + $0xc8] sm:$0xff] %v6994_v3  ;;  %v6895_v4 = vmul.f32 %v11178_v46, %v6851_v61 }
 0x603   : > { %v6931_v50 = vadd.f32 %v11183_v25, %v6895_v4 }
 0x605   : > { %v6963_v51 = vadd.f32 %v9321_v17, %v6931_v50 }
 0x606   : > { %v6852_v29 = vpop.f32.mrf.mxu1 }
 0x607   : > { %v6995_v12 = vmax.f32 %v6963_v51, 0.0  ;;  %v6853_v21 = vadd.f32 %v6852_v29, %v6764_v30 }
 0x609   : > { %7027 = vst [vmem:[%s11196_s15 + $0xd0] sm:$0xff] %v6995_v12  ;;  %v6896_v5 = vmul.f32 %v11178_v46, %v6853_v21 }
 0x60b   : > { %v6932_v23 = vadd.f32 %v11183_v25, %v6896_v5 }
 0x60d   : > { %v6964_v28 = vadd.f32 %v9322_v42, %v6932_v23 }
 0x60e   : > { %v6855_v26 = vpop.f32.mrf.mxu1 }
 0x60f   : > { %v6996_v48 = vmax.f32 %v6964_v28, 0.0  ;;  %v6856_v49 = vadd.f32 %v6855_v26, %v6767_v40 }
 0x611   : > { %7028 = vst [vmem:[%s11196_s15 + $0xd8] sm:$0xff] %v6996_v48  ;;  %v6897_v13 = vmul.f32 %v11178_v46, %v6856_v49 }
 0x613   : > { %v6933_v53 = vadd.f32 %v11183_v25, %v6897_v13 }
 0x615   : > { %v6965_v52 = vadd.f32 %v9323_v63, %v6933_v53 }
 0x616   : > { %v6857_v2 = vpop.f32.mrf.mxu1 }
 0x617   : > { %v6997_v14 = vmax.f32 %v6965_v52, 0.0  ;;  %v6858_v41 = vadd.f32 %v6857_v2, %v6769_v9 }
 0x619   : > { %7029 = vst [vmem:[%s11196_s15 + $0xe0] sm:$0xff] %v6997_v14  ;;  %v6898_v35 = vmul.f32 %v11178_v46, %v6858_v41 }
 0x61b   : > { %v6934_v57 = vadd.f32 %v11183_v25, %v6898_v35 }
 0x61d   : > { %v6966_v37 = vadd.f32 %v9324_v8, %v6934_v57 }
 0x61e   : > { %v6860_v6 = vpop.f32.mrf.mxu1 }
 0x61f   : > { %v6998_v18 = vmax.f32 %v6966_v37, 0.0  ;;  %v6861_v27 = vadd.f32 %v6860_v6, %v6772_v16 }
 0x621   : > { %7030 = vst [vmem:[%s11196_s15 + $0xe8] sm:$0xff] %v6998_v18  ;;  %v6899_v56 = vmul.f32 %v11178_v46, %v6861_v27 }
 0x623   : > { %v6935_v59 = vadd.f32 %v11183_v25, %v6899_v56 }
 0x625   : > { %v6967_v11 = vadd.f32 %v9325_v34, %v6935_v59 }
 0x626   : > { %v6862_v10 = vpop.f32.mrf.mxu1 }
 0x627   : > { %v6999_v0 = vmax.f32 %v6967_v11, 0.0  ;;  %v6863_v43 = vadd.f32 %v6862_v10, %v6774_v24 }
 0x629   : > { %7031 = vst [vmem:[%s11196_s15 + $0xf0] sm:$0xff] %v6999_v0  ;;  %v6900_v3 = vmul.f32 %v11178_v46, %v6863_v43 }
 0x62b   : > { %v6936_v61 = vadd.f32 %v11183_v25, %v6900_v3 }
 0x62d   : > { %v6968_v4 = vadd.f32 %v9326_v45, %v6936_v61 }
 0x62f   : > { %v7000_v19 = vmax.f32 %v6968_v4, 0.0 }
 0x631   : > { %7032 = vst [vmem:[%s11196_s15 + $0xf8] sm:$0xff] %v7000_v19 }
 0x632 PF: > { %s17_s24 = sadd.s32 1, %s9333_s24  }
 0x633   : > { %p14_p4 = scmp.ge.s32.totalorder %s17_s24, 4  }
 0x635   :  { %16 = sbr.rel (!%p14_p4) target bundleno = 1 (0x1), region = 82 }

</bundles_post_ra>
